<compile_context>
chip_gen: v7x
topology: tpu7x:2x2x1
jax: 0.10.0
libtpu: 0.0.40
codegen_flags: <defaults>
</compile_context>

<pallas_src>
import functools

import jax
import jax.numpy as jnp
from jax import lax
from jax.experimental import pallas as pl
from jax.experimental.pallas import tpu as pltpu


# ------------------------------ fused kernel -------------------------------

def _upblock_kernel(xup_ref, skip_ref, cm_ref, wup_ref, bup_ref,
                    w1_ref, b1_ref, w2_ref, b2_ref, w3_ref, b3_ref,
                    w4_ref, b4_ref, out_ref, *, K, H2, W2):
    # xup_ref : (1, H2+K-1, W2+K-1, Cin)  zero-dilated + edge-padded input
    # skip_ref: (1, H2*W2, Cout)          flattened skip connection
    # cm_ref  : (H2*W2, K)                column-edge validity masks
    # w*_ref  : matmul-ready weights, rows in (kh, kw, ci) order
    # b*_ref  : (1, C) biases
    # out_ref : (1, H2*W2, Cout)
    HW = H2 * W2
    p = K // 2

    def dense(a, w_ref, b_ref, relu):
        # one MXU matmul + bias (+ ReLU); f32 accumulation.
        y = jnp.dot(a, w_ref[...], preferred_element_type=jnp.float32)
        y = y + b_ref[...]
        return jnp.maximum(y, 0.0) if relu else y

    # ---------------- up = ConvTranspose2d(x);  out0 = up + skip ------------
    # Valid KxK conv (flipped weight) over the pre-dilated/padded input.
    # im2col: concatenate the K*K taps along the lane axis -> single matmul.
    Cin = xup_ref.shape[3]
    taps = [xup_ref[0, kh:kh + H2, kw:kw + W2, :].reshape(HW, Cin)
            for kh in range(K) for kw in range(K)]
    patches = jnp.concatenate(taps, axis=1) if len(taps) > 1 else taps[0]
    out0 = dense(patches, wup_ref, bup_ref, relu=False)
    out0 = out0 + skip_ref[0]                         # fused skip add

    # ---------------- ResidualBlock (conv1x1, convK, convK, conv1x1) --------
    cm = cm_ref[...]                                  # (HW, K)

    def conv_same(a, w_ref, b_ref):
        # 'same' KxK conv on the flattened (HW, C) activation, entirely in
        # registers/VMEM.  Row halo: p*W2+p zero rows concatenated on each
        # side, tap (kh, kw) is then the length-HW slice at offset kh*W2+kw.
        # Column halo: row-wrapped lanes are zeroed with the cm masks.
        if K == 1:
            return dense(a, w_ref, b_ref, relu=True)
        C = a.shape[1]
        z = jnp.zeros((p * W2 + p, C), jnp.float32)
        ap = jnp.concatenate([z, a, z], axis=0)       # (HW + 2*(p*W2+p), C)
        tps = []
        for kh in range(K):
            for kw in range(K):
                t = ap[kh * W2 + kw: kh * W2 + kw + HW, :]
                if kw != p:                           # edge columns -> zero
                    t = t * cm[:, kw:kw + 1]
                tps.append(t)
        return dense(jnp.concatenate(tps, axis=1), w_ref, b_ref, relu=True)

    t = dense(out0, w1_ref, b1_ref, relu=True)        # 1x1 conv + ReLU
    t = conv_same(t, w2_ref, b2_ref)                  # KxK conv + ReLU
    t = conv_same(t, w3_ref, b3_ref)                  # KxK conv + ReLU
    t = dense(t, w4_ref, b4_ref, relu=True)           # 1x1 conv + ReLU
    out_ref[0] = (t + out0).astype(out_ref.dtype)     # residual add


# ------------------------------ forward wrapper ----------------------------

def upblock_forward(params, x_nchw, skip_nchw):
    N, Cin, H, W = x_nchw.shape
    K = params["up_w"].shape[2]
    Cout = params["up_b"].shape[0]
    mid = params["c1_b"].shape[0]
    p = K // 2
    H2, W2 = 2 * H, 2 * W
    HW = H2 * W2

    # --- glue (tiny XLA ops): layout + the single zero-dilating pad ---------
    x = jnp.transpose(x_nchw, (0, 2, 3, 1))                    # NCHW -> NHWC
    skip = jnp.transpose(skip_nchw, (0, 2, 3, 1)).reshape(N, HW, Cout)
    lo = K - 1 - p
    hi = K - 1 - p + 1                                         # output_padding=1
    xup = lax.pad(x, jnp.array(0, x.dtype),
                  ((0, 0, 0), (lo, hi, 1), (lo, hi, 1), (0, 0, 0)))
    Hp, Wp = xup.shape[1], xup.shape[2]

    # --- matmul-ready weights: rows in (kh, kw, ci) order --------------------
    def conv_mat(w_oihw):                                      # OIHW -> (K*K*I, O)
        co, ci, kk, _ = w_oihw.shape
        return jnp.transpose(w_oihw, (2, 3, 1, 0)).reshape(kk * kk * ci, co)

    # ConvTranspose2d (IOHW) -> equivalent forward-conv weight, flipped HWIO
    w_up = jnp.transpose(jnp.flip(params["up_w"], (2, 3)),
                         (2, 3, 0, 1)).reshape(K * K * Cin, Cout)
    w1, w2 = conv_mat(params["c1_w"]), conv_mat(params["c2_w"])
    w3, w4 = conv_mat(params["c3_w"]), conv_mat(params["c4_w"])
    vec = lambda v: v.reshape(1, -1).astype(jnp.float32)

    # --- column-edge masks for the in-kernel halo shifts (tiny constants) ----
    col = jnp.arange(HW, dtype=jnp.int32) % W2
    off = jnp.arange(K, dtype=jnp.int32) - p
    cm = ((col[:, None] + off[None, :] >= 0) &
          (col[:, None] + off[None, :] < W2)).astype(jnp.float32)   # (HW, K)

    full = lambda s: pl.BlockSpec(s, lambda n: (0,) * len(s))
    kernel = functools.partial(_upblock_kernel, K=K, H2=H2, W2=W2)

    y_flat = pl.pallas_call(
        kernel,
        out_shape=jax.ShapeDtypeStruct((N, HW, Cout), x.dtype),
        grid=(N,),
        in_specs=[
            pl.BlockSpec((1, Hp, Wp, Cin), lambda n: (n, 0, 0, 0)),
            pl.BlockSpec((1, HW, Cout), lambda n: (n, 0, 0)),
            full((HW, K)),
            full((K * K * Cin, Cout)), full((1, Cout)),
            full((Cout, mid)), full((1, mid)),
            full((K * K * mid, mid)), full((1, mid)),
            full((K * K * mid, mid)), full((1, mid)),
            full((mid, Cout)), full((1, Cout)),
        ],
        out_specs=pl.BlockSpec((1, HW, Cout), lambda n: (n, 0, 0)),
        compiler_params=pltpu.CompilerParams(
            dimension_semantics=("parallel",)),
    )(xup, skip, cm, w_up, vec(params["up_b"]),
      w1, vec(params["c1_b"]), w2, vec(params["c2_b"]),
      w3, vec(params["c3_b"]), w4, vec(params["c4_b"]))

    y = y_flat.reshape(N, H2, W2, Cout)
    return jnp.transpose(y, (0, 3, 1, 2))                      # NHWC -> NCHW


# ---------------------------- params + reference ---------------------------

def init_params(key, in_ch, out_ch, k):
    ks = jax.random.split(key, 10)

    def nrm(kk, shape, scale=0.1):
        return scale * jax.random.normal(kk, shape, jnp.float32)

    mid = out_ch * 2
    return dict(
        up_w=nrm(ks[0], (in_ch, out_ch, k, k)),   # ConvTranspose2d: IOHW
        up_b=nrm(ks[1], (out_ch,)),
        c1_w=nrm(ks[2], (mid, out_ch, 1, 1)),     # Conv2d: OIHW
        c1_b=nrm(ks[3], (mid,)),
        c2_w=nrm(ks[4], (mid, mid, k, k)),
        c2_b=nrm(ks[5], (mid,)),
        c3_w=nrm(ks[6], (mid, mid, k, k)),
        c3_b=nrm(ks[7], (mid,)),
        c4_w=nrm(ks[8], (out_ch, mid, 1, 1)),
        c4_b=nrm(ks[9], (out_ch,)),
    )


def _ref_conv_same(x, w_oihw, b, relu):
    K = w_oihw.shape[2]
    p = K // 2
    y = lax.conv_general_dilated(
        x, jnp.transpose(w_oihw, (2, 3, 1, 0)), window_strides=(1, 1),
        padding=[(p, p), (p, p)],
        dimension_numbers=("NHWC", "HWIO", "NHWC"))
    y = y + b[None, None, None, :]
    return jnp.maximum(y, 0.0) if relu else y


def _ref_conv_transpose(x, w_iohw, b):
    K = w_iohw.shape[2]
    p = K // 2
    w = jnp.transpose(jnp.flip(w_iohw, axis=(2, 3)), (2, 3, 0, 1))
    y = lax.conv_general_dilated(
        x, w, window_strides=(1, 1),
        padding=[(K - 1 - p, K - 1 - p + 1)] * 2, lhs_dilation=(2, 2),
        dimension_numbers=("NHWC", "HWIO", "NHWC"))
    return y + b[None, None, None, :]


def upblock_reference(params, x_nchw, skip_nchw):
    x = jnp.transpose(x_nchw, (0, 2, 3, 1))
    skip = jnp.transpose(skip_nchw, (0, 2, 3, 1))
    out = _ref_conv_transpose(x, params["up_w"], params["up_b"]) + skip
    t = _ref_conv_same(out, params["c1_w"], params["c1_b"], True)
    t = _ref_conv_same(t, params["c2_w"], params["c2_b"], True)
    t = _ref_conv_same(t, params["c3_w"], params["c3_b"], True)
    t = _ref_conv_same(t, params["c4_w"], params["c4_b"], True) + out
    return jnp.transpose(t, (0, 3, 1, 2))


# ----------------------------------- main ----------------------------------

if __name__ == "__main__":
    in_ch, out_ch, k = 4, 4, 3
    key = jax.random.PRNGKey(0)
    kp, kx, ksk = jax.random.split(key, 3)
    params = init_params(kp, in_ch, out_ch, k)

    # x is the low-resolution feature map; skip is the 2x-resolution skip.
    x = jax.random.normal(kx, (2, in_ch, 8, 8), jnp.float32)
    skip = jax.random.normal(ksk, (2, out_ch, 16, 16), jnp.float32)

    y = jax.jit(upblock_forward)(params, x, skip)
    y = jax.block_until_ready(y)

    assert y.shape == (2, out_ch, 16, 16), y.shape
    y_ref = upblock_reference(params, x, skip)
    err = float(jnp.max(jnp.abs(y - y_ref)))
    assert jnp.allclose(y, y_ref, atol=1e-4, rtol=1e-4), f"max abs err {err}"

    print("KERNEL_OK")
</pallas_src>

<mosaic_0001>
module attributes {stable_mosaic.version = 11 : i64} {
  func.func @_upblock_kernel(%arg0: i32, %arg1: memref<1x18x18x4xf32, #tpu.memory_space<vmem>>, %arg2: memref<1x256x4xf32, #tpu.memory_space<vmem>>, %arg3: memref<256x3xf32, #tpu.memory_space<vmem>>, %arg4: memref<36x4xf32, #tpu.memory_space<vmem>>, %arg5: memref<1x4xf32, #tpu.memory_space<vmem>>, %arg6: memref<4x8xf32, #tpu.memory_space<vmem>>, %arg7: memref<1x8xf32, #tpu.memory_space<vmem>>, %arg8: memref<72x8xf32, #tpu.memory_space<vmem>>, %arg9: memref<1x8xf32, #tpu.memory_space<vmem>>, %arg10: memref<72x8xf32, #tpu.memory_space<vmem>>, %arg11: memref<1x8xf32, #tpu.memory_space<vmem>>, %arg12: memref<8x4xf32, #tpu.memory_space<vmem>>, %arg13: memref<1x4xf32, #tpu.memory_space<vmem>>, %arg14: memref<1x256x4xf32, #tpu.memory_space<vmem>>) attributes {dimension_semantics = [#tpu.dimension_semantics<parallel>], iteration_bounds = array<i64: 2>, scalar_prefetch = 0 : i64, scratch_operands = 0 : i64, tpu.core_type = #tpu.core_type<tc>, window_params = [{transform_indices = @transform_0, window_bounds = array<i64: 1, 18, 18, 4>}, {transform_indices = @transform_1, window_bounds = array<i64: 1, 256, 4>}, {pipeline_mode = #tpu.pipeline_mode<synchronous>, transform_indices = @transform_2, window_bounds = array<i64: 256, 3>}, {pipeline_mode = #tpu.pipeline_mode<synchronous>, transform_indices = @transform_3, window_bounds = array<i64: 36, 4>}, {pipeline_mode = #tpu.pipeline_mode<synchronous>, transform_indices = @transform_4, window_bounds = array<i64: 1, 4>}, {pipeline_mode = #tpu.pipeline_mode<synchronous>, transform_indices = @transform_5, window_bounds = array<i64: 4, 8>}, {pipeline_mode = #tpu.pipeline_mode<synchronous>, transform_indices = @transform_6, window_bounds = array<i64: 1, 8>}, {pipeline_mode = #tpu.pipeline_mode<synchronous>, transform_indices = @transform_7, window_bounds = array<i64: 72, 8>}, {pipeline_mode = #tpu.pipeline_mode<synchronous>, transform_indices = @transform_8, window_bounds = array<i64: 1, 8>}, {pipeline_mode = #tpu.pipeline_mode<synchronous>, transform_indices = @transform_9, window_bounds = array<i64: 72, 8>}, {pipeline_mode = #tpu.pipeline_mode<synchronous>, transform_indices = @transform_10, window_bounds = array<i64: 1, 8>}, {pipeline_mode = #tpu.pipeline_mode<synchronous>, transform_indices = @transform_11, window_bounds = array<i64: 8, 4>}, {pipeline_mode = #tpu.pipeline_mode<synchronous>, transform_indices = @transform_12, window_bounds = array<i64: 1, 4>}, {transform_indices = @transform_13, window_bounds = array<i64: 1, 256, 4>}]} {
    %c0 = arith.constant 0 : index
    %c0_0 = arith.constant 0 : index
    %c0_1 = arith.constant 0 : index
    %c0_2 = arith.constant 0 : index
    %0 = vector.load %arg1[%c0, %c0_0, %c0_1, %c0_2] : memref<1x18x18x4xf32, #tpu.memory_space<vmem>>, vector<1x16x16x4xf32>
    %1 = vector.shape_cast %0 : vector<1x16x16x4xf32> to vector<16x16x4xf32>
    %2 = vector.shape_cast %1 : vector<16x16x4xf32> to vector<256x4xf32>
    %c0_3 = arith.constant 0 : index
    %c0_4 = arith.constant 0 : index
    %c1 = arith.constant 1 : index
    %c0_5 = arith.constant 0 : index
    %3 = vector.load %arg1[%c0_3, %c0_4, %c1, %c0_5] : memref<1x18x18x4xf32, #tpu.memory_space<vmem>>, vector<1x16x16x4xf32>
    %4 = vector.shape_cast %3 : vector<1x16x16x4xf32> to vector<16x16x4xf32>
    %5 = vector.shape_cast %4 : vector<16x16x4xf32> to vector<256x4xf32>
    %c0_6 = arith.constant 0 : index
    %c0_7 = arith.constant 0 : index
    %c2 = arith.constant 2 : index
    %c0_8 = arith.constant 0 : index
    %6 = vector.load %arg1[%c0_6, %c0_7, %c2, %c0_8] : memref<1x18x18x4xf32, #tpu.memory_space<vmem>>, vector<1x16x16x4xf32>
    %7 = vector.shape_cast %6 : vector<1x16x16x4xf32> to vector<16x16x4xf32>
    %8 = vector.shape_cast %7 : vector<16x16x4xf32> to vector<256x4xf32>
    %c0_9 = arith.constant 0 : index
    %c1_10 = arith.constant 1 : index
    %c0_11 = arith.constant 0 : index
    %c0_12 = arith.constant 0 : index
    %9 = vector.load %arg1[%c0_9, %c1_10, %c0_11, %c0_12] : memref<1x18x18x4xf32, #tpu.memory_space<vmem>>, vector<1x16x16x4xf32>
    %10 = vector.shape_cast %9 : vector<1x16x16x4xf32> to vector<16x16x4xf32>
    %11 = vector.shape_cast %10 : vector<16x16x4xf32> to vector<256x4xf32>
    %c0_13 = arith.constant 0 : index
    %c1_14 = arith.constant 1 : index
    %c1_15 = arith.constant 1 : index
    %c0_16 = arith.constant 0 : index
    %12 = vector.load %arg1[%c0_13, %c1_14, %c1_15, %c0_16] : memref<1x18x18x4xf32, #tpu.memory_space<vmem>>, vector<1x16x16x4xf32>
    %13 = vector.shape_cast %12 : vector<1x16x16x4xf32> to vector<16x16x4xf32>
    %14 = vector.shape_cast %13 : vector<16x16x4xf32> to vector<256x4xf32>
    %c0_17 = arith.constant 0 : index
    %c1_18 = arith.constant 1 : index
    %c2_19 = arith.constant 2 : index
    %c0_20 = arith.constant 0 : index
    %15 = vector.load %arg1[%c0_17, %c1_18, %c2_19, %c0_20] : memref<1x18x18x4xf32, #tpu.memory_space<vmem>>, vector<1x16x16x4xf32>
    %16 = vector.shape_cast %15 : vector<1x16x16x4xf32> to vector<16x16x4xf32>
    %17 = vector.shape_cast %16 : vector<16x16x4xf32> to vector<256x4xf32>
    %c0_21 = arith.constant 0 : index
    %c2_22 = arith.constant 2 : index
    %c0_23 = arith.constant 0 : index
    %c0_24 = arith.constant 0 : index
    %18 = vector.load %arg1[%c0_21, %c2_22, %c0_23, %c0_24] : memref<1x18x18x4xf32, #tpu.memory_space<vmem>>, vector<1x16x16x4xf32>
    %19 = vector.shape_cast %18 : vector<1x16x16x4xf32> to vector<16x16x4xf32>
    %20 = vector.shape_cast %19 : vector<16x16x4xf32> to vector<256x4xf32>
    %c0_25 = arith.constant 0 : index
    %c2_26 = arith.constant 2 : index
    %c1_27 = arith.constant 1 : index
    %c0_28 = arith.constant 0 : index
    %21 = vector.load %arg1[%c0_25, %c2_26, %c1_27, %c0_28] : memref<1x18x18x4xf32, #tpu.memory_space<vmem>>, vector<1x16x16x4xf32>
    %22 = vector.shape_cast %21 : vector<1x16x16x4xf32> to vector<16x16x4xf32>
    %23 = vector.shape_cast %22 : vector<16x16x4xf32> to vector<256x4xf32>
    %c0_29 = arith.constant 0 : index
    %c2_30 = arith.constant 2 : index
    %c2_31 = arith.constant 2 : index
    %c0_32 = arith.constant 0 : index
    %24 = vector.load %arg1[%c0_29, %c2_30, %c2_31, %c0_32] : memref<1x18x18x4xf32, #tpu.memory_space<vmem>>, vector<1x16x16x4xf32>
    %25 = vector.shape_cast %24 : vector<1x16x16x4xf32> to vector<16x16x4xf32>
    %26 = vector.shape_cast %25 : vector<16x16x4xf32> to vector<256x4xf32>
    %27 = tpu.concatenate %2, %5, %8, %11, %14, %17, %20, %23, %26 in 1 : vector<256x4xf32>, vector<256x4xf32>, vector<256x4xf32>, vector<256x4xf32>, vector<256x4xf32>, vector<256x4xf32>, vector<256x4xf32>, vector<256x4xf32>, vector<256x4xf32> -> vector<256x36xf32>
    %c0_33 = arith.constant 0 : index
    %c0_34 = arith.constant 0 : index
    %28 = vector.load %arg4[%c0_33, %c0_34] : memref<36x4xf32, #tpu.memory_space<vmem>>, vector<36x4xf32>
    %cst = arith.constant dense<0.000000e+00> : vector<256x4xf32>
    %29 = tpu.matmul %27, %28, %cst {dimension_numbers = #tpu.dot_dimension_numbers<[1], [0], [0], [1], [0, 0, 1, 1], [], []>} : vector<256x36xf32>, vector<36x4xf32>, vector<256x4xf32> -> vector<256x4xf32>
    %c0_35 = arith.constant 0 : index
    %c0_36 = arith.constant 0 : index
    %30 = vector.load %arg5[%c0_35, %c0_36] : memref<1x4xf32, #tpu.memory_space<vmem>>, vector<1x4xf32>
    %31 = vector.broadcast %30 : vector<1x4xf32> to vector<256x4xf32>
    %32 = arith.addf %29, %31 : vector<256x4xf32>
    %c0_37 = arith.constant 0 : index
    %c0_38 = arith.constant 0 : index
    %c0_39 = arith.constant 0 : index
    %33 = vector.load %arg2[%c0_37, %c0_38, %c0_39] : memref<1x256x4xf32, #tpu.memory_space<vmem>>, vector<1x256x4xf32>
    %34 = vector.shape_cast %33 : vector<1x256x4xf32> to vector<256x4xf32>
    %35 = arith.addf %32, %34 : vector<256x4xf32>
    %c0_40 = arith.constant 0 : index
    %c0_41 = arith.constant 0 : index
    %36 = vector.load %arg3[%c0_40, %c0_41] : memref<256x3xf32, #tpu.memory_space<vmem>>, vector<256x3xf32>
    %c0_42 = arith.constant 0 : index
    %c0_43 = arith.constant 0 : index
    %37 = vector.load %arg6[%c0_42, %c0_43] : memref<4x8xf32, #tpu.memory_space<vmem>>, vector<4x8xf32>
    %cst_44 = arith.constant dense<0.000000e+00> : vector<256x8xf32>
    %38 = tpu.matmul %35, %37, %cst_44 {dimension_numbers = #tpu.dot_dimension_numbers<[1], [0], [0], [1], [0, 0, 1, 1], [], []>} : vector<256x4xf32>, vector<4x8xf32>, vector<256x8xf32> -> vector<256x8xf32>
    %c0_45 = arith.constant 0 : index
    %c0_46 = arith.constant 0 : index
    %39 = vector.load %arg7[%c0_45, %c0_46] : memref<1x8xf32, #tpu.memory_space<vmem>>, vector<1x8xf32>
    %40 = vector.broadcast %39 : vector<1x8xf32> to vector<256x8xf32>
    %41 = arith.addf %38, %40 : vector<256x8xf32>
    %cst_47 = arith.constant 0.000000e+00 : f32
    %42 = vector.broadcast %cst_47 : f32 to vector<256x8xf32>
    %43 = arith.maximumf %41, %42 : vector<256x8xf32>
    %cst_48 = arith.constant 0.000000e+00 : f32
    %44 = vector.broadcast %cst_48 : f32 to vector<17x8xf32>
    %45 = tpu.concatenate %44, %43, %44 in 0 : vector<17x8xf32>, vector<256x8xf32>, vector<17x8xf32> -> vector<290x8xf32>
    %46 = vector.extract_strided_slice %45 {offsets = [0, 0], sizes = [256, 8], strides = [1, 1]} : vector<290x8xf32> to vector<256x8xf32>
    %47 = vector.extract_strided_slice %36 {offsets = [0, 0], sizes = [256, 1], strides = [1, 1]} : vector<256x3xf32> to vector<256x1xf32>
    %48 = vector.broadcast %47 : vector<256x1xf32> to vector<256x8xf32>
    %49 = arith.mulf %46, %48 : vector<256x8xf32>
    %50 = vector.extract_strided_slice %45 {offsets = [1, 0], sizes = [256, 8], strides = [1, 1]} : vector<290x8xf32> to vector<256x8xf32>
    %51 = vector.extract_strided_slice %45 {offsets = [2, 0], sizes = [256, 8], strides = [1, 1]} : vector<290x8xf32> to vector<256x8xf32>
    %52 = vector.extract_strided_slice %36 {offsets = [0, 2], sizes = [256, 1], strides = [1, 1]} : vector<256x3xf32> to vector<256x1xf32>
    %53 = vector.broadcast %52 : vector<256x1xf32> to vector<256x8xf32>
    %54 = arith.mulf %51, %53 : vector<256x8xf32>
    %55 = vector.extract_strided_slice %45 {offsets = [16, 0], sizes = [256, 8], strides = [1, 1]} : vector<290x8xf32> to vector<256x8xf32>
    %56 = vector.extract_strided_slice %36 {offsets = [0, 0], sizes = [256, 1], strides = [1, 1]} : vector<256x3xf32> to vector<256x1xf32>
    %57 = vector.broadcast %56 : vector<256x1xf32> to vector<256x8xf32>
    %58 = arith.mulf %55, %57 : vector<256x8xf32>
    %59 = vector.extract_strided_slice %45 {offsets = [17, 0], sizes = [256, 8], strides = [1, 1]} : vector<290x8xf32> to vector<256x8xf32>
    %60 = vector.extract_strided_slice %45 {offsets = [18, 0], sizes = [256, 8], strides = [1, 1]} : vector<290x8xf32> to vector<256x8xf32>
    %61 = vector.extract_strided_slice %36 {offsets = [0, 2], sizes = [256, 1], strides = [1, 1]} : vector<256x3xf32> to vector<256x1xf32>
    %62 = vector.broadcast %61 : vector<256x1xf32> to vector<256x8xf32>
    %63 = arith.mulf %60, %62 : vector<256x8xf32>
    %64 = vector.extract_strided_slice %45 {offsets = [32, 0], sizes = [256, 8], strides = [1, 1]} : vector<290x8xf32> to vector<256x8xf32>
    %65 = vector.extract_strided_slice %36 {offsets = [0, 0], sizes = [256, 1], strides = [1, 1]} : vector<256x3xf32> to vector<256x1xf32>
    %66 = vector.broadcast %65 : vector<256x1xf32> to vector<256x8xf32>
    %67 = arith.mulf %64, %66 : vector<256x8xf32>
    %68 = vector.extract_strided_slice %45 {offsets = [33, 0], sizes = [256, 8], strides = [1, 1]} : vector<290x8xf32> to vector<256x8xf32>
    %69 = vector.extract_strided_slice %45 {offsets = [34, 0], sizes = [256, 8], strides = [1, 1]} : vector<290x8xf32> to vector<256x8xf32>
    %70 = vector.extract_strided_slice %36 {offsets = [0, 2], sizes = [256, 1], strides = [1, 1]} : vector<256x3xf32> to vector<256x1xf32>
    %71 = vector.broadcast %70 : vector<256x1xf32> to vector<256x8xf32>
    %72 = arith.mulf %69, %71 : vector<256x8xf32>
    %73 = tpu.concatenate %49, %50, %54, %58, %59, %63, %67, %68, %72 in 1 : vector<256x8xf32>, vector<256x8xf32>, vector<256x8xf32>, vector<256x8xf32>, vector<256x8xf32>, vector<256x8xf32>, vector<256x8xf32>, vector<256x8xf32>, vector<256x8xf32> -> vector<256x72xf32>
    %c0_49 = arith.constant 0 : index
    %c0_50 = arith.constant 0 : index
    %74 = vector.load %arg8[%c0_49, %c0_50] : memref<72x8xf32, #tpu.memory_space<vmem>>, vector<72x8xf32>
    %cst_51 = arith.constant dense<0.000000e+00> : vector<256x8xf32>
    %75 = tpu.matmul %73, %74, %cst_51 {dimension_numbers = #tpu.dot_dimension_numbers<[1], [0], [0], [1], [0, 0, 1, 1], [], []>} : vector<256x72xf32>, vector<72x8xf32>, vector<256x8xf32> -> vector<256x8xf32>
    %c0_52 = arith.constant 0 : index
    %c0_53 = arith.constant 0 : index
    %76 = vector.load %arg9[%c0_52, %c0_53] : memref<1x8xf32, #tpu.memory_space<vmem>>, vector<1x8xf32>
    %77 = vector.broadcast %76 : vector<1x8xf32> to vector<256x8xf32>
    %78 = arith.addf %75, %77 : vector<256x8xf32>
    %cst_54 = arith.constant 0.000000e+00 : f32
    %79 = vector.broadcast %cst_54 : f32 to vector<256x8xf32>
    %80 = arith.maximumf %78, %79 : vector<256x8xf32>
    %cst_55 = arith.constant 0.000000e+00 : f32
    %81 = vector.broadcast %cst_55 : f32 to vector<17x8xf32>
    %82 = tpu.concatenate %81, %80, %81 in 0 : vector<17x8xf32>, vector<256x8xf32>, vector<17x8xf32> -> vector<290x8xf32>
    %83 = vector.extract_strided_slice %82 {offsets = [0, 0], sizes = [256, 8], strides = [1, 1]} : vector<290x8xf32> to vector<256x8xf32>
    %84 = vector.extract_strided_slice %36 {offsets = [0, 0], sizes = [256, 1], strides = [1, 1]} : vector<256x3xf32> to vector<256x1xf32>
    %85 = vector.broadcast %84 : vector<256x1xf32> to vector<256x8xf32>
    %86 = arith.mulf %83, %85 : vector<256x8xf32>
    %87 = vector.extract_strided_slice %82 {offsets = [1, 0], sizes = [256, 8], strides = [1, 1]} : vector<290x8xf32> to vector<256x8xf32>
    %88 = vector.extract_strided_slice %82 {offsets = [2, 0], sizes = [256, 8], strides = [1, 1]} : vector<290x8xf32> to vector<256x8xf32>
    %89 = vector.extract_strided_slice %36 {offsets = [0, 2], sizes = [256, 1], strides = [1, 1]} : vector<256x3xf32> to vector<256x1xf32>
    %90 = vector.broadcast %89 : vector<256x1xf32> to vector<256x8xf32>
    %91 = arith.mulf %88, %90 : vector<256x8xf32>
    %92 = vector.extract_strided_slice %82 {offsets = [16, 0], sizes = [256, 8], strides = [1, 1]} : vector<290x8xf32> to vector<256x8xf32>
    %93 = vector.extract_strided_slice %36 {offsets = [0, 0], sizes = [256, 1], strides = [1, 1]} : vector<256x3xf32> to vector<256x1xf32>
    %94 = vector.broadcast %93 : vector<256x1xf32> to vector<256x8xf32>
    %95 = arith.mulf %92, %94 : vector<256x8xf32>
    %96 = vector.extract_strided_slice %82 {offsets = [17, 0], sizes = [256, 8], strides = [1, 1]} : vector<290x8xf32> to vector<256x8xf32>
    %97 = vector.extract_strided_slice %82 {offsets = [18, 0], sizes = [256, 8], strides = [1, 1]} : vector<290x8xf32> to vector<256x8xf32>
    %98 = vector.extract_strided_slice %36 {offsets = [0, 2], sizes = [256, 1], strides = [1, 1]} : vector<256x3xf32> to vector<256x1xf32>
    %99 = vector.broadcast %98 : vector<256x1xf32> to vector<256x8xf32>
    %100 = arith.mulf %97, %99 : vector<256x8xf32>
    %101 = vector.extract_strided_slice %82 {offsets = [32, 0], sizes = [256, 8], strides = [1, 1]} : vector<290x8xf32> to vector<256x8xf32>
    %102 = vector.extract_strided_slice %36 {offsets = [0, 0], sizes = [256, 1], strides = [1, 1]} : vector<256x3xf32> to vector<256x1xf32>
    %103 = vector.broadcast %102 : vector<256x1xf32> to vector<256x8xf32>
    %104 = arith.mulf %101, %103 : vector<256x8xf32>
    %105 = vector.extract_strided_slice %82 {offsets = [33, 0], sizes = [256, 8], strides = [1, 1]} : vector<290x8xf32> to vector<256x8xf32>
    %106 = vector.extract_strided_slice %82 {offsets = [34, 0], sizes = [256, 8], strides = [1, 1]} : vector<290x8xf32> to vector<256x8xf32>
    %107 = vector.extract_strided_slice %36 {offsets = [0, 2], sizes = [256, 1], strides = [1, 1]} : vector<256x3xf32> to vector<256x1xf32>
    %108 = vector.broadcast %107 : vector<256x1xf32> to vector<256x8xf32>
    %109 = arith.mulf %106, %108 : vector<256x8xf32>
    %110 = tpu.concatenate %86, %87, %91, %95, %96, %100, %104, %105, %109 in 1 : vector<256x8xf32>, vector<256x8xf32>, vector<256x8xf32>, vector<256x8xf32>, vector<256x8xf32>, vector<256x8xf32>, vector<256x8xf32>, vector<256x8xf32>, vector<256x8xf32> -> vector<256x72xf32>
    %c0_56 = arith.constant 0 : index
    %c0_57 = arith.constant 0 : index
    %111 = vector.load %arg10[%c0_56, %c0_57] : memref<72x8xf32, #tpu.memory_space<vmem>>, vector<72x8xf32>
    %cst_58 = arith.constant dense<0.000000e+00> : vector<256x8xf32>
    %112 = tpu.matmul %110, %111, %cst_58 {dimension_numbers = #tpu.dot_dimension_numbers<[1], [0], [0], [1], [0, 0, 1, 1], [], []>} : vector<256x72xf32>, vector<72x8xf32>, vector<256x8xf32> -> vector<256x8xf32>
    %c0_59 = arith.constant 0 : index
    %c0_60 = arith.constant 0 : index
    %113 = vector.load %arg11[%c0_59, %c0_60] : memref<1x8xf32, #tpu.memory_space<vmem>>, vector<1x8xf32>
    %114 = vector.broadcast %113 : vector<1x8xf32> to vector<256x8xf32>
    %115 = arith.addf %112, %114 : vector<256x8xf32>
    %cst_61 = arith.constant 0.000000e+00 : f32
    %116 = vector.broadcast %cst_61 : f32 to vector<256x8xf32>
    %117 = arith.maximumf %115, %116 : vector<256x8xf32>
    %c0_62 = arith.constant 0 : index
    %c0_63 = arith.constant 0 : index
    %118 = vector.load %arg12[%c0_62, %c0_63] : memref<8x4xf32, #tpu.memory_space<vmem>>, vector<8x4xf32>
    %cst_64 = arith.constant dense<0.000000e+00> : vector<256x4xf32>
    %119 = tpu.matmul %117, %118, %cst_64 {dimension_numbers = #tpu.dot_dimension_numbers<[1], [0], [0], [1], [0, 0, 1, 1], [], []>} : vector<256x8xf32>, vector<8x4xf32>, vector<256x4xf32> -> vector<256x4xf32>
    %c0_65 = arith.constant 0 : index
    %c0_66 = arith.constant 0 : index
    %120 = vector.load %arg13[%c0_65, %c0_66] : memref<1x4xf32, #tpu.memory_space<vmem>>, vector<1x4xf32>
    %121 = vector.broadcast %120 : vector<1x4xf32> to vector<256x4xf32>
    %122 = arith.addf %119, %121 : vector<256x4xf32>
    %cst_67 = arith.constant 0.000000e+00 : f32
    %123 = vector.broadcast %cst_67 : f32 to vector<256x4xf32>
    %124 = arith.maximumf %122, %123 : vector<256x4xf32>
    %125 = arith.addf %124, %35 : vector<256x4xf32>
    %c0_68 = arith.constant 0 : index
    %c0_69 = arith.constant 0 : index
    %c0_70 = arith.constant 0 : index
    %126 = vector.load %arg14[%c0_68, %c0_69, %c0_70] : memref<1x256x4xf32, #tpu.memory_space<vmem>>, vector<1x256x4xf32>
    %127 = vector.shape_cast %126 : vector<1x256x4xf32> to vector<256x4xf32>
    %128 = vector.shape_cast %125 : vector<256x4xf32> to vector<1x256x4xf32>
    tpu.vector_store %arg14[%c0_68, %c0_69, %c0_70], %128 {strides = array<i32>} : memref<1x256x4xf32, #tpu.memory_space<vmem>>, vector<1x256x4xf32>,
    return
  }
  func.func @transform_0(%arg0: i32) -> (i32, i32, i32, i32) {
    %c0_i32 = arith.constant 0 : i32
    %c0_i32_0 = arith.constant 0 : i32
    %c0_i32_1 = arith.constant 0 : i32
    %c0_i32_2 = arith.constant 0 : i32
    return %arg0, %c0_i32, %c0_i32_0, %c0_i32_1 : i32, i32, i32, i32
  }
  func.func @transform_1(%arg0: i32) -> (i32, i32, i32) {
    %c0_i32 = arith.constant 0 : i32
    %c0_i32_0 = arith.constant 0 : i32
    %c0_i32_1 = arith.constant 0 : i32
    return %arg0, %c0_i32, %c0_i32_0 : i32, i32, i32
  }
  func.func @transform_2(%arg0: i32) -> (i32, i32) {
    %c0_i32 = arith.constant 0 : i32
    %c0_i32_0 = arith.constant 0 : i32
    %c0_i32_1 = arith.constant 0 : i32
    return %c0_i32, %c0_i32_0 : i32, i32
  }
  func.func @transform_3(%arg0: i32) -> (i32, i32) {
    %c0_i32 = arith.constant 0 : i32
    %c0_i32_0 = arith.constant 0 : i32
    %c0_i32_1 = arith.constant 0 : i32
    return %c0_i32, %c0_i32_0 : i32, i32
  }
  func.func @transform_4(%arg0: i32) -> (i32, i32) {
    %c0_i32 = arith.constant 0 : i32
    %c0_i32_0 = arith.constant 0 : i32
    %c0_i32_1 = arith.constant 0 : i32
    return %c0_i32, %c0_i32_0 : i32, i32
  }
  func.func @transform_5(%arg0: i32) -> (i32, i32) {
    %c0_i32 = arith.constant 0 : i32
    %c0_i32_0 = arith.constant 0 : i32
    %c0_i32_1 = arith.constant 0 : i32
    return %c0_i32, %c0_i32_0 : i32, i32
  }
  func.func @transform_6(%arg0: i32) -> (i32, i32) {
    %c0_i32 = arith.constant 0 : i32
    %c0_i32_0 = arith.constant 0 : i32
    %c0_i32_1 = arith.constant 0 : i32
    return %c0_i32, %c0_i32_0 : i32, i32
  }
  func.func @transform_7(%arg0: i32) -> (i32, i32) {
    %c0_i32 = arith.constant 0 : i32
    %c0_i32_0 = arith.constant 0 : i32
    %c0_i32_1 = arith.constant 0 : i32
    return %c0_i32, %c0_i32_0 : i32, i32
  }
  func.func @transform_8(%arg0: i32) -> (i32, i32) {
    %c0_i32 = arith.constant 0 : i32
    %c0_i32_0 = arith.constant 0 : i32
    %c0_i32_1 = arith.constant 0 : i32
    return %c0_i32, %c0_i32_0 : i32, i32
  }
  func.func @transform_9(%arg0: i32) -> (i32, i32) {
    %c0_i32 = arith.constant 0 : i32
    %c0_i32_0 = arith.constant 0 : i32
    %c0_i32_1 = arith.constant 0 : i32
    return %c0_i32, %c0_i32_0 : i32, i32
  }
  func.func @transform_10(%arg0: i32) -> (i32, i32) {
    %c0_i32 = arith.constant 0 : i32
    %c0_i32_0 = arith.constant 0 : i32
    %c0_i32_1 = arith.constant 0 : i32
    return %c0_i32, %c0_i32_0 : i32, i32
  }
  func.func @transform_11(%arg0: i32) -> (i32, i32) {
    %c0_i32 = arith.constant 0 : i32
    %c0_i32_0 = arith.constant 0 : i32
    %c0_i32_1 = arith.constant 0 : i32
    return %c0_i32, %c0_i32_0 : i32, i32
  }
  func.func @transform_12(%arg0: i32) -> (i32, i32) {
    %c0_i32 = arith.constant 0 : i32
    %c0_i32_0 = arith.constant 0 : i32
    %c0_i32_1 = arith.constant 0 : i32
    return %c0_i32, %c0_i32_0 : i32, i32
  }
  func.func @transform_13(%arg0: i32) -> (i32, i32, i32) {
    %c0_i32 = arith.constant 0 : i32
    %c0_i32_0 = arith.constant 0 : i32
    %c0_i32_1 = arith.constant 0 : i32
    return %arg0, %c0_i32, %c0_i32_0 : i32, i32, i32
  }
}

</mosaic_0001>

<bundles_post_ra>
// kernel: upblock_forward.1
= control target key start
LH: loop header
LB: loop body
LE: loop exit
PB: predicated region body
PF: predicated region fallthrough
CT: control target
= control target key end

     0   :  { %s8986_s25 = smov 0   ;;  %s15844_s0 = inlined_call_operand.vmem [shape: f32[2,18,18,4], index: 0, kind: input, shape index: {}]   ;;  %s15845_s1 = inlined_call_operand.vmem [shape: f32[2,256,4], index: 1, kind: input, shape index: {}]   ;;  %s15846_s2 = inlined_call_operand.vmem [shape: f32[256,3], index: 2, kind: input, shape index: {}]   ;;  %s15847_s3 = inlined_call_operand.vmem [shape: f32[36,4], index: 3, kind: input, shape index: {}]   ;;  %s15848_s4 = inlined_call_operand.vmem [shape: f32[1,4], index: 4, kind: input, shape index: {}]   ;;  %s15849_s5 = inlined_call_operand.vmem [shape: f32[4,8], index: 5, kind: input, shape index: {}]   ;;  %s15850_s6 = inlined_call_operand.vmem [shape: f32[1,8], index: 6, kind: input, shape index: {}]   ;;  %s15851_s7 = inlined_call_operand.vmem [shape: f32[72,8], index: 7, kind: input, shape index: {}]   ;;  %s15852_s8 = inlined_call_operand.vmem [shape: f32[1,8], index: 8, kind: input, shape index: {}]   ;;  %s15853_s9 = inlined_call_operand.vmem [shape: f32[72,8], index: 9, kind: input, shape index: {}]   ;;  %s15854_s10 = inlined_call_operand.vmem [shape: f32[1,8], index: 10, kind: input, shape index: {}]   ;;  %s15855_s11 = inlined_call_operand.vmem [shape: f32[8,4], index: 11, kind: input, shape index: {}]   ;;  %s15856_s12 = inlined_call_operand.vmem [shape: f32[1,4], index: 12, kind: input, shape index: {}]   ;;  %s15857_s13 = inlined_call_operand.vmem [shape: f32[2,256,4], index: 13, kind: output, shape index: {}]  }
   0x1 LB: > { %s7948_s26 = sadd.s32 4294967295, %s8899_s25   ;;  %p7952_p0 = scmp.ge.s32.totalorder %s8899_s25, 1  ;;  %s8899_s25 = sphi %s8986_s25, %s23_s25  }
   0x2   : > { %p397_p1 = scmp.lt.s32.totalorder %s8899_s25, 3 }
   0x4   : > { %p398_p2 = pnand %p7952_p0, %p397_p1 }
   0x6   : > { %401 = sbr.rel (%p398_p2) target bundleno = 2613 (0xa35), region = 72 }
   0xd   : > { %p446_p3 = scmp.lt.s32.totalorder %s7948_s26, 1  ;;  %s8901_s14 = smov 4   ;;  %vm2148_vm0 = vcmask 1043456   ;;  %vm1775_vm1 = vcmask 31744   ;;  %vm1808_vm2 = vcmask 64512   ;;  %vm1841_vm3 = vcmask 97280  }
   0xe   : > { %s8902_s15 = smov 8   ;;  %s8903_s16 = smov 12   ;;  %vm1874_vm4 = vcmask 130048   ;;  %vm1907_vm5 = vcmask 162816   ;;  %vm1940_vm6 = vcmask 195584   ;;  %vm1973_vm7 = vcmask 228352  }
   0xf   : > { %s17364_s26 = smov (!%p446_p3, %s7948_s26), 1  ;;  %s8904_s17 = smov 16   ;;  %vm2006_vm8 = vcmask 261120   ;;  %vm2051_vm9 = vcmask 293888   ;;  %vm2869_vm10 = vcmask 1040384   ;;  %vm3518_vm11 = vcmask 1046528  }
  0x10   : > { %s8838_s27 = smul.u32 432, %s17364_s26  ;;  %s8905_s18 = smov 20   ;;  %vm3256_vm12 = vcmask 1041408   ;;  %vm3712_vm13 = vcmask 1045504   ;;  %vm4844_vm14 = vcmask 326656   ;;  %vm4910_vm15 = vcmask 457728  }
  0x11   : > { %s8906_s19 = smov 24   ;;  %s8907_s20 = smov 28  }
  0x12   : > { %s9000_s30 = scalar_lea.vmem %s15844_s0, %s8838_s27  ;;  %s8908_s21 = smov 32  }
  0x13   : > { %v9003_v0 = vld [vmem:[%s9000_s30 + $0x19] sm:$0xff]  ;;  %v493_v1 = vld [vmem:[%s9000_s30 + $0x1] sm:$0xff]  ;;  %v494_v3 = vld [vmem:[%s9000_s30 + $0x9] sm:$0xff]  ;;  %s8319_s22 = sshll.u32 %s17364_s26, 8  ;;  %s8913_s23 = smov 48  }
  0x14   : > { %787 = vrot.lane.b32.xlu1 %v9003_v0, %s8901_s14  ;;  %783 = vrot.lane.b32.xlu0 %v493_v1, %s8901_s14  ;;  %v9010_v2 = vld [vmem:[%s9000_s30 + $0x21] sm:$0xff]  ;;  %v9017_v4 = vld [vmem:[%s9000_s30 + $0x39] sm:$0xff]  ;;  %s10945_s27 = scalar_lea.vmem %s15845_s1, %s8319_s22 }
  0x15   : > { %v9020_v5 = vld [vmem:[%s9000_s30 + $0x31] sm:$0xff]  ;;  %v9030_v7 = vld [vmem:[%s9000_s30 + $0x49] sm:$0xff]  ;;  %v9040_v9 = vld [vmem:[%s9000_s30 + $0x61] sm:$0xff] }
  0x16   : > { %v9027_v6 = vld [vmem:[%s9000_s30 + $0x51] sm:$0xff]  ;;  %v9037_v8 = vld [vmem:[%s9000_s30 + $0x69] sm:$0xff]  ;;  %v9047_v10 = vld [vmem:[%s9000_s30 + $0x81] sm:$0xff] }
  0x17   : > { %v9050_v11 = vld [vmem:[%s9000_s30 + $0x79] sm:$0xff]  ;;  %v9060_v13 = vld [vmem:[%s9000_s30 + $0x91] sm:$0xff]  ;;  %v9070_v15 = vld [vmem:[%s9000_s30 + $0xa9] sm:$0xff] }
  0x18   : > { %789 = vrot.lane.b32.xlu1 %v9010_v2, %s8901_s14  ;;  %785 = vrot.lane.b32.xlu0 %v494_v3, %s8901_s14  ;;  %v9057_v12 = vld [vmem:[%s9000_s30 + $0x99] sm:$0xff]  ;;  %v9067_v14 = vld [vmem:[%s9000_s30 + $0xb1] sm:$0xff] }
  0x19   : > { %v9077_v16 = vld [vmem:[%s9000_s30 + $0xc9] sm:$0xff]  ;;  %v9080_v17 = vld [vmem:[%s9000_s30 + $0xc1] sm:$0xff]  ;;  %v9090_v19 = vld [vmem:[%s9000_s30 + $0xd9] sm:$0xff] }
  0x1a   : > { %v9087_v18 = vld [vmem:[%s9000_s30 + $0xe1] sm:$0xff]  ;;  %v9097_v20 = vld [vmem:[%s9000_s30 + $0xf9] sm:$0xff]  ;;  %v9100_v21 = vld [vmem:[%s9000_s30 + $0xf1] sm:$0xff] }
  0x1b   : > { %v9107_v22 = vld [vmem:[%s9000_s30 + $0x111] sm:$0xff]  ;;  %v9110_v23 = vld [vmem:[%s9000_s30 + $0x109] sm:$0xff]  ;;  %v9120_v25 = vld [vmem:[%s9000_s30 + $0x121] sm:$0xff] }
  0x1c   : > { %793 = vrot.lane.b32.xlu1 %v9017_v4, %s8901_s14  ;;  %791 = vrot.lane.b32.xlu0 %v9020_v5, %s8901_s14  ;;  %v9117_v24 = vld [vmem:[%s9000_s30 + $0x129] sm:$0xff]  ;;  %v9127_v26 = vld [vmem:[%s9000_s30 + $0x141] sm:$0xff] }
  0x1d   : > { %v9130_v27 = vld [vmem:[%s9000_s30 + $0x139] sm:$0xff]  ;;  %v9140_v29 = vld [vmem:[%s9000_s30 + $0x151] sm:$0xff]  ;;  %v9150_v31 = vld [vmem:[%s9000_s30 + $0x169] sm:$0xff] }
  0x1e   : > { %v9137_v28 = vld [vmem:[%s9000_s30 + $0x159] sm:$0xff]  ;;  %v9147_v30 = vld [vmem:[%s9000_s30 + $0x171] sm:$0xff]  ;;  %v525_v33 = vld [vmem:[%s9000_s30 + $0x2] sm:$0xff] }
  0x1f   : > { %v526_v32 = vld [vmem:[%s9000_s30 + $0xa] sm:$0xff]  ;;  %v9161_v34 = vld [vmem:[%s9000_s30 + $0x22] sm:$0xff]  ;;  %v9164_v35 = vld [vmem:[%s9000_s30 + $0x1a] sm:$0xff] }
  0x20   : > { %797 = vrot.lane.b32.xlu1 %v9027_v6, %s8901_s14  ;;  %795 = vrot.lane.b32.xlu0 %v9030_v7, %s8901_s14  ;;  %v9171_v36 = vld [vmem:[%s9000_s30 + $0x3a] sm:$0xff]  ;;  %v9174_v37 = vld [vmem:[%s9000_s30 + $0x32] sm:$0xff] }
  0x21   : > { %v9181_v38 = vld [vmem:[%s9000_s30 + $0x52] sm:$0xff]  ;;  %v9184_v39 = vld [vmem:[%s9000_s30 + $0x4a] sm:$0xff]  ;;  %v9194_v41 = vld [vmem:[%s9000_s30 + $0x62] sm:$0xff] }
  0x22   : > { %v9191_v40 = vld [vmem:[%s9000_s30 + $0x6a] sm:$0xff]  ;;  %v9201_v42 = vld [vmem:[%s9000_s30 + $0x82] sm:$0xff]  ;;  %v9204_v43 = vld [vmem:[%s9000_s30 + $0x7a] sm:$0xff] }
  0x23   : > { %v9211_v44 = vld [vmem:[%s9000_s30 + $0x9a] sm:$0xff]  ;;  %v9214_v45 = vld [vmem:[%s9000_s30 + $0x92] sm:$0xff]  ;;  %v9224_v47 = vld [vmem:[%s9000_s30 + $0xaa] sm:$0xff] }
  0x24   : > { %801 = vrot.lane.b32.xlu1 %v9037_v8, %s8901_s14  ;;  %799 = vrot.lane.b32.xlu0 %v9040_v9, %s8901_s14  ;;  %v9221_v46 = vld [vmem:[%s9000_s30 + $0xb2] sm:$0xff]  ;;  %v9231_v48 = vld [vmem:[%s9000_s30 + $0xca] sm:$0xff] }
  0x25   : > { %v9234_v49 = vld [vmem:[%s9000_s30 + $0xc2] sm:$0xff]  ;;  %v9244_v51 = vld [vmem:[%s9000_s30 + $0xda] sm:$0xff]  ;;  %v9254_v53 = vld [vmem:[%s9000_s30 + $0xf2] sm:$0xff] }
  0x26   : > { %v9241_v50 = vld [vmem:[%s9000_s30 + $0xe2] sm:$0xff]  ;;  %v9251_v52 = vld [vmem:[%s9000_s30 + $0xfa] sm:$0xff]  ;;  %v9261_v54 = vld [vmem:[%s9000_s30 + $0x112] sm:$0xff] }
  0x27   : > { %v9264_v55 = vld [vmem:[%s9000_s30 + $0x10a] sm:$0xff]  ;;  %v9274_v57 = vld [vmem:[%s9000_s30 + $0x122] sm:$0xff]  ;;  %v9284_v59 = vld [vmem:[%s9000_s30 + $0x13a] sm:$0xff] }
  0x28   : > { %805 = vrot.lane.b32.xlu1 %v9047_v10, %s8901_s14  ;;  %803 = vrot.lane.b32.xlu0 %v9050_v11, %s8901_s14  ;;  %v9271_v56 = vld [vmem:[%s9000_s30 + $0x12a] sm:$0xff]  ;;  %v9281_v58 = vld [vmem:[%s9000_s30 + $0x142] sm:$0xff] }
  0x29   : > { %v9295_v62 = vld [vmem:[%s9000_s30 + $0x15a] sm:$0xff]  ;;  %v9298_v63 = vld [vmem:[%s9000_s30 + $0x152] sm:$0xff] }
  0x2a   : > { %16278 = vst [vmem:[#allocation4_spill] sm:$0xff] %v9295_v62  ;;  %16279 = vst [vmem:[#allocation5_spill] sm:$0xff] %v9298_v63 }
  0x2c   : > { %809 = vrot.lane.b32.xlu1 %v9057_v12, %s8901_s14  ;;  %807 = vrot.lane.b32.xlu0 %v9060_v13, %s8901_s14 }
  0x30   : > { %813 = vrot.lane.b32.xlu1 %v9067_v14, %s8901_s14  ;;  %811 = vrot.lane.b32.xlu0 %v9070_v15, %s8901_s14 }
  0x34   : > { %817 = vrot.lane.b32.xlu1 %v9077_v16, %s8901_s14  ;;  %815 = vrot.lane.b32.xlu0 %v9080_v17, %s8901_s14 }
  0x38   : > { %821 = vrot.lane.b32.xlu1 %v9087_v18, %s8901_s14  ;;  %819 = vrot.lane.b32.xlu0 %v9090_v19, %s8901_s14 }
  0x3c   : > { %825 = vrot.lane.b32.xlu1 %v9097_v20, %s8901_s14  ;;  %823 = vrot.lane.b32.xlu0 %v9100_v21, %s8901_s14 }
  0x40   : > { %829 = vrot.lane.b32.xlu1 %v9107_v22, %s8901_s14  ;;  %827 = vrot.lane.b32.xlu0 %v9110_v23, %s8901_s14 }
  0x44   : > { %833 = vrot.lane.b32.xlu1 %v9117_v24, %s8901_s14  ;;  %831 = vrot.lane.b32.xlu0 %v9120_v25, %s8901_s14 }
  0x48   : > { %837 = vrot.lane.b32.xlu1 %v9127_v26, %s8901_s14  ;;  %835 = vrot.lane.b32.xlu0 %v9130_v27, %s8901_s14 }
  0x4c   : > { %841 = vrot.lane.b32.xlu1 %v9137_v28, %s8901_s14  ;;  %839 = vrot.lane.b32.xlu0 %v9140_v29, %s8901_s14 }
  0x50   : > { %845 = vrot.lane.b32.xlu1 %v9147_v30, %s8901_s14  ;;  %843 = vrot.lane.b32.xlu0 %v9150_v31, %s8901_s14  ;;  %s8914_s14 = smov 56  }
  0x54   : > { %913 = vrot.lane.b32.xlu1 %v526_v32, %s8902_s15  ;;  %911 = vrot.lane.b32.xlu0 %v525_v33, %s8902_s15  ;;  %v9309_v32 = vld [vmem:[%s9000_s30 + $0x172] sm:$0xff]  ;;  %v9312_v33 = vld [vmem:[%s9000_s30 + $0x16a] sm:$0xff] }
  0x55   : > { %16282 = vst [vmem:[#allocation8_spill] sm:$0xff] %v9309_v32  ;;  %16283 = vst [vmem:[#allocation9_spill] sm:$0xff] %v9312_v33 }
  0x58   : > { %917 = vrot.lane.b32.xlu1 %v9161_v34, %s8902_s15  ;;  %915 = vrot.lane.b32.xlu0 %v9164_v35, %s8902_s15 }
  0x5c   : > { %921 = vrot.lane.b32.xlu1 %v9171_v36, %s8902_s15  ;;  %919 = vrot.lane.b32.xlu0 %v9174_v37, %s8902_s15 }
  0x60   : > { %925 = vrot.lane.b32.xlu1 %v9181_v38, %s8902_s15  ;;  %923 = vrot.lane.b32.xlu0 %v9184_v39, %s8902_s15 }
  0x64   : > { %929 = vrot.lane.b32.xlu1 %v9191_v40, %s8902_s15  ;;  %927 = vrot.lane.b32.xlu0 %v9194_v41, %s8902_s15 }
  0x68   : > { %933 = vrot.lane.b32.xlu1 %v9201_v42, %s8902_s15  ;;  %931 = vrot.lane.b32.xlu0 %v9204_v43, %s8902_s15 }
  0x6c   : > { %937 = vrot.lane.b32.xlu1 %v9211_v44, %s8902_s15  ;;  %935 = vrot.lane.b32.xlu0 %v9214_v45, %s8902_s15 }
  0x70   : > { %941 = vrot.lane.b32.xlu1 %v9221_v46, %s8902_s15  ;;  %939 = vrot.lane.b32.xlu0 %v9224_v47, %s8902_s15 }
  0x74   : > { %945 = vrot.lane.b32.xlu1 %v9231_v48, %s8902_s15  ;;  %943 = vrot.lane.b32.xlu0 %v9234_v49, %s8902_s15 }
  0x78   : > { %949 = vrot.lane.b32.xlu1 %v9241_v50, %s8902_s15  ;;  %947 = vrot.lane.b32.xlu0 %v9244_v51, %s8902_s15 }
  0x7c   : > { %953 = vrot.lane.b32.xlu1 %v9251_v52, %s8902_s15  ;;  %951 = vrot.lane.b32.xlu0 %v9254_v53, %s8902_s15 }
  0x80   : > { %957 = vrot.lane.b32.xlu1 %v9261_v54, %s8902_s15  ;;  %955 = vrot.lane.b32.xlu0 %v9264_v55, %s8902_s15 }
  0x84   : > { %961 = vrot.lane.b32.xlu1 %v9271_v56, %s8902_s15  ;;  %959 = vrot.lane.b32.xlu0 %v9274_v57, %s8902_s15 }
  0x86   : > { %v9286_v60 = vpop.permute.xlu1 %787  ;;  %v9288_v61 = vpop.permute.xlu0 %783 }
  0x87   : > { %16276 = vst [vmem:[#allocation2_spill] sm:$0xff] %v9286_v60  ;;  %16277 = vst [vmem:[#allocation3_spill] sm:$0xff] %v9288_v61 }
  0x88   : > { %965 = vrot.lane.b32.xlu1 %v9281_v58, %s8902_s15  ;;  %963 = vrot.lane.b32.xlu0 %v9284_v59, %s8902_s15 }
  0x8a   : > { %v9300_v1 = vpop.permute.xlu1 %789  ;;  %v9302_v3 = vpop.permute.xlu0 %785 }
  0x8b   : > { %16280 = vst [vmem:[#allocation6_spill] sm:$0xff] %v9300_v1  ;;  %16281 = vst [vmem:[#allocation7_spill] sm:$0xff] %v9302_v3 }
  0x8c   : > { %969 = vrot.lane.b32.xlu1 %v9295_v62, %s8902_s15  ;;  %967 = vrot.lane.b32.xlu0 %v9298_v63, %s8902_s15  ;;  %v463_v63 = vld [vmem:[%s9000_s30 + $0x18] sm:$0xff]  ;;  %v464_v62 = vld [vmem:[%s9000_s30 + $0x20] sm:$0xff] }
  0x8e   : > { %v9314_v60 = vpop.permute.xlu1 %793  ;;  %v9316_v61 = vpop.permute.xlu0 %791 }
  0x8f   : > { %16284 = vst [vmem:[#allocation10_spill] sm:$0xff] %v9314_v60  ;;  %16285 = vst [vmem:[#allocation11_spill] sm:$0xff] %v9316_v61 }
  0x90   : > { %973 = vrot.lane.b32.xlu1 %v9309_v32, %s8902_s15  ;;  %971 = vrot.lane.b32.xlu0 %v9312_v33, %s8902_s15  ;;  %v9335_v33 = vld [vmem:[%s9000_s30 + $0x38] sm:$0xff]  ;;  %v9338_v32 = vld [vmem:[%s9000_s30 + $0x30] sm:$0xff] }
  0x91   : > { %16290 = vst [vmem:[#allocation16_spill] sm:$0xff] %v9335_v33  ;;  %16291 = vst [vmem:[#allocation17_spill] sm:$0xff] %v9338_v32 }
  0x92   : > { %v9322_v1 = vpop.permute.xlu1 %797  ;;  %v9324_v3 = vpop.permute.xlu0 %795 }
  0x93   : > { %16286 = vst [vmem:[#allocation12_spill] sm:$0xff] %v9322_v1  ;;  %16287 = vst [vmem:[#allocation13_spill] sm:$0xff] %v9324_v3  ;;  %v9349_v3 = vld [vmem:[%s9000_s30 + $0x50] sm:$0xff] }
  0x94   : > { %1041 = vrot.lane.b32.xlu1 %v464_v62, %s8903_s16  ;;  %1039 = vrot.lane.b32.xlu0 %v463_v63, %s8903_s16  ;;  %16294 = vst [vmem:[#allocation20_spill] sm:$0xff] %v9349_v3 }
  0x96   : > { %v9330_v61 = vpop.permute.xlu1 %801  ;;  %v9332_v60 = vpop.permute.xlu0 %799 }
  0x97   : > { %16288 = vst [vmem:[#allocation14_spill] sm:$0xff] %v9330_v61  ;;  %16289 = vst [vmem:[#allocation15_spill] sm:$0xff] %v9332_v60  ;;  %v9352_v61 = vld [vmem:[%s9000_s30 + $0x48] sm:$0xff] }
  0x98   : > { %1045 = vrot.lane.b32.xlu1 %v9335_v33, %s8903_s16  ;;  %1043 = vrot.lane.b32.xlu0 %v9338_v32, %s8903_s16  ;;  %16295 = vst [vmem:[#allocation21_spill] sm:$0xff] %v9352_v61  ;;  %v9363_v32 = vld [vmem:[%s9000_s30 + $0x68] sm:$0xff]  ;;  %v9517_v33 = vld [vmem:[%s9000_s30 + $0x170] sm:$0xff] }
  0x99   : > { %16298 = vst [vmem:[#allocation24_spill] sm:$0xff] %v9363_v32 }
  0x9a   : > { %v9344_v62 = vpop.permute.xlu1 %805  ;;  %v9346_v63 = vpop.permute.xlu0 %803 }
  0x9b   : > { %16292 = vst [vmem:[#allocation18_spill] sm:$0xff] %v9344_v62  ;;  %16293 = vst [vmem:[#allocation19_spill] sm:$0xff] %v9346_v63  ;;  %v9366_v62 = vld [vmem:[%s9000_s30 + $0x60] sm:$0xff] }
  0x9c   : > { %1049 = vrot.lane.b32.xlu1 %v9349_v3, %s8903_s16  ;;  %1047 = vrot.lane.b32.xlu0 %v9352_v61, %s8903_s16  ;;  %16299 = vst [vmem:[#allocation25_spill] sm:$0xff] %v9366_v62  ;;  %v9377_v3 = vld [vmem:[%s9000_s30 + $0x80] sm:$0xff] }
  0x9d   : > { %16302 = vst [vmem:[#allocation28_spill] sm:$0xff] %v9377_v3 }
  0x9e   : > { %v9358_v60 = vpop.permute.xlu1 %809  ;;  %v9360_v1 = vpop.permute.xlu0 %807 }
  0x9f   : > { %16296 = vst [vmem:[#allocation22_spill] sm:$0xff] %v9358_v60  ;;  %16297 = vst [vmem:[#allocation23_spill] sm:$0xff] %v9360_v1  ;;  %v9380_v60 = vld [vmem:[%s9000_s30 + $0x78] sm:$0xff] }
  0xa0   : > { %1053 = vrot.lane.b32.xlu1 %v9363_v32, %s8903_s16  ;;  %1051 = vrot.lane.b32.xlu0 %v9366_v62, %s8903_s16  ;;  %16303 = vst [vmem:[#allocation29_spill] sm:$0xff] %v9380_v60  ;;  %v9391_v32 = vld [vmem:[%s9000_s30 + $0x98] sm:$0xff] }
  0xa1   : > { %16306 = vst [vmem:[#allocation32_spill] sm:$0xff] %v9391_v32 }
  0xa2   : > { %v9372_v63 = vpop.permute.xlu1 %813  ;;  %v9374_v61 = vpop.permute.xlu0 %811 }
  0xa3   : > { %16300 = vst [vmem:[#allocation26_spill] sm:$0xff] %v9372_v63  ;;  %16301 = vst [vmem:[#allocation27_spill] sm:$0xff] %v9374_v61  ;;  %v9394_v63 = vld [vmem:[%s9000_s30 + $0x90] sm:$0xff] }
  0xa4   : > { %1057 = vrot.lane.b32.xlu1 %v9377_v3, %s8903_s16  ;;  %1055 = vrot.lane.b32.xlu0 %v9380_v60, %s8903_s16  ;;  %16307 = vst [vmem:[#allocation33_spill] sm:$0xff] %v9394_v63  ;;  %v9405_v3 = vld [vmem:[%s9000_s30 + $0xb0] sm:$0xff] }
  0xa5   : > { %16310 = vst [vmem:[#allocation36_spill] sm:$0xff] %v9405_v3 }
  0xa6   : > { %v9386_v1 = vpop.permute.xlu1 %817  ;;  %v9388_v62 = vpop.permute.xlu0 %815 }
  0xa7   : > { %16304 = vst [vmem:[#allocation30_spill] sm:$0xff] %v9386_v1  ;;  %16305 = vst [vmem:[#allocation31_spill] sm:$0xff] %v9388_v62  ;;  %v9408_v1 = vld [vmem:[%s9000_s30 + $0xa8] sm:$0xff] }
  0xa8   : > { %1061 = vrot.lane.b32.xlu1 %v9391_v32, %s8903_s16  ;;  %1059 = vrot.lane.b32.xlu0 %v9394_v63, %s8903_s16  ;;  %16311 = vst [vmem:[#allocation37_spill] sm:$0xff] %v9408_v1  ;;  %v9419_v32 = vld [vmem:[%s9000_s30 + $0xc8] sm:$0xff] }
  0xa9   : > { %16314 = vst [vmem:[#allocation40_spill] sm:$0xff] %v9419_v32 }
  0xaa   : > { %v9400_v61 = vpop.permute.xlu1 %821  ;;  %v9402_v60 = vpop.permute.xlu0 %819 }
  0xab   : > { %16308 = vst [vmem:[#allocation34_spill] sm:$0xff] %v9400_v61  ;;  %16309 = vst [vmem:[#allocation35_spill] sm:$0xff] %v9402_v60  ;;  %v9422_v61 = vld [vmem:[%s9000_s30 + $0xc0] sm:$0xff] }
  0xac   : > { %1065 = vrot.lane.b32.xlu1 %v9405_v3, %s8903_s16  ;;  %1063 = vrot.lane.b32.xlu0 %v9408_v1, %s8903_s16  ;;  %16315 = vst [vmem:[#allocation41_spill] sm:$0xff] %v9422_v61  ;;  %v9433_v3 = vld [vmem:[%s9000_s30 + $0xe0] sm:$0xff] }
  0xad   : > { %16318 = vst [vmem:[#allocation44_spill] sm:$0xff] %v9433_v3 }
  0xae   : > { %v9414_v62 = vpop.permute.xlu1 %825  ;;  %v9416_v63 = vpop.permute.xlu0 %823 }
  0xaf   : > { %16312 = vst [vmem:[#allocation38_spill] sm:$0xff] %v9414_v62  ;;  %16313 = vst [vmem:[#allocation39_spill] sm:$0xff] %v9416_v63  ;;  %v9436_v62 = vld [vmem:[%s9000_s30 + $0xd8] sm:$0xff] }
  0xb0   : > { %1069 = vrot.lane.b32.xlu1 %v9419_v32, %s8903_s16  ;;  %1067 = vrot.lane.b32.xlu0 %v9422_v61, %s8903_s16  ;;  %16319 = vst [vmem:[#allocation45_spill] sm:$0xff] %v9436_v62  ;;  %v9447_v32 = vld [vmem:[%s9000_s30 + $0xf8] sm:$0xff] }
  0xb1   : > { %16322 = vst [vmem:[#allocation48_spill] sm:$0xff] %v9447_v32 }
  0xb2   : > { %v9428_v60 = vpop.permute.xlu1 %829  ;;  %v9430_v1 = vpop.permute.xlu0 %827 }
  0xb3   : > { %16316 = vst [vmem:[#allocation42_spill] sm:$0xff] %v9428_v60  ;;  %16317 = vst [vmem:[#allocation43_spill] sm:$0xff] %v9430_v1  ;;  %v9450_v60 = vld [vmem:[%s9000_s30 + $0xf0] sm:$0xff] }
  0xb4   : > { %1073 = vrot.lane.b32.xlu1 %v9433_v3, %s8903_s16  ;;  %1071 = vrot.lane.b32.xlu0 %v9436_v62, %s8903_s16  ;;  %16323 = vst [vmem:[#allocation49_spill] sm:$0xff] %v9450_v60  ;;  %v9461_v3 = vld [vmem:[%s9000_s30 + $0x110] sm:$0xff] }
  0xb5   : > { %16326 = vst [vmem:[#allocation52_spill] sm:$0xff] %v9461_v3 }
  0xb6   : > { %v9442_v63 = vpop.permute.xlu1 %833  ;;  %v9444_v61 = vpop.permute.xlu0 %831 }
  0xb7   : > { %16320 = vst [vmem:[#allocation46_spill] sm:$0xff] %v9442_v63  ;;  %16321 = vst [vmem:[#allocation47_spill] sm:$0xff] %v9444_v61  ;;  %v9464_v63 = vld [vmem:[%s9000_s30 + $0x108] sm:$0xff] }
  0xb8   : > { %1077 = vrot.lane.b32.xlu1 %v9447_v32, %s8903_s16  ;;  %1075 = vrot.lane.b32.xlu0 %v9450_v60, %s8903_s16  ;;  %16327 = vst [vmem:[#allocation53_spill] sm:$0xff] %v9464_v63  ;;  %v9475_v32 = vld [vmem:[%s9000_s30 + $0x128] sm:$0xff] }
  0xb9   : > { %16330 = vst [vmem:[#allocation56_spill] sm:$0xff] %v9475_v32 }
  0xba   : > { %v9456_v1 = vpop.permute.xlu1 %837  ;;  %v9458_v62 = vpop.permute.xlu0 %835 }
  0xbb   : > { %16324 = vst [vmem:[#allocation50_spill] sm:$0xff] %v9456_v1  ;;  %16325 = vst [vmem:[#allocation51_spill] sm:$0xff] %v9458_v62  ;;  %v9478_v1 = vld [vmem:[%s9000_s30 + $0x120] sm:$0xff] }
  0xbc   : > { %1081 = vrot.lane.b32.xlu1 %v9461_v3, %s8903_s16  ;;  %1079 = vrot.lane.b32.xlu0 %v9464_v63, %s8903_s16  ;;  %16331 = vst [vmem:[#allocation57_spill] sm:$0xff] %v9478_v1  ;;  %v9489_v3 = vld [vmem:[%s9000_s30 + $0x140] sm:$0xff] }
  0xbd   : > { %16334 = vst [vmem:[#allocation60_spill] sm:$0xff] %v9489_v3 }
  0xbe   : > { %v9470_v61 = vpop.permute.xlu1 %841  ;;  %v9472_v60 = vpop.permute.xlu0 %839 }
  0xbf   : > { %16328 = vst [vmem:[#allocation54_spill] sm:$0xff] %v9470_v61  ;;  %16329 = vst [vmem:[#allocation55_spill] sm:$0xff] %v9472_v60  ;;  %v9492_v60 = vld [vmem:[%s9000_s30 + $0x138] sm:$0xff] }
  0xc0   : > { %1085 = vrot.lane.b32.xlu1 %v9475_v32, %s8903_s16  ;;  %1083 = vrot.lane.b32.xlu0 %v9478_v1, %s8903_s16  ;;  %16335 = vst [vmem:[#allocation61_spill] sm:$0xff] %v9492_v60  ;;  %v9503_v32 = vld [vmem:[%s9000_s30 + $0x158] sm:$0xff] }
  0xc1   : > { %16338 = vst [vmem:[#allocation64_spill] sm:$0xff] %v9503_v32 }
  0xc2   : > { %v9484_v62 = vpop.permute.xlu1 %845  ;;  %v9486_v63 = vpop.permute.xlu0 %843 }
  0xc3   : > { %16332 = vst [vmem:[#allocation58_spill] sm:$0xff] %v9484_v62  ;;  %16333 = vst [vmem:[#allocation59_spill] sm:$0xff] %v9486_v63  ;;  %v9506_v62 = vld [vmem:[%s9000_s30 + $0x150] sm:$0xff] }
  0xc4   : > { %1089 = vrot.lane.b32.xlu1 %v9489_v3, %s8903_s16  ;;  %1087 = vrot.lane.b32.xlu0 %v9492_v60, %s8903_s16  ;;  %16339 = vst [vmem:[#allocation65_spill] sm:$0xff] %v9506_v62  ;;  %v9520_v60 = vld [vmem:[%s9000_s30 + $0x168] sm:$0xff] }
  0xc6   : > { %v9498_v61 = vpop.permute.xlu1 %913  ;;  %v9500_v1 = vpop.permute.xlu0 %911 }
  0xc7   : > { %16336 = vst [vmem:[#allocation62_spill] sm:$0xff] %v9498_v61  ;;  %16337 = vst [vmem:[#allocation63_spill] sm:$0xff] %v9500_v1  ;;  %v9527_v1 = vld [vmem:[%s9000_s30 + $0x188] sm:$0xff]  ;;  %v9530_v61 = vld [vmem:[%s9000_s30 + $0x180] sm:$0xff] }
  0xc8   : > { %1093 = vrot.lane.b32.xlu1 %v9503_v32, %s8903_s16  ;;  %1091 = vrot.lane.b32.xlu0 %v9506_v62, %s8903_s16 }
  0xca   : > { %v9512_v63 = vpop.permute.xlu1 %917  ;;  %v9514_v3 = vpop.permute.xlu0 %915 }
  0xcb   : > { %16340 = vst [vmem:[#allocation66_spill] sm:$0xff] %v9512_v63  ;;  %16341 = vst [vmem:[#allocation67_spill] sm:$0xff] %v9514_v3 }
  0xcc   : > { %1097 = vrot.lane.b32.xlu1 %v9517_v33, %s8903_s16  ;;  %1095 = vrot.lane.b32.xlu0 %v9520_v60, %s8903_s16 }
  0xce   : > { %v9532_v32 = vpop.permute.xlu1 %921  ;;  %v9534_v62 = vpop.permute.xlu0 %919 }
  0xcf   : > { %16342 = vst [vmem:[#allocation68_spill] sm:$0xff] %v9532_v32  ;;  %16343 = vst [vmem:[#allocation69_spill] sm:$0xff] %v9534_v62 }
  0xd0   : > { %1101 = vrot.lane.b32.xlu1 %v9527_v1, %s8903_s16  ;;  %1099 = vrot.lane.b32.xlu0 %v9530_v61, %s8903_s16  ;;  %s8915_s16 = smov 64  }
  0xd2   : > { %v9540_v3 = vpop.permute.xlu1 %925  ;;  %v9542_v63 = vpop.permute.xlu0 %923 }
  0xd3   : > { %16344 = vst [vmem:[#allocation70_spill] sm:$0xff] %v9540_v3  ;;  %16345 = vst [vmem:[#allocation71_spill] sm:$0xff] %v9542_v63 }
  0xd4   : > { %1169 = vrot.lane.b32.xlu1 %v9010_v2, %s8904_s17  ;;  %1167 = vrot.lane.b32.xlu0 %v9003_v0, %s8904_s17 }
  0xd6   : > { %v9548_v32 = vpop.permute.xlu1 %929  ;;  %v9550_v62 = vpop.permute.xlu0 %927 }
  0xd7   : > { %16346 = vst [vmem:[#allocation72_spill] sm:$0xff] %v9550_v62 }
  0xd8   : > { %1173 = vrot.lane.b32.xlu1 %v9017_v4, %s8904_s17  ;;  %1171 = vrot.lane.b32.xlu0 %v9020_v5, %s8904_s17 }
  0xda   : > { %v9556_v3 = vpop.permute.xlu1 %933  ;;  %v9558_v63 = vpop.permute.xlu0 %931 }
  0xdb   : > { %16347 = vst [vmem:[#allocation73_spill] sm:$0xff] %v9556_v3  ;;  %16348 = vst [vmem:[#allocation74_spill] sm:$0xff] %v9558_v63  ;;  %v8088_v3 = vld [vmem:[%s9000_s30 + $0x49] sm:$0xff] }
  0xdc   : > { %1177 = vrot.lane.b32.xlu1 %v9027_v6, %s8904_s17  ;;  %1175 = vrot.lane.b32.xlu0 %v9030_v7, %s8904_s17 }
  0xde   : > { %v9564_v0 = vpop.permute.xlu1 %937  ;;  %v9566_v2 = vpop.permute.xlu0 %935 }
  0xdf   : > { %16349 = vst [vmem:[#allocation75_spill] sm:$0xff] %v9564_v0  ;;  %16350 = vst [vmem:[#allocation76_spill] sm:$0xff] %v9566_v2  ;;  %v8085_v2 = vld [vmem:[%s9000_s30 + $0x1a0] sm:$0xff]  ;;  %v8084_v0 = vld [vmem:[%s9000_s30 + $0x198] sm:$0xff] }
  0xe0   : > { %1181 = vrot.lane.b32.xlu1 %v9037_v8, %s8904_s17  ;;  %1179 = vrot.lane.b32.xlu0 %v9040_v9, %s8904_s17 }
  0xe2   : > { %v9572_v4 = vpop.permute.xlu1 %941  ;;  %v9574_v5 = vpop.permute.xlu0 %939 }
  0xe3   : > { %16351 = vst [vmem:[#allocation77_spill] sm:$0xff] %v9572_v4  ;;  %16352 = vst [vmem:[#allocation78_spill] sm:$0xff] %v9574_v5  ;;  %v16405_v5 = vld [vmem:[#allocation36_spill] sm:$0xff] }
  0xe4   : > { %1185 = vrot.lane.b32.xlu1 %v9047_v10, %s8904_s17  ;;  %1183 = vrot.lane.b32.xlu0 %v9050_v11, %s8904_s17 }
  0xe6   : > { %v9580_v6 = vpop.permute.xlu1 %945  ;;  %v9582_v7 = vpop.permute.xlu0 %943 }
  0xe7   : > { %16353 = vst [vmem:[#allocation79_spill] sm:$0xff] %v9580_v6  ;;  %16354 = vst [vmem:[#allocation80_spill] sm:$0xff] %v9582_v7  ;;  %v16397_v7 = vld [vmem:[#allocation28_spill] sm:$0xff] }
  0xe8   : > { %1189 = vrot.lane.b32.xlu1 %v9057_v12, %s8904_s17  ;;  %1187 = vrot.lane.b32.xlu0 %v9060_v13, %s8904_s17 }
  0xea   : > { %v9588_v8 = vpop.permute.xlu1 %949  ;;  %v9590_v9 = vpop.permute.xlu0 %947 }
  0xeb   : > { %16355 = vst [vmem:[#allocation81_spill] sm:$0xff] %v9588_v8  ;;  %16356 = vst [vmem:[#allocation82_spill] sm:$0xff] %v9590_v9 }
  0xec   : > { %1193 = vrot.lane.b32.xlu1 %v9067_v14, %s8904_s17  ;;  %1191 = vrot.lane.b32.xlu0 %v9070_v15, %s8904_s17 }
  0xee   : > { %v9596_v10 = vpop.permute.xlu1 %953  ;;  %v9598_v11 = vpop.permute.xlu0 %951 }
  0xef   : > { %16357 = vst [vmem:[#allocation83_spill] sm:$0xff] %v9596_v10  ;;  %16358 = vst [vmem:[#allocation84_spill] sm:$0xff] %v9598_v11 }
  0xf0   : > { %1197 = vrot.lane.b32.xlu1 %v9077_v16, %s8904_s17  ;;  %1195 = vrot.lane.b32.xlu0 %v9080_v17, %s8904_s17 }
  0xf2   : > { %v9604_v12 = vpop.permute.xlu1 %957  ;;  %v9606_v13 = vpop.permute.xlu0 %955 }
  0xf3   : > { %16359 = vst [vmem:[#allocation85_spill] sm:$0xff] %v9604_v12  ;;  %16360 = vst [vmem:[#allocation86_spill] sm:$0xff] %v9606_v13 }
  0xf4   : > { %1201 = vrot.lane.b32.xlu1 %v9087_v18, %s8904_s17  ;;  %1199 = vrot.lane.b32.xlu0 %v9090_v19, %s8904_s17 }
  0xf6   : > { %v9612_v14 = vpop.permute.xlu1 %961  ;;  %v9614_v15 = vpop.permute.xlu0 %959 }
  0xf7   : > { %16361 = vst [vmem:[#allocation87_spill] sm:$0xff] %v9612_v14  ;;  %16362 = vst [vmem:[#allocation88_spill] sm:$0xff] %v9614_v15 }
  0xf8   : > { %1205 = vrot.lane.b32.xlu1 %v9097_v20, %s8904_s17  ;;  %1203 = vrot.lane.b32.xlu0 %v9100_v21, %s8904_s17 }
  0xfa   : > { %v9620_v16 = vpop.permute.xlu1 %965  ;;  %v9622_v17 = vpop.permute.xlu0 %963 }
  0xfc   : > { %1209 = vrot.lane.b32.xlu1 %v9107_v22, %s8904_s17  ;;  %1207 = vrot.lane.b32.xlu0 %v9110_v23, %s8904_s17 }
  0xfe   : > { %v9628_v18 = vpop.permute.xlu1 %969  ;;  %v9630_v19 = vpop.permute.xlu0 %967 }
 0x100   : > { %1213 = vrot.lane.b32.xlu1 %v9117_v24, %s8904_s17  ;;  %1211 = vrot.lane.b32.xlu0 %v9120_v25, %s8904_s17 }
 0x102   : > { %v9636_v20 = vpop.permute.xlu1 %973  ;;  %v9638_v21 = vpop.permute.xlu0 %971 }
 0x104   : > { %1217 = vrot.lane.b32.xlu1 %v9127_v26, %s8904_s17  ;;  %1215 = vrot.lane.b32.xlu0 %v9130_v27, %s8904_s17  ;;  %v9661_v26 = vld [vmem:[%s9000_s30 + $0x189] sm:$0xff]  ;;  %v9664_v27 = vld [vmem:[%s9000_s30 + $0x181] sm:$0xff] }
 0x106   : > { %v9644_v22 = vpop.permute.xlu1 %1041  ;;  %v9646_v23 = vpop.permute.xlu0 %1039 }
 0x108   : > { %1221 = vrot.lane.b32.xlu1 %v9137_v28, %s8904_s17  ;;  %1219 = vrot.lane.b32.xlu0 %v9140_v29, %s8904_s17 }
 0x10a   : > { %v9652_v24 = vpop.permute.xlu1 %1045  ;;  %v9654_v25 = vpop.permute.xlu0 %1043 }
 0x10c   : > { %1225 = vrot.lane.b32.xlu1 %v9147_v30, %s8904_s17  ;;  %1223 = vrot.lane.b32.xlu0 %v9150_v31, %s8904_s17 }
 0x10e   : > { %v9666_v15 = vpop.permute.xlu1 %1049  ;;  %v9668_v28 = vpop.permute.xlu0 %1047 }
 0x110   : > { %1229 = vrot.lane.b32.xlu1 %v9661_v26, %s8904_s17  ;;  %1227 = vrot.lane.b32.xlu0 %v9664_v27, %s8904_s17 }
 0x112   : > { %v9674_v29 = vpop.permute.xlu1 %1053  ;;  %v9676_v30 = vpop.permute.xlu0 %1051 }
 0x114   : > { %1297 = vrot.lane.b32.xlu1 %v9161_v34, %s8905_s18  ;;  %1295 = vrot.lane.b32.xlu0 %v9164_v35, %s8905_s18 }
 0x116   : > { %v9682_v31 = vpop.permute.xlu1 %1057  ;;  %v9684_v14 = vpop.permute.xlu0 %1055 }
 0x117   : > { %16363 = vst [vmem:[#allocation89_spill] sm:$0xff] %v9682_v31  ;;  %16364 = vst [vmem:[#allocation90_spill] sm:$0xff] %v9684_v14 }
 0x118   : > { %1301 = vrot.lane.b32.xlu1 %v9171_v36, %s8905_s18  ;;  %1299 = vrot.lane.b32.xlu0 %v9174_v37, %s8905_s18 }
 0x11a   : > { %v9690_v13 = vpop.permute.xlu1 %1061  ;;  %v9692_v12 = vpop.permute.xlu0 %1059 }
 0x11b   : > { %16365 = vst [vmem:[#allocation91_spill] sm:$0xff] %v9690_v13  ;;  %16366 = vst [vmem:[#allocation92_spill] sm:$0xff] %v9692_v12  ;;  %v8087_v12 = vld [vmem:[%s9000_s30 + $0x39] sm:$0xff]  ;;  %v8086_v13 = vld [vmem:[%s9000_s30 + $0x31] sm:$0xff] }
 0x11c   : > { %1305 = vrot.lane.b32.xlu1 %v9181_v38, %s8905_s18  ;;  %1303 = vrot.lane.b32.xlu0 %v9184_v39, %s8905_s18 }
 0x11e   : > { %v9698_v34 = vpop.permute.xlu1 %1065  ;;  %v9700_v35 = vpop.permute.xlu0 %1063 }
 0x11f   : > { %16367 = vst [vmem:[#allocation93_spill] sm:$0xff] %v9698_v34  ;;  %16368 = vst [vmem:[#allocation94_spill] sm:$0xff] %v9700_v35 }
 0x120   : > { %1309 = vrot.lane.b32.xlu1 %v9191_v40, %s8905_s18  ;;  %1307 = vrot.lane.b32.xlu0 %v9194_v41, %s8905_s18 }
 0x122   : > { %v9706_v36 = vpop.permute.xlu1 %1069  ;;  %v9708_v37 = vpop.permute.xlu0 %1067 }
 0x123   : > { %16369 = vst [vmem:[#allocation95_spill] sm:$0xff] %v9706_v36  ;;  %16370 = vst [vmem:[#allocation96_spill] sm:$0xff] %v9708_v37  ;;  %v16401_v37 = vld [vmem:[#allocation32_spill] sm:$0xff] }
 0x124   : > { %1313 = vrot.lane.b32.xlu1 %v9201_v42, %s8905_s18  ;;  %1311 = vrot.lane.b32.xlu0 %v9204_v43, %s8905_s18 }
 0x126   : > { %v9714_v38 = vpop.permute.xlu1 %1073  ;;  %v9716_v39 = vpop.permute.xlu0 %1071 }
 0x127   : > { %16371 = vst [vmem:[#allocation97_spill] sm:$0xff] %v9714_v38  ;;  %16372 = vst [vmem:[#allocation98_spill] sm:$0xff] %v9716_v39  ;;  %v16393_v39 = vld [vmem:[#allocation24_spill] sm:$0xff] }
 0x128   : > { %1317 = vrot.lane.b32.xlu1 %v9211_v44, %s8905_s18  ;;  %1315 = vrot.lane.b32.xlu0 %v9214_v45, %s8905_s18 }
 0x12a   : > { %v9722_v40 = vpop.permute.xlu1 %1077  ;;  %v9724_v41 = vpop.permute.xlu0 %1075 }
 0x12b   : > { %16373 = vst [vmem:[#allocation99_spill] sm:$0xff] %v9722_v40  ;;  %16374 = vst [vmem:[#allocation100_spill] sm:$0xff] %v9724_v41  ;;  %v16389_v41 = vld [vmem:[#allocation20_spill] sm:$0xff]  ;;  %v16390_v40 = vld [vmem:[#allocation21_spill] sm:$0xff] }
 0x12c   : > { %1321 = vrot.lane.b32.xlu1 %v9221_v46, %s8905_s18  ;;  %1319 = vrot.lane.b32.xlu0 %v9224_v47, %s8905_s18 }
 0x12e   : > { %v9730_v42 = vpop.permute.xlu1 %1081  ;;  %v9732_v43 = vpop.permute.xlu0 %1079 }
 0x12f   : > { %16375 = vst [vmem:[#allocation101_spill] sm:$0xff] %v9730_v42  ;;  %16376 = vst [vmem:[#allocation102_spill] sm:$0xff] %v9732_v43  ;;  %v16386_v42 = vld [vmem:[#allocation17_spill] sm:$0xff] }
 0x130   : > { %1325 = vrot.lane.b32.xlu1 %v9231_v48, %s8905_s18  ;;  %1323 = vrot.lane.b32.xlu0 %v9234_v49, %s8905_s18 }
 0x132   : > { %v9738_v44 = vpop.permute.xlu1 %1085  ;;  %v9740_v45 = vpop.permute.xlu0 %1083 }
 0x133   : > { %16377 = vst [vmem:[#allocation103_spill] sm:$0xff] %v9738_v44  ;;  %16378 = vst [vmem:[#allocation104_spill] sm:$0xff] %v9740_v45  ;;  %v16383_v45 = vld [vmem:[#allocation8_spill] sm:$0xff]  ;;  %v9798_v44 = vld [vmem:[%s9000_s30 + $0x182] sm:$0xff] }
 0x134   : > { %1329 = vrot.lane.b32.xlu1 %v9241_v50, %s8905_s18  ;;  %1327 = vrot.lane.b32.xlu0 %v9244_v51, %s8905_s18 }
 0x136   : > { %v9746_v46 = vpop.permute.xlu1 %1089  ;;  %v9748_v47 = vpop.permute.xlu0 %1087 }
 0x137   : > { %16379 = vst [vmem:[#allocation105_spill] sm:$0xff] %v9746_v46  ;;  %16380 = vst [vmem:[#allocation106_spill] sm:$0xff] %v9748_v47  ;;  %v16381_v47 = vld [vmem:[#allocation4_spill] sm:$0xff] }
 0x138   : > { %1333 = vrot.lane.b32.xlu1 %v9251_v52, %s8905_s18  ;;  %1331 = vrot.lane.b32.xlu0 %v9254_v53, %s8905_s18 }
 0x13a   : > { %v9754_v48 = vpop.permute.xlu1 %1093  ;;  %v9756_v49 = vpop.permute.xlu0 %1091 }
 0x13c   : > { %1337 = vrot.lane.b32.xlu1 %v9261_v54, %s8905_s18  ;;  %1335 = vrot.lane.b32.xlu0 %v9264_v55, %s8905_s18 }
 0x13e   : > { %v9762_v50 = vpop.permute.xlu1 %1097  ;;  %v9764_v51 = vpop.permute.xlu0 %1095 }
 0x140   : > { %1341 = vrot.lane.b32.xlu1 %v9271_v56, %s8905_s18  ;;  %1339 = vrot.lane.b32.xlu0 %v9274_v57, %s8905_s18  ;;  %v16382_v56 = vld [vmem:[#allocation5_spill] sm:$0xff] }
 0x142   : > { %v9770_v52 = vpop.permute.xlu1 %1101  ;;  %v9772_v53 = vpop.permute.xlu0 %1099 }
 0x144   : > { %1345 = vrot.lane.b32.xlu1 %v9281_v58, %s8905_s18  ;;  %1343 = vrot.lane.b32.xlu0 %v9284_v59, %s8905_s18  ;;  %v16384_v58 = vld [vmem:[#allocation9_spill] sm:$0xff]  ;;  %v9795_v59 = vld [vmem:[%s9000_s30 + $0x18a] sm:$0xff] }
 0x146   : > { %v9778_v54 = vpop.permute.xlu1 %1169  ;;  %v9780_v55 = vpop.permute.xlu0 %1167 }
 0x148   : > { %1349 = vrot.lane.b32.xlu1 %v16381_v47, %s8905_s18  ;;  %1347 = vrot.lane.b32.xlu0 %v16382_v56, %s8905_s18 }
 0x14a   : > { %v9786_v57 = vpop.permute.xlu1 %1173  ;;  %v9788_v46 = vpop.permute.xlu0 %1171 }
 0x14c   : > { %1353 = vrot.lane.b32.xlu1 %v16383_v45, %s8905_s18  ;;  %1351 = vrot.lane.b32.xlu0 %v16384_v58, %s8905_s18  ;;  %v16385_v58 = vld [vmem:[#allocation16_spill] sm:$0xff] }
 0x14e   : > { %v9800_v43 = vpop.permute.xlu1 %1177  ;;  %v9802_v47 = vpop.permute.xlu0 %1175 }
 0x150   : > { %1357 = vrot.lane.b32.xlu1 %v9795_v59, %s8905_s18  ;;  %1355 = vrot.lane.b32.xlu0 %v9798_v44, %s8905_s18  ;;  %s8912_s18 = smov 40  }
 0x152   : > { %v9808_v56 = vpop.permute.xlu1 %1181  ;;  %v9810_v45 = vpop.permute.xlu0 %1179 }
 0x154   : > { %1425 = vrot.lane.b32.xlu1 %v16385_v58, %s8906_s19  ;;  %1423 = vrot.lane.b32.xlu0 %v16386_v42, %s8906_s19  ;;  %v16394_v58 = vld [vmem:[#allocation25_spill] sm:$0xff] }
 0x156   : > { %v9816_v11 = vpop.permute.xlu1 %1185  ;;  %v9818_v10 = vpop.permute.xlu0 %1183 }
 0x157   : > { %16387 = vst [vmem:[#allocation4_spill] sm:$0xff] %v9816_v11  ;;  %16388 = vst [vmem:[#allocation5_spill] sm:$0xff] %v9818_v10  ;;  %v8090_v11 = vld [vmem:[%s9000_s30 + $0x61] sm:$0xff] }
 0x158   : > { %1429 = vrot.lane.b32.xlu1 %v16389_v41, %s8906_s19  ;;  %1427 = vrot.lane.b32.xlu0 %v16390_v40, %s8906_s19  ;;  %v16398_v41 = vld [vmem:[#allocation29_spill] sm:$0xff] }
 0x15a   : > { %v9824_v9 = vpop.permute.xlu1 %1189  ;;  %v9826_v8 = vpop.permute.xlu0 %1187 }
 0x15b   : > { %16391 = vst [vmem:[#allocation8_spill] sm:$0xff] %v9824_v9  ;;  %16392 = vst [vmem:[#allocation9_spill] sm:$0xff] %v9826_v8 }
 0x15c   : > { %1433 = vrot.lane.b32.xlu1 %v16393_v39, %s8906_s19  ;;  %1431 = vrot.lane.b32.xlu0 %v16394_v58, %s8906_s19  ;;  %v16402_v39 = vld [vmem:[#allocation33_spill] sm:$0xff] }
 0x15e   : > { %v9832_v42 = vpop.permute.xlu1 %1193  ;;  %v9834_v38 = vpop.permute.xlu0 %1191 }
 0x15f   : > { %16395 = vst [vmem:[#allocation16_spill] sm:$0xff] %v9832_v42  ;;  %16396 = vst [vmem:[#allocation17_spill] sm:$0xff] %v9834_v38 }
 0x160   : > { %1437 = vrot.lane.b32.xlu1 %v16397_v7, %s8906_s19  ;;  %1435 = vrot.lane.b32.xlu0 %v16398_v41, %s8906_s19  ;;  %v16406_v7 = vld [vmem:[#allocation37_spill] sm:$0xff] }
 0x162   : > { %v9840_v40 = vpop.permute.xlu1 %1197  ;;  %v9842_v6 = vpop.permute.xlu0 %1195 }
 0x163   : > { %16399 = vst [vmem:[#allocation20_spill] sm:$0xff] %v9840_v40  ;;  %16400 = vst [vmem:[#allocation21_spill] sm:$0xff] %v9842_v6  ;;  %v16409_v6 = vld [vmem:[#allocation40_spill] sm:$0xff] }
 0x164   : > { %1441 = vrot.lane.b32.xlu1 %v16401_v37, %s8906_s19  ;;  %1439 = vrot.lane.b32.xlu0 %v16402_v39, %s8906_s19  ;;  %v16410_v37 = vld [vmem:[#allocation41_spill] sm:$0xff] }
 0x166   : > { %v9848_v58 = vpop.permute.xlu1 %1201  ;;  %v9850_v36 = vpop.permute.xlu0 %1199 }
 0x167   : > { %16403 = vst [vmem:[#allocation24_spill] sm:$0xff] %v9848_v58  ;;  %16404 = vst [vmem:[#allocation25_spill] sm:$0xff] %v9850_v36  ;;  %v16413_v36 = vld [vmem:[#allocation44_spill] sm:$0xff] }
 0x168   : > { %1445 = vrot.lane.b32.xlu1 %v16405_v5, %s8906_s19  ;;  %1443 = vrot.lane.b32.xlu0 %v16406_v7, %s8906_s19  ;;  %v16414_v5 = vld [vmem:[#allocation45_spill] sm:$0xff] }
 0x16a   : > { %v9856_v41 = vpop.permute.xlu1 %1205  ;;  %v9858_v40 = vpop.permute.xlu0 %1203 }
 0x16b   : > { %16407 = vst [vmem:[#allocation28_spill] sm:$0xff] %v9856_v41  ;;  %16408 = vst [vmem:[#allocation29_spill] sm:$0xff] %v9858_v40  ;;  %v16417_v40 = vld [vmem:[#allocation48_spill] sm:$0xff] }
 0x16c   : > { %1449 = vrot.lane.b32.xlu1 %v16409_v6, %s8906_s19  ;;  %1447 = vrot.lane.b32.xlu0 %v16410_v37, %s8906_s19  ;;  %v16418_v6 = vld [vmem:[#allocation49_spill] sm:$0xff] }
 0x16e   : > { %v9864_v39 = vpop.permute.xlu1 %1209  ;;  %v9866_v58 = vpop.permute.xlu0 %1207 }
 0x16f   : > { %16411 = vst [vmem:[#allocation32_spill] sm:$0xff] %v9864_v39  ;;  %16412 = vst [vmem:[#allocation33_spill] sm:$0xff] %v9866_v58  ;;  %v16421_v58 = vld [vmem:[#allocation52_spill] sm:$0xff] }
 0x170   : > { %1453 = vrot.lane.b32.xlu1 %v16413_v36, %s8906_s19  ;;  %1451 = vrot.lane.b32.xlu0 %v16414_v5, %s8906_s19  ;;  %v16422_v36 = vld [vmem:[#allocation53_spill] sm:$0xff] }
 0x172   : > { %v9872_v7 = vpop.permute.xlu1 %1213  ;;  %v9874_v41 = vpop.permute.xlu0 %1211 }
 0x173   : > { %16415 = vst [vmem:[#allocation36_spill] sm:$0xff] %v9872_v7  ;;  %16416 = vst [vmem:[#allocation37_spill] sm:$0xff] %v9874_v41  ;;  %v16423_v41 = vld [vmem:[#allocation56_spill] sm:$0xff] }
 0x174   : > { %1457 = vrot.lane.b32.xlu1 %v16417_v40, %s8906_s19  ;;  %1455 = vrot.lane.b32.xlu0 %v16418_v6, %s8906_s19  ;;  %v16424_v40 = vld [vmem:[#allocation57_spill] sm:$0xff] }
 0x176   : > { %v9880_v37 = vpop.permute.xlu1 %1217  ;;  %v9882_v39 = vpop.permute.xlu0 %1215 }
 0x177   : > { %16419 = vst [vmem:[#allocation40_spill] sm:$0xff] %v9880_v37  ;;  %16420 = vst [vmem:[#allocation41_spill] sm:$0xff] %v9882_v39 }
 0x178   : > { %1461 = vrot.lane.b32.xlu1 %v16421_v58, %s8906_s19  ;;  %1459 = vrot.lane.b32.xlu0 %v16422_v36, %s8906_s19  ;;  %v16425_v58 = vld [vmem:[#allocation60_spill] sm:$0xff]  ;;  %v16426_v36 = vld [vmem:[#allocation61_spill] sm:$0xff] }
 0x17a   : > { %v9888_v5 = vpop.permute.xlu1 %1221  ;;  %v9890_v7 = vpop.permute.xlu0 %1219 }
 0x17c   : > { %1465 = vrot.lane.b32.xlu1 %v16423_v41, %s8906_s19  ;;  %1463 = vrot.lane.b32.xlu0 %v16424_v40, %s8906_s19  ;;  %v16427_v41 = vld [vmem:[#allocation64_spill] sm:$0xff]  ;;  %v16428_v40 = vld [vmem:[#allocation65_spill] sm:$0xff] }
 0x17e   : > { %v9896_v6 = vpop.permute.xlu1 %1225  ;;  %v9898_v39 = vpop.permute.xlu0 %1223 }
 0x180   : > { %1469 = vrot.lane.b32.xlu1 %v16425_v58, %s8906_s19  ;;  %1467 = vrot.lane.b32.xlu0 %v16426_v36, %s8906_s19 }
 0x182   : > { %v9904_v37 = vpop.permute.xlu1 %1229  ;;  %v9906_v4 = vpop.permute.xlu0 %1227 }
 0x184   : > { %1473 = vrot.lane.b32.xlu1 %v16427_v41, %s8906_s19  ;;  %1471 = vrot.lane.b32.xlu0 %v16428_v40, %s8906_s19 }
 0x186   : > { %v9912_v38 = vpop.permute.xlu1 %1297  ;;  %v9914_v42 = vpop.permute.xlu0 %1295 }
 0x188   : > { %1477 = vrot.lane.b32.xlu1 %v9517_v33, %s8906_s19  ;;  %1475 = vrot.lane.b32.xlu0 %v9520_v60, %s8906_s19 }
 0x18a   : > { %v9920_v35 = vpop.permute.xlu1 %1301  ;;  %v9922_v34 = vpop.permute.xlu0 %1299 }
 0x18c   : > { %1481 = vrot.lane.b32.xlu1 %v9527_v1, %s8906_s19  ;;  %1479 = vrot.lane.b32.xlu0 %v9530_v61, %s8906_s19  ;;  %v8089_v61 = vld [vmem:[%s9000_s30 + $0x51] sm:$0xff] }
 0x18e   : > { %v9930_v8 = vpop.permute.xlu1 %1305  ;;  %v9932_v9 = vpop.permute.xlu0 %1303 }
 0x190   : > { %1485 = vrot.lane.b32.xlu1 %v8085_v2, %s8906_s19  ;;  %1483 = vrot.lane.b32.xlu0 %v8084_v0, %s8906_s19  ;;  %v8091_v0 = vld [vmem:[%s9000_s30 + $0x69] sm:$0xff] }
 0x192   : > { %v9938_v63 = vpop.permute.xlu1 %1309  ;;  %v9940_v1 = vpop.permute.xlu0 %1307 }
 0x194   : > { %1553 = vrot.lane.b32.xlu1 %v8087_v12, %s8907_s20  ;;  %1551 = vrot.lane.b32.xlu0 %v8086_v13, %s8907_s20  ;;  %v8093_v12 = vld [vmem:[%s9000_s30 + $0x81] sm:$0xff]  ;;  %v8092_v13 = vld [vmem:[%s9000_s30 + $0x79] sm:$0xff] }
 0x196   : > { %v9946_v10 = vpop.permute.xlu1 %1313  ;;  %v9948_v2 = vpop.permute.xlu0 %1311 }
 0x197   : > { %16429 = vst [vmem:[#allocation44_spill] sm:$0xff] %v9946_v10  ;;  %16430 = vst [vmem:[#allocation45_spill] sm:$0xff] %v9948_v2 }
 0x198   : > { %1557 = vrot.lane.b32.xlu1 %v8089_v61, %s8907_s20  ;;  %1555 = vrot.lane.b32.xlu0 %v8088_v3, %s8907_s20  ;;  %v8095_v3 = vld [vmem:[%s9000_s30 + $0x99] sm:$0xff]  ;;  %v8094_v61 = vld [vmem:[%s9000_s30 + $0x91] sm:$0xff] }
 0x19a   : > { %v9954_v14 = vpop.permute.xlu1 %1317  ;;  %v9956_v31 = vpop.permute.xlu0 %1315 }
 0x19b   : > { %16431 = vst [vmem:[#allocation48_spill] sm:$0xff] %v9954_v14  ;;  %16432 = vst [vmem:[#allocation49_spill] sm:$0xff] %v9956_v31 }
 0x19c   : > { %1561 = vrot.lane.b32.xlu1 %v8091_v0, %s8907_s20  ;;  %1559 = vrot.lane.b32.xlu0 %v8090_v11, %s8907_s20  ;;  %v2039_v11 = vld [vmem:[%s15847_s3] sm:$0xff] }
 0x19e   : > { %v9962_v2 = vpop.permute.xlu1 %1321  ;;  %v9964_v10 = vpop.permute.xlu0 %1319 }
 0x19f   : > { %16433 = vst [vmem:[#allocation52_spill] sm:$0xff] %v9962_v2  ;;  %16434 = vst [vmem:[#allocation53_spill] sm:$0xff] %v9964_v10  ;;  %v8096_v10 = vld [vmem:[%s9000_s30 + $0xa9] sm:$0xff] }
 0x1a0   : > { %1565 = vrot.lane.b32.xlu1 %v8093_v12, %s8907_s20  ;;  %1563 = vrot.lane.b32.xlu0 %v8092_v13, %s8907_s20  ;;  %v2040_v12 = vld [vmem:[%s15847_s3 + $0x8] sm:$0xff]  ;;  %v8097_v13 = vld [vmem:[%s9000_s30 + $0xb1] sm:$0xff] }
 0x1a1   : > { %v8796_v2 = vpack.c.bf16 %v2040_v12, %v2039_v11  ;;  %v8099_v11 = vld [vmem:[%s9000_s30 + $0xc9] sm:$0xff]  ;;  %v8098_v12 = vld [vmem:[%s9000_s30 + $0xc1] sm:$0xff] }
 0x1a2   : > { %v9970_v14 = vpop.permute.xlu1 %1325  ;;  %v9972_v0 = vpop.permute.xlu0 %1323 }
 0x1a3   : > { %16435 = vst [vmem:[#allocation56_spill] sm:$0xff] %v9970_v14  ;;  %16436 = vst [vmem:[#allocation57_spill] sm:$0xff] %v9972_v0  ;;  %8797 = vmatprep.subr.bf16.mxu0 %v8796_v2 }
 0x1a4   : > { %1569 = vrot.lane.b32.xlu1 %v8095_v3, %s8907_s20  ;;  %1567 = vrot.lane.b32.xlu0 %v8094_v61, %s8907_s20  ;;  %v2041_v3 = vld [vmem:[%s15847_s3 + $0x10] sm:$0xff]  ;;  %v2042_v61 = vld [vmem:[%s15847_s3 + $0x18] sm:$0xff] }
 0x1a5   : > { %8799 = vmatpush3.bf16.msra.mxu0 %v8796_v2 }
 0x1a6   : > { %v9984_v14 = vpop.permute.xlu1 %1329  ;;  %v9986_v0 = vpop.permute.xlu0 %1327 }
 0x1a7   : > { %16437 = vst [vmem:[#allocation60_spill] sm:$0xff] %v9984_v14  ;;  %16438 = vst [vmem:[#allocation61_spill] sm:$0xff] %v9986_v0  ;;  %v8800_v14 = vpack.c.bf16 %v2042_v61, %v2041_v3  ;;  %v2043_v3 = vld [vmem:[%s15847_s3 + $0x20] sm:$0xf] }
 0x1a8   : > { %1573 = vrot.lane.b32.xlu1 %v8097_v13, %s8907_s20  ;;  %1571 = vrot.lane.b32.xlu0 %v8096_v10, %s8907_s20  ;;  %v8101_v10 = vld [vmem:[%s9000_s30 + $0xe1] sm:$0xff]  ;;  %v8100_v13 = vld [vmem:[%s9000_s30 + $0xd9] sm:$0xff] }
 0x1a9   : > { %8801 = vmatprep.subr.bf16.mxu0 %v8800_v14  ;;  %v8103_v61 = vld [vmem:[%s9000_s30 + $0xf9] sm:$0xff] }
 0x1aa   : > { %v9998_v0 = vpop.permute.xlu1 %1333  ;;  %v10000_v31 = vpop.permute.xlu0 %1331  ;;  %8803 = vmatpush3.bf16.msra.mxu0 %v8800_v14 }
 0x1ab   : > { %16439 = vst [vmem:[#allocation64_spill] sm:$0xff] %v9998_v0  ;;  %16440 = vst [vmem:[#allocation65_spill] sm:$0xff] %v10000_v31  ;;  %8514 = vmatprep.subr.msk.mxu0 %vm2148_vm0, %v2043_v3  ;;  %v16447_v31 = vld [vmem:[#allocation50_spill] sm:$0xff] }
 0x1ac   : > { %1577 = vrot.lane.b32.xlu1 %v8099_v11, %s8907_s20  ;;  %1575 = vrot.lane.b32.xlu0 %v8098_v12, %s8907_s20  ;;  %v8102_v11 = vld [vmem:[%s9000_s30 + $0xf1] sm:$0xff] }
 0x1ae   : > { %v10006_v62 = vpop.permute.xlu1 %1337  ;;  %v10008_v2 = vpop.permute.xlu0 %1335  ;;  %8515 = vmatpush3.msk.msra.mxu0 %vm2148_vm0, %v2043_v3  ;;  %v1803_v3 = vsel %vm1775_vm1, %v16425_v58, %v16447_v31  ;;  %v8119_v58 = vld [vmem:[%s9000_s30 + $0x3a] sm:$0xff] }
 0x1af   : > { %16441 = vst [vmem:[#allocation107_spill] sm:$0xff] %v10006_v62  ;;  %16442 = vst [vmem:[#allocation108_spill] sm:$0xff] %v10008_v2  ;;  %v8105_v2 = vld [vmem:[%s9000_s30 + $0x111] sm:$0xff]  ;;  %v8104_v62 = vld [vmem:[%s9000_s30 + $0x109] sm:$0xff] }
 0x1b0   : > { %1581 = vrot.lane.b32.xlu1 %v8101_v10, %s8907_s20  ;;  %1579 = vrot.lane.b32.xlu0 %v8100_v13, %s8907_s20 }
 0x1b2   : > { %v10019_v14 = vpop.permute.xlu1 %1341  ;;  %v10021_v12 = vpop.permute.xlu0 %1339 }
 0x1b3   : > { %16443 = vst [vmem:[#allocation109_spill] sm:$0xff] %v10019_v14  ;;  %16444 = vst [vmem:[#allocation110_spill] sm:$0xff] %v10021_v12  ;;  %v16448_v14 = vld [vmem:[#allocation51_spill] sm:$0xff] }
 0x1b4   : > { %1585 = vrot.lane.b32.xlu1 %v8103_v61, %s8907_s20  ;;  %1583 = vrot.lane.b32.xlu0 %v8102_v11, %s8907_s20  ;;  %v1802_v12 = vsel %vm1775_vm1, %v16426_v36, %v16448_v14  ;;  %v1836_v61 = vsel %vm1808_vm2, %v1803_v3, %v9620_v16  ;;  %v8118_v36 = vld [vmem:[%s9000_s30 + $0x32] sm:$0xff]  ;;  %v16449_v14 = vld [vmem:[#allocation54_spill] sm:$0xff] }
 0x1b5   : > { %v1835_v11 = vsel %vm1808_vm2, %v1802_v12, %v9622_v17  ;;  %v16450_v12 = vld [vmem:[#allocation55_spill] sm:$0xff] }
 0x1b6   : > { %v10027_v10 = vpop.permute.xlu1 %1345  ;;  %v10029_v13 = vpop.permute.xlu0 %1343  ;;  %v1868_v31 = vsel %vm1841_vm3, %v1835_v11, %v9756_v49  ;;  %v1804_v49 = vsel %vm1775_vm1, %v16428_v40, %v16450_v12  ;;  %v8120_v11 = vld [vmem:[%s9000_s30 + $0x4a] sm:$0xff] }
 0x1b7   : > { %16445 = vst [vmem:[#allocation111_spill] sm:$0xff] %v10027_v10  ;;  %16446 = vst [vmem:[#allocation112_spill] sm:$0xff] %v10029_v13  ;;  %v1869_v13 = vsel %vm1841_vm3, %v1836_v61, %v9754_v48  ;;  %v1901_v17 = vsel %vm1874_vm4, %v1868_v31, %v9890_v7  ;;  %v1805_v48 = vsel %vm1775_vm1, %v16427_v41, %v16449_v14  ;;  %v8121_v61 = vld [vmem:[%s9000_s30 + $0x52] sm:$0xff]  ;;  %v8122_v14 = vld [vmem:[%s9000_s30 + $0x62] sm:$0xff] }
 0x1b8   : > { %1589 = vrot.lane.b32.xlu1 %v8105_v2, %s8907_s20  ;;  %1587 = vrot.lane.b32.xlu0 %v8104_v62, %s8907_s20  ;;  %v1902_v16 = vsel %vm1874_vm4, %v1869_v13, %v9888_v5  ;;  %v1838_v7 = vsel %vm1808_vm2, %v1805_v48, %v9628_v18  ;;  %v1837_v13 = vsel %vm1808_vm2, %v1804_v49, %v9630_v19 }
 0x1b9   : > { %v1871_v41 = vsel %vm1841_vm3, %v1838_v7, %v9762_v50  ;;  %v1870_v40 = vsel %vm1841_vm3, %v1837_v13, %v9764_v51  ;;  %v16454_v50 = vld [vmem:[#allocation59_spill] sm:$0xff]  ;;  %v8124_v7 = vld [vmem:[%s9000_s30 + $0x7a] sm:$0xff] }
 0x1ba   : > { %v1350_v2 = vpop.permute.xlu1 %1349  ;;  %v1348_v62 = vpop.permute.xlu0 %1347  ;;  %v1904_v18 = vsel %vm1874_vm4, %v1871_v41, %v9896_v6  ;;  %v1903_v19 = vsel %vm1874_vm4, %v1870_v40, %v9898_v39  ;;  %v1806_v51 = vsel %vm1775_vm1, %v9520_v60, %v16454_v50  ;;  %v8127_v13 = vld [vmem:[%s9000_s30 + $0x9a] sm:$0xff]  ;;  %v8126_v41 = vld [vmem:[%s9000_s30 + $0x92] sm:$0xff] }
 0x1bb   : > { %v10060_v3 = vsel %vm1907_vm5, %v1902_v16, %v1350_v2  ;;  %v10063_v5 = vsel %vm1907_vm5, %v1901_v17, %v1348_v62  ;;  %v16453_v16 = vld [vmem:[#allocation58_spill] sm:$0xff]  ;;  %v1839_v39 = vsel %vm1808_vm2, %v1806_v51, %v9638_v21  ;;  %v8123_v62 = vld [vmem:[%s9000_s30 + $0x6a] sm:$0xff] }
 0x1bc   : > { %16451 = vst [vmem:[#allocation50_spill] sm:$0xff] %v10060_v3  ;;  %16452 = vst [vmem:[#allocation51_spill] sm:$0xff] %v10063_v5  ;;  %1681 = vrot.lane.b32.xlu1 %v8119_v58, %s8908_s21  ;;  %1679 = vrot.lane.b32.xlu0 %v8118_v36, %s8908_s21  ;;  %v1807_v36 = vsel %vm1775_vm1, %v9517_v33, %v16453_v16  ;;  %v1872_v33 = vsel %vm1841_vm3, %v1839_v39, %v9772_v53  ;;  %v8125_v53 = vld [vmem:[%s9000_s30 + $0x82] sm:$0xff] }
 0x1bd   : > { %v1840_v6 = vsel %vm1808_vm2, %v1807_v36, %v9636_v20  ;;  %v1905_v21 = vsel %vm1874_vm4, %v1872_v33, %v9906_v4  ;;  %v8130_v16 = vld [vmem:[%s9000_s30 + $0xc2] sm:$0xff]  ;;  %v8135_v33 = vld [vmem:[%s9000_s30 + $0xfa] sm:$0xff] }
 0x1be   : > { %v1354_v31 = vpop.permute.xlu1 %1353  ;;  %v1352_v58 = vpop.permute.xlu0 %1351  ;;  %v1873_v60 = vsel %vm1841_vm3, %v1840_v6, %v9770_v52  ;;  %v8133_v51 = vld [vmem:[%s9000_s30 + $0xe2] sm:$0xff]  ;;  %v8132_v6 = vld [vmem:[%s9000_s30 + $0xda] sm:$0xff] }
 0x1bf   : > { %v10088_v17 = vsel %vm1907_vm5, %v1904_v18, %v1354_v31  ;;  %v10091_v2 = vsel %vm1907_vm5, %v1903_v19, %v1352_v58  ;;  %v1906_v20 = vsel %vm1874_vm4, %v1873_v60, %v9904_v37  ;;  %v8128_v18 = vld [vmem:[%s9000_s30 + $0xaa] sm:$0xff] }
 0x1c0   : > { %16455 = vst [vmem:[#allocation54_spill] sm:$0xff] %v10088_v17  ;;  %16456 = vst [vmem:[#allocation55_spill] sm:$0xff] %v10091_v2  ;;  %1685 = vrot.lane.b32.xlu1 %v8121_v61, %s8908_s21  ;;  %1683 = vrot.lane.b32.xlu0 %v8120_v11, %s8908_s21  ;;  %v8129_v11 = vld [vmem:[%s9000_s30 + $0xb2] sm:$0xff]  ;;  %v8131_v58 = vld [vmem:[%s9000_s30 + $0xca] sm:$0xff] }
 0x1c1   : > { %v8142_v2 = vld [vmem:[%s9000_s30 + $0x152] sm:$0xff] }
 0x1c2   : > { %v1358_v48 = vpop.permute.xlu1 %1357  ;;  %v1356_v12 = vpop.permute.xlu0 %1355 }
 0x1c3   : > { %v10110_v49 = vsel %vm1907_vm5, %v1906_v20, %v1358_v48  ;;  %v10113_v52 = vsel %vm1907_vm5, %v1905_v21, %v1356_v12  ;;  %v8137_v21 = vld [vmem:[%s9000_s30 + $0x112] sm:$0xff]  ;;  %v8136_v48 = vld [vmem:[%s9000_s30 + $0x10a] sm:$0xff] }
 0x1c4   : > { %16457 = vst [vmem:[#allocation58_spill] sm:$0xff] %v10110_v49  ;;  %16458 = vst [vmem:[#allocation59_spill] sm:$0xff] %v10113_v52  ;;  %1689 = vrot.lane.b32.xlu1 %v8123_v62, %s8908_s21  ;;  %1687 = vrot.lane.b32.xlu0 %v8122_v14, %s8908_s21  ;;  %v8134_v62 = vld [vmem:[%s9000_s30 + $0xf2] sm:$0xff] }
 0x1c5   : > { %v8110_v52 = vld [vmem:[%s9000_s30 + $0x151] sm:$0xff] }
 0x1c6   : > { %v10119_v37 = vpop.permute.xlu1 %1425  ;;  %v10121_v4 = vpop.permute.xlu0 %1423 }
 0x1c8   : > { %1693 = vrot.lane.b32.xlu1 %v8125_v53, %s8908_s21  ;;  %1691 = vrot.lane.b32.xlu0 %v8124_v7, %s8908_s21  ;;  %v8107_v7 = vld [vmem:[%s9000_s30 + $0x129] sm:$0xff] }
 0x1ca   : > { %v10127_v40 = vpop.permute.xlu1 %1429  ;;  %v10129_v61 = vpop.permute.xlu0 %1427 }
 0x1cc   : > { %1697 = vrot.lane.b32.xlu1 %v8127_v13, %s8908_s21  ;;  %1695 = vrot.lane.b32.xlu0 %v8126_v41, %s8908_s21  ;;  %v8106_v13 = vld [vmem:[%s9000_s30 + $0x121] sm:$0xff] }
 0x1ce   : > { %v10135_v19 = vpop.permute.xlu1 %1433  ;;  %v10137_v31 = vpop.permute.xlu0 %1431 }
 0x1d0   : > { %1701 = vrot.lane.b32.xlu1 %v8129_v11, %s8908_s21  ;;  %1699 = vrot.lane.b32.xlu0 %v8128_v18, %s8908_s21  ;;  %v8139_v18 = vld [vmem:[%s9000_s30 + $0x12a] sm:$0xff] }
 0x1d2   : > { %v10143_v36 = vpop.permute.xlu1 %1437  ;;  %v10145_v50 = vpop.permute.xlu0 %1435 }
 0x1d4   : > { %1705 = vrot.lane.b32.xlu1 %v8131_v58, %s8908_s21  ;;  %1703 = vrot.lane.b32.xlu0 %v8130_v16, %s8908_s21  ;;  %v8138_v58 = vld [vmem:[%s9000_s30 + $0x122] sm:$0xff] }
 0x1d6   : > { %v10151_v39 = vpop.permute.xlu1 %1441  ;;  %v10153_v60 = vpop.permute.xlu0 %1439 }
 0x1d8   : > { %1709 = vrot.lane.b32.xlu1 %v8133_v51, %s8908_s21  ;;  %1707 = vrot.lane.b32.xlu0 %v8132_v6, %s8908_s21  ;;  %v8109_v6 = vld [vmem:[%s9000_s30 + $0x141] sm:$0xff] }
 0x1da   : > { %v10159_v14 = vpop.permute.xlu1 %1445  ;;  %v10161_v20 = vpop.permute.xlu0 %1443 }
 0x1dc   : > { %1713 = vrot.lane.b32.xlu1 %v8135_v33, %s8908_s21  ;;  %1711 = vrot.lane.b32.xlu0 %v8134_v62, %s8908_s21  ;;  %v8108_v33 = vld [vmem:[%s9000_s30 + $0x139] sm:$0xff] }
 0x1de   : > { %v10167_v12 = vpop.permute.xlu1 %1449  ;;  %v10169_v53 = vpop.permute.xlu0 %1447 }
 0x1df   : > { %16459 = vst [vmem:[#allocation113_spill] sm:$0xff] %v10167_v12  ;;  %16460 = vst [vmem:[#allocation114_spill] sm:$0xff] %v10169_v53  ;;  %v16491_v53 = vld [vmem:[#allocation63_spill] sm:$0xff]  ;;  %v16492_v12 = vld [vmem:[#allocation2_spill] sm:$0xff] }
 0x1e0   : > { %1717 = vrot.lane.b32.xlu1 %v8137_v21, %s8908_s21  ;;  %1715 = vrot.lane.b32.xlu0 %v8136_v48, %s8908_s21  ;;  %v8141_v48 = vld [vmem:[%s9000_s30 + $0x142] sm:$0xff] }
 0x1e2   : > { %v10175_v41 = vpop.permute.xlu1 %1453  ;;  %v10177_v11 = vpop.permute.xlu0 %1451 }
 0x1e3   : > { %16461 = vst [vmem:[#allocation115_spill] sm:$0xff] %v10175_v41  ;;  %16462 = vst [vmem:[#allocation116_spill] sm:$0xff] %v10177_v11  ;;  %v16489_v11 = vld [vmem:[#allocation7_spill] sm:$0xff] }
 0x1e4   : > { %1593 = vrot.lane.b32.xlu1 %v8107_v7, %s8907_s20  ;;  %1591 = vrot.lane.b32.xlu0 %v8106_v13, %s8907_s20  ;;  %v8140_v7 = vld [vmem:[%s9000_s30 + $0x13a] sm:$0xff] }
 0x1e6   : > { %v10183_v16 = vpop.permute.xlu1 %1457  ;;  %v10185_v51 = vpop.permute.xlu0 %1455 }
 0x1e7   : > { %16463 = vst [vmem:[#allocation117_spill] sm:$0xff] %v10183_v16  ;;  %16464 = vst [vmem:[#allocation118_spill] sm:$0xff] %v10185_v51 }
 0x1e8   : > { %1721 = vrot.lane.b32.xlu1 %v8139_v18, %s8908_s21  ;;  %1719 = vrot.lane.b32.xlu0 %v8138_v58, %s8908_s21  ;;  %v8111_v58 = vld [vmem:[%s9000_s30 + $0x159] sm:$0xff] }
 0x1ea   : > { %v10191_v62 = vpop.permute.xlu1 %1461  ;;  %v10193_v21 = vpop.permute.xlu0 %1459 }
 0x1eb   : > { %16465 = vst [vmem:[#allocation119_spill] sm:$0xff] %v10191_v62  ;;  %16466 = vst [vmem:[#allocation120_spill] sm:$0xff] %v10193_v21  ;;  %v461_v21 = vld [vmem:[%s9000_s30] sm:$0xff]  ;;  %v462_v62 = vld [vmem:[%s9000_s30 + $0x8] sm:$0xff] }
 0x1ec   : > { %1597 = vrot.lane.b32.xlu1 %v8109_v6, %s8907_s20  ;;  %1595 = vrot.lane.b32.xlu0 %v8108_v33, %s8907_s20  ;;  %v8143_v33 = vld [vmem:[%s9000_s30 + $0x15a] sm:$0xff]  ;;  %v1777_v41 = vsel %vm1775_vm1, %v462_v62, %v16489_v11 }
 0x1ed   : > { %v8867_v62 = vld [vmem:[%s9000_s30 + $0x20] sm:$0xff] }
 0x1ee   : > { %v10199_v13 = vpop.permute.xlu1 %1465  ;;  %v10201_v18 = vpop.permute.xlu0 %1463 }
 0x1ef   : > { %16467 = vst [vmem:[#allocation121_spill] sm:$0xff] %v10199_v13  ;;  %16468 = vst [vmem:[#allocation122_spill] sm:$0xff] %v10201_v18 }
 0x1f0   : > { %1725 = vrot.lane.b32.xlu1 %v8141_v48, %s8908_s21  ;;  %1723 = vrot.lane.b32.xlu0 %v8140_v7, %s8908_s21  ;;  %v8113_v48 = vld [vmem:[%s9000_s30 + $0x171] sm:$0xff]  ;;  %v8112_v7 = vld [vmem:[%s9000_s30 + $0x169] sm:$0xff] }
 0x1f2   : > { %v10207_v49 = vpop.permute.xlu1 %1469  ;;  %v10209_v6 = vpop.permute.xlu0 %1467 }
 0x1f3   : > { %16469 = vst [vmem:[#allocation123_spill] sm:$0xff] %v10207_v49  ;;  %16470 = vst [vmem:[#allocation124_spill] sm:$0xff] %v10209_v6 }
 0x1f4   : > { %1601 = vrot.lane.b32.xlu1 %v8111_v58, %s8907_s20  ;;  %1599 = vrot.lane.b32.xlu0 %v8110_v52, %s8907_s20  ;;  %v8145_v52 = vld [vmem:[%s9000_s30 + $0x172] sm:$0xff]  ;;  %v8144_v58 = vld [vmem:[%s9000_s30 + $0x16a] sm:$0xff] }
 0x1f6   : > { %v10215_v17 = vpop.permute.xlu1 %1473  ;;  %v10217_v5 = vpop.permute.xlu0 %1471 }
 0x1f7   : > { %16471 = vst [vmem:[#allocation125_spill] sm:$0xff] %v10215_v17  ;;  %16472 = vst [vmem:[#allocation126_spill] sm:$0xff] %v10217_v5 }
 0x1f8   : > { %1729 = vrot.lane.b32.xlu1 %v8143_v33, %s8908_s21  ;;  %1727 = vrot.lane.b32.xlu0 %v8142_v2, %s8908_s21 }
 0x1fa   : > { %v10223_v3 = vpop.permute.xlu1 %1477  ;;  %v10225_v10 = vpop.permute.xlu0 %1475 }
 0x1fb   : > { %16473 = vst [vmem:[#allocation127_spill] sm:$0xff] %v10223_v3  ;;  %16474 = vst [vmem:[#allocation128_spill] sm:$0xff] %v10225_v10  ;;  %v10293_v10 = vld [vmem:[%s15846_s2 + $0x18] sm:$0xff] }
 0x1fc   : > { %1605 = vrot.lane.b32.xlu1 %v8113_v48, %s8907_s20  ;;  %1603 = vrot.lane.b32.xlu0 %v8112_v7, %s8907_s20  ;;  %v10248_v48 = vld [vmem:[%s15849_s5] sm:$0xf]  ;;  %16480 = vst [vmem:[#allocation134_spill] sm:$0xff] %v10293_v10 }
 0x1fd   : > { %8564 = vmatprep.subr.msk.mxu0 %vm2148_vm0, %v10248_v48  ;;  %8836 = vmatprep.subr.msk.mxu1 %vm2148_vm0, %v10248_v48 }
 0x1fe   : > { %v10231_v6 = vpop.permute.xlu1 %1481  ;;  %v10233_v17 = vpop.permute.xlu0 %1479  ;;  %8837 = vmatpush3.msk.msra.mxu1 %vm2148_vm0, %v10248_v48 }
 0x1ff   : > { %16475 = vst [vmem:[#allocation129_spill] sm:$0xff] %v10231_v6  ;;  %16476 = vst [vmem:[#allocation130_spill] sm:$0xff] %v10233_v17  ;;  %v8148_v17 = vld [vmem:[%s9000_s30 + $0x19a] sm:$0xff] }
 0x200   : > { %1733 = vrot.lane.b32.xlu1 %v8145_v52, %s8908_s21  ;;  %1731 = vrot.lane.b32.xlu0 %v8144_v58, %s8908_s21  ;;  %v8909_v58 = vmov 0  }
 0x201   : > { %8862 = vset.pattern.permute.xlu0 %v8909_v58  ;;  %8863 = vset.pattern.permute.xlu1 %v8909_v58  ;;  %v8149_v58 = vld [vmem:[%s9000_s30 + $0x1a2] sm:$0xff] }
 0x202   : > { %v10237_v2 = vpop.permute.xlu1 %1485  ;;  %v10239_v33 = vpop.permute.xlu0 %1483 }
 0x203   : > { %16477 = vst [vmem:[#allocation131_spill] sm:$0xff] %v10237_v2  ;;  %16478 = vst [vmem:[#allocation132_spill] sm:$0xff] %v10239_v33 }
 0x204   : > { %1609 = vrot.lane.b32.xlu1 %v9661_v26, %s8907_s20  ;;  %1607 = vrot.lane.b32.xlu0 %v9664_v27, %s8907_s20  ;;  %v8117_v26 = vld [vmem:[%s9000_s30 + $0x1a1] sm:$0xff]  ;;  %v8116_v27 = vld [vmem:[%s9000_s30 + $0x199] sm:$0xff] }
 0x206   : > { %v10250_v7 = vpop.permute.xlu1 %1553  ;;  %v10252_v52 = vpop.permute.xlu0 %1551 }
 0x208   : > { %1737 = vrot.lane.b32.xlu1 %v9795_v59, %s8908_s21  ;;  %1735 = vrot.lane.b32.xlu0 %v9798_v44, %s8908_s21  ;;  %v10283_v44 = vld [vmem:[%s15846_s2] sm:$0xff] }
 0x209   : > { %16479 = vst [vmem:[#allocation133_spill] sm:$0xff] %v10283_v44 }
 0x20a   : > { %v10266_v33 = vpop.permute.xlu1 %1557  ;;  %v10268_v2 = vpop.permute.xlu0 %1555 }
 0x20c   : > { %1613 = vrot.lane.b32.xlu1 %v8117_v26, %s8907_s20  ;;  %1611 = vrot.lane.b32.xlu0 %v8116_v27, %s8907_s20 }
 0x20e   : > { %v10274_v6 = vpop.permute.xlu1 %1561  ;;  %v10276_v59 = vpop.permute.xlu0 %1559 }
 0x210   : > { %1741 = vrot.lane.b32.xlu1 %v8149_v58, %s8908_s21  ;;  %1739 = vrot.lane.b32.xlu0 %v8148_v17, %s8908_s21 }
 0x212   : > { %v10285_v26 = vpop.permute.xlu1 %1565  ;;  %v10287_v27 = vpop.permute.xlu0 %1563 }
 0x214   : > { %2970 = vperm.xlu0 %8862, %v10283_v44  }
 0x216   : > { %v10295_v58 = vpop.permute.xlu1 %1569  ;;  %v10297_v17 = vpop.permute.xlu0 %1567 }
 0x218   : > { %2985 = vperm.xlu0 %8862, %v10293_v10   ;;  %v16488_v10 = vld [vmem:[#allocation3_spill] sm:$0xff] }
 0x219   : > { %v1776_v16 = vsel %vm1775_vm1, %v461_v21, %v16488_v10 }
 0x21a   : > { %v10300_v3 = vpop.permute.xlu1 %1573  ;;  %v10302_v5 = vpop.permute.xlu0 %1571 }
 0x21b   : > { %16481 = vst [vmem:[#allocation135_spill] sm:$0xff] %v10302_v5 }
 0x21e   : > { %v10304_v49 = vpop.permute.xlu1 %1577  ;;  %v10306_v18 = vpop.permute.xlu0 %1575 }
 0x21f   : > { %16482 = vst [vmem:[#allocation136_spill] sm:$0xff] %v10304_v49  ;;  %16483 = vst [vmem:[#allocation137_spill] sm:$0xff] %v10306_v18  ;;  %v16490_v49 = vld [vmem:[#allocation62_spill] sm:$0xff] }
 0x220   : > { %v1810_v18 = vsel %vm1808_vm2, %v1777_v41, %v16490_v49  ;;  %v16493_v49 = vld [vmem:[#allocation6_spill] sm:$0xff] }
 0x221   : > { %v1779_v41 = vsel %vm1775_vm1, %v8867_v62, %v16493_v49  ;;  %v8868_v49 = vld [vmem:[%s9000_s30 + $0x38] sm:$0xff] }
 0x222   : > { %v10308_v44 = vpop.permute.xlu1 %1581  ;;  %v10310_v13 = vpop.permute.xlu0 %1579 }
 0x223   : > { %16484 = vst [vmem:[#allocation138_spill] sm:$0xff] %v10308_v44  ;;  %16485 = vst [vmem:[#allocation139_spill] sm:$0xff] %v10310_v13  ;;  %v1809_v44 = vsel %vm1808_vm2, %v1776_v16, %v16491_v53  ;;  %v8866_v13 = vld [vmem:[%s9000_s30 + $0x18] sm:$0xff] }
 0x224   : > { %v1778_v5 = vsel %vm1775_vm1, %v8866_v13, %v16492_v12  ;;  %v16495_v13 = vld [vmem:[#allocation67_spill] sm:$0xff] }
 0x226   : > { %v10314_v0 = vpop.permute.xlu1 %1585  ;;  %v10316_v51 = vpop.permute.xlu0 %1583 }
 0x227   : > { %16486 = vst [vmem:[#allocation140_spill] sm:$0xff] %v10314_v0  ;;  %16487 = vst [vmem:[#allocation141_spill] sm:$0xff] %v10316_v51  ;;  %v1843_v0 = vsel %vm1841_vm3, %v1810_v18, %v9644_v22  ;;  %v1842_v51 = vsel %vm1841_vm3, %v1809_v44, %v9646_v23  ;;  %v16494_v22 = vld [vmem:[#allocation66_spill] sm:$0xff]  ;;  %v1811_v18 = vsel %vm1808_vm2, %v1778_v5, %v16495_v13 }
 0x228   : > { %v1876_v53 = vsel %vm1874_vm4, %v1843_v0, %v9778_v54  ;;  %v1875_v12 = vsel %vm1874_vm4, %v1842_v51, %v9780_v55  ;;  %v1812_v16 = vsel %vm1808_vm2, %v1779_v41, %v16494_v22 }
 0x229   : > { %v1909_v23 = vsel %vm1907_vm5, %v1876_v53, %v9912_v38  ;;  %v1908_v21 = vsel %vm1907_vm5, %v1875_v12, %v9914_v42  ;;  %v1845_v0 = vsel %vm1841_vm3, %v1812_v16, %v9652_v24  ;;  %v1844_v38 = vsel %vm1841_vm3, %v1811_v18, %v9654_v25  ;;  %v16496_v25 = vld [vmem:[#allocation10_spill] sm:$0xff]  ;;  %v16497_v53 = vld [vmem:[#allocation11_spill] sm:$0xff]  ;;  %v16499_v16 = vld [vmem:[#allocation69_spill] sm:$0xff] }
 0x22a   : > { %v10333_v10 = vpop.permute.xlu1 %1589  ;;  %v10335_v11 = vpop.permute.xlu0 %1587  ;;  %v1942_v54 = vsel %vm1940_vm6, %v1909_v23, %v10119_v37  ;;  %v1941_v55 = vsel %vm1940_vm6, %v1908_v21, %v10121_v4  ;;  %v1878_v37 = vsel %vm1874_vm4, %v1845_v0, %v9786_v57  ;;  %v1877_v4 = vsel %vm1874_vm4, %v1844_v38, %v9788_v46  ;;  %v16498_v46 = vld [vmem:[#allocation68_spill] sm:$0xff] }
 0x22b   : > { %v1975_v42 = vsel %vm1973_vm7, %v1942_v54, %v10250_v7  ;;  %v1974_v5 = vsel %vm1973_vm7, %v1941_v55, %v10252_v52  ;;  %v1781_v41 = vsel %vm1775_vm1, %v8868_v49, %v16496_v25  ;;  %v8869_v7 = vld [vmem:[%s9000_s30 + $0x30] sm:$0xff]  ;;  %v1911_v12 = vsel %vm1907_vm5, %v1878_v37, %v9920_v35  ;;  %v16503_v37 = vld [vmem:[#allocation71_spill] sm:$0xff] }
 0x22c   : > { %v1780_v52 = vsel %vm1775_vm1, %v8869_v7, %v16497_v53  ;;  %v1910_v57 = vsel %vm1907_vm5, %v1877_v4, %v9922_v34  ;;  %v1814_v22 = vsel %vm1808_vm2, %v1781_v41, %v16498_v46  ;;  %v1944_v21 = vsel %vm1940_vm6, %v1911_v12, %v10127_v40  ;;  %v8870_v38 = vld [vmem:[%s9000_s30 + $0x50] sm:$0xff] }
 0x22d   : > { %v1813_v23 = vsel %vm1808_vm2, %v1780_v52, %v16499_v16  ;;  %v1943_v13 = vsel %vm1940_vm6, %v1910_v57, %v10129_v61  ;;  %v1847_v34 = vsel %vm1841_vm3, %v1814_v22, %v9666_v15  ;;  %v1977_v18 = vsel %vm1973_vm7, %v1944_v21, %v10266_v33  ;;  %v16500_v33 = vld [vmem:[#allocation12_spill] sm:$0xff]  ;;  %v8872_v52 = vld [vmem:[%s9000_s30 + $0x68] sm:$0xff] }
 0x22e   : > { %v1682_v51 = vpop.permute.xlu1 %1681  ;;  %v1680_v44 = vpop.permute.xlu0 %1679  ;;  %v1846_v35 = vsel %vm1841_vm3, %v1813_v23, %v9668_v28  ;;  %v1976_v54 = vsel %vm1973_vm7, %v1943_v13, %v10268_v2  ;;  %v1880_v61 = vsel %vm1874_vm4, %v1847_v34, %v9800_v43  ;;  %v8871_v2 = vld [vmem:[%s9000_s30 + $0x48] sm:$0xff]  ;;  %v16506_v22 = vld [vmem:[#allocation72_spill] sm:$0xff]  ;;  %v16508_v13 = vld [vmem:[#allocation90_spill] sm:$0xff] }
 0x22f   : > { %v2008_v62 = vsel %vm2006_vm8, %v1975_v42, %v1682_v51  ;;  %v2007_v24 = vsel %vm2006_vm8, %v1974_v5, %v1680_v44  ;;  %v1879_v15 = vsel %vm1874_vm4, %v1846_v35, %v9802_v47  ;;  %v1783_v42 = vsel %vm1775_vm1, %v8870_v38, %v16500_v33  ;;  %v16501_v5 = vld [vmem:[#allocation13_spill] sm:$0xff]  ;;  %v16502_v47 = vld [vmem:[#allocation70_spill] sm:$0xff]  ;;  %v16505_v57 = vld [vmem:[#allocation15_spill] sm:$0xff] }
 0x230   : > { %8516 = vmatprep.mubr.msk.f32.mxu0 %vm2051_vm9, %v2007_v24  ;;  %v1782_v51 = vsel %vm1775_vm1, %v8871_v2, %v16501_v5  ;;  %v1912_v43 = vsel %vm1907_vm5, %v1879_v15, %v9932_v9  ;;  %v1816_v44 = vsel %vm1808_vm2, %v1783_v42, %v16502_v47  ;;  %v16512_v33 = vld [vmem:[#allocation19_spill] sm:$0xff]  ;;  %v16513_v42 = vld [vmem:[#allocation44_spill] sm:$0xff]  ;;  %v16514_v5 = vld [vmem:[#allocation45_spill] sm:$0xff] }
 0x231   : > { %8517 = vmatmul.mubr.msk.f32.vlgmr.msra.gmra.mrb[0].mxu0 %vm2051_vm9, %v2008_v62  ;;  %v1815_v4 = vsel %vm1808_vm2, %v1782_v51, %v16503_v37  ;;  %v1945_v24 = vsel %vm1940_vm6, %v1912_v43, %v10137_v31  ;;  %v16516_v47 = vld [vmem:[#allocation74_spill] sm:$0xff] }
 0x232   : > { %v1686_v55 = vpop.permute.xlu1 %1685  ;;  %v1684_v40 = vpop.permute.xlu0 %1683  ;;  %8565 = vmatpush3.msk.msra.mxu0 %vm2148_vm0, %v10248_v48  ;;  %v1913_v48 = vsel %vm1907_vm5, %v1880_v61, %v9930_v8  ;;  %v1849_v8 = vsel %vm1841_vm3, %v1816_v44, %v9674_v29  ;;  %v1848_v9 = vsel %vm1841_vm3, %v1815_v4, %v9676_v30  ;;  %v1978_v25 = vsel %vm1973_vm7, %v1945_v24, %v10276_v59  ;;  %v16504_v30 = vld [vmem:[#allocation14_spill] sm:$0xff] }
 0x233   : > { %v2010_v0 = vsel %vm2006_vm8, %v1977_v18, %v1686_v55  ;;  %v2009_v28 = vsel %vm2006_vm8, %v1976_v54, %v1684_v40  ;;  %v1946_v62 = vsel %vm1940_vm6, %v1913_v48, %v10135_v19  ;;  %v1882_v19 = vsel %vm1874_vm4, %v1849_v8, %v9808_v56  ;;  %v16515_v48 = vld [vmem:[#allocation73_spill] sm:$0xff]  ;;  %v16518_v8 = vld [vmem:[#allocation92_spill] sm:$0xff] }
 0x234   : > { %8519 = vmatprep.mubr.msk.f32.mxu0 %vm2051_vm9, %v2009_v28  ;;  %v1979_v49 = vsel %vm1973_vm7, %v1946_v62, %v10274_v6  ;;  %v1881_v31 = vsel %vm1874_vm4, %v1848_v9, %v9810_v45  ;;  %v1785_v12 = vsel %vm1775_vm1, %v8872_v52, %v16504_v30  ;;  %v8873_v6 = vld [vmem:[%s9000_s30 + $0x60] sm:$0xff]  ;;  %v1915_v46 = vsel %vm1907_vm5, %v1882_v19, %v9938_v63  ;;  %v16507_v63 = vld [vmem:[#allocation89_spill] sm:$0xff]  ;;  %v16517_v62 = vld [vmem:[#allocation91_spill] sm:$0xff] }
 0x235   : > { %8520 = vmatmul.mubr.msk.f32.gmra.mrb[2].mxu0 %vm2051_vm9, %v2010_v0  ;;  %v1784_v59 = vsel %vm1775_vm1, %v8873_v6, %v16505_v57  ;;  %v1914_v56 = vsel %vm1907_vm5, %v1881_v31, %v9940_v1  ;;  %v1818_v45 = vsel %vm1808_vm2, %v1785_v12, %v9548_v32  ;;  %v1948_v23 = vsel %vm1940_vm6, %v1915_v46, %v10143_v36  ;;  %v16509_v36 = vld [vmem:[#allocation4_spill] sm:$0xff]  ;;  %v8874_v0 = vld [vmem:[%s9000_s30 + $0x80] sm:$0xff]  ;;  %v8876_v52 = vld [vmem:[%s9000_s30 + $0x98] sm:$0xff] }
 0x236   : > { %v1690_v41 = vpop.permute.xlu1 %1689  ;;  %v1688_v7 = vpop.permute.xlu0 %1687  ;;  %v1817_v16 = vsel %vm1808_vm2, %v1784_v59, %v16506_v22  ;;  %v1947_v21 = vsel %vm1940_vm6, %v1914_v56, %v10145_v50  ;;  %v1851_v1 = vsel %vm1841_vm3, %v1818_v45, %v16507_v63  ;;  %v1981_v32 = vsel %vm1973_vm7, %v1948_v23, %v10285_v26  ;;  %v16510_v50 = vld [vmem:[#allocation5_spill] sm:$0xff]  ;;  %v16511_v28 = vld [vmem:[#allocation18_spill] sm:$0xff]  ;;  %v16522_v6 = vld [vmem:[#allocation23_spill] sm:$0xff] }
 0x237   : > { %v2012_v53 = vsel %vm2006_vm8, %v1979_v49, %v1690_v41  ;;  %v2011_v29 = vsel %vm2006_vm8, %v1978_v25, %v1688_v7  ;;  %v1850_v34 = vsel %vm1841_vm3, %v1817_v16, %v16508_v13  ;;  %v1980_v35 = vsel %vm1973_vm7, %v1947_v21, %v10287_v27  ;;  %v8875_v26 = vld [vmem:[%s9000_s30 + $0x78] sm:$0xff]  ;;  %v16521_v30 = vld [vmem:[#allocation22_spill] sm:$0xff]  ;;  %v16523_v57 = vld [vmem:[#allocation48_spill] sm:$0xff] }
 0x238   : > { %8522 = vmatprep.mubr.msk.f32.mxu0 %vm2051_vm9, %v2011_v29  ;;  %v1884_v55 = vsel %vm1874_vm4, %v1851_v1, %v16509_v36  ;;  %v1883_v40 = vsel %vm1874_vm4, %v1850_v34, %v16510_v50  ;;  %v1787_v38 = vsel %vm1775_vm1, %v8874_v0, %v16511_v28  ;;  %v1786_v27 = vsel %vm1775_vm1, %v8875_v26, %v16512_v33  ;;  %v16524_v46 = vld [vmem:[#allocation49_spill] sm:$0xff]  ;;  %v16525_v45 = vld [vmem:[#allocation75_spill] sm:$0xff]  ;;  %v16526_v16 = vld [vmem:[#allocation76_spill] sm:$0xff] }
 0x239   : > { %8523 = vmatmul.mubr.msk.f32.gmra.mrb[4].mxu0 %vm2051_vm9, %v2012_v53  ;;  %v1917_v2 = vsel %vm1907_vm5, %v1884_v55, %v16513_v42  ;;  %v1916_v51 = vsel %vm1907_vm5, %v1883_v40, %v16514_v5  ;;  %v1820_v43 = vsel %vm1808_vm2, %v1787_v38, %v16515_v48  ;;  %v1819_v44 = vsel %vm1808_vm2, %v1786_v27, %v16516_v47  ;;  %v16527_v1 = vld [vmem:[#allocation93_spill] sm:$0xff]  ;;  %v16528_v34 = vld [vmem:[#allocation94_spill] sm:$0xff]  ;;  %v8878_v0 = vld [vmem:[%s9000_s30 + $0xb0] sm:$0xff] }
 0x23a   : > { %v1694_v18 = vpop.permute.xlu1 %1693  ;;  %v1692_v54 = vpop.permute.xlu0 %1691  ;;  %v1950_v37 = vsel %vm1940_vm6, %v1917_v2, %v10151_v39  ;;  %v1949_v4 = vsel %vm1940_vm6, %v1916_v51, %v10153_v60  ;;  %v1853_v24 = vsel %vm1841_vm3, %v1820_v43, %v16517_v62  ;;  %v1852_v9 = vsel %vm1841_vm3, %v1819_v44, %v16518_v8  ;;  %v16519_v39 = vld [vmem:[#allocation8_spill] sm:$0xff]  ;;  %v16520_v60 = vld [vmem:[#allocation9_spill] sm:$0xff]  ;;  %v16532_v28 = vld [vmem:[#allocation26_spill] sm:$0xff] }
 0x23b   : > { %v2014_v61 = vsel %vm2006_vm8, %v1981_v32, %v1694_v18  ;;  %v2013_v15 = vsel %vm2006_vm8, %v1980_v35, %v1692_v54  ;;  %v1983_v49 = vsel %vm1973_vm7, %v1950_v37, %v10295_v58  ;;  %v1982_v25 = vsel %vm1973_vm7, %v1949_v4, %v10297_v17  ;;  %v8877_v58 = vld [vmem:[%s9000_s30 + $0x90] sm:$0xff]  ;;  %v16529_v18 = vld [vmem:[#allocation135_spill] sm:$0xff]  ;;  %v16535_v2 = vld [vmem:[#allocation53_spill] sm:$0xff] }
 0x23c   : > { %8525 = vmatprep.mubr.msk.f32.mxu0 %vm2051_vm9, %v2013_v15  ;;  %v1886_v19 = vsel %vm1874_vm4, %v1853_v24, %v16519_v39  ;;  %v1885_v31 = vsel %vm1874_vm4, %v1852_v9, %v16520_v60  ;;  %v1789_v12 = vsel %vm1775_vm1, %v8876_v52, %v16521_v30  ;;  %v1788_v17 = vsel %vm1775_vm1, %v8877_v58, %v16522_v6  ;;  %v16533_v26 = vld [vmem:[#allocation27_spill] sm:$0xff]  ;;  %v16534_v27 = vld [vmem:[#allocation52_spill] sm:$0xff]  ;;  %v16536_v51 = vld [vmem:[#allocation77_spill] sm:$0xff] }
 0x23d   : > { %8526 = vmatmul.mubr.msk.f32.gmra.mrb[6].mxu0 %vm2051_vm9, %v2014_v61  ;;  %v1919_v59 = vsel %vm1907_vm5, %v1886_v19, %v16523_v57  ;;  %v1918_v56 = vsel %vm1907_vm5, %v1885_v31, %v16524_v46  ;;  %v1822_v22 = vsel %vm1808_vm2, %v1789_v12, %v16525_v45  ;;  %v1821_v23 = vsel %vm1808_vm2, %v1788_v17, %v16526_v16  ;;  %v16537_v43 = vld [vmem:[#allocation78_spill] sm:$0xff]  ;;  %v16538_v44 = vld [vmem:[#allocation113_spill] sm:$0xff]  ;;  %v16540_v24 = vld [vmem:[#allocation95_spill] sm:$0xff] }
 0x23e   : > { %v1698_v41 = vpop.permute.xlu1 %1697  ;;  %v1696_v7 = vpop.permute.xlu0 %1695  ;;  %v1952_v21 = vsel %vm1940_vm6, %v1919_v59, %v10159_v14  ;;  %v1951_v63 = vsel %vm1940_vm6, %v1918_v56, %v10161_v20  ;;  %v1855_v13 = vsel %vm1841_vm3, %v1822_v22, %v16527_v1  ;;  %v1854_v32 = vsel %vm1841_vm3, %v1821_v23, %v16528_v34  ;;  %v16530_v14 = vld [vmem:[#allocation16_spill] sm:$0xff]  ;;  %v16531_v20 = vld [vmem:[#allocation17_spill] sm:$0xff]  ;;  %v16539_v4 = vld [vmem:[#allocation114_spill] sm:$0xff] }
 0x23f   : > { %v2016_v53 = vsel %vm2006_vm8, %v1983_v49, %v1698_v41  ;;  %v2015_v29 = vsel %vm2006_vm8, %v1982_v25, %v1696_v7  ;;  %v1985_v35 = vsel %vm1973_vm7, %v1952_v21, %v10300_v3  ;;  %v1984_v54 = vsel %vm1973_vm7, %v1951_v63, %v16529_v18  ;;  %v8879_v3 = vld [vmem:[%s9000_s30 + $0xa8] sm:$0xff]  ;;  %v16541_v9 = vld [vmem:[#allocation96_spill] sm:$0xff]  ;;  %v16543_v7 = vld [vmem:[#allocation137_spill] sm:$0xff] }
 0x240   : > { %8528 = vmatprep.mubr.msk.f32.mxu0 %vm2051_vm9, %v2015_v29  ;;  %v1888_v50 = vsel %vm1874_vm4, %v1855_v13, %v16530_v14  ;;  %v1887_v40 = vsel %vm1874_vm4, %v1854_v32, %v16531_v20  ;;  %v1791_v38 = vsel %vm1775_vm1, %v8878_v0, %v16532_v28  ;;  %v1790_v33 = vsel %vm1775_vm1, %v8879_v3, %v16533_v26  ;;  %v16542_v25 = vld [vmem:[#allocation136_spill] sm:$0xff]  ;;  %v16545_v29 = vld [vmem:[#allocation21_spill] sm:$0xff]  ;;  %v8880_v58 = vld [vmem:[%s9000_s30 + $0xc8] sm:$0xff] }
 0x241   : > { %8529 = vmatmul.mubr.msk.f32.gmra.mrb[8].mxu0 %vm2051_vm9, %v2016_v53  ;;  %v1921_v42 = vsel %vm1907_vm5, %v1888_v50, %v16534_v27  ;;  %v1920_v5 = vsel %vm1907_vm5, %v1887_v40, %v16535_v2  ;;  %v1824_v48 = vsel %vm1808_vm2, %v1791_v38, %v16536_v51  ;;  %v1823_v47 = vsel %vm1808_vm2, %v1790_v33, %v16537_v43  ;;  %v16544_v31 = vld [vmem:[#allocation20_spill] sm:$0xff]  ;;  %v16546_v6 = vld [vmem:[#allocation30_spill] sm:$0xff]  ;;  %v16547_v59 = vld [vmem:[#allocation31_spill] sm:$0xff] }
 0x242   : > { %v1702_v36 = vpop.permute.xlu1 %1701  ;;  %v1700_v55 = vpop.permute.xlu0 %1699  ;;  %v1954_v37 = vsel %vm1940_vm6, %v1921_v42, %v16538_v44  ;;  %v1953_v62 = vsel %vm1940_vm6, %v1920_v5, %v16539_v4  ;;  %v1857_v8 = vsel %vm1841_vm3, %v1824_v48, %v16540_v24  ;;  %v1856_v49 = vsel %vm1841_vm3, %v1823_v47, %v16541_v9  ;;  %v8881_v57 = vld [vmem:[%s9000_s30 + $0xc0] sm:$0xff]  ;;  %v16548_v56 = vld [vmem:[#allocation56_spill] sm:$0xff]  ;;  %v16549_v22 = vld [vmem:[#allocation57_spill] sm:$0xff] }
 0x243   : > { %v2018_v61 = vsel %vm2006_vm8, %v1985_v35, %v1702_v36  ;;  %v2017_v15 = vsel %vm2006_vm8, %v1984_v54, %v1700_v55  ;;  %v1987_v41 = vsel %vm1973_vm7, %v1954_v37, %v16542_v25  ;;  %v1986_v39 = vsel %vm1973_vm7, %v1953_v62, %v16543_v7  ;;  %v16550_v23 = vld [vmem:[#allocation79_spill] sm:$0xff]  ;;  %v16551_v63 = vld [vmem:[#allocation80_spill] sm:$0xff]  ;;  %v16554_v18 = vld [vmem:[#allocation97_spill] sm:$0xff] }
 0x244   : > { %8531 = vmatprep.mubr.msk.f32.mxu0 %vm2051_vm9, %v2017_v15  ;;  %v1890_v53 = vsel %vm1874_vm4, %v1857_v8, %v16544_v31  ;;  %v1889_v52 = vsel %vm1874_vm4, %v1856_v49, %v16545_v29  ;;  %v1793_v17 = vsel %vm1775_vm1, %v8880_v58, %v16546_v6  ;;  %v1792_v46 = vsel %vm1775_vm1, %v8881_v57, %v16547_v59  ;;  %v16552_v13 = vld [vmem:[#allocation115_spill] sm:$0xff]  ;;  %v16553_v32 = vld [vmem:[#allocation116_spill] sm:$0xff]  ;;  %v16555_v36 = vld [vmem:[#allocation98_spill] sm:$0xff] }
 0x245   : > { %8532 = vmatmul.mubr.msk.f32.gmra.mrb[10].mxu0 %vm2051_vm9, %v2018_v61  ;;  %v1923_v45 = vsel %vm1907_vm5, %v1890_v53, %v16548_v56  ;;  %v1922_v16 = vsel %vm1907_vm5, %v1889_v52, %v16549_v22  ;;  %v1826_v21 = vsel %vm1808_vm2, %v1793_v17, %v16550_v23  ;;  %v1825_v1 = vsel %vm1808_vm2, %v1792_v46, %v16551_v63  ;;  %v16556_v14 = vld [vmem:[#allocation138_spill] sm:$0xff]  ;;  %v16557_v20 = vld [vmem:[#allocation139_spill] sm:$0xff]  ;;  %v16558_v0 = vld [vmem:[#allocation24_spill] sm:$0xff] }
 0x246   : > { %v1706_v19 = vpop.permute.xlu1 %1705  ;;  %v1704_v60 = vpop.permute.xlu0 %1703  ;;  %v1956_v34 = vsel %vm1940_vm6, %v1923_v45, %v16552_v13  ;;  %v1955_v35 = vsel %vm1940_vm6, %v1922_v16, %v16553_v32  ;;  %v1859_v54 = vsel %vm1841_vm3, %v1826_v21, %v16554_v18  ;;  %v1858_v55 = vsel %vm1841_vm3, %v1825_v1, %v16555_v36  ;;  %v16559_v38 = vld [vmem:[#allocation25_spill] sm:$0xff]  ;;  %v8882_v27 = vld [vmem:[%s9000_s30 + $0xe0] sm:$0xff]  ;;  %v16561_v51 = vld [vmem:[#allocation35_spill] sm:$0xff] }
 0x247   : > { %v2020_v30 = vsel %vm2006_vm8, %v1987_v41, %v1706_v19  ;;  %v2019_v12 = vsel %vm2006_vm8, %v1986_v39, %v1704_v60  ;;  %v1989_v50 = vsel %vm1973_vm7, %v1956_v34, %v16556_v14  ;;  %v1988_v40 = vsel %vm1973_vm7, %v1955_v35, %v16557_v20  ;;  %v16560_v42 = vld [vmem:[#allocation34_spill] sm:$0xff]  ;;  %v8883_v5 = vld [vmem:[%s9000_s30 + $0xd8] sm:$0xff]  ;;  %v16562_v43 = vld [vmem:[#allocation60_spill] sm:$0xff] }
 0x248   : > { %8534 = vmatprep.mubr.msk.f32.mxu0 %vm2051_vm9, %v2019_v12  ;;  %v1892_v28 = vsel %vm1874_vm4, %v1859_v54, %v16558_v0  ;;  %v1891_v3 = vsel %vm1874_vm4, %v1858_v55, %v16559_v38  ;;  %v1795_v2 = vsel %vm1775_vm1, %v8882_v27, %v16560_v42  ;;  %v1794_v48 = vsel %vm1775_vm1, %v8883_v5, %v16561_v51  ;;  %v16563_v44 = vld [vmem:[#allocation61_spill] sm:$0xff]  ;;  %v16565_v24 = vld [vmem:[#allocation82_spill] sm:$0xff]  ;;  %v16568_v7 = vld [vmem:[#allocation99_spill] sm:$0xff] }
 0x249   : > { %8535 = vmatmul.mubr.msk.f32.gmra.mrb[12].mxu0 %vm2051_vm9, %v2020_v30  ;;  %v1925_v47 = vsel %vm1907_vm5, %v1892_v28, %v16562_v43  ;;  %v1924_v37 = vsel %vm1907_vm5, %v1891_v3, %v16563_v44  ;;  %v16564_v4 = vld [vmem:[#allocation81_spill] sm:$0xff]  ;;  %v1827_v8 = vsel %vm1808_vm2, %v1794_v48, %v16565_v24  ;;  %v16567_v25 = vld [vmem:[#allocation118_spill] sm:$0xff]  ;;  %v16569_v19 = vld [vmem:[#allocation100_spill] sm:$0xff]  ;;  %vm4877_vm0 = vcmask 392192  }
 0x24a   : > { %v1710_v61 = vpop.permute.xlu1 %1709  ;;  %v1708_v15 = vpop.permute.xlu0 %1707  ;;  %v1828_v62 = vsel %vm1808_vm2, %v1795_v2, %v16564_v4  ;;  %v16566_v9 = vld [vmem:[#allocation117_spill] sm:$0xff]  ;;  %v1957_v41 = vsel %vm1940_vm6, %v1924_v37, %v16567_v25  ;;  %v1860_v60 = vsel %vm1841_vm3, %v1827_v8, %v16569_v19  ;;  %v16570_v31 = vld [vmem:[#allocation140_spill] sm:$0xff]  ;;  %v16576_v23 = vld [vmem:[#allocation119_spill] sm:$0xff] }
 0x24b   : > { %v2022_v26 = vsel %vm2006_vm8, %v1989_v50, %v1710_v61  ;;  %v2021_v33 = vsel %vm2006_vm8, %v1988_v40, %v1708_v15  ;;  %v1958_v49 = vsel %vm1940_vm6, %v1925_v47, %v16566_v9  ;;  %v1861_v39 = vsel %vm1841_vm3, %v1828_v62, %v16568_v7  ;;  %v16571_v29 = vld [vmem:[#allocation141_spill] sm:$0xff]  ;;  %v16572_v58 = vld [vmem:[#allocation28_spill] sm:$0xff]  ;;  %v16578_v55 = vld [vmem:[#allocation38_spill] sm:$0xff] }
 0x24c   : > { %8537 = vmatprep.mubr.msk.f32.mxu0 %vm2051_vm9, %v2021_v33  ;;  %v1991_v53 = vsel %vm1973_vm7, %v1958_v49, %v16570_v31  ;;  %v1990_v52 = vsel %vm1973_vm7, %v1957_v41, %v16571_v29  ;;  %v1894_v6 = vsel %vm1874_vm4, %v1861_v39, %v16572_v58  ;;  %v16573_v17 = vld [vmem:[#allocation29_spill] sm:$0xff]  ;;  %v16574_v56 = vld [vmem:[#allocation64_spill] sm:$0xff]  ;;  %v16579_v20 = vld [vmem:[#allocation39_spill] sm:$0xff] }
 0x24d   : > { %8538 = vmatmul.mubr.msk.f32.gmra.mrb[14].mxu0 %vm2051_vm9, %v2022_v26  ;;  %v1893_v57 = vsel %vm1874_vm4, %v1860_v60, %v16573_v17  ;;  %v1927_v45 = vsel %vm1907_vm5, %v1894_v6, %v16574_v56  ;;  %v16575_v22 = vld [vmem:[#allocation65_spill] sm:$0xff]  ;;  %v16577_v63 = vld [vmem:[#allocation120_spill] sm:$0xff]  ;;  %v16583_v38 = vld [vmem:[#allocation102_spill] sm:$0xff] }
 0x24e   : > { %v1714_v30 = vpop.permute.xlu1 %1713  ;;  %v1712_v12 = vpop.permute.xlu0 %1711  ;;  %v1926_v16 = vsel %vm1907_vm5, %v1893_v57, %v16575_v22  ;;  %v1960_v21 = vsel %vm1940_vm6, %v1927_v45, %v16576_v23  ;;  %v8884_v36 = vld [vmem:[%s9000_s30 + $0xf8] sm:$0xff]  ;;  %v8885_v50 = vld [vmem:[%s9000_s30 + $0xf0] sm:$0xff]  ;;  %v16586_v51 = vld [vmem:[#allocation107_spill] sm:$0xff] }
 0x24f   : > { %v2024_v59 = vsel %vm2006_vm8, %v1991_v53, %v1714_v30  ;;  %v2023_v46 = vsel %vm2006_vm8, %v1990_v52, %v1712_v12  ;;  %v1959_v1 = vsel %vm1940_vm6, %v1926_v16, %v16577_v63  ;;  %v1993_v13 = vsel %vm1973_vm7, %v1960_v21, %v10333_v10  ;;  %v16580_v10 = vld [vmem:[#allocation83_spill] sm:$0xff]  ;;  %v16582_v0 = vld [vmem:[#allocation101_spill] sm:$0xff]  ;;  %v16584_v27 = vld [vmem:[#allocation32_spill] sm:$0xff] }
 0x250   : > { %8540 = vmatprep.mubr.msk.f32.mxu0 %vm2051_vm9, %v2023_v46  ;;  %v1992_v34 = vsel %vm1973_vm7, %v1959_v1, %v10335_v11  ;;  %v1797_v14 = vsel %vm1775_vm1, %v8884_v36, %v16578_v55  ;;  %v1796_v40 = vsel %vm1775_vm1, %v8885_v50, %v16579_v20  ;;  %v16581_v11 = vld [vmem:[#allocation84_spill] sm:$0xff]  ;;  %v16585_v2 = vld [vmem:[#allocation33_spill] sm:$0xff]  ;;  %v16589_v4 = vld [vmem:[#allocation122_spill] sm:$0xff] }
 0x251   : > { %8541 = vmatmul.mubr.msk.f32.gmra.mrb[16].mxu0 %vm2051_vm9, %v2024_v59  ;;  %v1830_v61 = vsel %vm1808_vm2, %v1797_v14, %v16580_v10  ;;  %v1829_v15 = vsel %vm1808_vm2, %v1796_v40, %v16581_v11  ;;  %v16587_v43 = vld [vmem:[#allocation108_spill] sm:$0xff]  ;;  %v16588_v44 = vld [vmem:[#allocation121_spill] sm:$0xff]  ;;  %v16590_v39 = vld [vmem:[#allocation42_spill] sm:$0xff] }
 0x252   : > { %v1718_v32 = vpop.permute.xlu1 %1717  ;;  %v1716_v35 = vpop.permute.xlu0 %1715  ;;  %v1863_v28 = vsel %vm1841_vm3, %v1830_v61, %v16582_v0  ;;  %v1862_v3 = vsel %vm1841_vm3, %v1829_v15, %v16583_v38  ;;  %v8886_v7 = vld [vmem:[%s9000_s30 + $0x110] sm:$0xff]  ;;  %v8887_v60 = vld [vmem:[%s9000_s30 + $0x108] sm:$0xff]  ;;  %v16592_v29 = vld [vmem:[#allocation85_spill] sm:$0xff] }
 0x253   : > { %v2026_v18 = vsel %vm2006_vm8, %v1993_v13, %v1718_v32  ;;  %v2025_v54 = vsel %vm2006_vm8, %v1992_v34, %v1716_v35  ;;  %v1896_v42 = vsel %vm1874_vm4, %v1863_v28, %v16584_v27  ;;  %v1895_v5 = vsel %vm1874_vm4, %v1862_v3, %v16585_v2  ;;  %v16591_v31 = vld [vmem:[#allocation43_spill] sm:$0xff]  ;;  %v16593_v30 = vld [vmem:[#allocation86_spill] sm:$0xff]  ;;  %v16595_v17 = vld [vmem:[#allocation104_spill] sm:$0xff] }
 0x254   : > { %8543 = vmatprep.mubr.msk.f32.mxu0 %vm2051_vm9, %v2025_v54  ;;  %v1929_v48 = vsel %vm1907_vm5, %v1896_v42, %v16586_v51  ;;  %v1928_v47 = vsel %vm1907_vm5, %v1895_v5, %v16587_v43  ;;  %v1799_v19 = vsel %vm1775_vm1, %v8886_v7, %v16590_v39  ;;  %v1798_v53 = vsel %vm1775_vm1, %v8887_v60, %v16591_v31  ;;  %v16594_v58 = vld [vmem:[#allocation103_spill] sm:$0xff]  ;;  %v16596_v56 = vld [vmem:[#allocation36_spill] sm:$0xff]  ;;  %v16597_v22 = vld [vmem:[#allocation37_spill] sm:$0xff] }
 0x255   : > { %8544 = vmatmul.mubr.msk.f32.gmra.mrb[18].mxu0 %vm2051_vm9, %v2026_v18  ;;  %v1962_v37 = vsel %vm1940_vm6, %v1929_v48, %v16588_v44  ;;  %v1961_v62 = vsel %vm1940_vm6, %v1928_v47, %v16589_v4  ;;  %v1832_v52 = vsel %vm1808_vm2, %v1799_v19, %v16592_v29  ;;  %v1831_v12 = vsel %vm1808_vm2, %v1798_v53, %v16593_v30  ;;  %v16598_v23 = vld [vmem:[#allocation109_spill] sm:$0xff]  ;;  %v16599_v63 = vld [vmem:[#allocation110_spill] sm:$0xff]  ;;  %v16600_v13 = vld [vmem:[#allocation123_spill] sm:$0xff] }
 0x256   : > { %v1594_v26 = vpop.permute.xlu1 %1593  ;;  %v1592_v33 = vpop.permute.xlu0 %1591  ;;  %v1865_v6 = vsel %vm1841_vm3, %v1832_v52, %v16594_v58  ;;  %v1864_v57 = vsel %vm1841_vm3, %v1831_v12, %v16595_v17  ;;  %v16601_v32 = vld [vmem:[#allocation124_spill] sm:$0xff]  ;;  %v8888_v20 = vld [vmem:[%s9000_s30 + $0x128] sm:$0xff]  ;;  %v16602_v40 = vld [vmem:[#allocation46_spill] sm:$0xff] }
 0x257   : > { %v1995_v24 = vsel %vm1973_vm7, %v1962_v37, %v1594_v26  ;;  %v1994_v8 = vsel %vm1973_vm7, %v1961_v62, %v1592_v33  ;;  %v1898_v45 = vsel %vm1874_vm4, %v1865_v6, %v16596_v56  ;;  %v1897_v16 = vsel %vm1874_vm4, %v1864_v57, %v16597_v22  ;;  %v8889_v61 = vld [vmem:[%s9000_s30 + $0x120] sm:$0xff]  ;;  %v16603_v11 = vld [vmem:[#allocation47_spill] sm:$0xff]  ;;  %v16605_v38 = vld [vmem:[#allocation88_spill] sm:$0xff] }
 0x258   : > { %v1931_v21 = vsel %vm1907_vm5, %v1898_v45, %v16598_v23  ;;  %v1930_v1 = vsel %vm1907_vm5, %v1897_v16, %v16599_v63  ;;  %v1801_v10 = vsel %vm1775_vm1, %v8888_v20, %v16602_v40  ;;  %v1800_v15 = vsel %vm1775_vm1, %v8889_v61, %v16603_v11  ;;  %v16604_v0 = vld [vmem:[#allocation87_spill] sm:$0xff]  ;;  %v16606_v26 = vld [vmem:[#allocation105_spill] sm:$0xff]  ;;  %v16607_v27 = vld [vmem:[#allocation106_spill] sm:$0xff] }
 0x259   : > { %v1964_v34 = vsel %vm1940_vm6, %v1931_v21, %v16600_v13  ;;  %v1963_v35 = vsel %vm1940_vm6, %v1930_v1, %v16601_v32  ;;  %v1834_v28 = vsel %vm1808_vm2, %v1801_v10, %v16604_v0  ;;  %v1833_v3 = vsel %vm1808_vm2, %v1800_v15, %v16605_v38  ;;  %v16608_v51 = vld [vmem:[#allocation40_spill] sm:$0xff]  ;;  %v16609_v43 = vld [vmem:[#allocation41_spill] sm:$0xff]  ;;  %v16610_v44 = vld [vmem:[#allocation111_spill] sm:$0xff] }
 0x25a   : > { %v1722_v9 = vpop.permute.xlu1 %1721  ;;  %v1720_v49 = vpop.permute.xlu0 %1719  ;;  %v1867_v33 = vsel %vm1841_vm3, %v1834_v28, %v16606_v26  ;;  %v1866_v42 = vsel %vm1841_vm3, %v1833_v3, %v16607_v27  ;;  %v16611_v4 = vld [vmem:[#allocation112_spill] sm:$0xff]  ;;  %v16614_v29 = vld [vmem:[#allocation127_spill] sm:$0xff]  ;;  %v16615_v52 = vld [vmem:[#allocation50_spill] sm:$0xff]  ;;  %vm4943_vm3 = vcmask 523264  }
 0x25b   : > { %v2028_v25 = vsel %vm2006_vm8, %v1995_v24, %v1722_v9  ;;  %v2027_v41 = vsel %vm2006_vm8, %v1994_v8, %v1720_v49  ;;  %v1900_v48 = vsel %vm1874_vm4, %v1867_v33, %v16608_v51  ;;  %v1899_v47 = vsel %vm1874_vm4, %v1866_v42, %v16609_v43  ;;  %v16612_v24 = vld [vmem:[#allocation125_spill] sm:$0xff]  ;;  %v16613_v9 = vld [vmem:[#allocation126_spill] sm:$0xff]  ;;  %v16616_v12 = vld [vmem:[#allocation128_spill] sm:$0xff] }
 0x25c   : > { %8546 = vmatprep.mubr.msk.f32.mxu0 %vm2051_vm9, %v2027_v41  ;;  %v1933_v37 = vsel %vm1907_vm5, %v1900_v48, %v16610_v44  ;;  %v1932_v62 = vsel %vm1907_vm5, %v1899_v47, %v16611_v4  ;;  %v1968_v30 = vsel %vm1940_vm6, %v16615_v52, %v16614_v29  ;;  %v16617_v58 = vld [vmem:[#allocation51_spill] sm:$0xff]  ;;  %v16618_v23 = vld [vmem:[#allocation129_spill] sm:$0xff]  ;;  %v16619_v21 = vld [vmem:[#allocation54_spill] sm:$0xff]  ;;  %vm4992_vm5 = vcmask 588800  }
 0x25d   : > { %8547 = vmatmul.mubr.msk.f32.gmra.mrb[20].mxu0 %vm2051_vm9, %v2028_v25  ;;  %v1966_v8 = vsel %vm1940_vm6, %v1933_v37, %v16612_v24  ;;  %v1965_v49 = vsel %vm1940_vm6, %v1932_v62, %v16613_v9  ;;  %v1967_v6 = vsel %vm1940_vm6, %v16617_v58, %v16616_v12  ;;  %v1970_v63 = vsel %vm1940_vm6, %v16619_v21, %v16618_v23  ;;  %v16620_v1 = vld [vmem:[#allocation130_spill] sm:$0xff]  ;;  %v16621_v13 = vld [vmem:[#allocation55_spill] sm:$0xff]  ;;  %v16624_v61 = vld [vmem:[#allocation132_spill] sm:$0xff] }
 0x25e   : > { %v1598_v59 = vpop.permute.xlu1 %1597  ;;  %v1596_v46 = vpop.permute.xlu0 %1595  ;;  %v16622_v20 = vld [vmem:[#allocation131_spill] sm:$0xff]  ;;  %v16623_v40 = vld [vmem:[#allocation58_spill] sm:$0xff]  ;;  %v10803_v42 = vld [vmem:[%s15846_s2 + $0x38] sm:$0xff] }
 0x25f   : > { %v1997_v18 = vsel %vm1973_vm7, %v1964_v34, %v1598_v59  ;;  %v1996_v54 = vsel %vm1973_vm7, %v1963_v35, %v1596_v46  ;;  %v1969_v34 = vsel %vm1940_vm6, %v16621_v13, %v16620_v1  ;;  %v1972_v10 = vsel %vm1940_vm6, %v16623_v40, %v16622_v20  ;;  %v16625_v11 = vld [vmem:[#allocation59_spill] sm:$0xff]  ;;  %v10827_v48 = vld [vmem:[%s15846_s2 + $0x78] sm:$0xff]  ;;  %v2443_v44 = vld [vmem:[%s15846_s2 + $0x10] sm:$0xff] }
 0x260   : > { %v1971_v15 = vsel %vm1940_vm6, %v16625_v11, %v16624_v61  ;;  %v10797_v27 = vld [vmem:[%s15846_s2 + $0x28] sm:$0xff]  ;;  %v10845_v37 = vld [vmem:[%s15846_s2 + $0x98] sm:$0xff]  ;;  %v2445_v4 = vld [vmem:[%s15846_s2 + $0x20] sm:$0xff] }
 0x261   : > { %2995 = vperm.xlu0 %8862, %v10797_v27   ;;  %v10821_v51 = vld [vmem:[%s15846_s2 + $0x68] sm:$0xff]  ;;  %v2447_v24 = vld [vmem:[%s15846_s2 + $0x30] sm:$0xff]  ;;  %v2449_v9 = vld [vmem:[%s15846_s2 + $0x40] sm:$0xff] }
 0x262   : > { %v1726_v36 = vpop.permute.xlu1 %1725  ;;  %v1724_v55 = vpop.permute.xlu0 %1723  ;;  %v2442_v43 = vld [vmem:[%s15846_s2 + $0x8] sm:$0xff]  ;;  %v2459_v29 = vld [vmem:[%s15846_s2 + $0x90] sm:$0xff]  ;;  %v2461_v52 = vld [vmem:[%s15846_s2 + $0xa0] sm:$0xff] }
 0x263   : > { %v2030_v14 = vsel %vm2006_vm8, %v1997_v18, %v1726_v36  ;;  %v2029_v50 = vsel %vm2006_vm8, %v1996_v54, %v1724_v55  ;;  %2975 = vperm.xlu1 %8863, %v2442_v43   ;;  %v10836_v47 = vld [vmem:[%s15846_s2 + $0x88] sm:$0xff]  ;;  %v2465_v12 = vld [vmem:[%s15846_s2 + $0xc0] sm:$0xff]  ;;  %v2467_v58 = vld [vmem:[%s15846_s2 + $0xd0] sm:$0xff] }
 0x264   : > { %8549 = vmatprep.mubr.msk.f32.mxu0 %vm2051_vm9, %v2029_v50  ;;  %v10854_v62 = vld [vmem:[%s15846_s2 + $0xa8] sm:$0xff]  ;;  %v2377_v21 = vld [vmem:[%s10945_s27] sm:$0xff] }
 0x265   : > { %8550 = vmatmul.mubr.msk.f32.gmra.mrb[22].mxu0 %vm2051_vm9, %v2030_v14  ;;  %3005 = vperm.xlu0 %8862, %v10803_v42   ;;  %v2381_v61 = vld [vmem:[%s10945_s27 + $0x20] sm:$0xff]  ;;  %v2382_v11 = vld [vmem:[%s10945_s27 + $0x28] sm:$0xff] }
 0x266   : > { %v1602_v2 = vpop.permute.xlu1 %1601  ;;  %v1600_v5 = vpop.permute.xlu0 %1599 }
 0x267   : > { %v1999_v25 = vsel %vm1973_vm7, %v1966_v8, %v1602_v2  ;;  %v1998_v41 = vsel %vm1973_vm7, %v1965_v49, %v1600_v5  ;;  %v10809_v2 = vld [vmem:[%s15846_s2 + $0x48] sm:$0xff]  ;;  %v10815_v5 = vld [vmem:[%s15846_s2 + $0x58] sm:$0xff]  ;;  %2980 = vperm.xlu1 %8863, %v2443_v44  }
 0x268   : > { %v10863_v8 = vld [vmem:[%s15846_s2 + $0xb8] sm:$0xff]  ;;  %v10872_v49 = vld [vmem:[%s15846_s2 + $0xc8] sm:$0xff] }
 0x269   : > { %3015 = vperm.xlu0 %8862, %v10809_v2  }
 0x26a   : > { %v1730_v7 = vpop.permute.xlu1 %1729  ;;  %v1728_v39 = vpop.permute.xlu0 %1727 }
 0x26b   : > { %v2032_v19 = vsel %vm2006_vm8, %v1999_v25, %v1730_v7  ;;  %v2031_v60 = vsel %vm2006_vm8, %v1998_v41, %v1728_v39  ;;  %2990 = vperm.xlu1 %8863, %v2445_v4   ;;  %v2451_v25 = vld [vmem:[%s15846_s2 + $0x50] sm:$0xff]  ;;  %v10881_v41 = vld [vmem:[%s15846_s2 + $0xd8] sm:$0xff]  ;;  %v2453_v7 = vld [vmem:[%s15846_s2 + $0x60] sm:$0xff] }
 0x26c   : > { %8552 = vmatprep.mubr.msk.f32.mxu0 %vm2051_vm9, %v2031_v60  ;;  %v10890_v39 = vld [vmem:[%s15846_s2 + $0xe8] sm:$0xff]  ;;  %v10899_v60 = vld [vmem:[%s15846_s2 + $0xf8] sm:$0xff] }
 0x26d   : > { %8553 = vmatmul.mubr.msk.f32.gmra.mrb[24].mxu0 %vm2051_vm9, %v2032_v19  ;;  %3025 = vperm.xlu0 %8862, %v10815_v5   ;;  %v2455_v19 = vld [vmem:[%s15846_s2 + $0x70] sm:$0xff] }
 0x26e   : > { %v1606_v31 = vpop.permute.xlu1 %1605  ;;  %v1604_v53 = vpop.permute.xlu0 %1603 }
 0x26f   : > { %v2001_v17 = vsel %vm1973_vm7, %v1968_v30, %v1606_v31  ;;  %v2000_v57 = vsel %vm1973_vm7, %v1967_v6, %v1604_v53  ;;  %3000 = vperm.xlu1 %8863, %v2447_v24   ;;  %v2457_v31 = vld [vmem:[%s15846_s2 + $0x80] sm:$0xff]  ;;  %v8910_v53 = vmov 2   ;;  %v2463_v30 = vld [vmem:[%s15846_s2 + $0xb0] sm:$0xff] }
 0x270   : > { %v2469_v6 = vld [vmem:[%s15846_s2 + $0xe0] sm:$0xff] }
 0x271   : > { %3035 = vperm.xlu0 %8862, %v10821_v51  }
 0x272   : > { %v1734_v59 = vpop.permute.xlu1 %1733  ;;  %v1732_v46 = vpop.permute.xlu0 %1731 }
 0x273   : > { %v2034_v56 = vsel %vm2006_vm8, %v2001_v17, %v1734_v59  ;;  %v2033_v45 = vsel %vm2006_vm8, %v2000_v57, %v1732_v46  ;;  %3010 = vperm.xlu1 %8863, %v2449_v9   ;;  %v2471_v17 = vld [vmem:[%s15846_s2 + $0xf0] sm:$0xff]  ;;  %v16626_v57 = vld [vmem:[#allocation133_spill] sm:$0xff]  ;;  %v16627_v59 = vld [vmem:[#allocation134_spill] sm:$0xff]  ;;  %v8911_v46 = vmov 0.0  }
 0x274   : > { %8555 = vmatprep.mubr.msk.f32.mxu0 %vm2051_vm9, %v2033_v45  ;;  %v10950_v45 = vld [vmem:[%s15848_s4] ss:$0 sm:$0xff] }
 0x275   : > { %8556 = vmatmul.mubr.msk.f32.gmra.mrb[26].mxu0 %vm2051_vm9, %v2034_v56  ;;  %3045 = vperm.xlu0 %8862, %v10827_v48   ;;  %v10932_v56 = vrot.slane %v8911_v46, 1 }
 0x276   : > { %v1610_v22 = vpop.permute.xlu1 %1609  ;;  %v1608_v16 = vpop.permute.xlu0 %1607 }
 0x277   : > { %v2003_v32 = vsel %vm1973_vm7, %v1970_v63, %v1610_v22  ;;  %v2002_v35 = vsel %vm1973_vm7, %v1969_v34, %v1608_v16  ;;  %3020 = vperm.xlu1 %8863, %v2451_v25   ;;  %16628 = vst [vmem:[#allocation3_spill] sm:$0xff] %v10932_v56  ;;  %v2378_v63 = vld [vmem:[%s10945_s27 + $0x8] sm:$0xff] }
 0x279   : > { %3055 = vperm.xlu0 %8862, %v10836_v47  }
 0x27a   : > { %v1738_v18 = vpop.permute.xlu1 %1737  ;;  %v1736_v54 = vpop.permute.xlu0 %1735 }
 0x27b   : > { %v2036_v36 = vsel %vm2006_vm8, %v2003_v32, %v1738_v18  ;;  %v2035_v55 = vsel %vm2006_vm8, %v2002_v35, %v1736_v54  ;;  %3030 = vperm.xlu1 %8863, %v2453_v7   ;;  %v2379_v54 = vld [vmem:[%s10945_s27 + $0x10] sm:$0xff] }
 0x27c   : > { %8558 = vmatprep.mubr.msk.f32.mxu0 %vm2051_vm9, %v2035_v55 }
 0x27d   : > { %8559 = vmatmul.mubr.msk.f32.gmra.mrb[28].mxu0 %vm2051_vm9, %v2036_v36  ;;  %3065 = vperm.xlu0 %8862, %v10845_v37   ;;  %v2380_v36 = vld [vmem:[%s10945_s27 + $0x18] sm:$0xff] }
 0x27e   : > { %v1614_v14 = vpop.permute.xlu1 %1613  ;;  %v1612_v50 = vpop.permute.xlu0 %1611 }
 0x27f   : > { %v2005_v0 = vsel %vm1973_vm7, %v1972_v10, %v1614_v14  ;;  %v2004_v28 = vsel %vm1973_vm7, %v1971_v15, %v1612_v50  ;;  %3040 = vperm.xlu1 %8863, %v2455_v19  }
 0x281   : > { %3075 = vperm.xlu0 %8862, %v10854_v62  }
 0x282   : > { %v1742_v38 = vpop.permute.xlu1 %1741  ;;  %v1740_v3 = vpop.permute.xlu0 %1739 }
 0x283   : > { %v2038_v26 = vsel %vm2006_vm8, %v2005_v0, %v1742_v38  ;;  %v2037_v33 = vsel %vm2006_vm8, %v2004_v28, %v1740_v3  ;;  %3050 = vperm.xlu1 %8863, %v2457_v31  }
 0x284   : > { %8561 = vmatprep.mubr.msk.f32.mxu0 %vm2051_vm9, %v2037_v33  ;;  %v2383_v33 = vld [vmem:[%s10945_s27 + $0x30] sm:$0xff] }
 0x285   : > { %8562 = vmatmul.mubr.msk.f32.gmra.mrb[30].mxu0 %vm2051_vm9, %v2038_v26  ;;  %3085 = vperm.xlu0 %8862, %v10863_v8  }
 0x287   : > { %3060 = vperm.xlu1 %8863, %v2459_v29  }
 0x289   : > { %3095 = vperm.xlu0 %8862, %v10872_v49  }
 0x28b   : > { %3070 = vperm.xlu1 %8863, %v2461_v52  }
 0x28d   : > { %3105 = vperm.xlu0 %8862, %v10881_v41  }
 0x28f   : > { %3080 = vperm.xlu1 %8863, %v2463_v30  }
 0x291   : > { %3115 = vperm.xlu0 %8862, %v10890_v39  }
 0x293   : > { %3090 = vperm.xlu1 %8863, %v2465_v12  }
 0x295   : > { %3125 = vperm.xlu0 %8862, %v10899_v60  }
 0x297   : > { %3100 = vperm.xlu1 %8863, %v2467_v58  }
 0x299   : > { %8865 = vset.pattern.permute.xlu0 %v8910_v53 }
 0x29a   : > { %3164 = vperm.xlu0 %8865, %v2442_v43  }
 0x29b   : > { %3110 = vperm.xlu1 %8863, %v2469_v6  }
 0x29e   : > { %3173 = vperm.xlu0 %8865, %v2445_v4  }
 0x29f   : > { %3120 = vperm.xlu1 %8863, %v2471_v17  }
 0x2a2   : > { %3179 = vperm.xlu0 %8865, %v2447_v24  }
 0x2a3   : > { %8864 = vset.pattern.permute.xlu1 %v8910_v53 }
 0x2a4   : > { %3161 = vperm.xlu1 %8864, %v16626_v57   ;;  %v2391_v57 = vld [vmem:[%s10945_s27 + $0x70] sm:$0xff] }
 0x2a6   : > { %3185 = vperm.xlu0 %8865, %v2449_v9  }
 0x2a8   : > { %3167 = vperm.xlu1 %8864, %v2443_v44   ;;  %v2386_v44 = vld [vmem:[%s10945_s27 + $0x48] sm:$0xff] }
 0x2aa   : > { %3191 = vperm.xlu0 %8865, %v2451_v25   ;;  %v2388_v25 = vld [vmem:[%s10945_s27 + $0x58] sm:$0xff] }
 0x2ac   : > { %3170 = vperm.xlu1 %8864, %v16627_v59   ;;  %v2392_v59 = vld [vmem:[%s10945_s27 + $0x78] sm:$0xff] }
 0x2ae   : > { %3197 = vperm.xlu0 %8865, %v2453_v7  }
 0x2b0   : > { %3176 = vperm.xlu1 %8864, %v10797_v27   ;;  %v2384_v27 = vld [vmem:[%s10945_s27 + $0x38] sm:$0xff] }
 0x2b2   : > { %3203 = vperm.xlu0 %8865, %v2455_v19  }
 0x2b4   : > { %3182 = vperm.xlu1 %8864, %v10803_v42  }
 0x2b6   : > { %3209 = vperm.xlu0 %8865, %v2457_v31  }
 0x2b8   : > { %3188 = vperm.xlu1 %8864, %v10809_v2  }
 0x2ba   : > { %3215 = vperm.xlu0 %8865, %v2459_v29   ;;  %v2389_v29 = vld [vmem:[%s10945_s27 + $0x60] sm:$0xff] }
 0x2bc   : > { %3194 = vperm.xlu1 %8864, %v10815_v5  }
 0x2be   : > { %3221 = vperm.xlu0 %8865, %v2461_v52   ;;  %v2390_v52 = vld [vmem:[%s10945_s27 + $0x68] sm:$0xff] }
 0x2c0   : > { %3200 = vperm.xlu1 %8864, %v10821_v51  }
 0x2c2   : > { %3227 = vperm.xlu0 %8865, %v2463_v30  }
 0x2c4   : > { %3206 = vperm.xlu1 %8864, %v10827_v48  }
 0x2c6   : > { %3233 = vperm.xlu0 %8865, %v2465_v12  }
 0x2c8   : > { %3212 = vperm.xlu1 %8864, %v10836_v47   ;;  %v2385_v47 = vld [vmem:[%s10945_s27 + $0x40] sm:$0xff] }
 0x2ca   : > { %3239 = vperm.xlu0 %8865, %v2467_v58  }
 0x2cc   : > { %3218 = vperm.xlu1 %8864, %v10845_v37  }
 0x2ce   : > { %3245 = vperm.xlu0 %8865, %v2469_v6  }
 0x2d0   : > { %3224 = vperm.xlu1 %8864, %v10854_v62  }
 0x2d2   : > { %3251 = vperm.xlu0 %8865, %v2471_v17  }
 0x2d4   : > { %3230 = vperm.xlu1 %8864, %v10863_v8  }
 0x2d6   : > { %3583 = vrot.lane.b32.xlu0 %v10932_v56, %s8902_s15 }
 0x2d8   : > { %3236 = vperm.xlu1 %8864, %v10872_v49   ;;  %v2387_v49 = vld [vmem:[%s10945_s27 + $0x50] sm:$0xff] }
 0x2dc   : > { %3242 = vperm.xlu1 %8864, %v10881_v41  }
 0x2e0   : > { %3248 = vperm.xlu1 %8864, %v10890_v39  }
 0x2e4   : > { %3254 = vperm.xlu1 %8864, %v10899_v60  }
 0x304   : > { %v8518_v22 = vpop.f32.mrb[0].mxu0 }
 0x305   : > { %v2224_v16 = vadd.f32 %v8518_v22, %v10950_v45  ;;  %v2218_v23 = vpop.f32.mrb[1].mxu0 }
 0x306   : > { %v2219_v1 = vadd.f32 %v10950_v45, %v2218_v23 }
 0x307   : > { %v10960_v32 = vadd.f32 %v2378_v63, %v2224_v16 }
 0x308   : > { %v10957_v13 = vadd.f32 %v2377_v21, %v2219_v1  ;;  %v8521_v34 = vpop.f32.mrb[2].mxu0  ;;  %v2393_v1 = vld [vmem:[%s10945_s27 + $0x80] sm:$0xff] }
 0x309   : > { %16630 = vst [vmem:[#allocation62_spill] sm:$0xff] %v10960_v32  ;;  %v2234_v35 = vadd.f32 %v8521_v34, %v10950_v45  ;;  %v2228_v18 = vpop.f32.mrb[3].mxu0  ;;  %v2394_v34 = vld [vmem:[%s10945_s27 + $0x88] sm:$0xff] }
 0x30a   : > { %16629 = vst [vmem:[#allocation7_spill] sm:$0xff] %v10957_v13  ;;  %v2229_v55 = vadd.f32 %v10950_v45, %v2228_v18  ;;  %8566 = vmatprep.mubr.msk.f32.mxu0 %vm1775_vm1, %v10957_v13 }
 0x30b   : > { %8567 = vmatmul.mubr.msk.f32.vlgmr.msra.gmra.mrb[32].mxu0 %vm1775_vm1, %v10960_v32  ;;  %v10973_v20 = vadd.f32 %v2380_v36, %v2234_v35 }
 0x30c   : > { %v10970_v14 = vadd.f32 %v2379_v54, %v2229_v55  ;;  %v8524_v50 = vpop.f32.mrb[4].mxu0 }
 0x30d   : > { %16632 = vst [vmem:[#allocation2_spill] sm:$0xff] %v10973_v20  ;;  %v2244_v40 = vadd.f32 %v8524_v50, %v10950_v45  ;;  %v2238_v10 = vpop.f32.mrb[5].mxu0 }
 0x30e   : > { %16631 = vst [vmem:[#allocation63_spill] sm:$0xff] %v10970_v14  ;;  %v2239_v15 = vadd.f32 %v10950_v45, %v2238_v10  ;;  %8569 = vmatprep.mubr.msk.f32.mxu0 %vm1775_vm1, %v10970_v14  ;;  %v2396_v10 = vld [vmem:[%s10945_s27 + $0x98] sm:$0xff] }
 0x30f   : > { %8570 = vmatmul.mubr.msk.f32.gmra.mrb[34].mxu0 %vm1775_vm1, %v10973_v20  ;;  %v10986_v38 = vadd.f32 %v2382_v11, %v2244_v40  ;;  %v2395_v40 = vld [vmem:[%s10945_s27 + $0x90] sm:$0xff] }
 0x310   : > { %v10983_v0 = vadd.f32 %v2381_v61, %v2239_v15  ;;  %v8527_v28 = vpop.f32.mrb[6].mxu0 }
 0x311   : > { %16634 = vst [vmem:[#allocation66_spill] sm:$0xff] %v10986_v38  ;;  %v2254_v3 = vadd.f32 %v8527_v28, %v10950_v45  ;;  %v2248_v26 = vpop.f32.mrb[7].mxu0 }
 0x312   : > { %16633 = vst [vmem:[#allocation6_spill] sm:$0xff] %v10983_v0  ;;  %v2249_v42 = vadd.f32 %v10950_v45, %v2248_v26  ;;  %8572 = vmatprep.mubr.msk.f32.mxu0 %vm1775_vm1, %v10983_v0 }
 0x313   : > { %8573 = vmatmul.mubr.msk.f32.gmra.mrb[36].mxu0 %vm1775_vm1, %v10986_v38  ;;  %v10999_v51 = vadd.f32 %v2384_v27, %v2254_v3  ;;  %v2398_v27 = vld [vmem:[%s10945_s27 + $0xa8] sm:$0xff] }
 0x314   : > { %v10996_v2 = vadd.f32 %v2383_v33, %v2249_v42  ;;  %v8530_v5 = vpop.f32.mrb[8].mxu0  ;;  %v2397_v33 = vld [vmem:[%s10945_s27 + $0xa0] sm:$0xff] }
 0x315   : > { %16636 = vst [vmem:[#allocation10_spill] sm:$0xff] %v10999_v51  ;;  %v2264_v48 = vadd.f32 %v8530_v5, %v10950_v45  ;;  %v2258_v43 = vpop.f32.mrb[9].mxu0 }
 0x316   : > { %16635 = vst [vmem:[#allocation67_spill] sm:$0xff] %v10996_v2  ;;  %v2259_v37 = vadd.f32 %v10950_v45, %v2258_v43  ;;  %8575 = vmatprep.mubr.msk.f32.mxu0 %vm1775_vm1, %v10996_v2 }
 0x317   : > { %8576 = vmatmul.mubr.msk.f32.gmra.mrb[38].mxu0 %vm1775_vm1, %v10999_v51  ;;  %v11012_v24 = vadd.f32 %v2386_v44, %v2264_v48 }
 0x318   : > { %v11009_v4 = vadd.f32 %v2385_v47, %v2259_v37  ;;  %v8533_v62 = vpop.f32.mrb[10].mxu0  ;;  %v2399_v37 = vld [vmem:[%s10945_s27 + $0xb0] sm:$0xff] }
 0x319   : > { %16638 = vst [vmem:[#allocation68_spill] sm:$0xff] %v11012_v24  ;;  %v2274_v8 = vadd.f32 %v8533_v62, %v10950_v45  ;;  %v2268_v9 = vpop.f32.mrb[11].mxu0  ;;  %v2400_v62 = vld [vmem:[%s10945_s27 + $0xb8] sm:$0xff] }
 0x31a   : > { %16637 = vst [vmem:[#allocation11_spill] sm:$0xff] %v11009_v4  ;;  %v2269_v41 = vadd.f32 %v10950_v45, %v2268_v9  ;;  %8578 = vmatprep.mubr.msk.f32.mxu0 %vm1775_vm1, %v11009_v4 }
 0x31b   : > { %8579 = vmatmul.mubr.msk.f32.gmra.mrb[40].mxu0 %vm1775_vm1, %v11012_v24  ;;  %v11025_v19 = vadd.f32 %v2388_v25, %v2274_v8 }
 0x31c   : > { %v11022_v7 = vadd.f32 %v2387_v49, %v2269_v41  ;;  %v8536_v39 = vpop.f32.mrb[12].mxu0 }
 0x31d   : > { %16640 = vst [vmem:[#allocation12_spill] sm:$0xff] %v11025_v19  ;;  %v2284_v31 = vadd.f32 %v8536_v39, %v10950_v45  ;;  %v2278_v53 = vpop.f32.mrb[13].mxu0 }
 0x31e   : > { %16639 = vst [vmem:[#allocation69_spill] sm:$0xff] %v11022_v7  ;;  %v2279_v30 = vadd.f32 %v10950_v45, %v2278_v53  ;;  %8581 = vmatprep.mubr.msk.f32.mxu0 %vm1775_vm1, %v11022_v7  ;;  %v2402_v53 = vld [vmem:[%s10945_s27 + $0xc8] sm:$0xff] }
 0x31f   : > { %8582 = vmatmul.mubr.msk.f32.gmra.mrb[42].mxu0 %vm1775_vm1, %v11025_v19  ;;  %v11037_v58 = vadd.f32 %v2390_v52, %v2284_v31  ;;  %v2401_v31 = vld [vmem:[%s10945_s27 + $0xc0] sm:$0xff] }
 0x320   : > { %v11035_v12 = vadd.f32 %v2389_v29, %v2279_v30  ;;  %v8539_v60 = vpop.f32.mrb[14].mxu0 }
 0x321   : > { %16642 = vst [vmem:[#allocation70_spill] sm:$0xff] %v11037_v58  ;;  %v2294_v6 = vadd.f32 %v8539_v60, %v10950_v45  ;;  %v2288_v17 = vpop.f32.mrb[15].mxu0 }
 0x322   : > { %16641 = vst [vmem:[#allocation13_spill] sm:$0xff] %v11035_v12  ;;  %v2289_v46 = vadd.f32 %v10950_v45, %v2288_v17  ;;  %8584 = vmatprep.mubr.msk.f32.mxu0 %vm1775_vm1, %v11035_v12 }
 0x323   : > { %8585 = vmatmul.mubr.msk.f32.gmra.mrb[44].mxu0 %vm1775_vm1, %v11037_v58  ;;  %v11049_v23 = vadd.f32 %v2392_v59, %v2294_v6  ;;  %v2404_v59 = vld [vmem:[%s10945_s27 + $0xd8] sm:$0xff] }
 0x324   : > { %v8542_v22 = vpop.f32.mrb[16].mxu0  ;;  %v11047_v16 = vadd.f32 %v2391_v57, %v2289_v46  ;;  %v2403_v57 = vld [vmem:[%s10945_s27 + $0xd0] sm:$0xff] }
 0x325   : > { %16644 = vst [vmem:[#allocation14_spill] sm:$0xff] %v11049_v23  ;;  %v2304_v21 = vadd.f32 %v8542_v22, %v10950_v45  ;;  %v2298_v63 = vpop.f32.mrb[17].mxu0 }
 0x326   : > { %16643 = vst [vmem:[#allocation71_spill] sm:$0xff] %v11047_v16  ;;  %v2299_v35 = vadd.f32 %v10950_v45, %v2298_v63  ;;  %8587 = vmatprep.mubr.msk.f32.mxu1 %vm1775_vm1, %v11047_v16 }
 0x327   : > { %8588 = vmatmul.mubr.msk.f32.vlgmr.msra.gmra.mrb[0].mxu1 %vm1775_vm1, %v11049_v23  ;;  %v11061_v36 = vadd.f32 %v2394_v34, %v2304_v21 }
 0x328   : > { %v11059_v18 = vadd.f32 %v2393_v1, %v2299_v35  ;;  %v8545_v54 = vpop.f32.mrb[18].mxu0  ;;  %v2405_v35 = vld [vmem:[%s10945_s27 + $0xe0] sm:$0xff] }
 0x329   : > { %16646 = vst [vmem:[#allocation72_spill] sm:$0xff] %v11061_v36  ;;  %v2314_v55 = vadd.f32 %v8545_v54, %v10950_v45  ;;  %v2308_v50 = vpop.f32.mrb[19].mxu0  ;;  %v2406_v54 = vld [vmem:[%s10945_s27 + $0xe8] sm:$0xff] }
 0x32a   : > { %16645 = vst [vmem:[#allocation15_spill] sm:$0xff] %v11059_v18  ;;  %v2309_v61 = vadd.f32 %v10950_v45, %v2308_v50  ;;  %8590 = vmatprep.mubr.msk.f32.mxu1 %vm1775_vm1, %v11059_v18 }
 0x32b   : > { %8591 = vmatmul.mubr.msk.f32.gmra.mrb[2].mxu1 %vm1775_vm1, %v11061_v36  ;;  %v11073_v15 = vadd.f32 %v2396_v10, %v2314_v55 }
 0x32c   : > { %v11071_v11 = vadd.f32 %v2395_v40, %v2309_v61 }
 0x32d   : > { %16648 = vst [vmem:[#allocation90_spill] sm:$0xff] %v11073_v15 }
 0x32e   : > { %16647 = vst [vmem:[#allocation89_spill] sm:$0xff] %v11071_v11  ;;  %8593 = vmatprep.mubr.msk.f32.mxu1 %vm1775_vm1, %v11071_v11 }
 0x32f   : > { %8594 = vmatmul.mubr.msk.f32.gmra.mrb[4].mxu1 %vm1775_vm1, %v11073_v15 }
 0x330   : > { %v8548_v28 = vpop.f32.mrb[20].mxu0 }
 0x331   : > { %v2324_v3 = vadd.f32 %v8548_v28, %v10950_v45  ;;  %v2318_v26 = vpop.f32.mrb[21].mxu0 }
 0x332   : > { %v2319_v42 = vadd.f32 %v10950_v45, %v2318_v26  ;;  %v2408_v26 = vld [vmem:[%s10945_s27 + $0xf8] sm:$0xff] }
 0x333   : > { %v11085_v48 = vadd.f32 %v2398_v27, %v2324_v3  ;;  %v2407_v3 = vld [vmem:[%s10945_s27 + $0xf0] sm:$0xff] }
 0x334   : > { %v11083_v5 = vadd.f32 %v2397_v33, %v2319_v42 }
 0x335   : > { %16650 = vst [vmem:[#allocation5_spill] sm:$0xff] %v11085_v48 }
 0x336   : > { %16649 = vst [vmem:[#allocation4_spill] sm:$0xff] %v11083_v5  ;;  %8596 = vmatprep.mubr.msk.f32.mxu1 %vm1775_vm1, %v11083_v5 }
 0x337   : > { %8597 = vmatmul.mubr.msk.f32.gmra.mrb[6].mxu1 %vm1775_vm1, %v11085_v48 }
 0x338   : > { %v8551_v43 = vpop.f32.mrb[22].mxu0 }
 0x339   : > { %v2334_v47 = vadd.f32 %v8551_v43, %v10950_v45  ;;  %v2328_v44 = vpop.f32.mrb[23].mxu0  ;;  %v11151_v43 = vpop.permute.xlu1 %2975 }
 0x33a   : > { %v2329_v8 = vadd.f32 %v10950_v45, %v2328_v44  ;;  %16661 = vst [vmem:[#allocation22_spill] sm:$0xff] %v11151_v43 }
 0x33b   : > { %v11097_v49 = vadd.f32 %v2400_v62, %v2334_v47  ;;  %v11153_v47 = vpop.permute.xlu0 %2970 }
 0x33c   : > { %v11095_v9 = vadd.f32 %v2399_v37, %v2329_v8  ;;  %16662 = vst [vmem:[#allocation23_spill] sm:$0xff] %v11153_v47 }
 0x33d   : > { %16652 = vst [vmem:[#allocation19_spill] sm:$0xff] %v11097_v49  ;;  %v11155_v44 = vpop.permute.xlu1 %2980 }
 0x33e   : > { %16651 = vst [vmem:[#allocation18_spill] sm:$0xff] %v11095_v9  ;;  %8599 = vmatprep.mubr.msk.f32.mxu1 %vm1775_vm1, %v11095_v9  ;;  %16663 = vst [vmem:[#allocation48_spill] sm:$0xff] %v11155_v44 }
 0x33f   : > { %8600 = vmatmul.mubr.msk.f32.gmra.mrb[8].mxu1 %vm1775_vm1, %v11097_v49  ;;  %v11157_v37 = vpop.permute.xlu0 %2985 }
 0x340   : > { %v8554_v25 = vpop.f32.mrb[24].mxu0  ;;  %16664 = vst [vmem:[#allocation49_spill] sm:$0xff] %v11157_v37 }
 0x341   : > { %v2344_v41 = vadd.f32 %v8554_v25, %v10950_v45  ;;  %v2338_v39 = vpop.f32.mrb[25].mxu0  ;;  %v11159_v62 = vpop.permute.xlu1 %2990 }
 0x342   : > { %v2339_v29 = vadd.f32 %v10950_v45, %v2338_v39  ;;  %16665 = vst [vmem:[#allocation75_spill] sm:$0xff] %v11159_v62 }
 0x343   : > { %v11109_v30 = vadd.f32 %v2402_v53, %v2344_v41 }
 0x344   : > { %v11107_v52 = vadd.f32 %v2401_v31, %v2339_v29 }
 0x345   : > { %16654 = vst [vmem:[#allocation45_spill] sm:$0xff] %v11109_v30  ;;  %v11163_v8 = vpop.permute.xlu1 %3000 }
 0x346   : > { %16653 = vst [vmem:[#allocation44_spill] sm:$0xff] %v11107_v52  ;;  %8602 = vmatprep.mubr.msk.f32.mxu1 %vm1775_vm1, %v11107_v52  ;;  %16667 = vst [vmem:[#allocation93_spill] sm:$0xff] %v11163_v8 }
 0x347   : > { %8603 = vmatmul.mubr.msk.f32.gmra.mrb[10].mxu1 %vm1775_vm1, %v11109_v30 }
 0x348   : > { %v8557_v60 = vpop.f32.mrb[26].mxu0 }
 0x349   : > { %v2354_v6 = vadd.f32 %v8557_v60, %v10950_v45  ;;  %v2348_v17 = vpop.f32.mrb[27].mxu0  ;;  %v11167_v41 = vpop.permute.xlu1 %3010 }
 0x34a   : > { %v2349_v46 = vadd.f32 %v10950_v45, %v2348_v17  ;;  %16669 = vst [vmem:[#allocation135_spill] sm:$0xff] %v11167_v41 }
 0x34b   : > { %v11121_v21 = vadd.f32 %v2404_v59, %v2354_v6 }
 0x34c   : > { %v11119_v22 = vadd.f32 %v2403_v57, %v2349_v46 }
 0x34d   : > { %16656 = vst [vmem:[#allocation74_spill] sm:$0xff] %v11121_v21  ;;  %v11171_v31 = vpop.permute.xlu1 %3020 }
 0x34e   : > { %16655 = vst [vmem:[#allocation73_spill] sm:$0xff] %v11119_v22  ;;  %8605 = vmatprep.mubr.msk.f32.mxu1 %vm1775_vm1, %v11119_v22  ;;  %16671 = vst [vmem:[#allocation17_spill] sm:$0xff] %v11171_v31 }
 0x34f   : > { %8606 = vmatmul.mubr.msk.f32.gmra.mrb[12].mxu1 %vm1775_vm1, %v11121_v21  ;;  %v11226_v21 = vld [vmem:[%s15850_s6] ss:$0 sm:$0xff] }
 0x350   : > { %v8560_v63 = vpop.f32.mrb[28].mxu0 }
 0x351   : > { %v2364_v1 = vadd.f32 %v8560_v63, %v10950_v45  ;;  %v2358_v34 = vpop.f32.mrb[29].mxu0  ;;  %v11175_v29 = vpop.permute.xlu1 %3030 }
 0x352   : > { %v2359_v55 = vadd.f32 %v10950_v45, %v2358_v34  ;;  %16673 = vst [vmem:[#allocation27_spill] sm:$0xff] %v11175_v29 }
 0x353   : > { %v11133_v40 = vadd.f32 %v2406_v54, %v2364_v1 }
 0x354   : > { %v11131_v50 = vadd.f32 %v2405_v35, %v2359_v55 }
 0x355   : > { %16658 = vst [vmem:[#allocation92_spill] sm:$0xff] %v11133_v40  ;;  %v11179_v6 = vpop.permute.xlu1 %3040 }
 0x356   : > { %16657 = vst [vmem:[#allocation91_spill] sm:$0xff] %v11131_v50  ;;  %8608 = vmatprep.mubr.msk.f32.mxu1 %vm1775_vm1, %v11131_v50  ;;  %16675 = vst [vmem:[#allocation53_spill] sm:$0xff] %v11179_v6 }
 0x357   : > { %8609 = vmatmul.mubr.msk.f32.gmra.mrb[14].mxu1 %vm1775_vm1, %v11133_v40 }
 0x358   : > { %v8563_v10 = vpop.f32.mrb[30].mxu0 }
 0x359   : > { %v2374_v61 = vadd.f32 %v8563_v10, %v10950_v45  ;;  %v2368_v28 = vpop.f32.mrb[31].mxu0  ;;  %v11183_v57 = vpop.permute.xlu1 %3050 }
 0x35a   : > { %v2369_v33 = vadd.f32 %v10950_v45, %v2368_v28  ;;  %v11161_v45 = vpop.permute.xlu0 %2995  ;;  %16677 = vst [vmem:[#allocation78_spill] sm:$0xff] %v11183_v57 }
 0x35b   : > { %v11145_v42 = vadd.f32 %v2408_v26, %v2374_v61  ;;  %16666 = vst [vmem:[#allocation76_spill] sm:$0xff] %v11161_v45 }
 0x35c   : > { %v11143_v27 = vadd.f32 %v2407_v3, %v2369_v33 }
 0x35d   : > { %16660 = vst [vmem:[#allocation9_spill] sm:$0xff] %v11145_v42  ;;  %v11187_v46 = vpop.permute.xlu1 %3060 }
 0x35e   : > { %16659 = vst [vmem:[#allocation8_spill] sm:$0xff] %v11143_v27  ;;  %8611 = vmatprep.mubr.msk.f32.mxu1 %vm1775_vm1, %v11143_v27  ;;  %v11165_v25 = vpop.permute.xlu0 %3005  ;;  %16679 = vst [vmem:[#allocation114_spill] sm:$0xff] %v11187_v46 }
 0x35f   : > { %8612 = vmatmul.mubr.msk.f32.gmra.mrb[16].mxu1 %vm1775_vm1, %v11145_v42  ;;  %16668 = vst [vmem:[#allocation94_spill] sm:$0xff] %v11165_v25 }
 0x361   : > { %v11191_v1 = vpop.permute.xlu1 %3070 }
 0x362   : > { %v11169_v39 = vpop.permute.xlu0 %3015  ;;  %16681 = vst [vmem:[#allocation96_spill] sm:$0xff] %v11191_v1 }
 0x363   : > { %16670 = vst [vmem:[#allocation16_spill] sm:$0xff] %v11169_v39 }
 0x365   : > { %v11195_v35 = vpop.permute.xlu1 %3080 }
 0x366   : > { %v11173_v53 = vpop.permute.xlu0 %3025  ;;  %16683 = vst [vmem:[#allocation137_spill] sm:$0xff] %v11195_v35 }
 0x367   : > { %16672 = vst [vmem:[#allocation26_spill] sm:$0xff] %v11173_v53 }
 0x369   : > { %v11199_v55 = vpop.permute.xlu1 %3090 }
 0x36a   : > { %v11177_v60 = vpop.permute.xlu0 %3035  ;;  %16685 = vst [vmem:[#allocation21_spill] sm:$0xff] %v11199_v55 }
 0x36b   : > { %16674 = vst [vmem:[#allocation52_spill] sm:$0xff] %v11177_v60 }
 0x36d   : > { %v11203_v61 = vpop.permute.xlu1 %3100 }
 0x36e   : > { %v11181_v17 = vpop.permute.xlu0 %3045  ;;  %16687 = vst [vmem:[#allocation31_spill] sm:$0xff] %v11203_v61 }
 0x36f   : > { %16676 = vst [vmem:[#allocation77_spill] sm:$0xff] %v11181_v17 }
 0x371   : > { %v11207_v3 = vpop.permute.xlu1 %3110 }
 0x372   : > { %v11185_v59 = vpop.permute.xlu0 %3055  ;;  %16689 = vst [vmem:[#allocation57_spill] sm:$0xff] %v11207_v3 }
 0x373   : > { %16678 = vst [vmem:[#allocation113_spill] sm:$0xff] %v11185_v59 }
 0x375   : > { %v11211_v33 = vpop.permute.xlu1 %3120 }
 0x376   : > { %v11189_v63 = vpop.permute.xlu0 %3065  ;;  %16691 = vst [vmem:[#allocation80_spill] sm:$0xff] %v11211_v33 }
 0x377   : > { %16680 = vst [vmem:[#allocation95_spill] sm:$0xff] %v11189_v63 }
 0x379   : > { %v11215_v42 = vpop.permute.xlu1 %3161 }
 0x37a   : > { %v11193_v34 = vpop.permute.xlu0 %3075 }
 0x37b   : > { %16682 = vst [vmem:[#allocation136_spill] sm:$0xff] %v11193_v34 }
 0x37d   : > { %v11219_v40 = vpop.permute.xlu1 %3167 }
 0x37e   : > { %v11197_v54 = vpop.permute.xlu0 %3085 }
 0x37f   : > { %16684 = vst [vmem:[#allocation20_spill] sm:$0xff] %v11197_v54 }
 0x381   : > { %v11228_v52 = vpop.permute.xlu1 %3170 }
 0x382   : > { %v11201_v10 = vpop.permute.xlu0 %3095 }
 0x383   : > { %16686 = vst [vmem:[#allocation30_spill] sm:$0xff] %v11201_v10 }
 0x385   : > { %v11234_v36 = vpop.permute.xlu1 %3176 }
 0x386   : > { %v11205_v28 = vpop.permute.xlu0 %3105 }
 0x387   : > { %16688 = vst [vmem:[#allocation56_spill] sm:$0xff] %v11205_v28 }
 0x389   : > { %v11250_v51 = vpop.permute.xlu1 %3182 }
 0x38a   : > { %v11209_v26 = vpop.permute.xlu0 %3115 }
 0x38b   : > { %16690 = vst [vmem:[#allocation79_spill] sm:$0xff] %v11209_v26 }
 0x38e   : > { %v11213_v27 = vpop.permute.xlu0 %3125 }
 0x38f   : > { %16692 = vst [vmem:[#allocation115_spill] sm:$0xff] %v11213_v27 }
 0x392   : > { %v11217_v50 = vpop.permute.xlu0 %3164 }
 0x396   : > { %v11221_v22 = vpop.permute.xlu0 %3173 }
 0x39a   : > { %v11232_v48 = vpop.permute.xlu0 %3179 }
 0x39e   : > { %v11244_v4 = vpop.permute.xlu0 %3185 }
 0x3de   : > { %v8568_v30 = vpop.f32.mrb[32].mxu0 }
 0x3df   : > { %v2652_v9 = vadd.f32 %v8568_v30, %v11226_v21  ;;  %v2646_v49 = vpop.f32.mrb[33].mxu0 }
 0x3e0   : > { %v2647_v5 = vadd.f32 %v11226_v21, %v2646_v49 }
 0x3e1   : > { %v2806_v11 = vmax.f32 %v2652_v9, 0.0 }
 0x3e2   : > { %v2805_v15 = vmax.f32 %v2647_v5, 0.0  ;;  %v8571_v18 = vpop.f32.mrb[34].mxu0 }
 0x3e3   : > { %v2871_v16 = vrot.slane %v2806_v11, 7  ;;  %v2662_v23 = vadd.f32 %v8571_v18, %v11226_v21  ;;  %v2656_v12 = vpop.f32.mrb[35].mxu0 }
 0x3e4   : > { %v2870_v58 = vrot.slane %v2805_v15, 7  ;;  %v2657_v7 = vadd.f32 %v11226_v21, %v2656_v12 }
 0x3e5   : > { %v2808_v19 = vmax.f32 %v2662_v23, 0.0 }
 0x3e6   : > { %v11239_v30 = vsel %vm2869_vm10, %v2870_v58, %v2871_v16  ;;  %v11242_v49 = vsel %vm2869_vm10, 0.0, %v2870_v58  ;;  %v2807_v9 = vmax.f32 %v2657_v7, 0.0  ;;  %v8574_v5 = vpop.f32.mrb[36].mxu0 }
 0x3e7   : > { %16693 = vst [vmem:[#allocation116_spill] sm:$0xff] %v11239_v30  ;;  %16694 = vst [vmem:[#allocation97_spill] sm:$0xff] %v11242_v49  ;;  %v2875_v11 = vrot.slane %v2808_v19, 7  ;;  %v2672_v24 = vadd.f32 %v8574_v5, %v11226_v21  ;;  %v2666_v18 = vpop.f32.mrb[37].mxu0  ;;  %v3521_v15 = vrot.slane %v11242_v49, 1  ;;  %v3523_v12 = vrot.slane %v11239_v30, 1 }
 0x3e8   : > { %v2873_v23 = vrot.slane %v2807_v9, 7  ;;  %v2667_v2 = vadd.f32 %v11226_v21, %v2666_v18 }
 0x3e9   : > { %v2810_v58 = vmax.f32 %v2672_v24, 0.0  ;;  %v3522_v7 = vsel %vm3518_vm11, %v10932_v56, %v3521_v15  ;;  %v11255_v0 = vsel %vm3518_vm11, %v3521_v15, %v3523_v12 }
 0x3ea   : > { %16695 = vst [vmem:[#allocation98_spill] sm:$0xff] %v11255_v0  ;;  %v11258_v19 = vsel %vm2869_vm10, %v2871_v16, %v2873_v23  ;;  %v11261_v5 = vsel %vm2869_vm10, %v2873_v23, %v2875_v11  ;;  %v2809_v38 = vmax.f32 %v2667_v2, 0.0  ;;  %v8577_v14 = vpop.f32.mrb[38].mxu0  ;;  %3585 = vrot.lane.b32.xlu1 %v3522_v7, %s8902_s15  ;;  %3587 = vrot.lane.b32.xlu0 %v11255_v0, %s8902_s15  ;;  %v11270_v23 = vpop.permute.xlu0 %3191 }
 0x3eb   : > { %v2879_v24 = vrot.slane %v2810_v58, 7  ;;  %v2682_v9 = vadd.f32 %v8577_v14, %v11226_v21  ;;  %v2676_v18 = vpop.f32.mrb[39].mxu0  ;;  %v3525_v15 = vrot.slane %v11258_v19, 1  ;;  %v3527_v20 = vrot.slane %v11261_v5, 1 }
 0x3ec   : > { %v2877_v16 = vrot.slane %v2809_v38, 7  ;;  %v2677_v13 = vadd.f32 %v11226_v21, %v2676_v18  ;;  %v11288_v38 = vpop.permute.xlu1 %3188 }
 0x3ed   : > { %v2812_v2 = vmax.f32 %v2682_v9, 0.0  ;;  %v11273_v32 = vsel %vm3518_vm11, %v3523_v12, %v3525_v15  ;;  %v11276_v7 = vsel %vm3518_vm11, %v3525_v15, %v3527_v20 }
 0x3ee   : > { %16696 = vst [vmem:[#allocation138_spill] sm:$0xff] %v11273_v32  ;;  %16697 = vst [vmem:[#allocation139_spill] sm:$0xff] %v11276_v7  ;;  %v11279_v58 = vsel %vm2869_vm10, %v2875_v11, %v2877_v16  ;;  %v11282_v14 = vsel %vm2869_vm10, %v2877_v16, %v2879_v24  ;;  %v2811_v56 = vmax.f32 %v2677_v13, 0.0  ;;  %v8580_v27 = vpop.f32.mrb[40].mxu0  ;;  %3589 = vrot.lane.b32.xlu1 %v11273_v32, %s8902_s15  ;;  %3591 = vrot.lane.b32.xlu0 %v11276_v7, %s8902_s15 }
 0x3ef   : > { %16698 = vst [vmem:[#allocation24_spill] sm:$0xff] %v11282_v14  ;;  %v2883_v12 = vrot.slane %v2812_v2, 7  ;;  %v2692_v9 = vadd.f32 %v8580_v27, %v11226_v21  ;;  %v2686_v18 = vpop.f32.mrb[41].mxu0  ;;  %v3529_v11 = vrot.slane %v11279_v58, 1  ;;  %v3531_v15 = vrot.slane %v11282_v14, 1 }
 0x3f0   : > { %v2881_v16 = vrot.slane %v2811_v56, 7  ;;  %v2687_v13 = vadd.f32 %v11226_v21, %v2686_v18  ;;  %v11310_v56 = vpop.permute.xlu0 %3197  ;;  %v11315_v10 = vpop.permute.xlu1 %3194 }
 0x3f1   : > { %v2814_v33 = vmax.f32 %v2692_v9, 0.0  ;;  %v11295_v26 = vsel %vm3518_vm11, %v3527_v20, %v3529_v11  ;;  %v11298_v3 = vsel %vm3518_vm11, %v3529_v11, %v3531_v15 }
 0x3f2   : > { %16699 = vst [vmem:[#allocation25_spill] sm:$0xff] %v11295_v26  ;;  %16700 = vst [vmem:[#allocation34_spill] sm:$0xff] %v11298_v3  ;;  %v11301_v28 = vsel %vm2869_vm10, %v2879_v24, %v2881_v16  ;;  %v11304_v27 = vsel %vm2869_vm10, %v2881_v16, %v2883_v12  ;;  %v2813_v2 = vmax.f32 %v2687_v13, 0.0  ;;  %v8583_v61 = vpop.f32.mrb[42].mxu0  ;;  %3593 = vrot.lane.b32.xlu1 %v11295_v26, %s8902_s15  ;;  %3595 = vrot.lane.b32.xlu0 %v11298_v3, %s8902_s15 }
 0x3f3   : > { %v2887_v20 = vrot.slane %v2814_v33, 7  ;;  %v2702_v9 = vadd.f32 %v8583_v61, %v11226_v21  ;;  %v2696_v18 = vpop.f32.mrb[43].mxu0  ;;  %v3533_v24 = vrot.slane %v11301_v28, 1  ;;  %v3535_v11 = vrot.slane %v11304_v27, 1 }
 0x3f4   : > { %v2885_v16 = vrot.slane %v2813_v2, 7  ;;  %v2697_v13 = vadd.f32 %v11226_v21, %v2696_v18  ;;  %v11338_v63 = vpop.permute.xlu0 %3203 }
 0x3f5   : > { %v2816_v55 = vmax.f32 %v2702_v9, 0.0  ;;  %v11319_v54 = vsel %vm3518_vm11, %v3531_v15, %v3533_v24  ;;  %v11322_v35 = vsel %vm3518_vm11, %v3533_v24, %v3535_v11 }
 0x3f6   : > { %16701 = vst [vmem:[#allocation35_spill] sm:$0xff] %v11319_v54  ;;  %16702 = vst [vmem:[#allocation60_spill] sm:$0xff] %v11322_v35  ;;  %v11325_v33 = vsel %vm2869_vm10, %v2883_v12, %v2885_v16  ;;  %v11328_v61 = vsel %vm2869_vm10, %v2885_v16, %v2887_v20  ;;  %v2815_v34 = vmax.f32 %v2697_v13, 0.0  ;;  %v8586_v1 = vpop.f32.mrb[44].mxu0  ;;  %3597 = vrot.lane.b32.xlu1 %v11319_v54, %s8902_s15  ;;  %3599 = vrot.lane.b32.xlu0 %v11322_v35, %s8902_s15  ;;  %v11352_v35 = vpop.permute.xlu1 %3200 }
 0x3f7   : > { %16703 = vst [vmem:[#allocation61_spill] sm:$0xff] %v11325_v33  ;;  %16704 = vst [vmem:[#allocation81_spill] sm:$0xff] %v11328_v61  ;;  %v2891_v2 = vrot.slane %v2816_v55, 7  ;;  %v2712_v15 = vadd.f32 %v8586_v1, %v11226_v21  ;;  %v2706_v9 = vpop.f32.mrb[45].mxu0  ;;  %v3537_v18 = vrot.slane %v11325_v33, 1  ;;  %v3539_v12 = vrot.slane %v11328_v61, 1 }
 0x3f8   : > { %v2889_v24 = vrot.slane %v2815_v34, 7  ;;  %v2707_v16 = vadd.f32 %v11226_v21, %v2706_v9 }
 0x3f9   : > { %v2818_v13 = vmax.f32 %v2712_v15, 0.0  ;;  %v11341_v46 = vsel %vm3518_vm11, %v3535_v11, %v3537_v18  ;;  %v11344_v59 = vsel %vm3518_vm11, %v3537_v18, %v3539_v12 }
 0x3fa   : > { %16705 = vst [vmem:[#allocation82_spill] sm:$0xff] %v11341_v46  ;;  %16706 = vst [vmem:[#allocation117_spill] sm:$0xff] %v11344_v59  ;;  %v11347_v55 = vsel %vm2869_vm10, %v2887_v20, %v2889_v24  ;;  %v11350_v1 = vsel %vm2869_vm10, %v2889_v24, %v2891_v2  ;;  %v2817_v34 = vmax.f32 %v2707_v16, 0.0  ;;  %v8589_v54 = vpop.f32.mrb[0].mxu1  ;;  %3601 = vrot.lane.b32.xlu1 %v11341_v46, %s8902_s15  ;;  %3603 = vrot.lane.b32.xlu0 %v11344_v59, %s8902_s15 }
 0x3fb   : > { %16707 = vst [vmem:[#allocation118_spill] sm:$0xff] %v11347_v55  ;;  %16708 = vst [vmem:[#allocation99_spill] sm:$0xff] %v11350_v1  ;;  %v2895_v11 = vrot.slane %v2818_v13, 7  ;;  %v2722_v15 = vadd.f32 %v8589_v54, %v11226_v21  ;;  %v2716_v9 = vpop.f32.mrb[1].mxu1  ;;  %v3541_v20 = vrot.slane %v11347_v55, 1  ;;  %v3543_v18 = vrot.slane %v11350_v1, 1 }
 0x3fc   : > { %v2893_v24 = vrot.slane %v2817_v34, 7  ;;  %v2717_v3 = vadd.f32 %v11226_v21, %v2716_v9  ;;  %v11378_v34 = vpop.permute.xlu0 %3209 }
 0x3fd   : > { %v2820_v26 = vmax.f32 %v2722_v15, 0.0  ;;  %v11363_v16 = vsel %vm3518_vm11, %v3539_v12, %v3541_v20  ;;  %v11366_v46 = vsel %vm3518_vm11, %v3541_v20, %v3543_v18 }
 0x3fe   : > { %16709 = vst [vmem:[#allocation100_spill] sm:$0xff] %v11363_v16  ;;  %16710 = vst [vmem:[#allocation140_spill] sm:$0xff] %v11366_v46  ;;  %v11369_v59 = vsel %vm2869_vm10, %v2891_v2, %v2893_v24  ;;  %v11372_v54 = vsel %vm2869_vm10, %v2893_v24, %v2895_v11  ;;  %v2819_v13 = vmax.f32 %v2717_v3, 0.0  ;;  %v8592_v7 = vpop.f32.mrb[2].mxu1  ;;  %3605 = vrot.lane.b32.xlu1 %v11363_v16, %s8902_s15  ;;  %3607 = vrot.lane.b32.xlu0 %v11366_v46, %s8902_s15  ;;  %v11383_v24 = vpop.permute.xlu1 %3206 }
 0x3ff   : > { %16711 = vst [vmem:[#allocation141_spill] sm:$0xff] %v11369_v59  ;;  %16712 = vst [vmem:[#allocation28_spill] sm:$0xff] %v11372_v54  ;;  %v2899_v12 = vrot.slane %v2820_v26, 7  ;;  %v2732_v15 = vadd.f32 %v8592_v7, %v11226_v21  ;;  %v2726_v9 = vpop.f32.mrb[3].mxu1  ;;  %v3545_v2 = vrot.slane %v11369_v59, 1  ;;  %v3547_v20 = vrot.slane %v11372_v54, 1 }
 0x400   : > { %v2897_v3 = vrot.slane %v2819_v13, 7  ;;  %v2727_v0 = vadd.f32 %v11226_v21, %v2726_v9  ;;  %v11406_v60 = vpop.permute.xlu0 %3215 }
 0x401   : > { %v2822_v32 = vmax.f32 %v2732_v15, 0.0  ;;  %v11387_v16 = vsel %vm3518_vm11, %v3543_v18, %v3545_v2  ;;  %v11390_v46 = vsel %vm3518_vm11, %v3545_v2, %v3547_v20 }
 0x402   : > { %16713 = vst [vmem:[#allocation29_spill] sm:$0xff] %v11387_v16  ;;  %16714 = vst [vmem:[#allocation64_spill] sm:$0xff] %v11390_v46  ;;  %v11393_v26 = vsel %vm2869_vm10, %v2895_v11, %v2897_v3  ;;  %v11396_v7 = vsel %vm2869_vm10, %v2897_v3, %v2899_v12  ;;  %v2821_v17 = vmax.f32 %v2727_v0, 0.0  ;;  %v8595_v57 = vpop.f32.mrb[4].mxu1  ;;  %3609 = vrot.lane.b32.xlu1 %v11387_v16, %s8902_s15  ;;  %3611 = vrot.lane.b32.xlu0 %v11390_v46, %s8902_s15 }
 0x403   : > { %v2903_v13 = vrot.slane %v2822_v32, 7  ;;  %v2742_v18 = vadd.f32 %v8595_v57, %v11226_v21  ;;  %v2736_v15 = vpop.f32.mrb[5].mxu1  ;;  %v3549_v9 = vrot.slane %v11393_v26, 1  ;;  %v3551_v11 = vrot.slane %v11396_v7, 1  ;;  %v11414_v32 = vpop.permute.xlu1 %3212 }
 0x404   : > { %v2901_v2 = vrot.slane %v2821_v17, 7  ;;  %v2737_v3 = vadd.f32 %v11226_v21, %v2736_v15 }
 0x405   : > { %v2824_v0 = vmax.f32 %v2742_v18, 0.0  ;;  %v11409_v6 = vsel %vm3518_vm11, %v3547_v20, %v3549_v9  ;;  %v11412_v16 = vsel %vm3518_vm11, %v3549_v9, %v3551_v11 }
 0x406   : > { %16715 = vst [vmem:[#allocation65_spill] sm:$0xff] %v11409_v6  ;;  %16716 = vst [vmem:[#allocation119_spill] sm:$0xff] %v11412_v16  ;;  %v11417_v57 = vsel %vm2869_vm10, %v2899_v12, %v2901_v2  ;;  %v11420_v46 = vsel %vm2869_vm10, %v2901_v2, %v2903_v13  ;;  %v2823_v17 = vmax.f32 %v2737_v3, 0.0  ;;  %3613 = vrot.lane.b32.xlu1 %v11409_v6, %s8902_s15  ;;  %3615 = vrot.lane.b32.xlu0 %v11412_v16, %s8902_s15 }
 0x407   : > { %16717 = vst [vmem:[#allocation120_spill] sm:$0xff] %v11420_v46  ;;  %v2907_v20 = vrot.slane %v2824_v0, 7  ;;  %v3553_v18 = vrot.slane %v11417_v57, 1  ;;  %v3555_v15 = vrot.slane %v11420_v46, 1  ;;  %v11444_v0 = vpop.permute.xlu0 %3221  ;;  %v11449_v16 = vpop.permute.xlu1 %3218 }
 0x408   : > { %v2905_v9 = vrot.slane %v2823_v17, 7 }
 0x409   : > { %v11429_v53 = vsel %vm3518_vm11, %v3551_v11, %v3553_v18  ;;  %v11432_v12 = vsel %vm3518_vm11, %v3553_v18, %v3555_v15 }
 0x40a   : > { %16718 = vst [vmem:[#allocation38_spill] sm:$0xff] %v11429_v53  ;;  %16719 = vst [vmem:[#allocation39_spill] sm:$0xff] %v11432_v12  ;;  %v11435_v2 = vsel %vm2869_vm10, %v2903_v13, %v2905_v9  ;;  %v11438_v3 = vsel %vm2869_vm10, %v2905_v9, %v2907_v20  ;;  %v8598_v6 = vpop.f32.mrb[6].mxu1  ;;  %3617 = vrot.lane.b32.xlu1 %v11429_v53, %s8902_s15  ;;  %3619 = vrot.lane.b32.xlu0 %v11432_v12, %s8902_s15 }
 0x40b   : > { %16720 = vst [vmem:[#allocation83_spill] sm:$0xff] %v11435_v2  ;;  %16721 = vst [vmem:[#allocation84_spill] sm:$0xff] %v11438_v3  ;;  %v2752_v11 = vadd.f32 %v8598_v6, %v11226_v21  ;;  %v2746_v17 = vpop.f32.mrb[7].mxu1  ;;  %v3557_v18 = vrot.slane %v11435_v2, 1  ;;  %v3559_v13 = vrot.slane %v11438_v3, 1  ;;  %v11462_v25 = vpop.permute.xlu0 %3227 }
 0x40c   : > { %v2747_v9 = vadd.f32 %v11226_v21, %v2746_v17  ;;  %v11464_v41 = vpop.permute.xlu1 %3224 }
 0x40d   : > { %v2826_v29 = vmax.f32 %v2752_v11, 0.0  ;;  %v11453_v39 = vsel %vm3518_vm11, %v3555_v15, %v3557_v18  ;;  %v11456_v53 = vsel %vm3518_vm11, %v3557_v18, %v3559_v13 }
 0x40e   : > { %16722 = vst [vmem:[#allocation101_spill] sm:$0xff] %v11453_v39  ;;  %16723 = vst [vmem:[#allocation102_spill] sm:$0xff] %v11456_v53  ;;  %v2825_v12 = vmax.f32 %v2747_v9, 0.0  ;;  %3621 = vrot.lane.b32.xlu1 %v11453_v39, %s8902_s15  ;;  %3623 = vrot.lane.b32.xlu0 %v11456_v53, %s8902_s15 }
 0x40f   : > { %v2911_v6 = vrot.slane %v2826_v29, 7 }
 0x410   : > { %v2909_v31 = vrot.slane %v2825_v12, 7  ;;  %v11482_v8 = vpop.permute.xlu1 %3230 }
 0x411   : > { %16728 = vst [vmem:[#allocation121_spill] sm:$0xff] %v11482_v8 }
 0x412   : > { %v11467_v11 = vsel %vm2869_vm10, %v2907_v20, %v2909_v31  ;;  %v11470_v15 = vsel %vm2869_vm10, %v2909_v31, %v2911_v6  ;;  %v8601_v17 = vpop.f32.mrb[8].mxu1 }
 0x413   : > { %16724 = vst [vmem:[#allocation32_spill] sm:$0xff] %v11467_v11  ;;  %16725 = vst [vmem:[#allocation33_spill] sm:$0xff] %v11470_v15  ;;  %v2762_v18 = vadd.f32 %v8601_v17, %v11226_v21  ;;  %v2756_v9 = vpop.f32.mrb[9].mxu1  ;;  %v3561_v39 = vrot.slane %v11467_v11, 1  ;;  %v3563_v53 = vrot.slane %v11470_v15, 1  ;;  %v11488_v17 = vpop.permute.xlu0 %3233 }
 0x414   : > { %v2757_v29 = vadd.f32 %v11226_v21, %v2756_v9  ;;  %16729 = vst [vmem:[#allocation122_spill] sm:$0xff] %v11488_v17 }
 0x415   : > { %v2828_v12 = vmax.f32 %v2762_v18, 0.0  ;;  %v11477_v45 = vsel %vm3518_vm11, %v3559_v13, %v3561_v39  ;;  %v11480_v20 = vsel %vm3518_vm11, %v3561_v39, %v3563_v53  ;;  %v11496_v39 = vpop.permute.xlu1 %3236 }
 0x416   : > { %16726 = vst [vmem:[#allocation107_spill] sm:$0xff] %v11477_v45  ;;  %16727 = vst [vmem:[#allocation108_spill] sm:$0xff] %v11480_v20  ;;  %v2827_v31 = vmax.f32 %v2757_v29, 0.0  ;;  %3625 = vrot.lane.b32.xlu1 %v11477_v45, %s8902_s15  ;;  %3627 = vrot.lane.b32.xlu0 %v11480_v20, %s8902_s15 }
 0x417   : > { %v2915_v37 = vrot.slane %v2828_v12, 7  ;;  %16732 = vst [vmem:[#allocation85_spill] sm:$0xff] %v11496_v39  ;;  %v11502_v12 = vpop.permute.xlu0 %3239 }
 0x418   : > { %v2913_v9 = vrot.slane %v2827_v31, 7  ;;  %16733 = vst [vmem:[#allocation86_spill] sm:$0xff] %v11502_v12 }
 0x41a   : > { %v11491_v18 = vsel %vm2869_vm10, %v2911_v6, %v2913_v9  ;;  %v11494_v13 = vsel %vm2869_vm10, %v2913_v9, %v2915_v37  ;;  %v8604_v62 = vpop.f32.mrb[10].mxu1 }
 0x41b   : > { %16730 = vst [vmem:[#allocation42_spill] sm:$0xff] %v11491_v18  ;;  %16731 = vst [vmem:[#allocation43_spill] sm:$0xff] %v11494_v13  ;;  %v2772_v29 = vadd.f32 %v8604_v62, %v11226_v21  ;;  %v2766_v43 = vpop.f32.mrb[11].mxu1  ;;  %v3565_v45 = vrot.slane %v11491_v18, 1  ;;  %v3567_v20 = vrot.slane %v11494_v13, 1  ;;  %v11514_v62 = vpop.permute.xlu1 %3242 }
 0x41c   : > { %v2767_v44 = vadd.f32 %v11226_v21, %v2766_v43  ;;  %16736 = vst [vmem:[#allocation36_spill] sm:$0xff] %v11514_v62  ;;  %v3246_v15 = vpop.permute.xlu0 %3245  ;;  %v16020_v2 = vrot.slane %v11514_v62, 6 }
 0x41d   : > { %v2830_v31 = vmax.f32 %v2772_v29, 0.0  ;;  %v11505_v6 = vsel %vm3518_vm11, %v3563_v53, %v3565_v45  ;;  %v11508_v9 = vsel %vm3518_vm11, %v3565_v45, %v3567_v20  ;;  %v3312_v12 = vrot.slane %v3246_v15, 6 }
 0x41e   : > { %16734 = vst [vmem:[#allocation103_spill] sm:$0xff] %v11505_v6  ;;  %16735 = vst [vmem:[#allocation104_spill] sm:$0xff] %v11508_v9  ;;  %v2829_v47 = vmax.f32 %v2767_v44, 0.0  ;;  %3629 = vrot.lane.b32.xlu1 %v11505_v6, %s8902_s15  ;;  %3631 = vrot.lane.b32.xlu0 %v11508_v9, %s8902_s15 }
 0x41f   : > { %v2919_v13 = vrot.slane %v2830_v31, 7  ;;  %v3249_v45 = vpop.permute.xlu1 %3248 }
 0x420   : > { %v2917_v43 = vrot.slane %v2829_v47, 7  ;;  %v3314_v3 = vrot.slane %v3249_v45, 6  ;;  %v11545_v45 = vrot.slane %v11215_v42, 6 }
 0x422   : > { %v11517_v18 = vsel %vm2869_vm10, %v2915_v37, %v2917_v43  ;;  %v11520_v53 = vsel %vm2869_vm10, %v2917_v43, %v2919_v13  ;;  %v8607_v29 = vpop.f32.mrb[12].mxu1  ;;  %16742 = vst [vmem:[#allocation46_spill] sm:$0xff] %v11545_v45 }
 0x423   : > { %16737 = vst [vmem:[#allocation37_spill] sm:$0xff] %v11517_v18  ;;  %16738 = vst [vmem:[#allocation109_spill] sm:$0xff] %v11520_v53  ;;  %v2782_v44 = vadd.f32 %v8607_v29, %v11226_v21  ;;  %v2776_v11 = vpop.f32.mrb[13].mxu1  ;;  %v3569_v6 = vrot.slane %v11517_v18, 1  ;;  %v3571_v9 = vrot.slane %v11520_v53, 1  ;;  %v3264_v29 = vrot.slane %v11221_v22, 6 }
 0x424   : > { %v2777_v31 = vadd.f32 %v11226_v21, %v2776_v11  ;;  %v11540_v11 = vsel %vm3256_vm12, %v16020_v2, %v3312_v12  ;;  %v3252_v2 = vpop.permute.xlu0 %3251 }
 0x425   : > { %v2832_v47 = vmax.f32 %v2782_v44, 0.0  ;;  %v11527_v37 = vsel %vm3518_vm11, %v3567_v20, %v3569_v6  ;;  %v11530_v43 = vsel %vm3518_vm11, %v3569_v6, %v3571_v9  ;;  %16741 = vst [vmem:[#allocation124_spill] sm:$0xff] %v11540_v11  ;;  %v3258_v6 = vrot.slane %v11217_v50, 6 }
 0x426   : > { %16739 = vst [vmem:[#allocation110_spill] sm:$0xff] %v11527_v37  ;;  %16740 = vst [vmem:[#allocation123_spill] sm:$0xff] %v11530_v43  ;;  %v2831_v39 = vmax.f32 %v2777_v31, 0.0  ;;  %3633 = vrot.lane.b32.xlu1 %v11527_v37, %s8902_s15  ;;  %3635 = vrot.lane.b32.xlu0 %v11530_v43, %s8902_s15  ;;  %v11548_v44 = vsel %vm3256_vm12, %v3312_v12, %v3314_v3  ;;  %v3255_v31 = vpop.permute.xlu1 %3254  ;;  %v3260_v43 = vrot.slane %v11219_v40, 6 }
 0x427   : > { %v2923_v15 = vrot.slane %v2832_v47, 7  ;;  %16743 = vst [vmem:[#allocation47_spill] sm:$0xff] %v11548_v44  ;;  %v3262_v47 = vrot.slane %v11228_v52, 6  ;;  %v3316_v52 = vrot.slane %v3252_v2, 6  ;;  %v11566_v18 = vrot.slane %v3255_v31, 6 }
 0x428   : > { %v2921_v20 = vrot.slane %v2831_v39, 7  ;;  %v11586_v31 = vsel %vm3256_vm12, %v11545_v45, %v3258_v6 }
 0x429   : > { %16747 = vst [vmem:[#allocation106_spill] sm:$0xff] %v11566_v18  ;;  %16751 = vst [vmem:[#allocation112_spill] sm:$0xff] %v11586_v31 }
 0x42a   : > { %v11553_v37 = vsel %vm2869_vm10, %v2919_v13, %v2921_v20  ;;  %v11556_v39 = vsel %vm2869_vm10, %v2921_v20, %v2923_v15  ;;  %v8610_v50 = vpop.f32.mrb[14].mxu1 }
 0x42b   : > { %16744 = vst [vmem:[#allocation87_spill] sm:$0xff] %v11553_v37  ;;  %16745 = vst [vmem:[#allocation88_spill] sm:$0xff] %v11556_v39  ;;  %v2792_v22 = vadd.f32 %v8610_v50, %v11226_v21  ;;  %v2786_v42 = vpop.f32.mrb[15].mxu1  ;;  %v3573_v53 = vrot.slane %v11553_v37, 1  ;;  %v3575_v12 = vrot.slane %v11556_v39, 1  ;;  %v11563_v40 = vmul.f32 %v11540_v11, %v11553_v37 }
 0x42c   : > { %v2787_v13 = vadd.f32 %v11226_v21, %v2786_v42  ;;  %v3382_v20 = vmul.f32 %v11548_v44, %v11556_v39  ;;  %v11578_v11 = vsel %vm3256_vm12, %v3258_v6, %v3260_v43  ;;  %v3268_v6 = vrot.slane %v11232_v48, 6 }
 0x42d   : > { %16746 = vst [vmem:[#allocation105_spill] sm:$0xff] %v11563_v40  ;;  %v2834_v62 = vmax.f32 %v2792_v22, 0.0  ;;  %v11571_v50 = vsel %vm3518_vm11, %v3571_v9, %v3573_v53  ;;  %v11574_v17 = vsel %vm3518_vm11, %v3573_v53, %v3575_v12  ;;  %16750 = vst [vmem:[#allocation111_spill] sm:$0xff] %v11578_v11  ;;  %v11589_v53 = vsel %vm3256_vm12, %v3260_v43, %v3262_v47 }
 0x42e   : > { %16748 = vst [vmem:[#allocation40_spill] sm:$0xff] %v11571_v50  ;;  %16749 = vst [vmem:[#allocation41_spill] sm:$0xff] %v11574_v17  ;;  %v2833_v2 = vmax.f32 %v2787_v13, 0.0  ;;  %3637 = vrot.lane.b32.xlu1 %v11571_v50, %s8902_s15  ;;  %3639 = vrot.lane.b32.xlu0 %v11574_v17, %s8902_s15  ;;  %v3770_v9 = vrot.slane %v3382_v20, 2  ;;  %v3266_v22 = vrot.slane %v11234_v36, 6  ;;  %v11593_v13 = vsel %vm3256_vm12, %v3314_v3, %v3316_v52 }
 0x42f   : > { %16752 = vst [vmem:[#allocation125_spill] sm:$0xff] %v11589_v53  ;;  %v2927_v42 = vrot.slane %v2834_v62, 7  ;;  %16753 = vst [vmem:[#allocation126_spill] sm:$0xff] %v11593_v13  ;;  %v3353_v50 = vmul.f32 0.0, %v11545_v45  ;;  %v16754_v17 = vrot.slane %v11563_v40, 2  ;;  %v11603_v43 = vsel %vm3256_vm12, %v3262_v47, %v3264_v29 }
 0x430   : > { %v2925_v8 = vrot.slane %v2833_v2, 7  ;;  %16756 = vst [vmem:[#allocation50_spill] sm:$0xff] %v11603_v43  ;;  %v3354_v36 = vmul.f32 0.0, %v11586_v31  ;;  %v11608_v62 = vsel %vm3256_vm12, %v3316_v52, %v11566_v18  ;;  %v11620_v48 = vmul.f32 %v11589_v53, %v11239_v30 }
 0x431   : > { %v11599_v44 = vsel %vm3712_vm13, %v16754_v17, %v3770_v9  ;;  %16757 = vst [vmem:[#allocation128_spill] sm:$0xff] %v11608_v62  ;;  %v3355_v17 = vmul.f32 %v11578_v11, %v11242_v49  ;;  %v3713_v11 = vrot.slane %v3353_v50, 2  ;;  %v3270_v39 = vrot.slane %v11250_v51, 6 }
 0x432   : > { %16755 = vst [vmem:[#allocation127_spill] sm:$0xff] %v11599_v44  ;;  %v11611_v3 = vsel %vm2869_vm10, %v2923_v15, %v2925_v8  ;;  %v11614_v20 = vsel %vm2869_vm10, %v2925_v8, %v2927_v42  ;;  %v8613_v2 = vpop.f32.mrb[16].mxu1  ;;  %v11628_v8 = vsel %vm3256_vm12, %v3264_v29, %v3266_v22  ;;  %v3718_v50 = vrot.slane %v11620_v48, 2 }
 0x433   : > { %16758 = vst [vmem:[#allocation51_spill] sm:$0xff] %v11611_v3  ;;  %16759 = vst [vmem:[#allocation129_spill] sm:$0xff] %v11614_v20  ;;  %v2802_v47 = vadd.f32 %v8613_v2, %v11226_v21  ;;  %v2796_v45 = vpop.f32.mrb[17].mxu1  ;;  %v3577_v52 = vrot.slane %v11611_v3, 1  ;;  %v3579_v31 = vrot.slane %v11614_v20, 1  ;;  %v3383_v15 = vmul.f32 %v11593_v13, %v11611_v3 }
 0x434   : > { %16760 = vst [vmem:[#allocation54_spill] sm:$0xff] %v11628_v8  ;;  %v2797_v40 = vadd.f32 %v11226_v21, %v2796_v45  ;;  %v3384_v53 = vmul.f32 %v11608_v62, %v11614_v20  ;;  %v11644_v21 = vrot.slane %v3354_v36, 2  ;;  %v3357_v51 = vmul.f32 %v11603_v43, %v11258_v19 }
 0x435   : > { %v2836_v30 = vmax.f32 %v2802_v47, 0.0  ;;  %v11634_v2 = vsel %vm3518_vm11, %v3575_v12, %v3577_v52  ;;  %v11637_v49 = vsel %vm3518_vm11, %v3577_v52, %v3579_v31  ;;  %v3772_v44 = vrot.slane %v3383_v15, 2 }
 0x436   : > { %16761 = vst [vmem:[#allocation130_spill] sm:$0xff] %v11634_v2  ;;  %16762 = vst [vmem:[#allocation55_spill] sm:$0xff] %v11637_v49  ;;  %v2835_v13 = vmax.f32 %v2797_v40, 0.0  ;;  %3641 = vrot.lane.b32.xlu1 %v11634_v2, %s8902_s15  ;;  %3643 = vrot.lane.b32.xlu0 %v11637_v49, %s8902_s15  ;;  %v3774_v29 = vrot.slane %v3384_v53, 2  ;;  %v3716_v12 = vrot.slane %v3355_v17, 2  ;;  %v3358_v40 = vmul.f32 %v11628_v8, %v11261_v5 }
 0x437   : > { %16763 = vst [vmem:[#allocation131_spill] sm:$0xff] %v11644_v21  ;;  %v11646_v45 = vrot.slane %v2836_v30, 7  ;;  %v11650_v47 = vsel %vm3712_vm13, %v3770_v9, %v3772_v44  ;;  %v3272_v53 = vrot.slane %v11244_v4, 6  ;;  %v3715_v30 = vsel %vm3712_vm13, %v3713_v11, %v11644_v21 }
 0x438   : > { %v2929_v52 = vrot.slane %v2835_v13, 7  ;;  %v11657_v15 = vsel %vm3712_vm13, %v3772_v44, %v3774_v29  ;;  %v11663_v36 = vsel %vm3256_vm12, %v3266_v22, %v3268_v6  ;;  %v11666_v9 = vsel %vm3256_vm12, %v3268_v6, %v3270_v39 }
 0x439   : > { %16764 = vst [vmem:[#allocation58_spill] sm:$0xff] %v11663_v36  ;;  %16765 = vst [vmem:[#allocation132_spill] sm:$0xff] %v11666_v9  ;;  %v3274_v13 = vrot.slane %v11288_v38, 6  ;;  %v3276_v44 = vrot.slane %v11270_v23, 6  ;;  %v3278_v6 = vrot.slane %v11315_v10, 6  ;;  %v3719_v38 = vsel %vm3712_vm13, %v3716_v12, %v3718_v50 }
 0x43a   : > { %v11670_v17 = vsel %vm2869_vm10, %v2927_v42, %v2929_v52  ;;  %3778 = vrot.lane.b32.xlu0 %v3715_v30, %s8904_s17  ;;  %v11676_v4 = vsel %vm2869_vm10, %v2929_v52, %v11646_v45  ;;  %v3720_v48 = vrot.slane %v3357_v51, 2  ;;  %v3722_v42 = vrot.slane %v3358_v40, 2 }
 0x43b   : > { %16766 = vst [vmem:[#allocation59_spill] sm:$0xff] %v11670_v17  ;;  %16767 = vst [vmem:[#allocation133_spill] sm:$0xff] %v11676_v4  ;;  %v16055_v11 = vrot.slane %v11670_v17, 1  ;;  %v3385_v22 = vmul.f32 %v11566_v18, %v11670_v17  ;;  %v3359_v23 = vmul.f32 %v11663_v36, %v11279_v58  ;;  %v3360_v52 = vmul.f32 %v11666_v9, %v11282_v14 }
 0x43c   : > { %v11693_v2 = vsel %vm3256_vm12, %v3270_v39, %v3272_v53  ;;  %v11696_v10 = vsel %vm3256_vm12, %v3272_v53, %v3274_v13  ;;  %v11705_v51 = vsel %vm3256_vm12, %v3274_v13, %v3276_v44  ;;  %v11708_v40 = vsel %vm3256_vm12, %v3276_v44, %v3278_v6 }
 0x43d   : > { %v11686_v30 = vsel %vm3518_vm11, %v3579_v31, %v16055_v11  ;;  %v3776_v49 = vrot.slane %v3385_v22, 2  ;;  %16769 = vst [vmem:[#allocation142_spill] sm:$0xff] %v11693_v2  ;;  %16770 = vst [vmem:[#allocation143_spill] sm:$0xff] %v11696_v10  ;;  %v3717_v39 = vsel %vm3712_vm13, %v11644_v21, %v3716_v12  ;;  %v3723_v53 = vsel %vm3712_vm13, %v3720_v48, %v3722_v42 }
 0x43e   : > { %16768 = vst [vmem:[#allocation134_spill] sm:$0xff] %v11686_v30  ;;  %3645 = vrot.lane.b32.xlu1 %v11686_v30, %s8902_s15  ;;  %3782 = vrot.lane.b32.xlu0 %v3719_v38, %s8904_s17  ;;  %16771 = vst [vmem:[#allocation144_spill] sm:$0xff] %v11705_v51  ;;  %v3724_v22 = vrot.slane %v3359_v23, 2  ;;  %v3726_v11 = vrot.slane %v3360_v52, 2  ;;  %v3361_v30 = vmul.f32 %v11693_v2, %v11301_v28  ;;  %v3282_v13 = vrot.slane %v11352_v35, 6 }
 0x43f   : > { %v11702_v31 = vsel %vm3712_vm13, %v3774_v29, %v3776_v49  ;;  %16772 = vst [vmem:[#allocation145_spill] sm:$0xff] %v11708_v40  ;;  %v3362_v49 = vmul.f32 %v11696_v10, %v11304_v27  ;;  %v3280_v29 = vrot.slane %v11310_v56, 6  ;;  %v3363_v12 = vmul.f32 %v11705_v51, %v11325_v33 }
 0x440   : > { %v3364_v44 = vmul.f32 %v11708_v40, %v11328_v61  ;;  %v3721_v38 = vsel %vm3712_vm13, %v3718_v50, %v3720_v48  ;;  %v3727_v23 = vsel %vm3712_vm13, %v3724_v22, %v3726_v11  ;;  %v3728_v52 = vrot.slane %v3361_v30, 2 }
 0x441   : > { %v3730_v21 = vrot.slane %v3362_v49, 2  ;;  %v3284_v56 = vrot.slane %v11338_v63, 6  ;;  %v11729_v35 = vsel %vm3256_vm12, %v3278_v6, %v3280_v29  ;;  %v3288_v50 = vrot.slane %v11378_v34, 6 }
 0x442   : > { %3780 = vrot.lane.b32.xlu1 %v3717_v39, %s8904_s17  ;;  %3786 = vrot.lane.b32.xlu0 %v3723_v53, %s8904_s17  ;;  %16773 = vst [vmem:[#allocation146_spill] sm:$0xff] %v11729_v35  ;;  %v11732_v39 = vsel %vm3256_vm12, %v3280_v29, %v3282_v13  ;;  %v3286_v53 = vrot.slane %v11383_v24, 6  ;;  %v3732_v48 = vrot.slane %v3363_v12, 2  ;;  %v3734_v40 = vrot.slane %v3364_v44, 2 }
 0x443   : > { %16774 = vst [vmem:[#allocation147_spill] sm:$0xff] %v11732_v39  ;;  %v3725_v30 = vsel %vm3712_vm13, %v3722_v42, %v3724_v22  ;;  %v3731_v63 = vsel %vm3712_vm13, %v3728_v52, %v3730_v21  ;;  %v3365_v6 = vmul.f32 %v11729_v35, %v11347_v55  ;;  %v3366_v49 = vmul.f32 %v11732_v39, %v11350_v1 }
 0x444   : > { %v11745_v24 = vsel %vm3256_vm12, %v3282_v13, %v3284_v56  ;;  %v11748_v29 = vsel %vm3256_vm12, %v3284_v56, %v3286_v53  ;;  %v3290_v34 = vrot.slane %v11414_v32, 6  ;;  %v3292_v42 = vrot.slane %v11406_v60, 6 }
 0x445   : > { %16775 = vst [vmem:[#allocation148_spill] sm:$0xff] %v11745_v24  ;;  %16776 = vst [vmem:[#allocation149_spill] sm:$0xff] %v11748_v29  ;;  %v11755_v22 = vsel %vm3256_vm12, %v3286_v53, %v3288_v50  ;;  %v3294_v12 = vrot.slane %v11449_v16, 6  ;;  %v3729_v44 = vsel %vm3712_vm13, %v3726_v11, %v3728_v52  ;;  %v3735_v13 = vsel %vm3712_vm13, %v3732_v48, %v3734_v40 }
 0x446   : > { %3784 = vrot.lane.b32.xlu1 %v3721_v38, %s8904_s17  ;;  %3790 = vrot.lane.b32.xlu0 %v3727_v23, %s8904_s17  ;;  %16777 = vst [vmem:[#allocation150_spill] sm:$0xff] %v11755_v22  ;;  %v3736_v38 = vrot.slane %v3365_v6, 2  ;;  %v3738_v23 = vrot.slane %v3366_v49, 2  ;;  %v3367_v32 = vmul.f32 %v11745_v24, %v11369_v59  ;;  %v3368_v56 = vmul.f32 %v11748_v29, %v11372_v54 }
 0x447   : > { %v11770_v60 = vsel %vm3256_vm12, %v3290_v34, %v3292_v42  ;;  %v11773_v16 = vsel %vm3256_vm12, %v3292_v42, %v3294_v12  ;;  %v3733_v11 = vsel %vm3712_vm13, %v3730_v21, %v3732_v48  ;;  %v3369_v52 = vmul.f32 %v11755_v22, %v11393_v26  ;;  %v11809_v22 = vpop.permute.xlu0 %3583 }
 0x448   : > { %16779 = vst [vmem:[#allocation152_spill] sm:$0xff] %v11770_v60  ;;  %16780 = vst [vmem:[#allocation153_spill] sm:$0xff] %v11773_v16  ;;  %v3739_v53 = vsel %vm3712_vm13, %v3736_v38, %v3738_v23  ;;  %v3296_v49 = vrot.slane %v11444_v0, 6  ;;  %v3371_v21 = vmul.f32 %v11770_v60, %v11417_v57  ;;  %v3372_v48 = vmul.f32 %v11773_v16, %v11420_v46  ;;  %v16784_v16 = vld [vmem:[#allocation122_spill] sm:$0xff]  ;;  %v16787_v46 = vld [vmem:[#allocation84_spill] sm:$0xff] }
 0x449   : > { %v3737_v42 = vsel %vm3712_vm13, %v3734_v40, %v3736_v38  ;;  %v3300_v0 = vrot.slane %v11462_v25, 6  ;;  %v3304_v40 = vrot.slane %v16784_v16, 6  ;;  %v16785_v38 = vld [vmem:[#allocation85_spill] sm:$0xff] }
 0x44a   : > { %3788 = vrot.lane.b32.xlu1 %v3725_v30, %s8904_s17  ;;  %3794 = vrot.lane.b32.xlu0 %v3731_v63, %s8904_s17  ;;  %v11765_v30 = vsel %vm3256_vm12, %v3288_v50, %v3290_v34  ;;  %v3740_v63 = vrot.slane %v3367_v32, 2  ;;  %v3742_v50 = vrot.slane %v3368_v56, 2  ;;  %v3298_v34 = vrot.slane %v11464_v41, 6 }
 0x44b   : > { %16778 = vst [vmem:[#allocation151_spill] sm:$0xff] %v11765_v30  ;;  %v3370_v6 = vmul.f32 %v11765_v30, %v11396_v7  ;;  %v11793_v41 = vsel %vm3256_vm12, %v3294_v12, %v3296_v49  ;;  %v3306_v60 = vrot.slane %v16785_v38, 6  ;;  %v16786_v30 = vld [vmem:[#allocation83_spill] sm:$0xff] }
 0x44c   : > { %16781 = vst [vmem:[#allocation154_spill] sm:$0xff] %v11793_v41  ;;  %v11796_v56 = vsel %vm3256_vm12, %v3296_v49, %v3298_v34  ;;  %v3741_v25 = vsel %vm3712_vm13, %v3738_v23, %v3740_v63  ;;  %v3373_v49 = vmul.f32 %v11793_v41, %v16786_v30  ;;  %v16790_v23 = vld [vmem:[#allocation86_spill] sm:$0xff] }
 0x44d   : > { %v3746_v32 = vrot.slane %v3370_v6, 2  ;;  %16782 = vst [vmem:[#allocation155_spill] sm:$0xff] %v11796_v56  ;;  %v3750_v6 = vrot.slane %v3372_v48, 2  ;;  %v11824_v48 = vsel %vm3256_vm12, %v3304_v40, %v3306_v60 }
 0x44e   : > { %3792 = vrot.lane.b32.xlu1 %v3729_v44, %s8904_s17  ;;  %3798 = vrot.lane.b32.xlu0 %v3735_v13, %s8904_s17  ;;  %v3743_v44 = vsel %vm3712_vm13, %v3740_v63, %v3742_v50  ;;  %v3744_v13 = vrot.slane %v3369_v52, 2  ;;  %v3748_v52 = vrot.slane %v3371_v21, 2  ;;  %v3308_v63 = vrot.slane %v16790_v23, 6  ;;  %16792 = vst [vmem:[#allocation86_spill] sm:$0xff] %v11824_v48 }
 0x44f   : > { %v3752_v38 = vrot.slane %v3373_v49, 2 }
 0x450   : > { %v3747_v12 = vsel %vm3712_vm13, %v3744_v13, %v3746_v32 }
 0x452   : > { %3796 = vrot.lane.b32.xlu1 %v3733_v11, %s8904_s17  ;;  %3802 = vrot.lane.b32.xlu0 %v3739_v53, %s8904_s17  ;;  %v16783_v11 = vld [vmem:[#allocation121_spill] sm:$0xff] }
 0x453   : > { %v3302_v53 = vrot.slane %v16783_v11, 6  ;;  %v3374_v11 = vmul.f32 %v11796_v56, %v16787_v46 }
 0x455   : > { %v11815_v16 = vsel %vm3256_vm12, %v3300_v0, %v3302_v53  ;;  %v11821_v21 = vsel %vm3256_vm12, %v3302_v53, %v3304_v40  ;;  %v3754_v56 = vrot.slane %v3374_v11, 2  ;;  %v11837_v53 = vsel %vm3256_vm12, %v3306_v60, %v3308_v63  ;;  %v16797_v40 = vld [vmem:[#allocation43_spill] sm:$0xff] }
 0x456   : > { %3800 = vrot.lane.b32.xlu1 %v3737_v42, %s8904_s17  ;;  %3806 = vrot.lane.b32.xlu0 %v3743_v44, %s8904_s17  ;;  %v11812_v42 = vsel %vm3256_vm12, %v3298_v34, %v3300_v0  ;;  %16789 = vst [vmem:[#allocation122_spill] sm:$0xff] %v11815_v16  ;;  %16791 = vst [vmem:[#allocation85_spill] sm:$0xff] %v11821_v21  ;;  %v3745_v44 = vsel %vm3712_vm13, %v3742_v50, %v3744_v13  ;;  %v16793_v0 = vld [vmem:[#allocation32_spill] sm:$0xff]  ;;  %v16796_v50 = vld [vmem:[#allocation42_spill] sm:$0xff] }
 0x457   : > { %16788 = vst [vmem:[#allocation121_spill] sm:$0xff] %v11812_v42  ;;  %v3751_v34 = vsel %vm3712_vm13, %v3748_v52, %v3750_v6  ;;  %v3375_v41 = vmul.f32 %v11812_v42, %v16793_v0  ;;  %16795 = vst [vmem:[#allocation156_spill] sm:$0xff] %v11837_v53  ;;  %v3377_v13 = vmul.f32 %v11821_v21, %v16796_v50 }
 0x458   : > { %v11843_v49 = vmul.f32 %v11824_v48, %v16797_v40  ;;  %v3749_v11 = vsel %vm3712_vm13, %v3746_v32, %v3748_v52  ;;  %v3755_v23 = vsel %vm3712_vm13, %v3752_v38, %v3754_v56  ;;  %v16802_v52 = vld [vmem:[#allocation37_spill] sm:$0xff] }
 0x459   : > { %v3760_v40 = vrot.slane %v3377_v13, 2  ;;  %v11873_v13 = vmul.f32 %v11837_v53, %v11553_v37 }
 0x45a   : > { %3804 = vrot.lane.b32.xlu1 %v3741_v25, %s8904_s17  ;;  %3810 = vrot.lane.b32.xlu0 %v3747_v12, %s8904_s17  ;;  %v16794_v25 = vld [vmem:[#allocation33_spill] sm:$0xff]  ;;  %v3762_v32 = vrot.slane %v11843_v49, 2 }
 0x45b   : > { %v3376_v12 = vmul.f32 %v11815_v16, %v16794_v25  ;;  %v3756_v16 = vrot.slane %v3375_v41, 2  ;;  %v16798_v25 = vld [vmem:[#allocation36_spill] sm:$0xff]  ;;  %v3379_v41 = vmul.f32 %v11837_v53, %v16802_v52  ;;  %16805 = vst [vmem:[#allocation159_spill] sm:$0xff] %v11873_v13 }
 0x45c   : > { %v11832_v46 = vpop.permute.xlu0 %3587  ;;  %v11852_v60 = vpop.permute.xlu1 %3585 }
 0x45d   : > { %v3758_v42 = vrot.slane %v3376_v12, 2 }
 0x45e   : > { %3808 = vrot.lane.b32.xlu1 %v3745_v44, %s8904_s17  ;;  %3814 = vrot.lane.b32.xlu0 %v3751_v34, %s8904_s17  ;;  %v16799_v44 = vrot.slane %v16798_v25, 6  ;;  %v11863_v25 = vmul.f32 %v11821_v21, %v11553_v37 }
 0x45f   : > { %v3759_v12 = vsel %vm3712_vm13, %v3756_v16, %v3758_v42 }
 0x460   : > { %v11850_v34 = vsel %vm3256_vm12, %v3308_v63, %v16799_v44  ;;  %v11856_v50 = vpop.permute.xlu0 %3591  ;;  %16803 = vst [vmem:[#allocation158_spill] sm:$0xff] %v11863_v25  ;;  %v3753_v63 = vsel %vm3712_vm13, %v3750_v6, %v3752_v38  ;;  %v16804_v44 = vld [vmem:[#allocation109_spill] sm:$0xff]  ;;  %v11878_v52 = vpop.permute.xlu1 %3589  ;;  %v3757_v6 = vsel %vm3712_vm13, %v3754_v56, %v3756_v16  ;;  %v3763_v38 = vsel %vm3712_vm13, %v3760_v40, %v3762_v32  ;;  %v16809_v16 = vld [vmem:[#allocation124_spill] sm:$0xff] }
 0x461   : > { %16800 = vst [vmem:[#allocation36_spill] sm:$0xff] %v11850_v34  ;;  %16801 = vst [vmem:[#allocation157_spill] sm:$0xff] %v11856_v50 }
 0x462   : > { %3812 = vrot.lane.b32.xlu1 %v3749_v11, %s8904_s17  ;;  %3818 = vrot.lane.b32.xlu0 %v3755_v23, %s8904_s17  ;;  %v3380_v11 = vmul.f32 %v11850_v34, %v16804_v44  ;;  %v16806_v23 = vld [vmem:[#allocation88_spill] sm:$0xff]  ;;  %16807 = vst [vmem:[#allocation160_spill] sm:$0xff] %v11878_v52  ;;  %v3764_v44 = vrot.slane %v3379_v41, 2  ;;  %v3446_v41 = vmul.f32 %v16809_v16, %v11611_v3 }
 0x463   : > { %v3508_v21 = vmul.f32 %v11824_v48, %v16806_v23  ;;  %v3445_v49 = vmul.f32 %v11850_v34, %v16806_v23 }
 0x464   : > { %v11887_v50 = vpop.permute.xlu0 %3595 }
 0x465   : > { %v4604_v37 = vrot.slane %v3508_v21, 2  ;;  %16808 = vst [vmem:[#allocation161_spill] sm:$0xff] %v11887_v50  ;;  %v4189_v0 = vrot.slane %v3445_v49, 2 }
 0x466   : > { %3816 = vrot.lane.b32.xlu1 %v3753_v63, %s8904_s17  ;;  %3822 = vrot.lane.b32.xlu0 %v3759_v12, %s8904_s17  ;;  %v3509_v63 = vmul.f32 %v11837_v53, %v11611_v3  ;;  %v3766_v12 = vrot.slane %v3380_v11, 2  ;;  %v11895_v53 = vsel %vm2869_vm10, %v11646_v45, 0.0  ;;  %v16811_v11 = vrot.slane %v11863_v25, 2  ;;  %v16864_v25 = vld [vmem:[#allocation53_spill] sm:$0xff] }
 0x467   : > { %16810 = vst [vmem:[#allocation162_spill] sm:$0xff] %v11895_v53  ;;  %v16814_v45 = vrot.slane %v11873_v13, 2 }
 0x468   : > { %v4606_v56 = vrot.slane %v3509_v63, 2  ;;  %v11900_v21 = vsel %vm3712_vm13, %v16811_v11, %v4604_v37  ;;  %v3761_v63 = vsel %vm3712_vm13, %v3758_v42, %v3760_v40  ;;  %v3767_v3 = vsel %vm3712_vm13, %v3764_v44, %v3766_v12 }
 0x469   : > { %16812 = vst [vmem:[#allocation163_spill] sm:$0xff] %v11900_v21  ;;  %v11912_v48 = vsel %vm3712_vm13, %v16814_v45, %v4189_v0  ;;  %v3511_v11 = vmul.f32 %v16809_v16, %v11670_v17  ;;  %v16819_v45 = vld [vmem:[#allocation126_spill] sm:$0xff] }
 0x46a   : > { %3820 = vrot.lane.b32.xlu1 %v3757_v6, %s8904_s17  ;;  %3826 = vrot.lane.b32.xlu0 %v3763_v38, %s8904_s17  ;;  %v11903_v23 = vsel %vm3712_vm13, %v4604_v37, %v4606_v56  ;;  %v4191_v6 = vrot.slane %v3446_v41, 2  ;;  %v3510_v38 = vmul.f32 %v11850_v34, %v11614_v20  ;;  %16815 = vst [vmem:[#allocation165_spill] sm:$0xff] %v11912_v48  ;;  %v11917_v37 = vpop.permute.xlu1 %3593  ;;  %v16818_v41 = vld [vmem:[#allocation47_spill] sm:$0xff]  ;;  %v4976_v21 = vld [vmem:[%s15851_s7] sm:$0xff] }
 0x46b   : > { %16813 = vst [vmem:[#allocation164_spill] sm:$0xff] %v11903_v23  ;;  %16816 = vst [vmem:[#allocation166_spill] sm:$0xff] %v11917_v37  ;;  %v3447_v34 = vmul.f32 %v16818_v41, %v11614_v20  ;;  %v11928_v48 = vmul.f32 %v16819_v45, %v11895_v53  ;;  %v4610_v16 = vrot.slane %v3511_v11, 2  ;;  %v3448_v49 = vmul.f32 %v16819_v45, %v11670_v17  ;;  %v11934_v23 = vpop.permute.xlu0 %3599  ;;  %v16824_v45 = vld [vmem:[#allocation127_spill] sm:$0xff]  ;;  %v16874_v37 = vld [vmem:[#allocation46_spill] sm:$0xff] }
 0x46c   : > { %v11922_v42 = vsel %vm3712_vm13, %v4189_v0, %v4191_v6  ;;  %v4608_v40 = vrot.slane %v3510_v38, 2  ;;  %16821 = vst [vmem:[#allocation169_spill] sm:$0xff] %v11934_v23  ;;  %v4003_v38 = vrot.slane %v11676_v4, 1  ;;  %v16873_v23 = vld [vmem:[#allocation77_spill] sm:$0xff] }
 0x46d   : > { %16817 = vst [vmem:[#allocation167_spill] sm:$0xff] %v11922_v42  ;;  %16820 = vst [vmem:[#allocation168_spill] sm:$0xff] %v11928_v48  ;;  %v4193_v0 = vrot.slane %v3447_v34, 2  ;;  %v3765_v42 = vsel %vm3712_vm13, %v3762_v32, %v3764_v44  ;;  %v4195_v11 = vrot.slane %v3448_v49, 2  ;;  %v3512_v49 = vmul.f32 %v16818_v41, %v11676_v4  ;;  %v16847_v41 = vld [vmem:[#allocation75_spill] sm:$0xff] }
 0x46e   : > { %3824 = vrot.lane.b32.xlu1 %v3761_v63, %s8904_s17  ;;  %3830 = vrot.lane.b32.xlu0 %v3767_v3, %s8904_s17  ;;  %v3450_v63 = vmul.f32 %v11566_v18, %v11895_v53  ;;  %v11937_v3 = vsel %vm3712_vm13, %v4606_v56, %v4608_v40  ;;  %v11942_v20 = vsel %vm3712_vm13, %v4608_v40, %v4610_v16  ;;  %v16826_v56 = vrot.slane %v11670_v17, 1  ;;  %v11968_v40 = vpop.permute.xlu1 %3597 }
 0x46f   : > { %16822 = vst [vmem:[#allocation170_spill] sm:$0xff] %v11937_v3  ;;  %16823 = vst [vmem:[#allocation171_spill] sm:$0xff] %v11942_v20  ;;  %v11948_v18 = vsel %vm3712_vm13, %v4191_v6, %v4193_v0  ;;  %v16828_v3 = vrot.slane %v11895_v53, 1  ;;  %v11961_v44 = vsel %vm3712_vm13, %v4193_v0, %v4195_v11  ;;  %v3449_v6 = vmul.f32 %v11608_v62, %v11676_v4  ;;  %v16856_v4 = vld [vmem:[#allocation94_spill] sm:$0xff]  ;;  %v16859_v20 = vld [vmem:[#allocation16_spill] sm:$0xff] }
 0x470   : > { %16825 = vst [vmem:[#allocation127_spill] sm:$0xff] %v11948_v18  ;;  %v11953_v34 = vsel %vm3518_vm11, %v16826_v56, %v4003_v38  ;;  %16830 = vst [vmem:[#allocation174_spill] sm:$0xff] %v11961_v44  ;;  %v16832_v56 = vld [vmem:[#allocation105_spill] sm:$0xff]  ;;  %v3393_v18 = vmul.f32 %v16856_v4, %v11304_v27 }
 0x471   : > { %16827 = vst [vmem:[#allocation172_spill] sm:$0xff] %v11953_v34  ;;  %v11958_v32 = vsel %vm3518_vm11, %v4003_v38, %v16828_v3  ;;  %16831 = vst [vmem:[#allocation175_spill] sm:$0xff] %v11968_v40  ;;  %v16833_v34 = vrot.slane %v16832_v56, 2  ;;  %v4612_v3 = vrot.slane %v3512_v49, 2  ;;  %v4197_v38 = vrot.slane %v3449_v6, 2  ;;  %v16840_v49 = vld [vmem:[#allocation23_spill] sm:$0xff] }
 0x472   : > { %3828 = vrot.lane.b32.xlu1 %v3765_v42, %s8904_s17  ;;  %3834 = vrot.lane.b32.xlu0 %v16824_v45, %s8904_s17  ;;  %16829 = vst [vmem:[#allocation173_spill] sm:$0xff] %v11958_v32  ;;  %v16102_v42 = vrot.slane %v11928_v48, 2  ;;  %v4199_v45 = vrot.slane %v3450_v63, 2  ;;  %v11973_v32 = vpop.permute.xlu0 %3603  ;;  %v11994_v6 = vpop.permute.xlu1 %3601  ;;  %v3401_v40 = vmul.f32 %v16873_v23, %v11396_v7 }
 0x473   : > { %v3769_v53 = vsel %vm3712_vm13, %v3766_v12, %v16833_v34  ;;  %16834 = vst [vmem:[#allocation105_spill] sm:$0xff] %v11973_v32  ;;  %v11979_v0 = vsel %vm3712_vm13, %v4610_v16, %v4612_v3  ;;  %v11987_v56 = vsel %vm3712_vm13, %v4195_v11, %v4197_v38  ;;  %v16839_v34 = vld [vmem:[#allocation97_spill] sm:$0xff]  ;;  %v16843_v16 = vld [vmem:[#allocation48_spill] sm:$0xff] }
 0x474   : > { %16835 = vst [vmem:[#allocation176_spill] sm:$0xff] %v11979_v0  ;;  %v11984_v63 = vsel %vm3712_vm13, %v4612_v3, %v16102_v42  ;;  %16837 = vst [vmem:[#allocation178_spill] sm:$0xff] %v11987_v56  ;;  %v11990_v12 = vsel %vm3712_vm13, %v4197_v38, %v4199_v45  ;;  %v3388_v3 = vmul.f32 %v16843_v16, %v11258_v19  ;;  %v16845_v45 = vld [vmem:[#allocation116_spill] sm:$0xff]  ;;  %v16846_v38 = vld [vmem:[#allocation22_spill] sm:$0xff] }
 0x475   : > { %16836 = vst [vmem:[#allocation177_spill] sm:$0xff] %v11984_v63  ;;  %16838 = vst [vmem:[#allocation179_spill] sm:$0xff] %v11990_v12  ;;  %v3387_v42 = vmul.f32 %v16846_v38, %v16845_v45  ;;  %v16853_v63 = vld [vmem:[#allocation76_spill] sm:$0xff] }
 0x476   : > { %3832 = vrot.lane.b32.xlu1 %v3769_v53, %s8904_s17  ;;  %3838 = vrot.lane.b32.xlu0 %v11657_v15, %s8904_s17  ;;  %v3386_v53 = vmul.f32 %v16840_v49, %v16839_v34  ;;  %16841 = vst [vmem:[#allocation97_spill] sm:$0xff] %v11994_v6  ;;  %v11999_v15 = vpop.permute.xlu0 %3607  ;;  %v12006_v11 = vpop.permute.xlu1 %3605  ;;  %v3391_v0 = vmul.f32 %v16853_v63, %v11282_v14 }
 0x477   : > { %16842 = vst [vmem:[#allocation180_spill] sm:$0xff] %v11999_v15  ;;  %16844 = vst [vmem:[#allocation48_spill] sm:$0xff] %v12006_v11  ;;  %v16869_v15 = vld [vmem:[#allocation111_spill] sm:$0xff] }
 0x478   : > { %v12074_v11 = vmul.f32 %v16869_v15, %v11258_v19 }
 0x47a   : > { %3836 = vrot.lane.b32.xlu1 %v11650_v47, %s8904_s17  ;;  %3906 = vrot.lane.b32.xlu0 %v3386_v53, %s8906_s19  ;;  %v3390_v47 = vmul.f32 %v16847_v41, %v11279_v58  ;;  %v12012_v48 = vpop.permute.xlu0 %3611  ;;  %v16849_v53 = vld [vmem:[#allocation49_spill] sm:$0xff]  ;;  %v12020_v62 = vpop.permute.xlu1 %3609  ;;  %v4139_v50 = vrot.slane %v12074_v11, 2 }
 0x47b   : > { %16848 = vst [vmem:[#allocation116_spill] sm:$0xff] %v12012_v48  ;;  %v3389_v12 = vmul.f32 %v16849_v53, %v11261_v5  ;;  %16851 = vst [vmem:[#allocation22_spill] sm:$0xff] %v12020_v62  ;;  %v4977_v48 = vld [vmem:[%s15851_s7 + $0x8] sm:$0xff]  ;;  %v3400_v62 = vmul.f32 %v16864_v25, %v11393_v26 }
 0x47e   : > { %3840 = vrot.lane.b32.xlu1 %v11702_v31, %s8904_s17  ;;  %3910 = vrot.lane.b32.xlu0 %v3388_v3, %s8906_s19  ;;  %v16850_v31 = vld [vmem:[#allocation93_spill] sm:$0xff]  ;;  %v12024_v56 = vpop.permute.xlu0 %3615  ;;  %v12032_v44 = vpop.permute.xlu1 %3613 }
 0x47f   : > { %v3392_v3 = vmul.f32 %v16850_v31, %v11301_v28  ;;  %16852 = vst [vmem:[#allocation75_spill] sm:$0xff] %v12024_v56  ;;  %16855 = vst [vmem:[#allocation49_spill] sm:$0xff] %v12032_v44  ;;  %v3395_v56 = vmul.f32 %v16859_v20, %v11328_v61 }
 0x482   : > { %3908 = vrot.lane.b32.xlu1 %v3387_v42, %s8906_s19  ;;  %3914 = vrot.lane.b32.xlu0 %v3390_v47, %s8906_s19  ;;  %v16854_v42 = vld [vmem:[#allocation135_spill] sm:$0xff]  ;;  %v12038_v17 = vpop.permute.xlu0 %3619  ;;  %v12052_v44 = vpop.permute.xlu1 %3617 }
 0x483   : > { %v3394_v47 = vmul.f32 %v16854_v42, %v11325_v33  ;;  %16858 = vst [vmem:[#allocation181_spill] sm:$0xff] %v12038_v17  ;;  %16861 = vst [vmem:[#allocation182_spill] sm:$0xff] %v12052_v44  ;;  %v16863_v17 = vld [vmem:[#allocation26_spill] sm:$0xff] }
 0x484   : > { %v3397_v13 = vmul.f32 %v16863_v17, %v11350_v1 }
 0x486   : > { %3912 = vrot.lane.b32.xlu1 %v3389_v12, %s8906_s19  ;;  %3918 = vrot.lane.b32.xlu0 %v3392_v3, %s8906_s19  ;;  %v16857_v12 = vld [vmem:[#allocation17_spill] sm:$0xff]  ;;  %v12064_v44 = vpop.permute.xlu1 %3621 }
 0x487   : > { %v3396_v3 = vmul.f32 %v16857_v12, %v11347_v55  ;;  %16865 = vst [vmem:[#allocation184_spill] sm:$0xff] %v12064_v44 }
 0x48a   : > { %3916 = vrot.lane.b32.xlu1 %v3391_v0, %s8906_s19  ;;  %3922 = vrot.lane.b32.xlu0 %v3394_v47, %s8906_s19  ;;  %v16860_v0 = vld [vmem:[#allocation27_spill] sm:$0xff]  ;;  %v12086_v32 = vpop.permute.xlu1 %3625 }
 0x48b   : > { %v3398_v47 = vmul.f32 %v16860_v0, %v11369_v59  ;;  %16871 = vst [vmem:[#allocation186_spill] sm:$0xff] %v12086_v32 }
 0x48e   : > { %3920 = vrot.lane.b32.xlu1 %v3393_v18, %s8906_s19  ;;  %3926 = vrot.lane.b32.xlu0 %v3396_v3, %s8906_s19  ;;  %v8804_v18 = vpack.c.bf16 %v4977_v48, %v4976_v21  ;;  %v12056_v3 = vpop.permute.xlu0 %3623  ;;  %v16867_v48 = vld [vmem:[#allocation52_spill] sm:$0xff] }
 0x48f   : > { %16862 = vst [vmem:[#allocation183_spill] sm:$0xff] %v12056_v3  ;;  %v3399_v21 = vmul.f32 %v16867_v48, %v11372_v54 }
 0x490   : > { %8805 = vmatprep.subr.bf16.mxu1 %v8804_v18  ;;  %v12104_v11 = vpop.permute.xlu1 %3629 }
 0x491   : > { %8807 = vmatpush3.bf16.msra.mxu1 %v8804_v18 }
 0x492   : > { %3924 = vrot.lane.b32.xlu1 %v3395_v56, %s8906_s19  ;;  %3930 = vrot.lane.b32.xlu0 %v3398_v47, %s8906_s19  ;;  %v12066_v56 = vpop.permute.xlu0 %3627  ;;  %v16868_v47 = vld [vmem:[#allocation78_spill] sm:$0xff] }
 0x493   : > { %16866 = vst [vmem:[#allocation185_spill] sm:$0xff] %v12066_v56  ;;  %v3402_v3 = vmul.f32 %v16868_v47, %v11417_v57  ;;  %v16870_v56 = vld [vmem:[#allocation112_spill] sm:$0xff]  ;;  %v3418_v47 = vmul.f32 %v16874_v37, %v16839_v34 }
 0x494   : > { %v3419_v44 = vmul.f32 %v16870_v56, %v16845_v45 }
 0x496   : > { %3928 = vrot.lane.b32.xlu1 %v3397_v13, %s8906_s19  ;;  %3934 = vrot.lane.b32.xlu0 %v3400_v62, %s8906_s19  ;;  %v4978_v13 = vld [vmem:[%s15851_s7 + $0x10] sm:$0xff]  ;;  %v4979_v62 = vld [vmem:[%s15851_s7 + $0x18] sm:$0xff]  ;;  %v12088_v6 = vpop.permute.xlu0 %3631 }
 0x497   : > { %v8808_v18 = vpack.c.bf16 %v4979_v62, %v4978_v13  ;;  %16872 = vst [vmem:[#allocation187_spill] sm:$0xff] %v12088_v6  ;;  %v4981_v13 = vld [vmem:[%s15851_s7 + $0x28] sm:$0xff]  ;;  %v4137_v62 = vrot.slane %v3419_v44, 2  ;;  %v3452_v44 = vmul.f32 %v16846_v38, %v11261_v5 }
 0x498   : > { %v12112_v30 = vpop.permute.xlu1 %3633 }
 0x499   : > { %8809 = vmatprep.subr.bf16.mxu1 %v8808_v18 }
 0x49a   : > { %3932 = vrot.lane.b32.xlu1 %v3399_v21, %s8906_s19  ;;  %3938 = vrot.lane.b32.xlu0 %v3402_v3, %s8906_s19  ;;  %v16875_v3 = vld [vmem:[#allocation138_spill] sm:$0xff]  ;;  %v12106_v32 = vpop.permute.xlu0 %3635 }
 0x49b   : > { %8811 = vmatpush3.bf16.msra.mxu1 %v8808_v18  ;;  %v4980_v21 = vld [vmem:[%s15851_s7 + $0x20] sm:$0xff]  ;;  %16876 = vst [vmem:[#allocation138_spill] sm:$0xff] %v12104_v11  ;;  %16877 = vst [vmem:[#allocation188_spill] sm:$0xff] %v12106_v32  ;;  %v4140_v18 = vsel %vm3712_vm13, %v4137_v62, %v4139_v50 }
 0x49c   : > { %v8812_v6 = vpack.c.bf16 %v4981_v13, %v4980_v21  ;;  %v3484_v13 = vmul.f32 %v16870_v56, %v11261_v5  ;;  %v16884_v56 = vld [vmem:[#allocation139_spill] sm:$0xff] }
 0x49e   : > { %3936 = vrot.lane.b32.xlu1 %v3401_v40, %s8906_s19  ;;  %4009 = vrot.lane.b32.xlu0 %v16875_v3, %s8908_s21  ;;  %v4136_v40 = vrot.slane %v3418_v47, 2  ;;  %v16878_v3 = vld [vmem:[#allocation98_spill] sm:$0xff]  ;;  %v3483_v47 = vmul.f32 %v16874_v37, %v11258_v19  ;;  %v4556_v32 = vrot.slane %v3484_v13, 2 }
 0x49f   : > { %8813 = vmatprep.subr.bf16.mxu1 %v8812_v6  ;;  %16879 = vst [vmem:[#allocation98_spill] sm:$0xff] %v12112_v30 }
 0x4a0   : > { %8815 = vmatpush3.bf16.msra.mxu1 %v8812_v6  ;;  %v12114_v52 = vpop.permute.xlu0 %3639  ;;  %v4138_v21 = vsel %vm3712_vm13, %v4136_v40, %v4137_v62  ;;  %v4982_v6 = vld [vmem:[%s15851_s7 + $0x30] sm:$0xff]  ;;  %v12131_v40 = vpop.permute.xlu1 %3637 }
 0x4a1   : > { %16880 = vst [vmem:[#allocation189_spill] sm:$0xff] %v12114_v52  ;;  %16881 = vst [vmem:[#allocation190_spill] sm:$0xff] %v12131_v40  ;;  %v3451_v52 = vmul.f32 %v16840_v49, %v11258_v19  ;;  %v3422_v40 = vmul.f32 %v11603_v43, %v11279_v58 }
 0x4a2   : > { %4007 = vrot.lane.b32.xlu1 %v16878_v3, %s8908_s21  ;;  %4203 = vrot.lane.b32.xlu0 %v4140_v18, %s8912_s18  ;;  %v4983_v18 = vld [vmem:[%s15851_s7 + $0x38] sm:$0xff] }
 0x4a3   : > { %v8816_v62 = vpack.c.bf16 %v4983_v18, %v4982_v6  ;;  %v4984_v6 = vld [vmem:[%s15851_s7 + $0x40] sm:$0xff]  ;;  %v4143_v37 = vrot.slane %v3422_v40, 2 }
 0x4a5   : > { %8817 = vmatprep.subr.bf16.mxu1 %v8816_v62 }
 0x4a6   : > { %4201 = vrot.lane.b32.xlu1 %v4138_v21, %s8912_s18  ;;  %4331 = vrot.lane.b32.xlu0 %v3452_v44, %s8913_s23  ;;  %v4555_v21 = vrot.slane %v3483_v47, 2  ;;  %v16883_v44 = vld [vmem:[#allocation125_spill] sm:$0xff] }
 0x4a7   : > { %v3421_v30 = vmul.f32 %v16883_v44, %v11261_v5  ;;  %8819 = vmatpush3.bf16.msra.mxu1 %v8816_v62 }
 0x4a8   : > { %v12133_v3 = vpop.permute.xlu0 %3643  ;;  %v12145_v18 = vpop.permute.xlu1 %3641  ;;  %8630 = vmatprep.subr.mxu1 %v4984_v6  ;;  %v4557_v47 = vsel %vm3712_vm13, %v4555_v21, %v4556_v32  ;;  %v16887_v21 = vld [vmem:[#allocation25_spill] sm:$0xff] }
 0x4a9   : > { %16882 = vst [vmem:[#allocation191_spill] sm:$0xff] %v12133_v3  ;;  %16885 = vst [vmem:[#allocation139_spill] sm:$0xff] %v12145_v18  ;;  %v4141_v13 = vrot.slane %v3421_v30, 2  ;;  %v3485_v30 = vmul.f32 %v16869_v15, %v11279_v58  ;;  %v3486_v15 = vmul.f32 %v16883_v44, %v11282_v14 }
 0x4aa   : > { %4329 = vrot.lane.b32.xlu1 %v3451_v52, %s8913_s23  ;;  %4011 = vrot.lane.b32.xlu0 %v16884_v56, %s8908_s21 }
 0x4ab   : > { %8631 = vmatpush3.msra.mxu1 %v4984_v6  ;;  %v4142_v18 = vsel %vm3712_vm13, %v4139_v50, %v4141_v13  ;;  %v4144_v6 = vsel %vm3712_vm13, %v4141_v13, %v4143_v37 }
 0x4ac   : > { %v12147_v3 = vpop.permute.xlu0 %3778 }
 0x4ae   : > { %4426 = vrot.lane.b32.xlu1 %v16884_v56, %s8914_s14  ;;  %4620 = vrot.lane.b32.xlu0 %v4557_v47, %s8915_s16  ;;  %v4558_v47 = vrot.slane %v3485_v30, 2 }
 0x4b0   : > { %v12155_v52 = vpop.permute.xlu1 %3645  ;;  %v12157_v62 = vpop.permute.xlu0 %3782 }
 0x4b1   : > { %16886 = vst [vmem:[#allocation192_spill] sm:$0xff] %v12155_v52  ;;  %v3454_v52 = vmul.f32 %v16849_v53, %v11282_v14 }
 0x4b2   : > { %4428 = vrot.lane.b32.xlu1 %v16887_v21, %s8914_s14  ;;  %4205 = vrot.lane.b32.xlu0 %v4142_v18, %s8912_s18  ;;  %v4559_v18 = vsel %vm3712_vm13, %v4556_v32, %v4558_v47  ;;  %v16891_v32 = vld [vmem:[#allocation34_spill] sm:$0xff] }
 0x4b4   : > { %v12165_v56 = vpop.permute.xlu1 %3780  ;;  %v12167_v11 = vpop.permute.xlu0 %3786 }
 0x4b6   : > { %4013 = vrot.lane.b32.xlu1 %v16887_v21, %s8908_s21  ;;  %4207 = vrot.lane.b32.xlu0 %v4144_v6, %s8912_s18  ;;  %v3453_v21 = vmul.f32 %v16843_v16, %v11279_v58  ;;  %v4560_v6 = vrot.slane %v3486_v15, 2 }
 0x4b8   : > { %v12173_v50 = vpop.permute.xlu1 %3784  ;;  %v12175_v40 = vpop.permute.xlu0 %3790 }
 0x4b9   : > { %16888 = vst [vmem:[#allocation25_spill] sm:$0xff] %v12175_v40  ;;  %v3423_v40 = vmul.f32 %v11628_v8, %v11282_v14 }
 0x4ba   : > { %4622 = vrot.lane.b32.xlu1 %v4559_v18, %s8915_s16  ;;  %4335 = vrot.lane.b32.xlu0 %v3454_v52, %s8913_s23  ;;  %v4561_v52 = vsel %vm3712_vm13, %v4558_v47, %v4560_v6  ;;  %v16896_v47 = vld [vmem:[#allocation35_spill] sm:$0xff] }
 0x4bc   : > { %v12184_v13 = vpop.permute.xlu1 %3788  ;;  %v12186_v30 = vpop.permute.xlu0 %3794 }
 0x4bd   : > { %16889 = vst [vmem:[#allocation193_spill] sm:$0xff] %v12184_v13  ;;  %16890 = vst [vmem:[#allocation194_spill] sm:$0xff] %v12186_v30  ;;  %v4145_v13 = vrot.slane %v3423_v40, 2  ;;  %v3424_v30 = vmul.f32 %v11663_v36, %v11301_v28 }
 0x4be   : > { %4333 = vrot.lane.b32.xlu1 %v3453_v21, %s8913_s23  ;;  %4015 = vrot.lane.b32.xlu0 %v16891_v32, %s8908_s21 }
 0x4bf   : > { %v4146_v14 = vsel %vm3712_vm13, %v4143_v37, %v4145_v13 }
 0x4c0   : > { %v12195_v44 = vpop.permute.xlu1 %3792  ;;  %v12197_v18 = vpop.permute.xlu0 %3798 }
 0x4c1   : > { %16892 = vst [vmem:[#allocation34_spill] sm:$0xff] %v12195_v44  ;;  %16893 = vst [vmem:[#allocation195_spill] sm:$0xff] %v12197_v18  ;;  %v4147_v44 = vrot.slane %v3424_v30, 2  ;;  %v3487_v18 = vmul.f32 %v11603_v43, %v11301_v28  ;;  %v3456_v43 = vmul.f32 %v16853_v63, %v11304_v27 }
 0x4c2   : > { %4430 = vrot.lane.b32.xlu1 %v16891_v32, %s8914_s14  ;;  %4624 = vrot.lane.b32.xlu0 %v4561_v52, %s8915_s16 }
 0x4c3   : > { %v4148_v52 = vsel %vm3712_vm13, %v4145_v13, %v4147_v44 }
 0x4c4   : > { %v12205_v15 = vpop.permute.xlu1 %3796  ;;  %v12207_v21 = vpop.permute.xlu0 %3802 }
 0x4c5   : > { %16894 = vst [vmem:[#allocation196_spill] sm:$0xff] %v12205_v15  ;;  %16895 = vst [vmem:[#allocation197_spill] sm:$0xff] %v12207_v21  ;;  %v4562_v15 = vrot.slane %v3487_v18, 2 }
 0x4c6   : > { %4432 = vrot.lane.b32.xlu1 %v16896_v47, %s8914_s14  ;;  %4209 = vrot.lane.b32.xlu0 %v4146_v14, %s8912_s18 }
 0x4c7   : > { %v4563_v14 = vsel %vm3712_vm13, %v4560_v6, %v4562_v15  ;;  %v16903_v6 = vld [vmem:[#allocation60_spill] sm:$0xff] }
 0x4c8   : > { %v12215_v40 = vpop.permute.xlu1 %3800  ;;  %v12217_v32 = vpop.permute.xlu0 %3806 }
 0x4c9   : > { %16897 = vst [vmem:[#allocation35_spill] sm:$0xff] %v12215_v40  ;;  %16898 = vst [vmem:[#allocation198_spill] sm:$0xff] %v12217_v32  ;;  %v3488_v32 = vmul.f32 %v11628_v8, %v11304_v27  ;;  %v3430_v40 = vmul.f32 %v11729_v35, %v11369_v59 }
 0x4ca   : > { %4017 = vrot.lane.b32.xlu1 %v16896_v47, %s8908_s21  ;;  %4211 = vrot.lane.b32.xlu0 %v4148_v52, %s8912_s18  ;;  %v3455_v47 = vmul.f32 %v16847_v41, %v11301_v28 }
 0x4cb   : > { %v4564_v52 = vrot.slane %v3488_v32, 2 }
 0x4cc   : > { %v12223_v37 = vpop.permute.xlu1 %3804  ;;  %v12225_v30 = vpop.permute.xlu0 %3810 }
 0x4cd   : > { %16899 = vst [vmem:[#allocation199_spill] sm:$0xff] %v12223_v37  ;;  %16900 = vst [vmem:[#allocation200_spill] sm:$0xff] %v12225_v30  ;;  %v3425_v30 = vmul.f32 %v11666_v9, %v11304_v27 }
 0x4ce   : > { %4626 = vrot.lane.b32.xlu1 %v4563_v14, %s8915_s16  ;;  %4339 = vrot.lane.b32.xlu0 %v3456_v43, %s8913_s23  ;;  %v4565_v43 = vsel %vm3712_vm13, %v4562_v15, %v4564_v52  ;;  %v16908_v15 = vld [vmem:[#allocation82_spill] sm:$0xff] }
 0x4d0   : > { %v12234_v13 = vpop.permute.xlu1 %3808  ;;  %v12236_v18 = vpop.permute.xlu0 %3814 }
 0x4d1   : > { %16901 = vst [vmem:[#allocation201_spill] sm:$0xff] %v12234_v13  ;;  %16902 = vst [vmem:[#allocation202_spill] sm:$0xff] %v12236_v18  ;;  %v4149_v13 = vrot.slane %v3425_v30, 2  ;;  %v3426_v18 = vmul.f32 %v11693_v2, %v11325_v33 }
 0x4d2   : > { %4337 = vrot.lane.b32.xlu1 %v3455_v47, %s8913_s23  ;;  %4019 = vrot.lane.b32.xlu0 %v16903_v6, %s8908_s21 }
 0x4d3   : > { %v4150_v37 = vsel %vm3712_vm13, %v4147_v44, %v4149_v13 }
 0x4d4   : > { %v12245_v8 = vpop.permute.xlu1 %3812  ;;  %v12247_v14 = vpop.permute.xlu0 %3818 }
 0x4d5   : > { %16904 = vst [vmem:[#allocation60_spill] sm:$0xff] %v12245_v8  ;;  %16905 = vst [vmem:[#allocation203_spill] sm:$0xff] %v12247_v14  ;;  %v4151_v8 = vrot.slane %v3426_v18, 2  ;;  %v3489_v14 = vmul.f32 %v11663_v36, %v11325_v33  ;;  %v3458_v36 = vmul.f32 %v16856_v4, %v11328_v61 }
 0x4d6   : > { %4434 = vrot.lane.b32.xlu1 %v16903_v6, %s8914_s14  ;;  %4628 = vrot.lane.b32.xlu0 %v4565_v43, %s8915_s16 }
 0x4d7   : > { %v4152_v43 = vsel %vm3712_vm13, %v4149_v13, %v4151_v8 }
 0x4d8   : > { %v12255_v32 = vpop.permute.xlu1 %3816  ;;  %v12257_v47 = vpop.permute.xlu0 %3822 }
 0x4d9   : > { %16906 = vst [vmem:[#allocation204_spill] sm:$0xff] %v12255_v32  ;;  %16907 = vst [vmem:[#allocation205_spill] sm:$0xff] %v12257_v47  ;;  %v4566_v32 = vrot.slane %v3489_v14, 2  ;;  %v16921_v47 = vld [vmem:[#allocation145_spill] sm:$0xff] }
 0x4da   : > { %4436 = vrot.lane.b32.xlu1 %v16908_v15, %s8914_s14  ;;  %4213 = vrot.lane.b32.xlu0 %v4150_v37, %s8912_s18 }
 0x4db   : > { %v4567_v37 = vsel %vm3712_vm13, %v4564_v52, %v4566_v32  ;;  %v16915_v52 = vld [vmem:[#allocation117_spill] sm:$0xff] }
 0x4dc   : > { %v12265_v30 = vpop.permute.xlu1 %3820  ;;  %v12267_v6 = vpop.permute.xlu0 %3826 }
 0x4dd   : > { %16909 = vst [vmem:[#allocation82_spill] sm:$0xff] %v12265_v30  ;;  %16910 = vst [vmem:[#allocation206_spill] sm:$0xff] %v12267_v6  ;;  %v3490_v6 = vmul.f32 %v11666_v9, %v11328_v61  ;;  %v3429_v30 = vmul.f32 %v16921_v47, %v11350_v1 }
 0x4de   : > { %4021 = vrot.lane.b32.xlu1 %v16908_v15, %s8908_s21  ;;  %4215 = vrot.lane.b32.xlu0 %v4152_v43, %s8912_s18  ;;  %v3457_v15 = vmul.f32 %v16850_v31, %v11325_v33 }
 0x4df   : > { %v4568_v43 = vrot.slane %v3490_v6, 2  ;;  %v4157_v21 = vrot.slane %v3429_v30, 2  ;;  %v16923_v30 = vld [vmem:[#allocation29_spill] sm:$0xff] }
 0x4e0   : > { %v12273_v44 = vpop.permute.xlu1 %3824  ;;  %v12275_v18 = vpop.permute.xlu0 %3830 }
 0x4e1   : > { %16911 = vst [vmem:[#allocation207_spill] sm:$0xff] %v12273_v44  ;;  %16912 = vst [vmem:[#allocation208_spill] sm:$0xff] %v12275_v18  ;;  %v3427_v18 = vmul.f32 %v11696_v10, %v11328_v61  ;;  %v3493_v61 = vmul.f32 %v11705_v51, %v11369_v59 }
 0x4e2   : > { %4630 = vrot.lane.b32.xlu1 %v4567_v37, %s8915_s16  ;;  %4343 = vrot.lane.b32.xlu0 %v3458_v36, %s8913_s23  ;;  %v4569_v36 = vsel %vm3712_vm13, %v4566_v32, %v4568_v43  ;;  %v16919_v32 = vld [vmem:[#allocation100_spill] sm:$0xff] }
 0x4e3   : > { %v4574_v33 = vrot.slane %v3493_v61, 2 }
 0x4e4   : > { %v12284_v13 = vpop.permute.xlu1 %3828  ;;  %v12286_v14 = vpop.permute.xlu0 %3834 }
 0x4e5   : > { %16913 = vst [vmem:[#allocation209_spill] sm:$0xff] %v12284_v13  ;;  %16914 = vst [vmem:[#allocation210_spill] sm:$0xff] %v12286_v14  ;;  %v4153_v13 = vrot.slane %v3427_v18, 2  ;;  %v3428_v14 = vmul.f32 %v11705_v51, %v11347_v55  ;;  %v3462_v51 = vmul.f32 %v16863_v17, %v11372_v54 }
 0x4e6   : > { %4341 = vrot.lane.b32.xlu1 %v3457_v15, %s8913_s23  ;;  %4023 = vrot.lane.b32.xlu0 %v16915_v52, %s8908_s21 }
 0x4e7   : > { %v4154_v44 = vsel %vm3712_vm13, %v4151_v8, %v4153_v13 }
 0x4e8   : > { %v12295_v9 = vpop.permute.xlu1 %3832  ;;  %v12297_v37 = vpop.permute.xlu0 %3838 }
 0x4e9   : > { %16916 = vst [vmem:[#allocation117_spill] sm:$0xff] %v12295_v9  ;;  %16917 = vst [vmem:[#allocation211_spill] sm:$0xff] %v12297_v37  ;;  %v4155_v9 = vrot.slane %v3428_v14, 2  ;;  %v3491_v37 = vmul.f32 %v11693_v2, %v11347_v55  ;;  %v3460_v2 = vmul.f32 %v16859_v20, %v11350_v1 }
 0x4ea   : > { %4438 = vrot.lane.b32.xlu1 %v16915_v52, %s8914_s14  ;;  %4632 = vrot.lane.b32.xlu0 %v4569_v36, %s8915_s16 }
 0x4eb   : > { %v4156_v36 = vsel %vm3712_vm13, %v4153_v13, %v4155_v9 }
 0x4ec   : > { %v12305_v6 = vpop.permute.xlu1 %3836  ;;  %v12307_v15 = vpop.permute.xlu0 %3906 }
 0x4ed   : > { %16918 = vst [vmem:[#allocation212_spill] sm:$0xff] %v12305_v6  ;;  %v4570_v6 = vrot.slane %v3491_v37, 2 }
 0x4ee   : > { %4440 = vrot.lane.b32.xlu1 %v16919_v32, %s8914_s14  ;;  %4217 = vrot.lane.b32.xlu0 %v4154_v44, %s8912_s18 }
 0x4ef   : > { %v4571_v44 = vsel %vm3712_vm13, %v4568_v43, %v4570_v6  ;;  %v16922_v43 = vld [vmem:[#allocation140_spill] sm:$0xff] }
 0x4f0   : > { %v12315_v18 = vpop.permute.xlu1 %3840  ;;  %v12317_v52 = vpop.permute.xlu0 %3910 }
 0x4f1   : > { %16920 = vst [vmem:[#allocation100_spill] sm:$0xff] %v12315_v18  ;;  %v3492_v18 = vmul.f32 %v11696_v10, %v11350_v1  ;;  %v4158_v1 = vsel %vm3712_vm13, %v4155_v9, %v4157_v21 }
 0x4f2   : > { %4025 = vrot.lane.b32.xlu1 %v16919_v32, %s8908_s21  ;;  %4219 = vrot.lane.b32.xlu0 %v4156_v36, %s8912_s18  ;;  %v3459_v32 = vmul.f32 %v16854_v42, %v11347_v55  ;;  %v4159_v55 = vrot.slane %v3430_v40, 2 }
 0x4f3   : > { %v4572_v36 = vrot.slane %v3492_v18, 2 }
 0x4f4   : > { %v12323_v8 = vpop.permute.xlu1 %3908  ;;  %v12325_v14 = vpop.permute.xlu0 %3914 }
 0x4f6   : > { %4634 = vrot.lane.b32.xlu1 %v4571_v44, %s8915_s16  ;;  %4347 = vrot.lane.b32.xlu0 %v3460_v2, %s8913_s23  ;;  %v4573_v2 = vsel %vm3712_vm13, %v4570_v6, %v4572_v36 }
 0x4f8   : > { %v12334_v13 = vpop.permute.xlu1 %3912  ;;  %v12336_v37 = vpop.permute.xlu0 %3918 }
 0x4fa   : > { %4345 = vrot.lane.b32.xlu1 %v3459_v32, %s8913_s23  ;;  %4027 = vrot.lane.b32.xlu0 %v16922_v43, %s8908_s21 }
 0x4fc   : > { %v12345_v10 = vpop.permute.xlu1 %3916  ;;  %v12347_v44 = vpop.permute.xlu0 %3922 }
 0x4fe   : > { %4442 = vrot.lane.b32.xlu1 %v16922_v43, %s8914_s14  ;;  %4636 = vrot.lane.b32.xlu0 %v4573_v2, %s8915_s16  ;;  %v4160_v2 = vsel %vm3712_vm13, %v4157_v21, %v4159_v55 }
 0x500   : > { %v12355_v18 = vpop.permute.xlu1 %3920  ;;  %v12357_v32 = vpop.permute.xlu0 %3926 }
 0x502   : > { %4444 = vrot.lane.b32.xlu1 %v16923_v30, %s8914_s14  ;;  %4221 = vrot.lane.b32.xlu0 %v4158_v1, %s8912_s18  ;;  %v4575_v1 = vsel %vm3712_vm13, %v4572_v36, %v4574_v33  ;;  %v16929_v36 = vld [vmem:[#allocation64_spill] sm:$0xff] }
 0x504   : > { %v12365_v6 = vpop.permute.xlu1 %3924  ;;  %v12367_v43 = vpop.permute.xlu0 %3930 }
 0x505   : > { %16924 = vst [vmem:[#allocation140_spill] sm:$0xff] %v12367_v43  ;;  %v3494_v43 = vmul.f32 %v16921_v47, %v11372_v54 }
 0x506   : > { %4029 = vrot.lane.b32.xlu1 %v16923_v30, %s8908_s21  ;;  %4223 = vrot.lane.b32.xlu0 %v4160_v2, %s8912_s18  ;;  %v3461_v30 = vmul.f32 %v16857_v12, %v11369_v59 }
 0x507   : > { %v4576_v2 = vrot.slane %v3494_v43, 2 }
 0x508   : > { %v12373_v9 = vpop.permute.xlu1 %3928  ;;  %v12375_v40 = vpop.permute.xlu0 %3934 }
 0x509   : > { %16925 = vst [vmem:[#allocation29_spill] sm:$0xff] %v12373_v9  ;;  %16926 = vst [vmem:[#allocation213_spill] sm:$0xff] %v12375_v40  ;;  %v3431_v40 = vmul.f32 %v11732_v39, %v11372_v54  ;;  %v16931_v9 = vld [vmem:[#allocation65_spill] sm:$0xff] }
 0x50a   : > { %4638 = vrot.lane.b32.xlu1 %v4575_v1, %s8915_s16  ;;  %4351 = vrot.lane.b32.xlu0 %v3462_v51, %s8913_s23  ;;  %v4577_v51 = vsel %vm3712_vm13, %v4574_v33, %v4576_v2  ;;  %v3128_v33 = vmul.f32 0.0, %v16840_v49  ;;  %v3464_v49 = vmul.f32 %v16867_v48, %v11396_v7 }
 0x50c   : > { %v12384_v61 = vpop.permute.xlu1 %3932  ;;  %v12386_v21 = vpop.permute.xlu0 %3938 }
 0x50d   : > { %16927 = vst [vmem:[#allocation214_spill] sm:$0xff] %v12384_v61  ;;  %16928 = vst [vmem:[#allocation215_spill] sm:$0xff] %v12386_v21  ;;  %v4161_v61 = vrot.slane %v3431_v40, 2  ;;  %v3432_v21 = vmul.f32 %v11745_v24, %v11393_v26 }
 0x50e   : > { %4349 = vrot.lane.b32.xlu1 %v3461_v30, %s8913_s23  ;;  %4031 = vrot.lane.b32.xlu0 %v16929_v36, %s8908_s21 }
 0x50f   : > { %v4162_v30 = vsel %vm3712_vm13, %v4159_v55, %v4161_v61  ;;  %v4163_v54 = vrot.slane %v3432_v21, 2  ;;  %v4716_v55 = vsel %vm1808_vm2, %v3128_v33, %v11809_v22 }
 0x510   : > { %v12395_v47 = vpop.permute.xlu1 %3936  ;;  %v4010_v1 = vpop.permute.xlu0 %4009  ;;  %v12418_v21 = vsel %vm1874_vm4, %v4716_v55, %v12147_v3 }
 0x511   : > { %16930 = vst [vmem:[#allocation64_spill] sm:$0xff] %v12395_v47  ;;  %v3495_v47 = vmul.f32 %v11729_v35, %v11393_v26  ;;  %16932 = vst [vmem:[#allocation65_spill] sm:$0xff] %v12418_v21 }
 0x512   : > { %4446 = vrot.lane.b32.xlu1 %v16929_v36, %s8914_s14  ;;  %4640 = vrot.lane.b32.xlu0 %v4577_v51, %s8915_s16  ;;  %v4164_v36 = vsel %vm3712_vm13, %v4161_v61, %v4163_v54  ;;  %v3496_v61 = vmul.f32 %v11732_v39, %v11396_v7 }
 0x513   : > { %v4578_v51 = vrot.slane %v3495_v47, 2  ;;  %v4780_v47 = vsel %vm1940_vm6, %v12418_v21, %v12307_v15 }
 0x514   : > { %v4008_v43 = vpop.permute.xlu1 %4007  ;;  %v4204_v59 = vpop.permute.xlu0 %4203  ;;  %v4580_v55 = vrot.slane %v3496_v61, 2 }
 0x515   : > { %v4812_v22 = vsel %vm2006_vm8, %v4780_v47, %v4008_v43  ;;  %v3433_v47 = vmul.f32 %v11748_v29, %v11396_v7 }
 0x516   : > { %4448 = vrot.lane.b32.xlu1 %v16931_v9, %s8914_s14  ;;  %4225 = vrot.lane.b32.xlu0 %v4162_v30, %s8912_s18 }
 0x517   : > { %v4165_v61 = vrot.slane %v3433_v47, 2 }
 0x518   : > { %v4202_v40 = vpop.permute.xlu1 %4201  ;;  %v4332_v17 = vpop.permute.xlu0 %4331 }
 0x519   : > { %v4845_v3 = vsel %vm4844_vm14, %v4812_v22, %v4202_v40  ;;  %v16933_v40 = vld [vmem:[#allocation119_spill] sm:$0xff]  ;;  %v4166_v21 = vsel %vm3712_vm13, %v4163_v54, %v4165_v61  ;;  %v3130_v54 = vmul.f32 %v16843_v16, %v16839_v34 }
 0x51a   : > { %4033 = vrot.lane.b32.xlu1 %v16931_v9, %s8908_s21  ;;  %4227 = vrot.lane.b32.xlu0 %v4164_v36, %s8912_s18  ;;  %v4579_v9 = vsel %vm3712_vm13, %v4576_v2, %v4578_v51  ;;  %v3463_v2 = vmul.f32 %v16860_v0, %v11393_v26 }
 0x51c   : > { %v4330_v30 = vpop.permute.xlu1 %4329  ;;  %v12420_v35 = vpop.permute.xlu0 %4011 }
 0x51d   : > { %v4878_v33 = vsel %vm4877_vm0, %v4845_v3, %v4330_v30  ;;  %v12446_v30 = vmul.f32 0.0, %v16846_v38  ;;  %v4581_v3 = vsel %vm3712_vm13, %v4578_v51, %v4580_v55 }
 0x51e   : > { %4642 = vrot.lane.b32.xlu1 %v4579_v9, %s8915_s16  ;;  %4355 = vrot.lane.b32.xlu0 %v3464_v49, %s8913_s23 }
 0x51f   : > { %16934 = vst [vmem:[#allocation119_spill] sm:$0xff] %v12446_v30 }
 0x520   : > { %v4427_v15 = vpop.permute.xlu1 %4426  ;;  %v4621_v36 = vpop.permute.xlu0 %4620 }
 0x521   : > { %v4911_v43 = vsel %vm4910_vm15, %v4878_v33, %v4427_v15  ;;  %v16935_v33 = vld [vmem:[#allocation150_spill] sm:$0xff] }
 0x522   : > { %v4944_v49 = vsel %vm4943_vm3, %v4911_v43, %v4621_v36  ;;  %4353 = vrot.lane.b32.xlu1 %v3463_v2, %s8913_s23  ;;  %4035 = vrot.lane.b32.xlu0 %v16933_v40, %s8908_s21  ;;  %v12451_v15 = vmul.f32 %v16935_v33, %v11417_v57  ;;  %v4717_v36 = vsel %vm1808_vm2, %v12446_v30, %v11852_v60 }
 0x523   : > { %8632 = vmatprep.mubr.msk.f32.mxu1 %vm4992_vm5, %v4944_v49  ;;  %v4749_v2 = vsel %vm1874_vm4, %v4717_v36, %v12165_v56  ;;  %v12468_v60 = vmul.f32 %v11745_v24, %v11417_v57 }
 0x524   : > { %v4429_v9 = vpop.permute.xlu1 %4428  ;;  %v4206_v22 = vpop.permute.xlu0 %4205  ;;  %v4781_v51 = vsel %vm1940_vm6, %v4749_v2, %v12323_v8  ;;  %v4167_v39 = vrot.slane %v12451_v15, 2 }
 0x525   : > { %v4813_v49 = vsel %vm2006_vm8, %v4781_v51, %v4010_v1  ;;  %v4582_v51 = vrot.slane %v12468_v60, 2 }
 0x526   : > { %4450 = vrot.lane.b32.xlu1 %v16933_v40, %s8914_s14  ;;  %4644 = vrot.lane.b32.xlu0 %v4581_v3, %s8915_s16  ;;  %v4846_v40 = vsel %vm4844_vm14, %v4813_v49, %v4204_v59  ;;  %v16936_v3 = vld [vmem:[#allocation38_spill] sm:$0xff]  ;;  %v4168_v59 = vsel %vm3712_vm13, %v4165_v61, %v4167_v39  ;;  %v16937_v49 = vld [vmem:[#allocation120_spill] sm:$0xff] }
 0x527   : > { %v4879_v56 = vsel %vm4877_vm0, %v4846_v40, %v4332_v17  ;;  %v4718_v17 = vsel %vm1808_vm2, %v3130_v54, %v11832_v46  ;;  %v3466_v61 = vmul.f32 %v16873_v23, %v16937_v49  ;;  %v4583_v40 = vsel %vm3712_vm13, %v4580_v55, %v4582_v51 }
 0x528   : > { %v4014_v43 = vpop.permute.xlu1 %4013  ;;  %v4208_v47 = vpop.permute.xlu0 %4207  ;;  %v4912_v8 = vsel %vm4910_vm15, %v4879_v56, %v4429_v9  ;;  %v4750_v34 = vsel %vm1874_vm4, %v4718_v17, %v12157_v62 }
 0x529   : > { %v4782_v60 = vsel %vm1940_vm6, %v4750_v34, %v12317_v52  ;;  %v16938_v52 = vld [vmem:[#allocation113_spill] sm:$0xff] }
 0x52a   : > { %4452 = vrot.lane.b32.xlu1 %v16936_v3, %s8914_s14  ;;  %4229 = vrot.lane.b32.xlu0 %v4166_v21, %s8912_s18  ;;  %v3403_v54 = vmul.f32 %v16938_v52, %v16937_v49 }
 0x52c   : > { %v4623_v1 = vpop.permute.xlu1 %4622  ;;  %v4336_v36 = vpop.permute.xlu0 %4335 }
 0x52d   : > { %v4945_v2 = vsel %vm4943_vm3, %v4912_v8, %v4623_v1  ;;  %v3465_v1 = vmul.f32 %v16864_v25, %v11417_v57 }
 0x52e   : > { %4037 = vrot.lane.b32.xlu1 %v16936_v3, %s8908_s21  ;;  %4231 = vrot.lane.b32.xlu0 %v4168_v59, %s8912_s18  ;;  %v4814_v3 = vsel %vm2006_vm8, %v4782_v60, %v12420_v35  ;;  %v3131_v35 = vmul.f32 %v16849_v53, %v16845_v45  ;;  %v16940_v45 = vld [vmem:[#allocation83_spill] sm:$0xff] }
 0x52f   : > { %8633 = vmatmul.mubr.msk.f32.vlgmr.msra.gmra.mrb[18].mxu1 %vm4992_vm5, %v4945_v2  ;;  %v4847_v46 = vsel %vm4844_vm14, %v4814_v3, %v4206_v22  ;;  %v16939_v22 = vld [vmem:[#allocation160_spill] sm:$0xff]  ;;  %v12521_v60 = vmul.f32 %v16935_v33, %v16940_v45  ;;  %v16941_v3 = vld [vmem:[#allocation39_spill] sm:$0xff] }
 0x530   : > { %v4334_v21 = vpop.permute.xlu1 %4333  ;;  %v4016_v9 = vpop.permute.xlu0 %4015  ;;  %v4719_v59 = vsel %vm1808_vm2, %v3131_v35, %v16939_v22 }
 0x531   : > { %v4880_v62 = vsel %vm4877_vm0, %v4847_v46, %v4334_v21  ;;  %v4751_v21 = vsel %vm1874_vm4, %v4719_v59, %v12173_v50  ;;  %v16942_v46 = vld [vmem:[#allocation101_spill] sm:$0xff] }
 0x532   : > { %4646 = vrot.lane.b32.xlu1 %v4583_v40, %s8915_s16  ;;  %4359 = vrot.lane.b32.xlu0 %v3466_v61, %s8913_s23  ;;  %v3498_v61 = vmul.f32 %v11748_v29, %v16937_v49  ;;  %v4783_v40 = vsel %vm1940_vm6, %v4751_v21, %v12334_v13  ;;  %v16944_v21 = vld [vmem:[#allocation152_spill] sm:$0xff] }
 0x534   : > { %v4431_v56 = vpop.permute.xlu1 %4430  ;;  %v4625_v8 = vpop.permute.xlu0 %4624 }
 0x535   : > { %v4913_v55 = vsel %vm4910_vm15, %v4880_v62, %v4431_v56  ;;  %v4815_v62 = vsel %vm2006_vm8, %v4783_v40, %v4014_v43  ;;  %v3132_v43 = vmul.f32 %v16847_v41, %v11258_v19  ;;  %v16945_v19 = vld [vmem:[#allocation157_spill] sm:$0xff] }
 0x536   : > { %v4946_v2 = vsel %vm4943_vm3, %v4913_v55, %v4625_v8  ;;  %4357 = vrot.lane.b32.xlu1 %v3465_v1, %s8913_s23  ;;  %3940 = vrot.lane.b32.xlu0 %v3403_v54, %s8906_s19  ;;  %v4584_v8 = vrot.slane %v3498_v61, 2  ;;  %v4586_v1 = vrot.slane %v12521_v60, 2  ;;  %v16943_v54 = vld [vmem:[#allocation151_spill] sm:$0xff]  ;;  %v4848_v35 = vsel %vm4844_vm14, %v4815_v62, %v4208_v47 }
 0x537   : > { %8635 = vmatprep.mubr.msk.f32.mxu1 %vm4992_vm5, %v4946_v2  ;;  %v3435_v55 = vmul.f32 %v16943_v54, %v16937_v49  ;;  %v4881_v13 = vsel %vm4877_vm0, %v4848_v35, %v4336_v36  ;;  %v12544_v61 = vmul.f32 %v16944_v21, %v16940_v45 }
 0x538   : > { %v4433_v17 = vpop.permute.xlu1 %4432  ;;  %v4210_v34 = vpop.permute.xlu0 %4209  ;;  %v4585_v40 = vsel %vm3712_vm13, %v4582_v51, %v4584_v8  ;;  %v16946_v51 = vld [vmem:[#allocation78_spill] sm:$0xff] }
 0x539   : > { %v4914_v2 = vsel %vm4910_vm15, %v4881_v13, %v4433_v17  ;;  %v4169_v36 = vrot.slane %v3435_v55, 2  ;;  %v4720_v17 = vsel %vm1808_vm2, %v3132_v43, %v16945_v19  ;;  %v3467_v13 = vmul.f32 %v16946_v51, %v16940_v45 }
 0x53a   : > { %4454 = vrot.lane.b32.xlu1 %v16941_v3, %s8914_s14  ;;  %4456 = vrot.lane.b32.xlu0 %v16942_v46, %s8914_s14 }
 0x53b   : > { %v4170_v55 = vsel %vm3712_vm13, %v4167_v39, %v4169_v36 }
 0x53c   : > { %v4018_v56 = vpop.permute.xlu1 %4017  ;;  %v4212_v50 = vpop.permute.xlu0 %4211 }
 0x53e   : > { %4039 = vrot.lane.b32.xlu1 %v16941_v3, %s8908_s21  ;;  %4041 = vrot.lane.b32.xlu0 %v16942_v46, %s8908_s21  ;;  %v4587_v3 = vsel %vm3712_vm13, %v4584_v8, %v4586_v1  ;;  %v4752_v46 = vsel %vm1874_vm4, %v4720_v17, %v12167_v11 }
 0x53f   : > { %v4784_v8 = vsel %vm1940_vm6, %v4752_v46, %v12325_v14 }
 0x540   : > { %v4627_v22 = vpop.permute.xlu1 %4626  ;;  %v4340_v59 = vpop.permute.xlu0 %4339  ;;  %v4816_v43 = vsel %vm2006_vm8, %v4784_v8, %v4016_v9  ;;  %v3133_v9 = vmul.f32 %v16853_v63, %v11261_v5  ;;  %v16951_v5 = vld [vmem:[#allocation193_spill] sm:$0xff] }
 0x541   : > { %v4947_v47 = vsel %vm4943_vm3, %v4914_v2, %v4627_v22  ;;  %v4171_v2 = vrot.slane %v12544_v61, 2  ;;  %v4849_v11 = vsel %vm4844_vm14, %v4816_v43, %v4210_v34  ;;  %v16948_v34 = vld [vmem:[#allocation166_spill] sm:$0xff] }
 0x542   : > { %4648 = vrot.lane.b32.xlu1 %v4585_v40, %s8915_s16  ;;  %4650 = vrot.lane.b32.xlu0 %v4587_v3, %s8915_s16  ;;  %v16947_v3 = vld [vmem:[#allocation84_spill] sm:$0xff]  ;;  %v4721_v17 = vsel %vm1808_vm2, %v3133_v9, %v16948_v34 }
 0x543   : > { %8636 = vmatmul.mubr.msk.f32.gmra.mrb[20].mxu1 %vm4992_vm5, %v4947_v47  ;;  %v3468_v14 = vmul.f32 %v16938_v52, %v16947_v3  ;;  %v4172_v39 = vsel %vm3712_vm13, %v4169_v36, %v4171_v2  ;;  %v16950_v36 = vld [vmem:[#allocation95_spill] sm:$0xff]  ;;  %v4753_v43 = vsel %vm1874_vm4, %v4721_v17, %v16951_v5 }
 0x544   : > { %v4338_v62 = vpop.permute.xlu1 %4337  ;;  %v4020_v35 = vpop.permute.xlu0 %4019 }
 0x545   : > { %v4882_v22 = vsel %vm4877_vm0, %v4849_v11, %v4338_v62  ;;  %v4785_v11 = vsel %vm1940_vm6, %v4753_v43, %v12345_v10  ;;  %v16954_v10 = vld [vmem:[#allocation107_spill] sm:$0xff] }
 0x546   : > { %4233 = vrot.lane.b32.xlu1 %v4170_v55, %s8912_s18  ;;  %4361 = vrot.lane.b32.xlu0 %v3467_v13, %s8913_s23  ;;  %v16949_v13 = vld [vmem:[#allocation114_spill] sm:$0xff]  ;;  %v3405_v55 = vmul.f32 %v16950_v36, %v16947_v3 }
 0x547   : > { %v3404_v8 = vmul.f32 %v16949_v13, %v16940_v45 }
 0x548   : > { %v4435_v47 = vpop.permute.xlu1 %4434  ;;  %v4629_v40 = vpop.permute.xlu0 %4628 }
 0x549   : > { %v4915_v15 = vsel %vm4910_vm15, %v4882_v22, %v4435_v47  ;;  %v4817_v22 = vsel %vm2006_vm8, %v4785_v11, %v4018_v56  ;;  %v3134_v56 = vmul.f32 %v16850_v31, %v11279_v58  ;;  %v16955_v11 = vld [vmem:[#allocation153_spill] sm:$0xff] }
 0x54a   : > { %v4948_v19 = vsel %vm4943_vm3, %v4915_v15, %v4629_v40  ;;  %4235 = vrot.lane.b32.xlu1 %v4172_v39, %s8912_s18  ;;  %4363 = vrot.lane.b32.xlu0 %v3468_v14, %s8913_s23  ;;  %v3500_v14 = vmul.f32 %v16943_v54, %v16947_v3  ;;  %v16952_v15 = vld [vmem:[#allocation32_spill] sm:$0xff]  ;;  %v4850_v9 = vsel %vm4844_vm14, %v4817_v22, %v4212_v50 }
 0x54b   : > { %8638 = vmatprep.mubr.msk.f32.mxu1 %vm4992_vm5, %v4948_v19  ;;  %v12600_v39 = vmul.f32 %v16944_v21, %v16952_v15  ;;  %v16953_v19 = vld [vmem:[#allocation102_spill] sm:$0xff]  ;;  %v4883_v34 = vsel %vm4877_vm0, %v4850_v9, %v4340_v59  ;;  %v3437_v22 = vmul.f32 %v16955_v11, %v16947_v3  ;;  %v16956_v59 = vld [vmem:[#allocation161_spill] sm:$0xff]  ;;  %v3469_v60 = vmul.f32 %v16949_v13, %v16952_v15 }
 0x54c   : > { %v4437_v46 = vpop.permute.xlu1 %4436  ;;  %v4214_v62 = vpop.permute.xlu0 %4213  ;;  %v4588_v43 = vrot.slane %v3500_v14, 2  ;;  %v4722_v58 = vsel %vm1808_vm2, %v3134_v56, %v16956_v59 }
 0x54d   : > { %v4916_v17 = vsel %vm4910_vm15, %v4883_v34, %v4437_v46  ;;  %v16147_v50 = vrot.slane %v12600_v39, 2  ;;  %v16957_v46 = vld [vmem:[#allocation25_spill] sm:$0xff] }
 0x54e   : > { %3942 = vrot.lane.b32.xlu1 %v3404_v8, %s8906_s19  ;;  %3944 = vrot.lane.b32.xlu0 %v3405_v55, %s8906_s19  ;;  %v4754_v9 = vsel %vm1874_vm4, %v4722_v58, %v16957_v46 }
 0x54f   : > { %v4591_v56 = vsel %vm3712_vm13, %v4588_v43, %v16147_v50  ;;  %v16970_v50 = vld [vmem:[#allocation155_spill] sm:$0xff] }
 0x550   : > { %v4022_v47 = vpop.permute.xlu1 %4021  ;;  %v4216_v40 = vpop.permute.xlu0 %4215 }
 0x552   : > { %4458 = vrot.lane.b32.xlu1 %v16953_v19, %s8914_s14  ;;  %4460 = vrot.lane.b32.xlu0 %v16954_v10, %s8914_s14 }
 0x554   : > { %v4631_v8 = vpop.permute.xlu1 %4630  ;;  %v4344_v55 = vpop.permute.xlu0 %4343 }
 0x555   : > { %v4949_v5 = vsel %vm4943_vm3, %v4916_v17, %v4631_v8  ;;  %v16958_v17 = vld [vmem:[#allocation154_spill] sm:$0xff] }
 0x556   : > { %4043 = vrot.lane.b32.xlu1 %v16953_v19, %s8908_s21  ;;  %4045 = vrot.lane.b32.xlu0 %v16954_v10, %s8908_s21  ;;  %v12626_v8 = vmul.f32 %v16958_v17, %v16952_v15  ;;  %v4786_v19 = vsel %vm1940_vm6, %v4754_v9, %v12336_v37  ;;  %v4589_v10 = vsel %vm3712_vm13, %v4586_v1, %v4588_v43 }
 0x557   : > { %8639 = vmatmul.mubr.msk.f32.gmra.mrb[22].mxu1 %vm4992_vm5, %v4949_v5  ;;  %v4173_v5 = vrot.slane %v3437_v22, 2  ;;  %v4818_v59 = vsel %vm2006_vm8, %v4786_v19, %v4020_v35  ;;  %v16959_v22 = vld [vmem:[#allocation24_spill] sm:$0xff] }
 0x558   : > { %v4342_v14 = vpop.permute.xlu1 %4341  ;;  %v4024_v34 = vpop.permute.xlu0 %4023  ;;  %v4851_v58 = vsel %vm4844_vm14, %v4818_v59, %v4214_v62  ;;  %v16146_v35 = vrot.slane %v12626_v8, 2  ;;  %v3135_v19 = vmul.f32 %v16856_v4, %v16959_v22  ;;  %v16961_v59 = vld [vmem:[#allocation33_spill] sm:$0xff]  ;;  %v16963_v22 = vld [vmem:[#allocation96_spill] sm:$0xff] }
 0x559   : > { %v4884_v46 = vsel %vm4877_vm0, %v4851_v58, %v4342_v14  ;;  %v4174_v43 = vsel %vm3712_vm13, %v4171_v2, %v4173_v5  ;;  %v16960_v14 = vld [vmem:[#allocation175_spill] sm:$0xff]  ;;  %v3470_v2 = vmul.f32 %v16950_v36, %v16961_v59  ;;  %v16962_v58 = vld [vmem:[#allocation34_spill] sm:$0xff] }
 0x55a   : > { %4652 = vrot.lane.b32.xlu1 %v4589_v10, %s8915_s16  ;;  %4654 = vrot.lane.b32.xlu0 %v4591_v56, %s8915_s16  ;;  %v4723_v10 = vsel %vm1808_vm2, %v3135_v19, %v16960_v14  ;;  %v3406_v19 = vmul.f32 %v16963_v22, %v16952_v15 }
 0x55c   : > { %v4439_v37 = vpop.permute.xlu1 %4438  ;;  %v4633_v9 = vpop.permute.xlu0 %4632 }
 0x55d   : > { %v4917_v1 = vsel %vm4910_vm15, %v4884_v46, %v4439_v37  ;;  %v4755_v46 = vsel %vm1874_vm4, %v4723_v10, %v16962_v58  ;;  %v4176_v37 = vsel %vm3712_vm13, %v4173_v5, %v16146_v35  ;;  %v3136_v58 = vmul.f32 %v16854_v42, %v11301_v28  ;;  %v16969_v28 = vld [vmem:[#allocation194_spill] sm:$0xff] }
 0x55e   : > { %v4950_v62 = vsel %vm4943_vm3, %v4917_v1, %v4633_v9  ;;  %4237 = vrot.lane.b32.xlu1 %v4174_v43, %s8912_s18  ;;  %4365 = vrot.lane.b32.xlu0 %v3469_v60, %s8913_s23  ;;  %v4787_v9 = vsel %vm1940_vm6, %v4755_v46, %v12355_v18 }
 0x55f   : > { %8641 = vmatprep.mubr.msk.f32.mxu1 %vm4992_vm5, %v4950_v62  ;;  %v4819_v60 = vsel %vm2006_vm8, %v4787_v9, %v4022_v47  ;;  %v16964_v62 = vld [vmem:[#allocation136_spill] sm:$0xff]  ;;  %v16965_v9 = vld [vmem:[#allocation42_spill] sm:$0xff] }
 0x560   : > { %v4441_v56 = vpop.permute.xlu1 %4440  ;;  %v4218_v61 = vpop.permute.xlu0 %4217  ;;  %v3407_v14 = vmul.f32 %v16964_v62, %v16961_v59  ;;  %v4852_v10 = vsel %vm4844_vm14, %v4819_v60, %v4216_v40  ;;  %v12684_v40 = vmul.f32 %v16958_v17, %v16965_v9  ;;  %v16966_v60 = vld [vmem:[#allocation108_spill] sm:$0xff]  ;;  %v3439_v17 = vmul.f32 %v16970_v50, %v16961_v59 }
 0x561   : > { %v4885_v18 = vsel %vm4877_vm0, %v4852_v10, %v4344_v55  ;;  %v16967_v55 = vld [vmem:[#allocation103_spill] sm:$0xff] }
 0x562   : > { %4239 = vrot.lane.b32.xlu1 %v4176_v37, %s8912_s18  ;;  %4367 = vrot.lane.b32.xlu0 %v3470_v2, %s8913_s23  ;;  %v4918_v5 = vsel %vm4910_vm15, %v4885_v18, %v4441_v56  ;;  %v3502_v37 = vmul.f32 %v16955_v11, %v16961_v59  ;;  %v16968_v56 = vld [vmem:[#allocation169_spill] sm:$0xff]  ;;  %v16150_v35 = vrot.slane %v12684_v40, 2 }
 0x564   : > { %v4026_v1 = vpop.permute.xlu1 %4025  ;;  %v4220_v43 = vpop.permute.xlu0 %4219 }
 0x566   : > { %3946 = vrot.lane.b32.xlu1 %v3406_v19, %s8906_s19  ;;  %3948 = vrot.lane.b32.xlu0 %v3407_v14, %s8906_s19  ;;  %v4724_v19 = vsel %vm1808_vm2, %v3136_v58, %v16968_v56 }
 0x567   : > { %v4756_v14 = vsel %vm1874_vm4, %v4724_v19, %v16969_v28 }
 0x568   : > { %v4635_v2 = vpop.permute.xlu1 %4634  ;;  %v4348_v47 = vpop.permute.xlu0 %4347 }
 0x569   : > { %v4951_v46 = vsel %vm4943_vm3, %v4918_v5, %v4635_v2  ;;  %v4788_v5 = vsel %vm1940_vm6, %v4756_v14, %v12347_v44  ;;  %v4592_v2 = vrot.slane %v3502_v37, 2  ;;  %v16971_v37 = vld [vmem:[#allocation121_spill] sm:$0xff] }
 0x56a   : > { %4462 = vrot.lane.b32.xlu1 %v16966_v60, %s8914_s14  ;;  %4464 = vrot.lane.b32.xlu0 %v16967_v55, %s8914_s14  ;;  %v4820_v11 = vsel %vm2006_vm8, %v4788_v5, %v4024_v34  ;;  %v12709_v19 = vmul.f32 %v16971_v37, %v16965_v9  ;;  %v16972_v34 = vrot.slane %v12600_v39, 2 }
 0x56b   : > { %8642 = vmatmul.mubr.msk.f32.gmra.mrb[24].mxu1 %vm4992_vm5, %v4951_v46  ;;  %v4853_v58 = vsel %vm4844_vm14, %v4820_v11, %v4218_v61  ;;  %v3137_v11 = vmul.f32 %v16859_v20, %v11304_v27  ;;  %v16975_v27 = vrot.slane %v12626_v8, 2  ;;  %v17094_v20 = vld [vmem:[#allocation209_spill] sm:$0xff] }
 0x56c   : > { %v4346_v10 = vpop.permute.xlu1 %4345  ;;  %v4028_v18 = vpop.permute.xlu0 %4027  ;;  %v4593_v14 = vsel %vm3712_vm13, %v16972_v34, %v4592_v2 }
 0x56d   : > { %v4886_v46 = vsel %vm4877_vm0, %v4853_v58, %v4346_v10  ;;  %v16973_v10 = vld [vmem:[#allocation97_spill] sm:$0xff] }
 0x56e   : > { %4047 = vrot.lane.b32.xlu1 %v16966_v60, %s8908_s21  ;;  %4049 = vrot.lane.b32.xlu0 %v16967_v55, %s8908_s21  ;;  %v4595_v60 = vsel %vm3712_vm13, %v4592_v2, %v16150_v35  ;;  %v4177_v55 = vrot.slane %v3439_v17, 2  ;;  %v4725_v39 = vsel %vm1808_vm2, %v3137_v11, %v16973_v10  ;;  %v3471_v2 = vmul.f32 %v16963_v22, %v16965_v9  ;;  %v16974_v17 = vld [vmem:[#allocation196_spill] sm:$0xff]  ;;  %v16976_v11 = vld [vmem:[#allocation43_spill] sm:$0xff]  ;;  %v16985_v35 = vld [vmem:[#allocation122_spill] sm:$0xff] }
 0x570   : > { %v4443_v56 = vpop.permute.xlu1 %4442  ;;  %v4637_v44 = vpop.permute.xlu0 %4636 }
 0x571   : > { %v4919_v28 = vsel %vm4910_vm15, %v4886_v46, %v4443_v56  ;;  %v4757_v46 = vsel %vm1874_vm4, %v4725_v39, %v16974_v17  ;;  %v4178_v56 = vsel %vm3712_vm13, %v16975_v27, %v4177_v55 }
 0x572   : > { %v4952_v61 = vsel %vm4943_vm3, %v4919_v28, %v4637_v44  ;;  %4656 = vrot.lane.b32.xlu1 %v4593_v14, %s8915_s16  ;;  %4658 = vrot.lane.b32.xlu0 %v4595_v60, %s8915_s16  ;;  %v4179_v44 = vrot.slane %v12709_v19, 2  ;;  %v4789_v28 = vsel %vm1940_vm6, %v4757_v46, %v12365_v6  ;;  %v16978_v46 = vld [vmem:[#allocation20_spill] sm:$0xff] }
 0x573   : > { %8644 = vmatprep.mubr.msk.f32.mxu1 %vm4992_vm5, %v4952_v61  ;;  %v4821_v34 = vsel %vm2006_vm8, %v4789_v28, %v4026_v1  ;;  %v3472_v61 = vmul.f32 %v16964_v62, %v16976_v11  ;;  %v16977_v1 = vld [vmem:[#allocation137_spill] sm:$0xff]  ;;  %v3409_v27 = vmul.f32 %v16978_v46, %v16976_v11  ;;  %v16981_v28 = vld [vmem:[#allocation195_spill] sm:$0xff] }
 0x574   : > { %v4445_v5 = vpop.permute.xlu1 %4444  ;;  %v4222_v58 = vpop.permute.xlu0 %4221  ;;  %v4180_v8 = vsel %vm3712_vm13, %v4177_v55, %v4179_v44  ;;  %v4854_v10 = vsel %vm4844_vm14, %v4821_v34, %v4220_v43  ;;  %v3408_v17 = vmul.f32 %v16977_v1, %v16965_v9 }
 0x575   : > { %v4887_v6 = vsel %vm4877_vm0, %v4854_v10, %v4348_v47  ;;  %v16980_v47 = vld [vmem:[#allocation105_spill] sm:$0xff] }
 0x576   : > { %4241 = vrot.lane.b32.xlu1 %v4178_v56, %s8912_s18  ;;  %4369 = vrot.lane.b32.xlu0 %v3471_v2, %s8913_s23  ;;  %v4920_v19 = vsel %vm4910_vm15, %v4887_v6, %v4445_v5  ;;  %v16979_v56 = vld [vmem:[#allocation61_spill] sm:$0xff]  ;;  %v3504_v6 = vmul.f32 %v16970_v50, %v16976_v11 }
 0x577   : > { %v3138_v55 = vmul.f32 %v16857_v12, %v16979_v56  ;;  %v16984_v56 = vld [vmem:[#allocation110_spill] sm:$0xff] }
 0x578   : > { %v4030_v14 = vpop.permute.xlu1 %4029  ;;  %v4224_v60 = vpop.permute.xlu0 %4223 }
 0x579   : > { %v4726_v5 = vsel %vm1808_vm2, %v3138_v55, %v16980_v47 }
 0x57a   : > { %4243 = vrot.lane.b32.xlu1 %v4180_v8, %s8912_s18  ;;  %4371 = vrot.lane.b32.xlu0 %v3472_v61, %s8913_s23  ;;  %v4758_v34 = vsel %vm1874_vm4, %v4726_v5, %v16981_v28  ;;  %v4596_v28 = vrot.slane %v3504_v6, 2 }
 0x57b   : > { %v4790_v10 = vsel %vm1940_vm6, %v4758_v34, %v12357_v32 }
 0x57c   : > { %v4639_v39 = vpop.permute.xlu1 %4638  ;;  %v4352_v2 = vpop.permute.xlu0 %4351 }
 0x57d   : > { %v4953_v43 = vsel %vm4943_vm3, %v4920_v19, %v4639_v39  ;;  %v16982_v19 = vld [vmem:[#allocation37_spill] sm:$0xff] }
 0x57e   : > { %3950 = vrot.lane.b32.xlu1 %v3408_v17, %s8906_s19  ;;  %3952 = vrot.lane.b32.xlu0 %v3409_v27, %s8906_s19  ;;  %v12767_v39 = vmul.f32 %v16971_v37, %v16982_v19  ;;  %v4822_v17 = vsel %vm2006_vm8, %v4790_v10, %v4028_v18  ;;  %v16983_v27 = vld [vmem:[#allocation104_spill] sm:$0xff]  ;;  %v3441_v18 = vmul.f32 %v16985_v35, %v16976_v11  ;;  %v16986_v10 = vld [vmem:[#allocation81_spill] sm:$0xff]  ;;  %v16987_v37 = vld [vmem:[#allocation26_spill] sm:$0xff] }
 0x57f   : > { %8645 = vmatmul.mubr.msk.f32.gmra.mrb[26].mxu1 %vm4992_vm5, %v4953_v43  ;;  %v4855_v55 = vsel %vm4844_vm14, %v4822_v17, %v4222_v58  ;;  %v3139_v50 = vmul.f32 %v16987_v37, %v16986_v10  ;;  %v16988_v58 = vld [vmem:[#allocation48_spill] sm:$0xff]  ;;  %v16992_v10 = vld [vmem:[#allocation29_spill] sm:$0xff] }
 0x580   : > { %v4350_v61 = vpop.permute.xlu1 %4349  ;;  %v4032_v8 = vpop.permute.xlu0 %4031  ;;  %v16154_v34 = vrot.slane %v12767_v39, 2  ;;  %v17023_v37 = vld [vmem:[#allocation213_spill] sm:$0xff] }
 0x581   : > { %v4888_v43 = vsel %vm4877_vm0, %v4855_v55, %v4350_v61  ;;  %v4727_v61 = vsel %vm1808_vm2, %v3139_v50, %v16988_v58  ;;  %v16989_v55 = vld [vmem:[#allocation85_spill] sm:$0xff] }
 0x582   : > { %4466 = vrot.lane.b32.xlu1 %v16983_v27, %s8914_s14  ;;  %4468 = vrot.lane.b32.xlu0 %v16984_v56, %s8914_s14 }
 0x584   : > { %v4447_v32 = vpop.permute.xlu1 %4446  ;;  %v4641_v47 = vpop.permute.xlu0 %4640 }
 0x585   : > { %v4921_v5 = vsel %vm4910_vm15, %v4888_v43, %v4447_v32  ;;  %v12792_v43 = vmul.f32 %v16989_v55, %v16982_v19  ;;  %v16990_v32 = vld [vmem:[#allocation35_spill] sm:$0xff] }
 0x586   : > { %v4954_v21 = vsel %vm4943_vm3, %v4921_v5, %v4641_v47  ;;  %4051 = vrot.lane.b32.xlu1 %v16983_v27, %s8908_s21  ;;  %4053 = vrot.lane.b32.xlu0 %v16984_v56, %s8908_s21  ;;  %v4759_v47 = vsel %vm1874_vm4, %v4727_v61, %v16990_v32  ;;  %v16991_v5 = vrot.slane %v12684_v40, 2  ;;  %v4181_v56 = vrot.slane %v3441_v18, 2 }
 0x587   : > { %8647 = vmatprep.mubr.msk.f32.mxu1 %vm4992_vm5, %v4954_v21  ;;  %v4599_v21 = vsel %vm3712_vm13, %v4596_v28, %v16154_v34  ;;  %v4791_v50 = vsel %vm1940_vm6, %v4759_v47, %v16992_v10  ;;  %v3473_v40 = vmul.f32 %v16977_v1, %v16982_v19 }
 0x588   : > { %v4449_v6 = vpop.permute.xlu1 %4448  ;;  %v4226_v17 = vpop.permute.xlu0 %4225  ;;  %v4597_v27 = vsel %vm3712_vm13, %v16991_v5, %v4596_v28  ;;  %v4823_v58 = vsel %vm2006_vm8, %v4791_v50, %v4030_v14  ;;  %v4182_v32 = vsel %vm3712_vm13, %v4179_v44, %v4181_v56  ;;  %v4183_v5 = vrot.slane %v12792_v43, 2  ;;  %v16994_v50 = vld [vmem:[#allocation118_spill] sm:$0xff] }
 0x589   : > { %v4856_v28 = vsel %vm4844_vm14, %v4823_v58, %v4224_v60  ;;  %v3140_v44 = vmul.f32 %v16860_v0, %v16994_v50  ;;  %v16995_v58 = vld [vmem:[#allocation180_spill] sm:$0xff]  ;;  %v17000_v0 = vld [vmem:[#allocation99_spill] sm:$0xff] }
 0x58a   : > { %4660 = vrot.lane.b32.xlu1 %v4597_v27, %s8915_s16  ;;  %4662 = vrot.lane.b32.xlu0 %v4599_v21, %s8915_s16  ;;  %v4889_v18 = vsel %vm4877_vm0, %v4856_v28, %v4352_v2  ;;  %v16993_v21 = vld [vmem:[#allocation109_spill] sm:$0xff]  ;;  %v4184_v60 = vsel %vm3712_vm13, %v4181_v56, %v4183_v5  ;;  %v16998_v56 = vld [vmem:[#allocation30_spill] sm:$0xff]  ;;  %v16999_v50 = vld [vmem:[#allocation140_spill] sm:$0xff] }
 0x58b   : > { %v4922_v47 = vsel %vm4910_vm15, %v4889_v18, %v4449_v6  ;;  %v3474_v10 = vmul.f32 %v16978_v46, %v16993_v21  ;;  %v4728_v2 = vsel %vm1808_vm2, %v3140_v44, %v16995_v58  ;;  %v16996_v6 = vld [vmem:[#allocation197_spill] sm:$0xff]  ;;  %v3506_v34 = vmul.f32 %v16985_v35, %v16993_v21 }
 0x58c   : > { %v4034_v55 = vpop.permute.xlu1 %4033  ;;  %v4228_v61 = vpop.permute.xlu0 %4227  ;;  %v16997_v18 = vld [vmem:[#allocation21_spill] sm:$0xff]  ;;  %v17007_v35 = vrot.slane %v12767_v39, 2  ;;  %v17010_v39 = vld [vmem:[#allocation87_spill] sm:$0xff] }
 0x58e   : > { %4245 = vrot.lane.b32.xlu1 %v4182_v32, %s8912_s18  ;;  %4373 = vrot.lane.b32.xlu0 %v3473_v40, %s8913_s23  ;;  %v4760_v40 = vsel %vm1874_vm4, %v4728_v2, %v16996_v6 }
 0x590   : > { %v4643_v14 = vpop.permute.xlu1 %4642  ;;  %v4356_v27 = vpop.permute.xlu0 %4355 }
 0x591   : > { %v4955_v43 = vsel %vm4943_vm3, %v4922_v47, %v4643_v14  ;;  %v3410_v47 = vmul.f32 %v16997_v18, %v16982_v19  ;;  %v3411_v14 = vmul.f32 %v16998_v56, %v16993_v21 }
 0x592   : > { %4247 = vrot.lane.b32.xlu1 %v4184_v60, %s8912_s18  ;;  %4375 = vrot.lane.b32.xlu0 %v3474_v10, %s8913_s23  ;;  %v4792_v10 = vsel %vm1940_vm6, %v4760_v40, %v16999_v50  ;;  %v3141_v40 = vmul.f32 %v16867_v48, %v17000_v0  ;;  %v17005_v0 = vld [vmem:[#allocation86_spill] sm:$0xff] }
 0x593   : > { %8648 = vmatmul.mubr.msk.f32.gmra.mrb[28].mxu1 %vm4992_vm5, %v4955_v43  ;;  %v4824_v60 = vsel %vm2006_vm8, %v4792_v10, %v4032_v8 }
 0x594   : > { %v4354_v32 = vpop.permute.xlu1 %4353  ;;  %v12829_v28 = vpop.permute.xlu0 %4035  ;;  %v4857_v44 = vsel %vm4844_vm14, %v4824_v60, %v4226_v17  ;;  %v17003_v17 = vld [vmem:[#allocation22_spill] sm:$0xff]  ;;  %v17004_v60 = vld [vmem:[#allocation199_spill] sm:$0xff] }
 0x595   : > { %v4890_v43 = vsel %vm4877_vm0, %v4857_v44, %v4354_v32  ;;  %v4729_v32 = vsel %vm1808_vm2, %v3141_v40, %v17003_v17 }
 0x596   : > { %3954 = vrot.lane.b32.xlu1 %v3410_v47, %s8906_s19  ;;  %3956 = vrot.lane.b32.xlu0 %v3411_v14, %s8906_s19  ;;  %v17001_v47 = vld [vmem:[#allocation123_spill] sm:$0xff]  ;;  %v17002_v14 = vld [vmem:[#allocation40_spill] sm:$0xff]  ;;  %v4761_v44 = vsel %vm1874_vm4, %v4729_v32, %v17004_v60  ;;  %v17008_v32 = vld [vmem:[#allocation158_spill] sm:$0xff] }
 0x597   : > { %v17009_v60 = vrot.slane %v17008_v32, 2  ;;  %v17014_v32 = vld [vmem:[#allocation28_spill] sm:$0xff] }
 0x598   : > { %v4451_v58 = vpop.permute.xlu1 %4450  ;;  %v4645_v2 = vpop.permute.xlu0 %4644 }
 0x599   : > { %v4923_v6 = vsel %vm4910_vm15, %v4890_v43, %v4451_v58  ;;  %v4600_v43 = vrot.slane %v3506_v34, 2  ;;  %v3443_v58 = vmul.f32 %v17005_v0, %v16993_v21 }
 0x59a   : > { %v4956_v8 = vsel %vm4943_vm3, %v4923_v6, %v4645_v2  ;;  %4470 = vrot.lane.b32.xlu1 %v17001_v47, %s8914_s14  ;;  %4472 = vrot.lane.b32.xlu0 %v17002_v14, %s8914_s14  ;;  %v17006_v2 = vld [vmem:[#allocation214_spill] sm:$0xff] }
 0x59b   : > { %8650 = vmatprep.mubr.msk.f32.mxu1 %vm4992_vm5, %v4956_v8  ;;  %v4793_v6 = vsel %vm1940_vm6, %v4761_v44, %v17006_v2  ;;  %v4601_v34 = vsel %vm3712_vm13, %v17007_v35, %v4600_v43  ;;  %v4603_v0 = vsel %vm3712_vm13, %v4600_v43, %v17009_v60  ;;  %v4185_v48 = vrot.slane %v3443_v58, 2  ;;  %v17012_v58 = vld [vmem:[#allocation159_spill] sm:$0xff] }
 0x59c   : > { %v4453_v50 = vpop.permute.xlu1 %4452  ;;  %v4230_v10 = vpop.permute.xlu0 %4229  ;;  %v4825_v40 = vsel %vm2006_vm8, %v4793_v6, %v4034_v55  ;;  %v3475_v35 = vmul.f32 %v16997_v18, %v17010_v39  ;;  %v3143_v60 = vmul.f32 %v16873_v23, %v17014_v32  ;;  %v17021_v23 = vld [vmem:[#allocation64_spill] sm:$0xff] }
 0x59d   : > { %v4858_v44 = vsel %vm4844_vm14, %v4825_v40, %v4228_v61  ;;  %v4186_v43 = vsel %vm3712_vm13, %v4183_v5, %v4185_v48  ;;  %v17013_v40 = vrot.slane %v17012_v58, 2  ;;  %v17015_v5 = vld [vmem:[#allocation141_spill] sm:$0xff] }
 0x59e   : > { %4055 = vrot.lane.b32.xlu1 %v17001_v47, %s8908_s21  ;;  %4057 = vrot.lane.b32.xlu0 %v17002_v14, %s8908_s21  ;;  %v4891_v47 = vsel %vm4877_vm0, %v4858_v44, %v4356_v27  ;;  %v17011_v27 = vld [vmem:[#allocation88_spill] sm:$0xff]  ;;  %v3142_v44 = vmul.f32 %v16864_v25, %v17015_v5 }
 0x59f   : > { %v4924_v55 = vsel %vm4910_vm15, %v4891_v47, %v4453_v50  ;;  %v3476_v50 = vmul.f32 %v16998_v56, %v17011_v27  ;;  %v17016_v47 = vld [vmem:[#allocation49_spill] sm:$0xff] }
 0x5a0   : > { %v4038_v8 = vpop.permute.xlu1 %4037  ;;  %v4232_v17 = vpop.permute.xlu0 %4231 }
 0x5a2   : > { %4664 = vrot.lane.b32.xlu1 %v4601_v34, %s8915_s16  ;;  %4666 = vrot.lane.b32.xlu0 %v4603_v0, %s8915_s16  ;;  %v4188_v34 = vsel %vm3712_vm13, %v4185_v48, %v17013_v40  ;;  %v17018_v48 = vld [vmem:[#allocation56_spill] sm:$0xff]  ;;  %v17019_v40 = vld [vmem:[#allocation201_spill] sm:$0xff] }
 0x5a3   : > { %v3413_v58 = vmul.f32 %v17018_v48, %v17011_v27 }
 0x5a4   : > { %v4647_v14 = vpop.permute.xlu1 %4646  ;;  %v4360_v2 = vpop.permute.xlu0 %4359 }
 0x5a5   : > { %v4957_v6 = vsel %vm4943_vm3, %v4924_v55, %v4647_v14  ;;  %v4731_v55 = vsel %vm1808_vm2, %v3143_v60, %v17016_v47  ;;  %v17022_v60 = vld [vmem:[#allocation198_spill] sm:$0xff] }
 0x5a6   : > { %4249 = vrot.lane.b32.xlu1 %v4186_v43, %s8912_s18  ;;  %4377 = vrot.lane.b32.xlu0 %v3475_v35, %s8913_s23  ;;  %v4763_v32 = vsel %vm1874_vm4, %v4731_v55, %v17019_v40 }
 0x5a7   : > { %8651 = vmatmul.mubr.msk.f32.gmra.mrb[30].mxu1 %vm4992_vm5, %v4957_v6  ;;  %v17017_v6 = vld [vmem:[#allocation31_spill] sm:$0xff]  ;;  %v4795_v5 = vsel %vm1940_vm6, %v4763_v32, %v17021_v23 }
 0x5a8   : > { %v4358_v61 = vpop.permute.xlu1 %4357  ;;  %v12884_v0 = vpop.permute.xlu0 %3940  ;;  %v3412_v43 = vmul.f32 %v17017_v6, %v17010_v39  ;;  %v4827_v25 = vsel %vm2006_vm8, %v4795_v5, %v4038_v8  ;;  %v17028_v5 = vld [vmem:[#allocation51_spill] sm:$0xff] }
 0x5a9   : > { %v4860_v23 = vsel %vm4844_vm14, %v4827_v25, %v4232_v17 }
 0x5aa   : > { %4251 = vrot.lane.b32.xlu1 %v4188_v34, %s8912_s18  ;;  %4379 = vrot.lane.b32.xlu0 %v3476_v50, %s8913_s23  ;;  %v17020_v34 = vld [vmem:[#allocation116_spill] sm:$0xff]  ;;  %v4893_v8 = vsel %vm4877_vm0, %v4860_v23, %v4360_v2  ;;  %v17026_v2 = vld [vmem:[#allocation163_spill] sm:$0xff]  ;;  %v17030_v23 = vld [vmem:[#allocation129_spill] sm:$0xff] }
 0x5ab   : > { %v4730_v50 = vsel %vm1808_vm2, %v3142_v44, %v17020_v34 }
 0x5ac   : > { %v4455_v14 = vpop.permute.xlu1 %4454  ;;  %v4457_v35 = vpop.permute.xlu0 %4456  ;;  %v4762_v47 = vsel %vm1874_vm4, %v4730_v50, %v17022_v60  ;;  %v3477_v60 = vmul.f32 %v17017_v6, %v17028_v5 }
 0x5ad   : > { %v4794_v12 = vsel %vm1940_vm6, %v4762_v47, %v17023_v37  ;;  %v4926_v34 = vsel %vm4910_vm15, %v4893_v8, %v4457_v35  ;;  %v17029_v47 = vld [vmem:[#allocation165_spill] sm:$0xff]  ;;  %v3145_v8 = vmul.f32 %v16938_v52, %v11396_v7  ;;  %v17036_v7 = vld [vmem:[#allocation200_spill] sm:$0xff]  ;;  %v17038_v52 = vld [vmem:[#allocation215_spill] sm:$0xff] }
 0x5ae   : > { %3958 = vrot.lane.b32.xlu1 %v3412_v43, %s8906_s19  ;;  %3960 = vrot.lane.b32.xlu0 %v3413_v58, %s8906_s19  ;;  %v4826_v44 = vsel %vm2006_vm8, %v4794_v12, %v12829_v28  ;;  %v17024_v43 = vld [vmem:[#allocation41_spill] sm:$0xff]  ;;  %v17025_v58 = vld [vmem:[#allocation130_spill] sm:$0xff] }
 0x5af   : > { %v4859_v40 = vsel %vm4844_vm14, %v4826_v44, %v4230_v10 }
 0x5b0   : > { %v4040_v30 = vpop.permute.xlu1 %4039  ;;  %v4042_v55 = vpop.permute.xlu0 %4041  ;;  %v4892_v32 = vsel %vm4877_vm0, %v4859_v40, %v4358_v61  ;;  %v17027_v61 = vld [vmem:[#allocation164_spill] sm:$0xff] }
 0x5b1   : > { %v4925_v37 = vsel %vm4910_vm15, %v4892_v32, %v4455_v14  ;;  %v17031_v32 = vld [vmem:[#allocation167_spill] sm:$0xff] }
 0x5b2   : > { %4474 = vrot.lane.b32.xlu1 %v17024_v43, %s8914_s14  ;;  %4476 = vrot.lane.b32.xlu0 %v17025_v58, %s8914_s14 }
 0x5b4   : > { %v4649_v50 = vpop.permute.xlu1 %4648  ;;  %v4651_v12 = vpop.permute.xlu0 %4650 }
 0x5b5   : > { %v4958_v28 = vsel %vm4943_vm3, %v4925_v37, %v4649_v50  ;;  %v4959_v25 = vsel %vm4943_vm3, %v4926_v34, %v4651_v12  ;;  %v17032_v37 = vld [vmem:[#allocation75_spill] sm:$0xff]  ;;  %v17033_v50 = vld [vmem:[#allocation182_spill] sm:$0xff] }
 0x5b6   : > { %4059 = vrot.lane.b32.xlu1 %v17024_v43, %s8908_s21  ;;  %4061 = vrot.lane.b32.xlu0 %v17025_v58, %s8908_s21  ;;  %v3478_v43 = vmul.f32 %v17018_v48, %v17030_v23  ;;  %v3144_v58 = vmul.f32 %v16946_v51, %v11393_v26  ;;  %v4733_v12 = vsel %vm1808_vm2, %v3145_v8, %v17033_v50  ;;  %v17035_v26 = vld [vmem:[#allocation79_spill] sm:$0xff] }
 0x5b7   : > { %8653 = vmatprep.mubr.msk.f32.mxu1 %vm4992_vm5, %v4958_v28 }
 0x5b8   : > { %8654 = vmatmul.mubr.msk.f32.gmra.mrb[32].mxu1 %vm4992_vm5, %v4959_v25  ;;  %v4234_v10 = vpop.permute.xlu1 %4233  ;;  %v4362_v17 = vpop.permute.xlu0 %4361  ;;  %v4732_v34 = vsel %vm1808_vm2, %v3144_v58, %v17032_v37 }
 0x5ba   : > { %4668 = vrot.lane.b32.xlu1 %v17026_v2, %s8915_s16  ;;  %4670 = vrot.lane.b32.xlu0 %v17027_v61, %s8915_s16  ;;  %v17034_v2 = vld [vmem:[#allocation57_spill] sm:$0xff] }
 0x5bb   : > { %v3414_v61 = vmul.f32 %v17034_v2, %v17028_v5 }
 0x5bc   : > { %v4236_v14 = vpop.permute.xlu1 %4235  ;;  %v4364_v35 = vpop.permute.xlu0 %4363 }
 0x5be   : > { %4253 = vrot.lane.b32.xlu1 %v17029_v47, %s8912_s18  ;;  %4381 = vrot.lane.b32.xlu0 %v3477_v60, %s8913_s23  ;;  %v3415_v60 = vmul.f32 %v17035_v26, %v17030_v23  ;;  %v4764_v47 = vsel %vm1874_vm4, %v4732_v34, %v17036_v7 }
 0x5bf   : > { %v4796_v58 = vsel %vm1940_vm6, %v4764_v47, %v17038_v52  ;;  %v17040_v52 = vld [vmem:[#allocation134_spill] sm:$0xff] }
 0x5c0   : > { %v12945_v44 = vpop.permute.xlu1 %3942  ;;  %v12947_v40 = vpop.permute.xlu0 %3944  ;;  %v4828_v37 = vsel %vm2006_vm8, %v4796_v58, %v4040_v30  ;;  %v17043_v58 = vld [vmem:[#allocation59_spill] sm:$0xff] }
 0x5c1   : > { %v4861_v51 = vsel %vm4844_vm14, %v4828_v37, %v4234_v10  ;;  %v17044_v37 = vld [vmem:[#allocation127_spill] sm:$0xff] }
 0x5c2   : > { %4255 = vrot.lane.b32.xlu1 %v17031_v32, %s8912_s18  ;;  %4383 = vrot.lane.b32.xlu0 %v3478_v43, %s8913_s23  ;;  %v17037_v32 = vld [vmem:[#allocation60_spill] sm:$0xff] }
 0x5c3   : > { %v4765_v43 = vsel %vm1874_vm4, %v4733_v12, %v17037_v32  ;;  %v17039_v32 = vld [vmem:[#allocation55_spill] sm:$0xff] }
 0x5c4   : > { %v4459_v28 = vpop.permute.xlu1 %4458  ;;  %v4461_v25 = vpop.permute.xlu0 %4460  ;;  %v4797_v8 = vsel %vm1940_vm6, %v4765_v43, %v12884_v0  ;;  %v4894_v0 = vsel %vm4877_vm0, %v4861_v51, %v4362_v17 }
 0x5c5   : > { %v4829_v50 = vsel %vm2006_vm8, %v4797_v8, %v4042_v55  ;;  %v4927_v30 = vsel %vm4910_vm15, %v4894_v0, %v4459_v28  ;;  %v17042_v28 = vld [vmem:[#allocation171_spill] sm:$0xff]  ;;  %v3479_v8 = vmul.f32 %v17034_v2, %v17043_v58  ;;  %v3146_v0 = vmul.f32 %v16949_v13, %v11417_v57 }
 0x5c6   : > { %3962 = vrot.lane.b32.xlu1 %v3414_v61, %s8906_s19  ;;  %3964 = vrot.lane.b32.xlu0 %v3415_v60, %s8906_s19  ;;  %v4862_v34 = vsel %vm4844_vm14, %v4829_v50, %v4236_v14  ;;  %v17050_v57 = vld [vmem:[#allocation115_spill] sm:$0xff] }
 0x5c7   : > { %v4895_v61 = vsel %vm4877_vm0, %v4862_v34, %v4364_v35  ;;  %v17041_v35 = vld [vmem:[#allocation170_spill] sm:$0xff] }
 0x5c8   : > { %v4044_v7 = vpop.permute.xlu1 %4043  ;;  %v4046_v12 = vpop.permute.xlu0 %4045  ;;  %v4928_v55 = vsel %vm4910_vm15, %v4895_v61, %v4461_v25  ;;  %v3147_v61 = vmul.f32 %v16950_v36, %v16937_v49  ;;  %v17051_v49 = vld [vmem:[#allocation202_spill] sm:$0xff] }
 0x5ca   : > { %4478 = vrot.lane.b32.xlu1 %v17039_v32, %s8914_s14  ;;  %4480 = vrot.lane.b32.xlu0 %v17040_v52, %s8914_s14 }
 0x5cc   : > { %v4653_v60 = vpop.permute.xlu1 %4652  ;;  %v4655_v10 = vpop.permute.xlu0 %4654 }
 0x5cd   : > { %v4960_v14 = vsel %vm4943_vm3, %v4927_v30, %v4653_v60  ;;  %v4961_v47 = vsel %vm4943_vm3, %v4928_v55, %v4655_v10  ;;  %v17046_v30 = vld [vmem:[#allocation174_spill] sm:$0xff]  ;;  %v17047_v55 = vld [vmem:[#allocation181_spill] sm:$0xff]  ;;  %v17048_v10 = vld [vmem:[#allocation184_spill] sm:$0xff] }
 0x5ce   : > { %4063 = vrot.lane.b32.xlu1 %v17039_v32, %s8908_s21  ;;  %4065 = vrot.lane.b32.xlu0 %v17040_v52, %s8908_s21  ;;  %v17045_v32 = vld [vmem:[#allocation133_spill] sm:$0xff]  ;;  %v4734_v60 = vsel %vm1808_vm2, %v3146_v0, %v17047_v55 }
 0x5cf   : > { %8656 = vmatprep.mubr.msk.f32.mxu1 %vm4992_vm5, %v4960_v14  ;;  %v3480_v52 = vmul.f32 %v17035_v26, %v17045_v32  ;;  %v4735_v14 = vsel %vm1808_vm2, %v3147_v61, %v17048_v10  ;;  %v4766_v36 = vsel %vm1874_vm4, %v4734_v60, %v17051_v49  ;;  %v17053_v49 = vld [vmem:[#allocation172_spill] sm:$0xff] }
 0x5d0   : > { %8657 = vmatmul.mubr.msk.f32.gmra.mrb[34].mxu1 %vm4992_vm5, %v4961_v47  ;;  %v4238_v51 = vpop.permute.xlu1 %4237  ;;  %v4366_v17 = vpop.permute.xlu0 %4365  ;;  %v4798_v0 = vsel %vm1940_vm6, %v4766_v36, %v12945_v44  ;;  %v17054_v36 = vld [vmem:[#allocation173_spill] sm:$0xff] }
 0x5d2   : > { %4672 = vrot.lane.b32.xlu1 %v17041_v35, %s8915_s16  ;;  %4674 = vrot.lane.b32.xlu0 %v17042_v28, %s8915_s16  ;;  %v17049_v28 = vld [vmem:[#allocation80_spill] sm:$0xff] }
 0x5d4   : > { %v4240_v25 = vpop.permute.xlu1 %4239  ;;  %v4368_v43 = vpop.permute.xlu0 %4367 }
 0x5d6   : > { %4257 = vrot.lane.b32.xlu1 %v17044_v37, %s8912_s18  ;;  %4385 = vrot.lane.b32.xlu0 %v3479_v8, %s8913_s23  ;;  %v3416_v8 = vmul.f32 %v17049_v28, %v17043_v58  ;;  %v3417_v37 = vmul.f32 %v17050_v57, %v17045_v32  ;;  %v4830_v58 = vsel %vm2006_vm8, %v4798_v0, %v4044_v7  ;;  %v17057_v0 = vld [vmem:[#allocation162_spill] sm:$0xff] }
 0x5d7   : > { %v4863_v55 = vsel %vm4844_vm14, %v4830_v58, %v4238_v51  ;;  %v17058_v58 = vld [vmem:[#allocation178_spill] sm:$0xff] }
 0x5d8   : > { %v13005_v50 = vpop.permute.xlu1 %3946  ;;  %v13007_v34 = vpop.permute.xlu0 %3948  ;;  %v4896_v44 = vsel %vm4877_vm0, %v4863_v55, %v4366_v17 }
 0x5da   : > { %4259 = vrot.lane.b32.xlu1 %v17046_v30, %s8912_s18  ;;  %4387 = vrot.lane.b32.xlu0 %v3480_v52, %s8913_s23  ;;  %v17052_v30 = vld [vmem:[#allocation204_spill] sm:$0xff] }
 0x5db   : > { %v4767_v52 = vsel %vm1874_vm4, %v4735_v14, %v17052_v30 }
 0x5dc   : > { %v4463_v47 = vpop.permute.xlu1 %4462  ;;  %v4465_v35 = vpop.permute.xlu0 %4464  ;;  %v4799_v61 = vsel %vm1940_vm6, %v4767_v52, %v12947_v40 }
 0x5dd   : > { %v4831_v32 = vsel %vm2006_vm8, %v4799_v61, %v4046_v12  ;;  %v4929_v7 = vsel %vm4910_vm15, %v4896_v44, %v4463_v47  ;;  %v17055_v47 = vld [vmem:[#allocation176_spill] sm:$0xff]  ;;  %v3481_v61 = vmul.f32 %v17049_v28, %v17057_v0  ;;  %v17061_v44 = vrot.slane %v17057_v0, 1 }
 0x5de   : > { %3966 = vrot.lane.b32.xlu1 %v3416_v8, %s8906_s19  ;;  %3968 = vrot.lane.b32.xlu0 %v3417_v37, %s8906_s19  ;;  %v4864_v60 = vsel %vm4844_vm14, %v4831_v32, %v4240_v25  ;;  %v17059_v32 = vld [vmem:[#allocation128_spill] sm:$0xff] }
 0x5df   : > { %v4897_v40 = vsel %vm4877_vm0, %v4864_v60, %v4368_v43  ;;  %v3514_v55 = vmul.f32 0.0, %v17059_v32 }
 0x5e0   : > { %v4048_v10 = vpop.permute.xlu1 %4047  ;;  %v4050_v14 = vpop.permute.xlu0 %4049  ;;  %v4930_v12 = vsel %vm4910_vm15, %v4897_v40, %v4465_v35  ;;  %v17056_v35 = vld [vmem:[#allocation177_spill] sm:$0xff] }
 0x5e2   : > { %4482 = vrot.lane.b32.xlu1 %v17053_v49, %s8914_s14  ;;  %4484 = vrot.lane.b32.xlu0 %v17054_v36, %s8914_s14 }
 0x5e4   : > { %v4657_v8 = vpop.permute.xlu1 %4656  ;;  %v4659_v51 = vpop.permute.xlu0 %4658 }
 0x5e5   : > { %v4962_v25 = vsel %vm4943_vm3, %v4929_v7, %v4657_v8  ;;  %v4963_v37 = vsel %vm4943_vm3, %v4930_v12, %v4659_v51  ;;  %v3148_v7 = vmul.f32 %v16963_v22, %v16940_v45  ;;  %v3149_v12 = vmul.f32 %v16964_v62, %v16947_v3  ;;  %v17062_v8 = vld [vmem:[#allocation179_spill] sm:$0xff]  ;;  %v17070_v22 = vld [vmem:[#allocation106_spill] sm:$0xff] }
 0x5e6   : > { %4067 = vrot.lane.b32.xlu1 %v17053_v49, %s8908_s21  ;;  %4069 = vrot.lane.b32.xlu0 %v17054_v36, %s8908_s21  ;;  %v17060_v36 = vld [vmem:[#allocation3_spill] sm:$0xff]  ;;  %v13081_v51 = vrot.slane %v3514_v55, 2  ;;  %v3482_v45 = vmul.f32 0.0, %v17050_v57 }
 0x5e7   : > { %8659 = vmatprep.mubr.msk.f32.mxu1 %vm4992_vm5, %v4962_v25  ;;  %v4425_v40 = vsel %vm3518_vm11, %v17061_v44, %v17060_v36  ;;  %v17064_v25 = vld [vmem:[#allocation183_spill] sm:$0xff]  ;;  %v17067_v44 = vld [vmem:[#allocation82_spill] sm:$0xff] }
 0x5e8   : > { %8660 = vmatmul.mubr.msk.f32.gmra.mrb[36].mxu1 %vm4992_vm5, %v4963_v37  ;;  %v4242_v17 = vpop.permute.xlu1 %4241  ;;  %v4370_v43 = vpop.permute.xlu0 %4369  ;;  %17063 = vst [vmem:[#allocation38_spill] sm:$0xff] %v13081_v51  ;;  %v4736_v37 = vsel %vm1808_vm2, %v3148_v7, %v17064_v25  ;;  %v3515_v7 = vmul.f32 0.0, %v17070_v22 }
 0x5ea   : > { %4676 = vrot.lane.b32.xlu1 %v17055_v47, %s8915_s16  ;;  %4678 = vrot.lane.b32.xlu0 %v17056_v35, %s8915_s16  ;;  %v17065_v47 = vld [vmem:[#allocation186_spill] sm:$0xff] }
 0x5eb   : > { %v4737_v35 = vsel %vm1808_vm2, %v3149_v12, %v17065_v47 }
 0x5ec   : > { %v4244_v30 = vpop.permute.xlu1 %4243  ;;  %v4372_v52 = vpop.permute.xlu0 %4371 }
 0x5ee   : > { %4261 = vrot.lane.b32.xlu1 %v17058_v58, %s8912_s18  ;;  %4389 = vrot.lane.b32.xlu0 %v3481_v61, %s8913_s23  ;;  %v17066_v58 = vld [vmem:[#allocation203_spill] sm:$0xff] }
 0x5ef   : > { %v4768_v3 = vsel %vm1874_vm4, %v4736_v37, %v17066_v58 }
 0x5f0   : > { %v13066_v60 = vpop.permute.xlu1 %3950  ;;  %v13068_v49 = vpop.permute.xlu0 %3952  ;;  %v4800_v12 = vsel %vm1940_vm6, %v4768_v3, %v13005_v50 }
 0x5f1   : > { %v4832_v37 = vsel %vm2006_vm8, %v4800_v12, %v4048_v10 }
 0x5f2   : > { %4263 = vrot.lane.b32.xlu1 %v17062_v8, %s8912_s18  ;;  %4486 = vrot.lane.b32.xlu0 %v4425_v40, %s8914_s14  ;;  %v4769_v8 = vsel %vm1874_vm4, %v4737_v35, %v17067_v44  ;;  %v17068_v40 = vld [vmem:[#allocation168_spill] sm:$0xff]  ;;  %v4865_v35 = vsel %vm4844_vm14, %v4832_v37, %v4242_v17 }
 0x5f3   : > { %v17069_v55 = vrot.slane %v17068_v40, 2  ;;  %v4801_v25 = vsel %vm1940_vm6, %v4769_v8, %v13007_v34  ;;  %v4898_v50 = vsel %vm4877_vm0, %v4865_v35, %v4370_v43 }
 0x5f4   : > { %v4467_v0 = vpop.permute.xlu1 %4466  ;;  %v4469_v61 = vpop.permute.xlu0 %4468  ;;  %v4833_v47 = vsel %vm2006_vm8, %v4801_v25, %v4050_v14 }
 0x5f5   : > { %v4617_v62 = vsel %vm3712_vm13, %v17069_v55, %v13081_v51  ;;  %v4866_v58 = vsel %vm4844_vm14, %v4833_v47, %v4244_v30  ;;  %v4618_v55 = vrot.slane %v3515_v7, 2 }
 0x5f6   : > { %4391 = vrot.lane.b32.xlu1 %v3482_v45, %s8913_s23  ;;  %4680 = vrot.lane.b32.xlu0 %v4617_v62, %s8915_s16  ;;  %v4899_v34 = vsel %vm4877_vm0, %v4866_v58, %v4372_v52  ;;  %v4931_v62 = vsel %vm4910_vm15, %v4898_v50, %v4467_v0  ;;  %v13123_v0 = vld [vmem:[%s15852_s8] ss:$0 sm:$0xff]  ;;  %v3150_v58 = vmul.f32 %v16977_v1, %v16952_v15 }
 0x5f7   : > { %v4932_v10 = vsel %vm4910_vm15, %v4899_v34, %v4469_v61  ;;  %v4619_v3 = vsel %vm3712_vm13, %v13081_v51, %v4618_v55  ;;  %v3151_v50 = vmul.f32 %v16978_v46, %v16961_v59 }
 0x5f8   : > { %v4052_v44 = vpop.permute.xlu1 %4051  ;;  %v4054_v40 = vpop.permute.xlu0 %4053 }
 0x5fa   : > { %4488 = vrot.lane.b32.xlu1 %v17060_v36, %s8914_s14 }
 0x5fc   : > { %v4661_v45 = vpop.permute.xlu1 %4660  ;;  %v4663_v14 = vpop.permute.xlu0 %4662 }
 0x5fd   : > { %v4964_v17 = vsel %vm4943_vm3, %v4931_v62, %v4661_v45  ;;  %v4965_v30 = vsel %vm4943_vm3, %v4932_v10, %v4663_v14  ;;  %v17071_v45 = vld [vmem:[#allocation185_spill] sm:$0xff] }
 0x5fe   : > { %4682 = vrot.lane.b32.xlu1 %v4619_v3, %s8915_s16  ;;  %8662 = vmatprep.mubr.msk.f32.mxu1 %vm4992_vm5, %v4964_v17  ;;  %v4738_v14 = vsel %vm1808_vm2, %v3150_v58, %v17071_v45  ;;  %v17072_v17 = vld [vmem:[#allocation138_spill] sm:$0xff]  ;;  %v17073_v3 = vld [vmem:[#allocation205_spill] sm:$0xff] }
 0x5ff   : > { %8663 = vmatmul.mubr.msk.f32.gmra.mrb[38].mxu1 %vm4992_vm5, %v4965_v30  ;;  %v4739_v30 = vsel %vm1808_vm2, %v3151_v50, %v17072_v17  ;;  %v17078_v17 = vld [vmem:[#allocation46_spill] sm:$0xff] }
 0x600   : > { %v4246_v43 = vpop.permute.xlu1 %4245  ;;  %v4374_v52 = vpop.permute.xlu0 %4373 }
 0x602   : > { %v8634_v61 = vpop.f32.mrb[18].mxu1 }
 0x603   : > { %v5161_v8 = vadd.f32 %v8634_v61, %v13123_v0  ;;  %v5155_v7 = vpop.f32.mrb[19].mxu1  ;;  %v4770_v61 = vsel %vm1874_vm4, %v4738_v14, %v17073_v3 }
 0x604   : > { %v5156_v12 = vadd.f32 %v13123_v0, %v5155_v7  ;;  %v4248_v25 = vpop.permute.xlu1 %4247  ;;  %v4376_v37 = vpop.permute.xlu0 %4375 }
 0x605   : > { %v5315_v47 = vmax.f32 %v5161_v8, 0.0  ;;  %v17076_v8 = vld [vmem:[#allocation207_spill] sm:$0xff] }
 0x606   : > { %v5314_v35 = vmax.f32 %v5156_v12, 0.0  ;;  %v4771_v7 = vsel %vm1874_vm4, %v4739_v30, %v17076_v8  ;;  %v4802_v12 = vsel %vm1940_vm6, %v4770_v61, %v13066_v60  ;;  %v17080_v30 = vld [vmem:[#allocation125_spill] sm:$0xff] }
 0x607   : > { %v13129_v55 = vrot.slane %v5315_v47, 7  ;;  %v4803_v60 = vsel %vm1940_vm6, %v4771_v7, %v13068_v49  ;;  %v4834_v61 = vsel %vm2006_vm8, %v4802_v12, %v4052_v44  ;;  %v17082_v44 = vld [vmem:[#allocation131_spill] sm:$0xff] }
 0x608   : > { %v5378_v34 = vrot.slane %v5314_v35, 7  ;;  %v13133_v62 = vpop.permute.xlu1 %3954  ;;  %v13135_v10 = vpop.permute.xlu0 %3956  ;;  %v17077_v35 = vld [vmem:[#allocation111_spill] sm:$0xff]  ;;  %v4835_v33 = vsel %vm2006_vm8, %v4803_v60, %v4054_v40  ;;  %v4867_v49 = vsel %vm4844_vm14, %v4834_v61, %v4246_v43 }
 0x609   : > { %v4868_v12 = vsel %vm4844_vm14, %v4835_v33, %v4248_v25  ;;  %v4900_v25 = vsel %vm4877_vm0, %v4867_v49, %v4374_v52 }
 0x60a   : > { %v13145_v15 = vsel %vm2869_vm10, %v5378_v34, %v13129_v55  ;;  %v13148_v59 = vsel %vm2869_vm10, 0.0, %v5378_v34  ;;  %v17079_v34 = vld [vmem:[#allocation112_spill] sm:$0xff] }
 0x60b   : > { %17074 = vst [vmem:[#allocation120_spill] sm:$0xff] %v13145_v15  ;;  %17075 = vst [vmem:[#allocation160_spill] sm:$0xff] %v13148_v59  ;;  %v5665_v47 = vrot.slane %v13148_v59, 1  ;;  %v5506_v58 = vmul.f32 %v13148_v59, %v17077_v35  ;;  %v5569_v3 = vmul.f32 %v13148_v59, %v17078_v17  ;;  %v13162_v51 = vmul.f32 %v13145_v15, %v17079_v34 }
 0x60c   : > { %v4471_v50 = vpop.permute.xlu1 %4470  ;;  %v4473_v45 = vpop.permute.xlu0 %4472  ;;  %v13166_v8 = vmul.f32 %v13145_v15, %v17080_v30  ;;  %v17081_v1 = vrot.slane %v13145_v15, 1  ;;  %v5538_v33 = vmul.f32 %v13145_v15, %v16846_v38 }
 0x60d   : > { %v5666_v46 = vsel %vm3518_vm11, %v17060_v36, %v5665_v47  ;;  %v5851_v14 = vrot.slane %v5506_v58, 2  ;;  %v6268_v32 = vrot.slane %v5569_v3, 2  ;;  %v16174_v13 = vrot.slane %v13162_v51, 2 }
 0x60e   : > { %5727 = vrot.lane.b32.xlu0 %v5666_v46, %s8902_s15  ;;  %v5668_v22 = vsel %vm3518_vm11, %v5665_v47, %v17081_v1  ;;  %v16173_v54 = vrot.slane %v13166_v8, 2  ;;  %v17083_v1 = vld [vmem:[#allocation23_spill] sm:$0xff]  ;;  %v4901_v3 = vsel %vm4877_vm0, %v4868_v12, %v4376_v37  ;;  %v4933_v60 = vsel %vm4910_vm15, %v4900_v25, %v4471_v50 }
 0x60f   : > { %v5852_v7 = vsel %vm3712_vm13, %v17082_v44, %v5851_v14  ;;  %v5537_v47 = vmul.f32 %v13148_v59, %v17083_v1  ;;  %v6270_v40 = vsel %vm3712_vm13, %v6268_v32, %v16174_v13  ;;  %v4934_v61 = vsel %vm4910_vm15, %v4901_v3, %v4473_v45 }
 0x610   : > { %5913 = vrot.lane.b32.xlu1 %v5852_v7, %s8904_s17  ;;  %v13185_v46 = vpop.permute.xlu1 %4055  ;;  %v13187_v58 = vpop.permute.xlu0 %4057  ;;  %v5854_v43 = vsel %vm3712_vm13, %v5851_v14, %v16173_v54 }
 0x612   : > { %6038 = vrot.lane.b32.xlu0 %v5537_v47, %s8906_s19 }
 0x614   : > { %6040 = vrot.lane.b32.xlu1 %v5538_v33, %s8906_s19  ;;  %v4665_v32 = vpop.permute.xlu1 %4664  ;;  %v4667_v44 = vpop.permute.xlu0 %4666 }
 0x615   : > { %v4966_v7 = vsel %vm4943_vm3, %v4933_v60, %v4665_v32  ;;  %v4967_v14 = vsel %vm4943_vm3, %v4934_v61, %v4667_v44  ;;  %v7087_v32 = vld [vmem:[%s15853_s9] sm:$0xff] }
 0x616   : > { %6139 = vrot.lane.b32.xlu0 %v5668_v22, %s8908_s21  ;;  %v8637_v47 = vpop.f32.mrb[20].mxu1  ;;  %8665 = vmatprep.mubr.msk.f32.mxu1 %vm4992_vm5, %v4966_v7 }
 0x617   : > { %v5171_v52 = vadd.f32 %v8637_v47, %v13123_v0  ;;  %v5165_v37 = vpop.f32.mrb[21].mxu1  ;;  %8666 = vmatmul.mubr.msk.f32.gmra.mrb[40].mxu1 %vm4992_vm5, %v4967_v14  ;;  %v3152_v14 = vmul.f32 %v16997_v18, %v16965_v9 }
 0x618   : > { %v5166_v50 = vadd.f32 %v13123_v0, %v5165_v37  ;;  %5729 = vrot.lane.b32.xlu1 %v5668_v22, %s8902_s15  ;;  %v13213_v45 = vpop.permute.xlu1 %4249  ;;  %v13215_v49 = vpop.permute.xlu0 %4377  ;;  %v7088_v22 = vld [vmem:[%s15853_s9 + $0x8] sm:$0xff]  ;;  %v3153_v37 = vmul.f32 %v16998_v56, %v16976_v11  ;;  %v17087_v11 = vrot.slane %v13145_v15, 1  ;;  %v17090_v56 = vrot.slane %v13162_v51, 2  ;;  %v17091_v15 = vld [vmem:[#allocation54_spill] sm:$0xff] }
 0x619   : > { %v5317_v12 = vmax.f32 %v5171_v52, 0.0 }
 0x61a   : > { %v5316_v33 = vmax.f32 %v5166_v50, 0.0 }
 0x61b   : > { %v13217_v25 = vrot.slane %v5317_v12, 7  ;;  %v7089_v12 = vld [vmem:[%s15853_s9 + $0x10] sm:$0xff] }
 0x61c   : > { %v5381_v3 = vrot.slane %v5316_v33, 7  ;;  %6333 = vrot.lane.b32.xlu1 %v6270_v40, %s8912_s18  ;;  %v4252_v60 = vpop.permute.xlu1 %4251  ;;  %v13220_v61 = vpop.permute.xlu0 %4379  ;;  %v8820_v40 = vpack.c.bf16 %v7088_v22, %v7087_v32  ;;  %v17085_v33 = vld [vmem:[#allocation50_spill] sm:$0xff]  ;;  %v17086_v32 = vld [vmem:[#allocation187_spill] sm:$0xff] }
 0x61d   : > { %v4740_v22 = vsel %vm1808_vm2, %v3152_v14, %v17086_v32 }
 0x61e   : > { %v13230_v44 = vsel %vm2869_vm10, %v13129_v55, %v5381_v3  ;;  %v13234_v7 = vsel %vm2869_vm10, %v5381_v3, %v13217_v25  ;;  %8821 = vmatprep.subr.bf16.mxu0 %v8820_v40 }
 0x61f   : > { %17084 = vst [vmem:[#allocation83_spill] sm:$0xff] %v13234_v7  ;;  %v5669_v47 = vrot.slane %v13230_v44, 1  ;;  %v5571_v52 = vmul.f32 %v13230_v44, %v17077_v35  ;;  %v5508_v3 = vmul.f32 %v13230_v44, %v17085_v33  ;;  %v5633_v9 = vmul.f32 %v13230_v44, %v17078_v17  ;;  %8823 = vmatpush3.bf16.msra.mxu0 %v8820_v40  ;;  %v7090_v17 = vld [vmem:[%s15853_s9 + $0x18] sm:$0xff] }
 0x620   : > { %5915 = vrot.lane.b32.xlu1 %v5854_v43, %s8904_s17  ;;  %v13244_v55 = vpop.permute.xlu1 %3958  ;;  %v13246_v50 = vpop.permute.xlu0 %3960  ;;  %v5602_v54 = vmul.f32 %v13230_v44, %v17083_v1  ;;  %v17088_v14 = vrot.slane %v13234_v7, 1  ;;  %v13274_v1 = vmul.f32 %v13234_v7, %v17079_v34  ;;  %v13283_v59 = vmul.f32 %v13234_v7, %v17091_v15 }
 0x621   : > { %v5670_v43 = vsel %vm3518_vm11, %v17087_v11, %v5669_v47  ;;  %v6271_v13 = vrot.slane %v5571_v52, 2  ;;  %v5855_v11 = vrot.slane %v5508_v3, 2  ;;  %v6678_v40 = vrot.slane %v5633_v9, 2  ;;  %v17089_v52 = vld [vmem:[#allocation98_spill] sm:$0xff] }
 0x622   : > { %6141 = vrot.lane.b32.xlu0 %v5670_v43, %s8908_s21  ;;  %v13270_v32 = vsel %vm3518_vm11, %v5669_v47, %v17088_v14  ;;  %v4741_v36 = vsel %vm1808_vm2, %v3153_v37, %v17089_v52  ;;  %v13287_v47 = vmul.f32 %v13234_v7, %v17080_v30  ;;  %v17092_v3 = vld [vmem:[#allocation206_spill] sm:$0xff]  ;;  %v17093_v37 = vrot.slane %v13166_v8, 2 }
 0x623   : > { %v6272_v18 = vsel %vm3712_vm13, %v17090_v56, %v6271_v13  ;;  %v4772_v34 = vsel %vm1874_vm4, %v4740_v22, %v17092_v3  ;;  %v6679_v56 = vrot.slane %v13274_v1, 2  ;;  %v8824_v52 = vpack.c.bf16 %v7090_v17, %v7089_v12 }
 0x624   : > { %6460 = vrot.lane.b32.xlu1 %v5602_v54, %s8913_s23  ;;  %v4475_v9 = vpop.permute.xlu1 %4474  ;;  %v4477_v14 = vpop.permute.xlu0 %4476  ;;  %v5856_v51 = vsel %vm3712_vm13, %v17093_v37, %v5855_v11  ;;  %v4773_v29 = vsel %vm1874_vm4, %v4741_v36, %v17094_v20  ;;  %v4804_v42 = vsel %vm1940_vm6, %v4772_v34, %v13133_v62  ;;  %v5857_v24 = vrot.slane %v13283_v59, 2 }
 0x625   : > { %v6273_v22 = vrot.slane %v13287_v47, 2  ;;  %v4805_v54 = vsel %vm1940_vm6, %v4773_v29, %v13135_v10  ;;  %v5539_v8 = vmul.f32 %v13230_v44, %v16843_v16  ;;  %v6680_v12 = vsel %vm3712_vm13, %v6678_v40, %v6679_v56  ;;  %8825 = vmatprep.subr.bf16.mxu0 %v8824_v52  ;;  %v7092_v40 = vld [vmem:[%s15853_s9 + $0x28] sm:$0xff] }
 0x626   : > { %5731 = vrot.lane.b32.xlu0 %v5670_v43, %s8902_s15  ;;  %v4836_v20 = vsel %vm2006_vm8, %v4804_v42, %v13185_v46  ;;  %v4837_v36 = vsel %vm2006_vm8, %v4805_v54, %v13187_v58  ;;  %v13317_v29 = vsel %vm3712_vm13, %v5855_v11, %v5857_v24  ;;  %8827 = vmatpush3.bf16.msra.mxu0 %v8824_v52  ;;  %v7094_v54 = vld [vmem:[%s15853_s9 + $0x38] sm:$0xff] }
 0x627   : > { %v13322_v62 = vsel %vm3712_vm13, %v6271_v13, %v6273_v22  ;;  %v4869_v10 = vsel %vm4844_vm14, %v4836_v20, %v13213_v45  ;;  %v4870_v43 = vsel %vm4844_vm14, %v4837_v36, %v4252_v60  ;;  %v7091_v60 = vld [vmem:[%s15853_s9 + $0x20] sm:$0xff]  ;;  %v3155_v59 = vmul.f32 %v17018_v48, %v16993_v21 }
 0x628   : > { %6042 = vrot.lane.b32.xlu1 %v5539_v8, %s8906_s19  ;;  %v13328_v42 = vpop.permute.xlu1 %4059  ;;  %v13330_v46 = vpop.permute.xlu0 %4061  ;;  %v4902_v17 = vsel %vm4877_vm0, %v4869_v10, %v13215_v49  ;;  %v4903_v13 = vsel %vm4877_vm0, %v4870_v43, %v13220_v61  ;;  %v8828_v52 = vpack.c.bf16 %v7092_v40, %v7091_v60 }
 0x629   : > { %v4935_v49 = vsel %vm4910_vm15, %v4902_v17, %v4475_v9  ;;  %v4936_v3 = vsel %vm4910_vm15, %v4903_v13, %v4477_v14  ;;  %v5603_v13 = vmul.f32 %v13234_v7, %v16846_v38 }
 0x62a   : > { %v8640_v58 = vpop.f32.mrb[22].mxu1  ;;  %6335 = vrot.lane.b32.xlu0 %v6272_v18, %s8912_s18  ;;  %v7093_v18 = vld [vmem:[%s15853_s9 + $0x30] sm:$0xff]  ;;  %8829 = vmatprep.subr.bf16.mxu0 %v8828_v52 }
 0x62b   : > { %v5181_v11 = vadd.f32 %v8640_v58, %v13123_v0  ;;  %v5175_v45 = vpop.f32.mrb[23].mxu1  ;;  %v8832_v9 = vpack.c.bf16 %v7094_v54, %v7093_v18  ;;  %8831 = vmatpush3.bf16.msra.mxu0 %v8828_v52  ;;  %v5540_v18 = vmul.f32 %v13234_v7, %v16849_v53 }
 0x62c   : > { %v5176_v61 = vadd.f32 %v13123_v0, %v5175_v45  ;;  %6554 = vrot.lane.b32.xlu1 %v13270_v32, %s8914_s14  ;;  %v4669_v34 = vpop.permute.xlu1 %4668  ;;  %v4671_v37 = vpop.permute.xlu0 %4670  ;;  %v7095_v45 = vld [vmem:[%s15853_s9 + $0x40] sm:$0xff] }
 0x62d   : > { %v5319_v8 = vmax.f32 %v5181_v11, 0.0  ;;  %v4968_v20 = vsel %vm4943_vm3, %v4935_v49, %v4669_v34  ;;  %v4969_v36 = vsel %vm4943_vm3, %v4936_v3, %v4671_v37  ;;  %8833 = vmatprep.subr.bf16.mxu0 %v8832_v9  ;;  %v17098_v37 = vrot.slane %v13234_v7, 1 }
 0x62e   : > { %v5318_v10 = vmax.f32 %v5176_v61, 0.0  ;;  %5917 = vrot.lane.b32.xlu0 %v5856_v51, %s8904_s17  ;;  %8668 = vmatprep.mubr.msk.f32.mxu1 %vm4992_vm5, %v4968_v20  ;;  %v17097_v61 = vld [vmem:[#allocation58_spill] sm:$0xff] }
 0x62f   : > { %v13359_v14 = vrot.slane %v5319_v8, 7  ;;  %8669 = vmatmul.mubr.msk.f32.gmra.mrb[42].mxu1 %vm4992_vm5, %v4969_v36  ;;  %8835 = vmatpush3.bf16.msra.mxu0 %v8832_v9 }
 0x630   : > { %v5385_v43 = vrot.slane %v5318_v10, 7  ;;  %6143 = vrot.lane.b32.xlu1 %v13270_v32, %s8908_s21  ;;  %v4254_v58 = vpop.permute.xlu1 %4253  ;;  %v13364_v17 = vpop.permute.xlu0 %4381  ;;  %8696 = vmatprep.subr.mxu0 %v7095_v45  ;;  %v17099_v10 = vld [vmem:[#allocation132_spill] sm:$0xff] }
 0x632   : > { %v13370_v51 = vsel %vm2869_vm10, %v13217_v25, %v5385_v43  ;;  %v13374_v11 = vsel %vm2869_vm10, %v5385_v43, %v13359_v14  ;;  %6462 = vrot.lane.b32.xlu0 %v5603_v13, %s8913_s23 }
 0x633   : > { %17095 = vst [vmem:[#allocation39_spill] sm:$0xff] %v13370_v51  ;;  %17096 = vst [vmem:[#allocation101_spill] sm:$0xff] %v13374_v11  ;;  %v5673_v60 = vrot.slane %v13370_v51, 1  ;;  %v5635_v38 = vmul.f32 %v13370_v51, %v17077_v35  ;;  %v5573_v49 = vmul.f32 %v13370_v51, %v17085_v33  ;;  %v16187_v3 = vrot.slane %v13374_v11, 1  ;;  %8697 = vmatpush3.msra.mxu0 %v7095_v45 }
 0x634   : > { %6740 = vrot.lane.b32.xlu1 %v6680_v12, %s8915_s16  ;;  %v4256_v40 = vpop.permute.xlu1 %4255  ;;  %v4384_v25 = vpop.permute.xlu0 %4383  ;;  %v5510_v34 = vmul.f32 %v13370_v51, %v17097_v61  ;;  %v13398_v52 = vmul.f32 %v13374_v11, %v17080_v30  ;;  %v13412_v30 = vmul.f32 %v13374_v11, %v17099_v10 }
 0x635   : > { %v13394_v35 = vsel %vm3518_vm11, %v17098_v37, %v5673_v60  ;;  %v6681_v12 = vrot.slane %v5635_v38, 2  ;;  %v6275_v54 = vrot.slane %v5573_v49, 2  ;;  %v13404_v8 = vsel %vm3518_vm11, %v5673_v60, %v16187_v3 }
 0x636   : > { %6044 = vrot.lane.b32.xlu0 %v5540_v18, %s8906_s19  ;;  %v5859_v20 = vrot.slane %v5510_v34, 2  ;;  %v16186_v9 = vrot.slane %v13398_v52, 2  ;;  %v16188_v47 = vrot.slane %v13412_v30, 2  ;;  %v17100_v18 = vld [vmem:[#allocation188_spill] sm:$0xff]  ;;  %v17101_v34 = vld [vmem:[#allocation190_spill] sm:$0xff] }
 0x637   : > { %v6682_v36 = vsel %vm3712_vm13, %v6679_v56, %v6681_v12  ;;  %v13423_v60 = vsel %vm3712_vm13, %v6273_v22, %v6275_v54  ;;  %v13432_v56 = vmul.f32 %v13374_v11, %v17091_v15  ;;  %v3154_v22 = vmul.f32 %v17017_v6, %v16982_v19 }
 0x638   : > { %6145 = vrot.lane.b32.xlu1 %v13394_v35, %s8908_s21  ;;  %v13416_v43 = vpop.permute.xlu1 %3962  ;;  %v13418_v13 = vpop.permute.xlu0 %3964  ;;  %v13428_v1 = vsel %vm3712_vm13, %v5857_v24, %v5859_v20  ;;  %v13437_v38 = vsel %vm3712_vm13, %v6681_v12, %v16186_v9  ;;  %v13450_v45 = vsel %vm3712_vm13, %v5859_v20, %v16188_v47  ;;  %v4743_v37 = vsel %vm1808_vm2, %v3155_v59, %v17101_v34  ;;  %v17102_v9 = vld [vmem:[#allocation208_spill] sm:$0xff]  ;;  %v17103_v20 = vld [vmem:[#allocation117_spill] sm:$0xff] }
 0x639   : > { %v6277_v24 = vrot.slane %v13432_v56, 2  ;;  %v4742_v49 = vsel %vm1808_vm2, %v3154_v22, %v17100_v18  ;;  %v4775_v47 = vsel %vm1874_vm4, %v4743_v37, %v17103_v20 }
 0x63a   : > { %6556 = vrot.lane.b32.xlu0 %v13394_v35, %s8914_s14  ;;  %v4774_v3 = vsel %vm1874_vm4, %v4742_v49, %v17102_v9  ;;  %v4807_v59 = vsel %vm1940_vm6, %v4775_v47, %v13246_v50 }
 0x63b   : > { %v13460_v12 = vsel %vm3712_vm13, %v6275_v54, %v6277_v24  ;;  %v4806_v22 = vsel %vm1940_vm6, %v4774_v3, %v13244_v55  ;;  %v4839_v18 = vsel %vm2006_vm8, %v4807_v59, %v13330_v46  ;;  %v5604_v46 = vmul.f32 %v13370_v51, %v16843_v16 }
 0x63c   : > { %6742 = vrot.lane.b32.xlu1 %v6682_v36, %s8915_s16  ;;  %v4479_v19 = vpop.permute.xlu1 %4478  ;;  %v4481_v21 = vpop.permute.xlu0 %4480  ;;  %v4838_v54 = vsel %vm2006_vm8, %v4806_v22, %v13328_v42  ;;  %v4872_v55 = vsel %vm4844_vm14, %v4839_v18, %v4256_v40 }
 0x63d   : > { %v4871_v34 = vsel %vm4844_vm14, %v4838_v54, %v4254_v58  ;;  %v4905_v40 = vsel %vm4877_vm0, %v4872_v55, %v4384_v25 }
 0x63e   : > { %v8643_v36 = vpop.f32.mrb[24].mxu1  ;;  %5733 = vrot.lane.b32.xlu0 %v13270_v32, %s8902_s15  ;;  %v4904_v58 = vsel %vm4877_vm0, %v4871_v34, %v13364_v17  ;;  %v4938_v20 = vsel %vm4910_vm15, %v4905_v40, %v4481_v21  ;;  %v17106_v34 = vld [vmem:[#allocation142_spill] sm:$0xff] }
 0x63f   : > { %v5191_v9 = vadd.f32 %v8643_v36, %v13123_v0  ;;  %v5185_v49 = vpop.f32.mrb[25].mxu1 }
 0x640   : > { %v5186_v3 = vadd.f32 %v13123_v0, %v5185_v49  ;;  %5919 = vrot.lane.b32.xlu1 %v13317_v29, %s8904_s17  ;;  %v13482_v50 = vpop.permute.xlu1 %4063  ;;  %v13484_v32 = vpop.permute.xlu0 %4065  ;;  %v4937_v29 = vsel %vm4910_vm15, %v4904_v58, %v4479_v19  ;;  %v5541_v19 = vmul.f32 %v13370_v51, %v16847_v41 }
 0x641   : > { %v5321_v42 = vmax.f32 %v5191_v9, 0.0 }
 0x642   : > { %v5320_v47 = vmax.f32 %v5186_v3, 0.0  ;;  %6337 = vrot.lane.b32.xlu0 %v13322_v62, %s8912_s18  ;;  %v17107_v3 = vrot.slane %v13374_v11, 1 }
 0x643   : > { %v13493_v37 = vrot.slane %v5321_v42, 7 }
 0x644   : > { %v5389_v22 = vrot.slane %v5320_v47, 7  ;;  %6464 = vrot.lane.b32.xlu1 %v5604_v46, %s8913_s23  ;;  %v4673_v59 = vpop.permute.xlu1 %4672  ;;  %v4675_v36 = vpop.permute.xlu0 %4674 }
 0x645   : > { %v4970_v62 = vsel %vm4943_vm3, %v4937_v29, %v4673_v59  ;;  %v4971_v54 = vsel %vm4943_vm3, %v4938_v20, %v4675_v36  ;;  %v17108_v29 = vrot.slane %v13398_v52, 2  ;;  %v17109_v59 = vld [vmem:[#allocation143_spill] sm:$0xff]  ;;  %v17110_v52 = vrot.slane %v13412_v30, 2 }
 0x646   : > { %v13502_v17 = vsel %vm2869_vm10, %v13359_v14, %v5389_v22  ;;  %v13506_v25 = vsel %vm2869_vm10, %v5389_v22, %v13493_v37  ;;  %5735 = vrot.lane.b32.xlu0 %v13394_v35, %s8902_s15  ;;  %8671 = vmatprep.mubr.msk.f32.mxu1 %vm4992_vm5, %v4970_v62 }
 0x647   : > { %17104 = vst [vmem:[#allocation157_spill] sm:$0xff] %v13502_v17  ;;  %17105 = vst [vmem:[#allocation84_spill] sm:$0xff] %v13506_v25  ;;  %8672 = vmatmul.mubr.msk.f32.gmra.mrb[44].mxu1 %vm4992_vm5, %v4971_v54  ;;  %v5677_v21 = vrot.slane %v13502_v17, 1  ;;  %v5637_v14 = vmul.f32 %v13502_v17, %v17085_v33  ;;  %v5575_v49 = vmul.f32 %v13502_v17, %v17097_v61  ;;  %v16191_v35 = vrot.slane %v13506_v25, 1 }
 0x648   : > { %6046 = vrot.lane.b32.xlu1 %v5541_v19, %s8906_s19  ;;  %v4258_v18 = vpop.permute.xlu1 %4257  ;;  %v4386_v9 = vpop.permute.xlu0 %4385  ;;  %v5512_v55 = vmul.f32 %v13502_v17, %v17106_v34  ;;  %v13530_v33 = vmul.f32 %v13506_v25, %v17091_v15  ;;  %v13545_v15 = vmul.f32 %v13506_v25, %v17109_v59  ;;  %v13561_v19 = vmul.f32 %v13506_v25, %v17099_v10 }
 0x649   : > { %v13526_v42 = vsel %vm3518_vm11, %v17107_v3, %v5677_v21  ;;  %v6685_v47 = vrot.slane %v5637_v14, 2  ;;  %v6279_v46 = vrot.slane %v5575_v49, 2  ;;  %v13537_v58 = vsel %vm3518_vm11, %v5677_v21, %v16191_v35  ;;  %v17112_v35 = vld [vmem:[#allocation139_spill] sm:$0xff] }
 0x64a   : > { %6339 = vrot.lane.b32.xlu0 %v13423_v60, %s8912_s18  ;;  %v5863_v40 = vrot.slane %v5512_v55, 2  ;;  %v16190_v22 = vrot.slane %v13530_v33, 2  ;;  %v16189_v14 = vrot.slane %v13545_v15, 2  ;;  %v16193_v56 = vrot.slane %v13561_v19, 2 }
 0x64b   : > { %v6686_v20 = vsel %vm3712_vm13, %v17108_v29, %v6685_v47  ;;  %v13552_v62 = vsel %vm3712_vm13, %v6277_v24, %v6279_v46  ;;  %v5605_v55 = vmul.f32 %v13374_v11, %v16849_v53  ;;  %v3156_v3 = vmul.f32 %v17034_v2, %v17010_v39  ;;  %v17111_v29 = vld [vmem:[#allocation189_spill] sm:$0xff] }
 0x64c   : > { %6558 = vrot.lane.b32.xlu1 %v13404_v8, %s8914_s14  ;;  %v4260_v60 = vpop.permute.xlu1 %4259  ;;  %v4388_v36 = vpop.permute.xlu0 %4387  ;;  %v13557_v54 = vsel %vm3712_vm13, %v17110_v52, %v5863_v40  ;;  %v13566_v21 = vsel %vm3712_vm13, %v6685_v47, %v16190_v22  ;;  %v13575_v30 = vsel %vm3712_vm13, %v5863_v40, %v16189_v14  ;;  %v3157_v47 = vmul.f32 %v17035_v26, %v17011_v27 }
 0x64d   : > { %v4744_v52 = vsel %vm1808_vm2, %v3156_v3, %v17111_v29  ;;  %v17114_v3 = vld [vmem:[#allocation212_spill] sm:$0xff] }
 0x64e   : > { %5921 = vrot.lane.b32.xlu0 %v13428_v1, %s8904_s17  ;;  %v13588_v1 = vsel %vm3712_vm13, %v6279_v46, %v16193_v56  ;;  %v4745_v48 = vsel %vm1808_vm2, %v3157_v47, %v17112_v35  ;;  %v17113_v46 = vld [vmem:[#allocation210_spill] sm:$0xff] }
 0x64f   : > { %v4776_v56 = vsel %vm1874_vm4, %v4744_v52, %v17113_v46 }
 0x650   : > { %6147 = vrot.lane.b32.xlu1 %v13404_v8, %s8908_s21  ;;  %v13579_v24 = vpop.permute.xlu1 %3966  ;;  %v13581_v49 = vpop.permute.xlu0 %3968  ;;  %v4808_v29 = vsel %vm1940_vm6, %v4776_v56, %v13416_v43 }
 0x652   : > { %v8646_v40 = vpop.f32.mrb[26].mxu1  ;;  %6466 = vrot.lane.b32.xlu0 %v5605_v55, %s8913_s23  ;;  %v5542_v55 = vmul.f32 %v13374_v11, %v16853_v63 }
 0x653   : > { %v5201_v14 = vadd.f32 %v8646_v40, %v13123_v0  ;;  %v5195_v22 = vpop.f32.mrb[27].mxu1  ;;  %v4777_v40 = vsel %vm1874_vm4, %v4745_v48, %v17114_v3 }
 0x654   : > { %v5196_v39 = vadd.f32 %v13123_v0, %v5195_v22  ;;  %6744 = vrot.lane.b32.xlu1 %v13437_v38, %s8915_s16  ;;  %v4483_v27 = vpop.permute.xlu1 %4482  ;;  %v4485_v26 = vpop.permute.xlu0 %4484  ;;  %v4809_v47 = vsel %vm1940_vm6, %v4777_v40, %v13418_v13  ;;  %v4840_v22 = vsel %vm2006_vm8, %v4808_v29, %v13482_v50  ;;  %v3158_v50 = vmul.f32 %v17049_v28, %v17028_v5 }
 0x655   : > { %v5323_v35 = vmax.f32 %v5201_v14, 0.0  ;;  %v4841_v38 = vsel %vm2006_vm8, %v4809_v47, %v13484_v32  ;;  %v4873_v46 = vsel %vm4844_vm14, %v4840_v22, %v4258_v18 }
 0x656   : > { %v5322_v52 = vmax.f32 %v5196_v39, 0.0  ;;  %6048 = vrot.lane.b32.xlu0 %v5542_v55, %s8906_s19  ;;  %v4874_v48 = vsel %vm4844_vm14, %v4841_v38, %v4260_v60  ;;  %v4906_v56 = vsel %vm4877_vm0, %v4873_v46, %v4386_v9 }
 0x657   : > { %v13619_v2 = vrot.slane %v5323_v35, 7  ;;  %v4907_v60 = vsel %vm4877_vm0, %v4874_v48, %v4388_v36  ;;  %v4939_v39 = vsel %vm4910_vm15, %v4906_v56, %v4483_v27  ;;  %v17117_v35 = vld [vmem:[#allocation144_spill] sm:$0xff]  ;;  %v17119_v48 = vrot.slane %v13530_v33, 2 }
 0x658   : > { %v5393_v43 = vrot.slane %v5322_v52, 7  ;;  %6149 = vrot.lane.b32.xlu1 %v13526_v42, %s8908_s21  ;;  %v4068_v13 = vpop.permute.xlu1 %4067  ;;  %v13624_v14 = vpop.permute.xlu0 %4069  ;;  %v4940_v9 = vsel %vm4910_vm15, %v4907_v60, %v4485_v26  ;;  %v17122_v33 = vrot.slane %v13561_v19, 2 }
 0x65a   : > { %v13631_v32 = vsel %vm2869_vm10, %v13493_v37, %v5393_v43  ;;  %v13635_v18 = vsel %vm2869_vm10, %v5393_v43, %v13619_v2  ;;  %6560 = vrot.lane.b32.xlu0 %v13526_v42, %s8914_s14 }
 0x65b   : > { %17115 = vst [vmem:[#allocation166_spill] sm:$0xff] %v13631_v32  ;;  %17116 = vst [vmem:[#allocation193_spill] sm:$0xff] %v13635_v18  ;;  %v5681_v55 = vrot.slane %v13631_v32, 1  ;;  %v5639_v5 = vmul.f32 %v13631_v32, %v17097_v61  ;;  %v5577_v40 = vmul.f32 %v13631_v32, %v17106_v34  ;;  %v5683_v29 = vrot.slane %v13635_v18, 1 }
 0x65c   : > { %6746 = vrot.lane.b32.xlu1 %v6686_v20, %s8915_s16  ;;  %v4677_v37 = vpop.permute.xlu1 %4676  ;;  %v4679_v3 = vpop.permute.xlu0 %4678  ;;  %v5514_v36 = vmul.f32 %v13631_v32, %v17117_v35  ;;  %v17118_v61 = vrot.slane %v13506_v25, 1  ;;  %v13668_v46 = vmul.f32 %v13635_v18, %v17099_v10  ;;  %v13682_v60 = vmul.f32 %v13635_v18, %v17109_v59 }
 0x65d   : > { %v4972_v27 = vsel %vm4943_vm3, %v4939_v39, %v4677_v37  ;;  %v4973_v47 = vsel %vm4943_vm3, %v4940_v9, %v4679_v3  ;;  %v6689_v20 = vrot.slane %v5639_v5, 2  ;;  %v6283_v22 = vrot.slane %v5577_v40, 2  ;;  %v17121_v39 = vld [vmem:[#allocation191_spill] sm:$0xff] }
 0x65e   : > { %v13656_v26 = vsel %vm3518_vm11, %v17118_v61, %v5681_v55  ;;  %5737 = vrot.lane.b32.xlu0 %v13404_v8, %s8902_s15  ;;  %8674 = vmatprep.mubr.msk.f32.mxu1 %vm4992_vm5, %v4972_v27  ;;  %v13664_v52 = vsel %vm3518_vm11, %v5681_v55, %v5683_v29  ;;  %v5867_v38 = vrot.slane %v5514_v36, 2  ;;  %v17120_v8 = vld [vmem:[#allocation145_spill] sm:$0xff]  ;;  %v4746_v55 = vsel %vm1808_vm2, %v3158_v50, %v17121_v39  ;;  %v17124_v36 = vld [vmem:[#allocation211_spill] sm:$0xff] }
 0x65f   : > { %8675 = vmatmul.mubr.msk.f32.gmra.mrb[46].mxu1 %vm4992_vm5, %v4973_v47  ;;  %v13674_v43 = vsel %vm3712_vm13, %v17119_v48, %v6689_v20  ;;  %v13678_v56 = vmul.f32 %v13635_v18, %v17120_v8  ;;  %v13691_v9 = vsel %vm3712_vm13, %v17122_v33, %v6283_v22  ;;  %v17123_v37 = vrot.slane %v13545_v15, 2 }
 0x660   : > { %5923 = vrot.lane.b32.xlu1 %v13450_v45, %s8904_s17  ;;  %v4262_v10 = vpop.permute.xlu1 %4261  ;;  %v4390_v5 = vpop.permute.xlu0 %4389  ;;  %v6691_v40 = vrot.slane %v13668_v46, 2  ;;  %v4778_v50 = vsel %vm1874_vm4, %v4746_v55, %v17124_v36  ;;  %v6285_v45 = vrot.slane %v13682_v60, 2  ;;  %v5606_v15 = vmul.f32 %v13502_v17, %v16847_v41 }
 0x661   : > { %v13696_v3 = vsel %vm3712_vm13, %v17123_v37, %v5867_v38  ;;  %v5869_v27 = vrot.slane %v13678_v56, 2  ;;  %v4810_v19 = vsel %vm1940_vm6, %v4778_v50, %v13579_v24 }
 0x662   : > { %6341 = vrot.lane.b32.xlu0 %v13460_v12, %s8912_s18  ;;  %v13712_v47 = vsel %vm3712_vm13, %v6689_v20, %v6691_v40  ;;  %v4842_v61 = vsel %vm2006_vm8, %v4810_v19, %v4068_v13  ;;  %v13723_v24 = vsel %vm3712_vm13, %v6283_v22, %v6285_v45  ;;  %v5543_v13 = vmul.f32 %v13502_v17, %v16850_v31 }
 0x663   : > { %v13718_v48 = vsel %vm3712_vm13, %v5867_v38, %v5869_v27  ;;  %v4875_v12 = vsel %vm4844_vm14, %v4842_v61, %v4262_v10  ;;  %v3159_v22 = vmul.f32 %v17050_v57, %v17030_v23  ;;  %v17126_v61 = vld [vmem:[#allocation192_spill] sm:$0xff] }
 0x664   : > { %6468 = vrot.lane.b32.xlu1 %v5606_v15, %s8913_s23  ;;  %v4264_v39 = vpop.permute.xlu1 %4263  ;;  %v4487_v55 = vpop.permute.xlu0 %4486  ;;  %v4908_v38 = vsel %vm4877_vm0, %v4875_v12, %v4390_v5  ;;  %v17127_v23 = vld [vmem:[#allocation100_spill] sm:$0xff] }
 0x665   : > { %v4941_v10 = vsel %vm4910_vm15, %v4908_v38, %v4487_v55  ;;  %v4747_v5 = vsel %vm1808_vm2, %v3159_v22, %v17126_v61 }
 0x666   : > { %v8649_v20 = vpop.f32.mrb[28].mxu1  ;;  %5739 = vrot.lane.b32.xlu0 %v13526_v42, %s8902_s15  ;;  %v4779_v55 = vsel %vm1874_vm4, %v4747_v5, %v17127_v23 }
 0x667   : > { %v5211_v33 = vadd.f32 %v8649_v20, %v13123_v0  ;;  %v5205_v37 = vpop.f32.mrb[29].mxu1 }
 0x668   : > { %v5206_v36 = vadd.f32 %v13123_v0, %v5205_v37  ;;  %6050 = vrot.lane.b32.xlu1 %v5543_v13, %s8906_s19  ;;  %v13738_v50 = vpop.permute.xlu1 %4391  ;;  %v4681_v42 = vpop.permute.xlu0 %4680  ;;  %v4811_v13 = vsel %vm1940_vm6, %v4779_v55, %v13581_v49 }
 0x669   : > { %17125 = vst [vmem:[#allocation32_spill] sm:$0xff] %v13738_v50  ;;  %v5325_v19 = vmax.f32 %v5211_v33, 0.0  ;;  %v4974_v15 = vsel %vm4943_vm3, %v4941_v10, %v4681_v42  ;;  %v4843_v37 = vsel %vm2006_vm8, %v4811_v13, %v13624_v14 }
 0x66a   : > { %v5324_v12 = vmax.f32 %v5206_v36, 0.0  ;;  %6343 = vrot.lane.b32.xlu0 %v13552_v62, %s8912_s18  ;;  %8677 = vmatprep.mubr.msk.f32.mxu1 %vm4992_vm5, %v4974_v15  ;;  %v4876_v62 = vsel %vm4844_vm14, %v4843_v37, %v4264_v39  ;;  %v5607_v36 = vmul.f32 %v13506_v25, %v16853_v63  ;;  %v17132_v15 = vld [vmem:[#allocation146_spill] sm:$0xff] }
 0x66b   : > { %v5399_v20 = vrot.slane %v5325_v19, 7  ;;  %v4909_v49 = vsel %vm4877_vm0, %v4876_v62, %v13738_v50  ;;  %v17133_v62 = vld [vmem:[#allocation147_spill] sm:$0xff]  ;;  %v17138_v50 = vld [vmem:[#allocation149_spill] sm:$0xff] }
 0x66c   : > { %v5397_v38 = vrot.slane %v5324_v12, 7  ;;  %6562 = vrot.lane.b32.xlu1 %v13537_v58, %s8914_s14  ;;  %v13752_v33 = vpop.permute.xlu1 %4488 }
 0x66d   : > { %17128 = vst [vmem:[#allocation102_spill] sm:$0xff] %v13752_v33 }
 0x66e   : > { %v13759_v22 = vsel %vm2869_vm10, %v13619_v2, %v5397_v38  ;;  %v13762_v10 = vsel %vm2869_vm10, %v5397_v38, %v5399_v20  ;;  %5925 = vrot.lane.b32.xlu0 %v13557_v54, %s8904_s17  ;;  %v4942_v2 = vsel %vm4910_vm15, %v4909_v49, %v13752_v33 }
 0x66f   : > { %17129 = vst [vmem:[#allocation107_spill] sm:$0xff] %v13759_v22  ;;  %17130 = vst [vmem:[#allocation161_spill] sm:$0xff] %v13762_v10  ;;  %v5685_v14 = vrot.slane %v13759_v22, 1  ;;  %v5641_v39 = vmul.f32 %v13759_v22, %v17106_v34  ;;  %v5579_v54 = vmul.f32 %v13759_v22, %v17117_v35  ;;  %v5687_v19 = vrot.slane %v13762_v10, 1 }
 0x670   : > { %6151 = vrot.lane.b32.xlu1 %v13537_v58, %s8908_s21  ;;  %v13777_v42 = vpop.permute.xlu1 %4682  ;;  %v5516_v61 = vmul.f32 %v13759_v22, %v17132_v15  ;;  %v5642_v23 = vmul.f32 %v13762_v10, %v17109_v59  ;;  %v5517_v49 = vmul.f32 %v13762_v10, %v17133_v62  ;;  %v5580_v59 = vmul.f32 %v13762_v10, %v17120_v8 }
 0x671   : > { %17131 = vst [vmem:[#allocation25_spill] sm:$0xff] %v13777_v42  ;;  %v4975_v5 = vsel %vm4943_vm3, %v4942_v2, %v13777_v42  ;;  %v13789_v34 = vsel %vm3518_vm11, %v5683_v29, %v5685_v14  ;;  %v6693_v12 = vrot.slane %v5641_v39, 2  ;;  %v6287_v55 = vrot.slane %v5579_v54, 2 }
 0x672   : > { %6470 = vrot.lane.b32.xlu0 %v5607_v36, %s8913_s23  ;;  %8678 = vmatmul.mubr.msk.f32.gmra.mrb[48].mxu1 %vm4992_vm5, %v4975_v5  ;;  %v13796_v13 = vsel %vm3518_vm11, %v5685_v14, %v5687_v19  ;;  %v5871_v38 = vrot.slane %v5516_v61, 2  ;;  %v6695_v29 = vrot.slane %v5642_v23, 2  ;;  %v5544_v36 = vmul.f32 %v13506_v25, %v16856_v4 }
 0x673   : > { %v13801_v37 = vsel %vm3712_vm13, %v6691_v40, %v6693_v12  ;;  %v13814_v46 = vsel %vm3712_vm13, %v6285_v45, %v6287_v55  ;;  %v5873_v39 = vrot.slane %v5517_v49, 2  ;;  %v6289_v2 = vrot.slane %v5580_v59, 2 }
 0x674   : > { %6748 = vrot.lane.b32.xlu1 %v13566_v21, %s8915_s16  ;;  %v13819_v40 = vsel %vm3712_vm13, %v5869_v27, %v5871_v38  ;;  %v13822_v14 = vsel %vm3712_vm13, %v6693_v12, %v6695_v29 }
 0x675   : > { %v13826_v21 = vsel %vm3712_vm13, %v5871_v38, %v5873_v39  ;;  %v13829_v60 = vsel %vm3712_vm13, %v6287_v55, %v6289_v2 }
 0x676   : > { %6052 = vrot.lane.b32.xlu0 %v5544_v36, %s8906_s19 }
 0x678   : > { %6153 = vrot.lane.b32.xlu1 %v13656_v26, %s8908_s21 }
 0x67a   : > { %v8652_v56 = vpop.f32.mrb[30].mxu1  ;;  %6564 = vrot.lane.b32.xlu0 %v13656_v26, %s8914_s14 }
 0x67b   : > { %v5221_v27 = vadd.f32 %v8652_v56, %v13123_v0  ;;  %v5215_v45 = vpop.f32.mrb[31].mxu1  ;;  %v17136_v56 = vld [vmem:[#allocation148_spill] sm:$0xff] }
 0x67c   : > { %v5216_v54 = vadd.f32 %v13123_v0, %v5215_v45  ;;  %6750 = vrot.lane.b32.xlu1 %v13674_v43, %s8915_s16  ;;  %v5608_v43 = vmul.f32 %v13631_v32, %v16850_v31 }
 0x67d   : > { %v5327_v61 = vmax.f32 %v5221_v27, 0.0  ;;  %v17137_v27 = vld [vmem:[#allocation135_spill] sm:$0xff] }
 0x67e   : > { %v5326_v5 = vmax.f32 %v5216_v54, 0.0  ;;  %5741 = vrot.lane.b32.xlu0 %v13537_v58, %s8902_s15  ;;  %v5545_v45 = vmul.f32 %v13631_v32, %v17137_v27 }
 0x67f   : > { %v5403_v12 = vrot.slane %v5327_v61, 7 }
 0x680   : > { %v5401_v23 = vrot.slane %v5326_v5, 7  ;;  %5927 = vrot.lane.b32.xlu1 %v13575_v30, %s8904_s17  ;;  %v13858_v30 = vpop.permute.xlu0 %5727 }
 0x682   : > { %v13844_v55 = vsel %vm2869_vm10, %v5399_v20, %v5401_v23  ;;  %v13847_v38 = vsel %vm2869_vm10, %v5401_v23, %v5403_v12  ;;  %v13849_v49 = vpop.permute.xlu1 %5913  ;;  %6345 = vrot.lane.b32.xlu0 %v13588_v1, %s8912_s18 }
 0x683   : > { %17134 = vst [vmem:[#allocation24_spill] sm:$0xff] %v13844_v55  ;;  %17135 = vst [vmem:[#allocation175_spill] sm:$0xff] %v13847_v38  ;;  %v5689_v58 = vrot.slane %v13844_v55, 1  ;;  %v5643_v59 = vmul.f32 %v13844_v55, %v17117_v35  ;;  %v5581_v20 = vmul.f32 %v13844_v55, %v17132_v15  ;;  %v5691_v36 = vrot.slane %v13847_v38, 1 }
 0x684   : > { %6472 = vrot.lane.b32.xlu1 %v5608_v43, %s8913_s23  ;;  %v5518_v1 = vmul.f32 %v13844_v55, %v17136_v56  ;;  %v5644_v42 = vmul.f32 %v13847_v38, %v17120_v8  ;;  %v13894_v8 = vpop.permute.xlu0 %6038 }
 0x685   : > { %v13869_v54 = vsel %vm3518_vm11, %v5687_v19, %v5689_v58  ;;  %v6697_v61 = vrot.slane %v5643_v59, 2  ;;  %v6291_v5 = vrot.slane %v5581_v20, 2  ;;  %v13876_v23 = vsel %vm3518_vm11, %v5689_v58, %v5691_v36 }
 0x686   : > { %v13871_v35 = vpop.permute.xlu1 %6040  ;;  %5743 = vrot.lane.b32.xlu0 %v13656_v26, %s8902_s15  ;;  %v5875_v43 = vrot.slane %v5518_v1, 2  ;;  %v5519_v19 = vmul.f32 %v13847_v38, %v17138_v50  ;;  %v6699_v58 = vrot.slane %v5644_v42, 2  ;;  %v5582_v20 = vmul.f32 %v13847_v38, %v17133_v62 }
 0x687   : > { %v13881_v33 = vsel %vm3712_vm13, %v6695_v29, %v6697_v61  ;;  %v13887_v59 = vsel %vm3712_vm13, %v6289_v2, %v6291_v5 }
 0x688   : > { %6054 = vrot.lane.b32.xlu1 %v5545_v45, %s8906_s19  ;;  %v13890_v26 = vsel %vm3712_vm13, %v5873_v39, %v5875_v43  ;;  %v5877_v1 = vrot.slane %v5519_v19, 2  ;;  %v13901_v45 = vsel %vm3712_vm13, %v6697_v61, %v6699_v58  ;;  %v6293_v2 = vrot.slane %v5582_v20, 2  ;;  %v6140_v20 = vpop.permute.xlu0 %6139 }
 0x68a   : > { %v13896_v29 = vpop.permute.xlu1 %5729  ;;  %6347 = vrot.lane.b32.xlu0 %v13691_v9, %s8912_s18  ;;  %v13904_v39 = vsel %vm3712_vm13, %v5875_v43, %v5877_v1  ;;  %v13910_v19 = vsel %vm3712_vm13, %v6291_v5, %v6293_v2 }
 0x68b   : > { %v8655_v57 = vpop.f32.mrb[32].mxu1 }
 0x68c   : > { %v5231_v42 = vadd.f32 %v8655_v57, %v13123_v0  ;;  %v5225_v28 = vpop.f32.mrb[33].mxu1  ;;  %6566 = vrot.lane.b32.xlu1 %v13664_v52, %s8914_s14  ;;  %v5609_v57 = vmul.f32 %v13635_v18, %v16856_v4 }
 0x68d   : > { %v5226_v6 = vadd.f32 %v13123_v0, %v5225_v28 }
 0x68e   : > { %v5329_v9 = vmax.f32 %v5231_v42, 0.0  ;;  %v6334_v32 = vpop.permute.xlu1 %6333  ;;  %5929 = vrot.lane.b32.xlu0 %v13696_v3, %s8904_s17  ;;  %v17141_v3 = vld [vmem:[#allocation16_spill] sm:$0xff] }
 0x68f   : > { %v5328_v61 = vmax.f32 %v5226_v6, 0.0  ;;  %v5546_v42 = vmul.f32 %v13635_v18, %v17141_v3 }
 0x690   : > { %v13915_v43 = vrot.slane %v5329_v9, 7  ;;  %6155 = vrot.lane.b32.xlu1 %v13664_v52, %s8908_s21 }
 0x691   : > { %v5405_v25 = vrot.slane %v5328_v61, 7 }
 0x692   : > { %v13921_v5 = vpop.permute.xlu1 %5915  ;;  %6474 = vrot.lane.b32.xlu0 %v5609_v57, %s8913_s23 }
 0x693   : > { %v13925_v28 = vsel %vm2869_vm10, %v5403_v12, %v5405_v25  ;;  %v13929_v6 = vsel %vm2869_vm10, %v5405_v25, %v13915_v43  ;;  %v17142_v25 = vld [vmem:[#allocation150_spill] sm:$0xff] }
 0x694   : > { %17139 = vst [vmem:[#allocation33_spill] sm:$0xff] %v13925_v28  ;;  %17140 = vst [vmem:[#allocation34_spill] sm:$0xff] %v13929_v6  ;;  %v13931_v0 = vpop.permute.xlu0 %6141  ;;  %6752 = vrot.lane.b32.xlu1 %v13712_v47, %s8915_s16  ;;  %v5693_v9 = vrot.slane %v13925_v28, 1  ;;  %v5645_v61 = vmul.f32 %v13925_v28, %v17132_v15  ;;  %v5583_v12 = vmul.f32 %v13925_v28, %v17136_v56  ;;  %v16211_v57 = vrot.slane %v13929_v6, 1 }
 0x695   : > { %v5520_v17 = vmul.f32 %v13925_v28, %v17142_v25  ;;  %v13951_v4 = vmul.f32 %v13929_v6, %v17133_v62 }
 0x696   : > { %v6461_v11 = vpop.permute.xlu1 %6460  ;;  %6056 = vrot.lane.b32.xlu0 %v5546_v42, %s8906_s19  ;;  %v13947_v47 = vsel %vm3518_vm11, %v5691_v36, %v5693_v9  ;;  %v6701_v18 = vrot.slane %v5645_v61, 2  ;;  %v6295_v15 = vrot.slane %v5583_v12, 2  ;;  %v13956_v51 = vsel %vm3518_vm11, %v5693_v9, %v16211_v57  ;;  %v17144_v61 = vld [vmem:[#allocation151_spill] sm:$0xff] }
 0x697   : > { %17143 = vst [vmem:[#allocation42_spill] sm:$0xff] %v13956_v51  ;;  %v5879_v31 = vrot.slane %v5520_v17, 2  ;;  %v16213_v42 = vrot.slane %v13951_v4, 2  ;;  %v13968_v62 = vmul.f32 %v13929_v6, %v17144_v61  ;;  %v13978_v17 = vmul.f32 %v13929_v6, %v17138_v50 }
 0x698   : > { %v13958_v7 = vpop.permute.xlu0 %5731  ;;  %6157 = vrot.lane.b32.xlu1 %v13789_v34, %s8908_s21  ;;  %v13963_v36 = vsel %vm3712_vm13, %v6699_v58, %v6701_v18  ;;  %v13971_v12 = vsel %vm3712_vm13, %v6293_v2, %v6295_v15 }
 0x699   : > { %17145 = vst [vmem:[#allocation108_spill] sm:$0xff] %v13971_v12  ;;  %v13974_v9 = vsel %vm3712_vm13, %v5877_v1, %v5879_v31  ;;  %v13987_v58 = vsel %vm3712_vm13, %v6701_v18, %v16213_v42  ;;  %v16214_v2 = vrot.slane %v13968_v62, 2  ;;  %v16215_v51 = vrot.slane %v13978_v17, 2 }
 0x69a   : > { %17146 = vst [vmem:[#allocation103_spill] sm:$0xff] %v13974_v9  ;;  %v13980_v57 = vpop.permute.xlu1 %6042  ;;  %6568 = vrot.lane.b32.xlu0 %v13789_v34, %s8914_s14  ;;  %17147 = vst [vmem:[#allocation169_spill] sm:$0xff] %v13987_v58 }
 0x69b   : > { %v13996_v9 = vsel %vm3712_vm13, %v5879_v31, %v16214_v2  ;;  %v14001_v12 = vsel %vm3712_vm13, %v6295_v15, %v16215_v51  ;;  %v5610_v15 = vmul.f32 %v13759_v22, %v17137_v27 }
 0x69c   : > { %v6336_v1 = vpop.permute.xlu0 %6335  ;;  %6754 = vrot.lane.b32.xlu1 %v13801_v37, %s8915_s16  ;;  %17148 = vst [vmem:[#allocation194_spill] sm:$0xff] %v13996_v9  ;;  %17149 = vst [vmem:[#allocation97_spill] sm:$0xff] %v14001_v12  ;;  %v17150_v37 = vld [vmem:[#allocation65_spill] sm:$0xff] }
 0x69d   : > { %v6895_v58 = vsel %vm1940_vm6, %v17150_v37, %v13894_v8 }
 0x69e   : > { %v6555_v18 = vpop.permute.xlu1 %6554  ;;  %5745 = vrot.lane.b32.xlu0 %v13664_v52, %s8902_s15  ;;  %v6927_v2 = vsel %vm2006_vm8, %v6895_v58, %v6140_v20 }
 0x69f   : > { %v6959_v51 = vsel %vm4844_vm14, %v6927_v2, %v6334_v32 }
 0x6a0   : > { %5931 = vrot.lane.b32.xlu1 %v13718_v48, %s8904_s17  ;;  %v14007_v42 = vpop.permute.xlu0 %5917  ;;  %v14023_v48 = vld [vmem:[%s15852_s8] ss:$0 sm:$0xff]  ;;  %v6991_v20 = vsel %vm4877_vm0, %v6959_v51, %v6461_v11 }
 0x6a1   : > { %v7023_v32 = vsel %vm4910_vm15, %v6991_v20, %v6555_v18 }
 0x6a2   : > { %v14012_v31 = vpop.permute.xlu1 %6143  ;;  %6349 = vrot.lane.b32.xlu0 %v13723_v24, %s8912_s18  ;;  %v17151_v24 = vld [vmem:[#allocation119_spill] sm:$0xff] }
 0x6a3   : > { %v8658_v52 = vpop.f32.mrb[34].mxu1  ;;  %v6833_v27 = vsel %vm1808_vm2, %v17151_v24, %v13858_v30 }
 0x6a4   : > { %v5241_v8 = vadd.f32 %v14023_v48, %v8658_v52  ;;  %v5235_v37 = vpop.f32.mrb[35].mxu1  ;;  %6476 = vrot.lane.b32.xlu1 %v5610_v15, %s8913_s23  ;;  %v6463_v12 = vpop.permute.xlu0 %6462  ;;  %v17152_v52 = vld [vmem:[#allocation17_spill] sm:$0xff]  ;;  %v6864_v30 = vsel %vm1874_vm4, %v6833_v27, %v13849_v49 }
 0x6a5   : > { %v5236_v58 = vadd.f32 %v14023_v48, %v5235_v37  ;;  %v5547_v63 = vmul.f32 %v13759_v22, %v17152_v52  ;;  %v6896_v11 = vsel %vm1940_vm6, %v6864_v30, %v13871_v35  ;;  %v17155_v37 = vld [vmem:[#allocation152_spill] sm:$0xff] }
 0x6a6   : > { %v5331_v2 = vmax.f32 %v5241_v8, 0.0  ;;  %v6741_v9 = vpop.permute.xlu1 %6740  ;;  %5747 = vrot.lane.b32.xlu0 %v13789_v34, %s8902_s15  ;;  %v6928_v18 = vsel %vm2006_vm8, %v6896_v11, %v13931_v0 }
 0x6a7   : > { %v5330_v15 = vmax.f32 %v5236_v58, 0.0  ;;  %v7055_v28 = vsel %vm4943_vm3, %v7023_v32, %v6741_v9  ;;  %v6960_v49 = vsel %vm4844_vm14, %v6928_v18, %v6336_v1  ;;  %v17156_v58 = vrot.slane %v13929_v6, 1 }
 0x6a8   : > { %v14040_v24 = vrot.slane %v5331_v2, 7  ;;  %8698 = vmatprep.mubr.msk.f32.mxu0 %vm4992_vm5, %v7055_v28  ;;  %6058 = vrot.lane.b32.xlu1 %v5547_v63, %s8906_s19  ;;  %v14044_v51 = vpop.permute.xlu0 %6044  ;;  %v6992_v35 = vsel %vm4877_vm0, %v6960_v49, %v6463_v12  ;;  %v17157_v18 = vrot.slane %v13951_v4, 2 }
 0x6a9   : > { %v5409_v34 = vrot.slane %v5330_v15, 7 }
 0x6aa   : > { %v14050_v8 = vpop.permute.xlu1 %6145  ;;  %6351 = vrot.lane.b32.xlu0 %v13814_v46, %s8912_s18 }
 0x6ab   : > { %v14057_v27 = vsel %vm2869_vm10, %v13915_v43, %v5409_v34  ;;  %v14061_v63 = vsel %vm2869_vm10, %v5409_v34, %v14040_v24 }
 0x6ac   : > { %17153 = vst [vmem:[#allocation196_spill] sm:$0xff] %v14057_v27  ;;  %17154 = vst [vmem:[#allocation43_spill] sm:$0xff] %v14061_v63  ;;  %6570 = vrot.lane.b32.xlu1 %v13796_v13, %s8914_s14  ;;  %v6557_v28 = vpop.permute.xlu0 %6556  ;;  %v5697_v0 = vrot.slane %v14057_v27, 1  ;;  %v5647_v46 = vmul.f32 %v14057_v27, %v17136_v56  ;;  %v5585_v43 = vmul.f32 %v14057_v27, %v17142_v25  ;;  %v16222_v1 = vrot.slane %v14061_v63, 1 }
 0x6ad   : > { %v7024_v9 = vsel %vm4910_vm15, %v6992_v35, %v6557_v28  ;;  %v5522_v20 = vmul.f32 %v14057_v27, %v17155_v37  ;;  %v14084_v2 = vmul.f32 %v14061_v63, %v17138_v50  ;;  %v5611_v50 = vmul.f32 %v13762_v10, %v17141_v3  ;;  %v17158_v28 = vld [vmem:[#allocation153_spill] sm:$0xff] }
 0x6ae   : > { %v6743_v12 = vpop.permute.xlu1 %6742  ;;  %5933 = vrot.lane.b32.xlu0 %v13819_v40, %s8904_s17  ;;  %v14080_v32 = vsel %vm3518_vm11, %v17156_v58, %v5697_v0  ;;  %v6705_v56 = vrot.slane %v5647_v46, 2  ;;  %v6299_v30 = vrot.slane %v5585_v43, 2  ;;  %v14090_v11 = vsel %vm3518_vm11, %v5697_v0, %v16222_v1 }
 0x6af   : > { %v7056_v15 = vsel %vm4943_vm3, %v7024_v9, %v6743_v12  ;;  %v5883_v34 = vrot.slane %v5522_v20, 2  ;;  %v16220_v35 = vrot.slane %v14084_v2, 2  ;;  %v14107_v0 = vmul.f32 %v14061_v63, %v17158_v28 }
 0x6b0   : > { %6159 = vrot.lane.b32.xlu1 %v13796_v13, %s8908_s21  ;;  %8699 = vmatmul.mubr.msk.f32.vlgmr.msra.gmra.mrb[46].mxu0 %vm4992_vm5, %v7056_v15  ;;  %v14095_v40 = vpop.permute.xlu0 %5733  ;;  %v14102_v49 = vsel %vm3712_vm13, %v17157_v18, %v6705_v56  ;;  %v17159_v46 = vrot.slane %v13978_v17, 2  ;;  %v17160_v43 = vrot.slane %v13968_v62, 2  ;;  %v14121_v4 = vmul.f32 %v14061_v63, %v17144_v61  ;;  %v17162_v18 = vld [vmem:[#allocation26_spill] sm:$0xff] }
 0x6b1   : > { %v14129_v17 = vsel %vm3712_vm13, %v6705_v56, %v16220_v35  ;;  %v16221_v58 = vrot.slane %v14107_v0, 2 }
 0x6b2   : > { %v14112_v9 = vsel %vm3712_vm13, %v17159_v46, %v6299_v30  ;;  %v14117_v20 = vsel %vm3712_vm13, %v17160_v43, %v5883_v34  ;;  %v14123_v12 = vpop.permute.xlu1 %5919  ;;  %6478 = vrot.lane.b32.xlu0 %v5611_v50, %s8913_s23  ;;  %17161 = vst [vmem:[#allocation61_spill] sm:$0xff] %v14129_v17  ;;  %v16223_v62 = vrot.slane %v14121_v4, 2  ;;  %v5548_v46 = vmul.f32 %v13762_v10, %v17162_v18 }
 0x6b3   : > { %v14140_v50 = vsel %vm3712_vm13, %v5883_v34, %v16221_v58  ;;  %v17165_v58 = vld [vmem:[#allocation160_spill] sm:$0xff] }
 0x6b4   : > { %6756 = vrot.lane.b32.xlu1 %v13822_v14, %s8915_s16  ;;  %v6338_v15 = vpop.permute.xlu0 %6337  ;;  %17163 = vst [vmem:[#allocation105_spill] sm:$0xff] %v14140_v50  ;;  %v14145_v56 = vsel %vm3712_vm13, %v6299_v30, %v16223_v62  ;;  %v5476_v1 = vmul.f32 %v17165_v58, %v16843_v16 }
 0x6b5   : > { %17164 = vst [vmem:[#allocation195_spill] sm:$0xff] %v14145_v56 }
 0x6b6   : > { %v6465_v43 = vpop.permute.xlu1 %6464  ;;  %6060 = vrot.lane.b32.xlu0 %v5548_v46, %s8906_s19  ;;  %v6834_v22 = vsel %vm1808_vm2, %v5476_v1, %v13896_v29 }
 0x6b7   : > { %v6865_v16 = vsel %vm1874_vm4, %v6834_v22, %v13921_v5  ;;  %v5612_v5 = vmul.f32 %v13844_v55, %v17152_v52 }
 0x6b8   : > { %6161 = vrot.lane.b32.xlu1 %v13869_v54, %s8908_s21  ;;  %v14150_v14 = vpop.permute.xlu0 %5735 }
 0x6ba   : > { %v14152_v35 = vpop.permute.xlu1 %6046  ;;  %6572 = vrot.lane.b32.xlu0 %v13869_v54, %s8914_s14 }
 0x6bb   : > { %v8661_v34 = vpop.f32.mrb[36].mxu1 }
 0x6bc   : > { %v5251_v30 = vadd.f32 %v14023_v48, %v8661_v34  ;;  %v5245_v62 = vpop.f32.mrb[37].mxu1  ;;  %6758 = vrot.lane.b32.xlu1 %v13881_v33, %s8915_s16  ;;  %v6340_v46 = vpop.permute.xlu0 %6339  ;;  %v17166_v34 = vld [vmem:[#allocation120_spill] sm:$0xff]  ;;  %v6897_v33 = vsel %vm1940_vm6, %v6865_v16, %v13980_v57  ;;  %v17170_v16 = vld [vmem:[#allocation154_spill] sm:$0xff] }
 0x6bd   : > { %v5246_v10 = vadd.f32 %v14023_v48, %v5245_v62  ;;  %v5477_v50 = vmul.f32 %v17166_v34, %v16849_v53  ;;  %v17169_v62 = vld [vmem:[#allocation27_spill] sm:$0xff] }
 0x6be   : > { %v5333_v56 = vmax.f32 %v5251_v30, 0.0  ;;  %v6559_v3 = vpop.permute.xlu1 %6558  ;;  %5749 = vrot.lane.b32.xlu0 %v13796_v13, %s8902_s15  ;;  %v6929_v13 = vsel %vm2006_vm8, %v6897_v33, %v14012_v31  ;;  %v17171_v33 = vrot.slane %v14061_v63, 1 }
 0x6bf   : > { %v5332_v58 = vmax.f32 %v5246_v10, 0.0  ;;  %v6835_v22 = vsel %vm1808_vm2, %v5477_v50, %v13958_v7  ;;  %v6961_v10 = vsel %vm4844_vm14, %v6929_v13, %v6338_v15  ;;  %v5549_v15 = vmul.f32 %v13844_v55, %v17169_v62 }
 0x6c0   : > { %v14172_v17 = vrot.slane %v5333_v56, 7  ;;  %5935 = vrot.lane.b32.xlu1 %v13826_v21, %s8904_s17  ;;  %v14176_v29 = vpop.permute.xlu0 %5921  ;;  %v6866_v21 = vsel %vm1874_vm4, %v6835_v22, %v14007_v42 }
 0x6c1   : > { %v5413_v1 = vrot.slane %v5332_v58, 7  ;;  %v6898_v31 = vsel %vm1940_vm6, %v6866_v21, %v14044_v51 }
 0x6c2   : > { %v14183_v53 = vpop.permute.xlu1 %6147  ;;  %6353 = vrot.lane.b32.xlu0 %v13829_v60, %s8912_s18 }
 0x6c3   : > { %v14193_v57 = vsel %vm2869_vm10, %v14040_v24, %v5413_v1  ;;  %v14197_v7 = vsel %vm2869_vm10, %v5413_v1, %v14172_v17  ;;  %v6993_v24 = vsel %vm4877_vm0, %v6961_v10, %v6465_v43 }
 0x6c4   : > { %17167 = vst [vmem:[#allocation37_spill] sm:$0xff] %v14193_v57  ;;  %17168 = vst [vmem:[#allocation104_spill] sm:$0xff] %v14197_v7  ;;  %6480 = vrot.lane.b32.xlu1 %v5612_v5, %s8913_s23  ;;  %v6467_v60 = vpop.permute.xlu0 %6466  ;;  %v5701_v50 = vrot.slane %v14193_v57, 1  ;;  %v5649_v42 = vmul.f32 %v14193_v57, %v17142_v25  ;;  %v5587_v56 = vmul.f32 %v14193_v57, %v17155_v37  ;;  %v5703_v30 = vrot.slane %v14197_v7, 1 }
 0x6c5   : > { %v5524_v51 = vmul.f32 %v14193_v57, %v17170_v16  ;;  %v7025_v58 = vsel %vm4910_vm15, %v6993_v24, %v6559_v3  ;;  %v14223_v13 = vmul.f32 %v14197_v7, %v17144_v61  ;;  %v17172_v5 = vrot.slane %v14084_v2, 2 }
 0x6c6   : > { %v6745_v34 = vpop.permute.xlu1 %6744  ;;  %5751 = vrot.lane.b32.xlu0 %v13869_v54, %s8902_s15  ;;  %v14219_v25 = vsel %vm3518_vm11, %v17171_v33, %v5701_v50  ;;  %v6709_v43 = vrot.slane %v5649_v42, 2  ;;  %v6303_v22 = vrot.slane %v5587_v56, 2  ;;  %v14229_v3 = vsel %vm3518_vm11, %v5701_v50, %v5703_v30  ;;  %v17173_v42 = vld [vmem:[#allocation155_spill] sm:$0xff] }
 0x6c7   : > { %v7057_v1 = vsel %vm4943_vm3, %v7025_v58, %v6745_v34  ;;  %v5887_v10 = vrot.slane %v5524_v51, 2  ;;  %v16227_v21 = vrot.slane %v14223_v13, 2  ;;  %v14243_v24 = vmul.f32 %v14197_v7, %v17173_v42 }
 0x6c8   : > { %6062 = vrot.lane.b32.xlu1 %v5549_v15, %s8906_s19  ;;  %8701 = vmatprep.mubr.msk.f32.mxu0 %vm4992_vm5, %v7057_v1  ;;  %v14233_v54 = vpop.permute.xlu0 %6048  ;;  %v14238_v61 = vsel %vm3712_vm13, %v17172_v5, %v6709_v43  ;;  %v17174_v50 = vrot.slane %v14121_v4, 2  ;;  %v17175_v15 = vrot.slane %v14107_v0, 2  ;;  %v14257_v2 = vmul.f32 %v14197_v7, %v17158_v28 }
 0x6c9   : > { %v6930_v58 = vsel %vm2006_vm8, %v6898_v31, %v14050_v8  ;;  %v14268_v4 = vsel %vm3712_vm13, %v6709_v43, %v16227_v21  ;;  %v5889_v0 = vrot.slane %v14243_v24, 2 }
 0x6ca   : > { %v14248_v56 = vsel %vm3712_vm13, %v17174_v50, %v6303_v22  ;;  %v14253_v51 = vsel %vm3712_vm13, %v17175_v15, %v5887_v10  ;;  %v14261_v34 = vpop.permute.xlu1 %6149  ;;  %6355 = vrot.lane.b32.xlu0 %v13887_v59, %s8912_s18  ;;  %v6962_v33 = vsel %vm4844_vm14, %v6930_v58, %v6340_v46  ;;  %v6305_v1 = vrot.slane %v14257_v2, 2 }
 0x6cb   : > { %v6994_v5 = vsel %vm4877_vm0, %v6962_v33, %v6467_v60  ;;  %v14277_v31 = vsel %vm3712_vm13, %v5887_v10, %v5889_v0  ;;  %v5613_v10 = vmul.f32 %v13847_v38, %v17162_v18  ;;  %v17176_v33 = vld [vmem:[#allocation52_spill] sm:$0xff] }
 0x6cc   : > { %6574 = vrot.lane.b32.xlu1 %v13876_v23, %s8914_s14  ;;  %v6561_v8 = vpop.permute.xlu0 %6560  ;;  %v14281_v43 = vsel %vm3712_vm13, %v6303_v22, %v6305_v1 }
 0x6cd   : > { %v7026_v59 = vsel %vm4910_vm15, %v6994_v5, %v6561_v8  ;;  %v5550_v5 = vmul.f32 %v13847_v38, %v17176_v33 }
 0x6ce   : > { %v6747_v50 = vpop.permute.xlu1 %6746  ;;  %5937 = vrot.lane.b32.xlu0 %v13890_v26, %s8904_s17 }
 0x6cf   : > { %v7058_v46 = vsel %vm4943_vm3, %v7026_v59, %v6747_v50 }
 0x6d0   : > { %6163 = vrot.lane.b32.xlu1 %v13876_v23, %s8908_s21  ;;  %8702 = vmatmul.mubr.msk.f32.gmra.mrb[48].mxu0 %vm4992_vm5, %v7058_v46  ;;  %v14289_v60 = vpop.permute.xlu0 %5737 }
 0x6d2   : > { %v14293_v24 = vpop.permute.xlu1 %5923  ;;  %6482 = vrot.lane.b32.xlu0 %v5613_v10, %s8913_s23  ;;  %v8664_v22 = vpop.f32.mrb[38].mxu1  ;;  %v5478_v10 = vmul.f32 %v13230_v44, %v16847_v41 }
 0x6d3   : > { %v5261_v15 = vadd.f32 %v14023_v48, %v8664_v22  ;;  %v5255_v26 = vpop.f32.mrb[39].mxu1 }
 0x6d4   : > { %v5256_v2 = vadd.f32 %v14023_v48, %v5255_v26  ;;  %6760 = vrot.lane.b32.xlu1 %v13901_v45, %s8915_s16  ;;  %v6342_v58 = vpop.permute.xlu0 %6341  ;;  %v6836_v45 = vsel %vm1808_vm2, %v5478_v10, %v14095_v40 }
 0x6d5   : > { %v5335_v8 = vmax.f32 %v5261_v15, 0.0 }
 0x6d6   : > { %v5334_v59 = vmax.f32 %v5256_v2, 0.0  ;;  %v6469_v50 = vpop.permute.xlu1 %6468  ;;  %6064 = vrot.lane.b32.xlu0 %v5550_v5, %s8906_s19 }
 0x6d7   : > { %v14303_v46 = vrot.slane %v5335_v8, 7 }
 0x6d8   : > { %v5417_v22 = vrot.slane %v5334_v59, 7  ;;  %6165 = vrot.lane.b32.xlu1 %v13947_v47, %s8908_s21  ;;  %v14309_v26 = vpop.permute.xlu0 %5739  ;;  %v17179_v59 = vld [vmem:[#allocation121_spill] sm:$0xff] }
 0x6da   : > { %v14315_v15 = vsel %vm2869_vm10, %v14172_v17, %v5417_v22  ;;  %v14319_v2 = vsel %vm2869_vm10, %v5417_v22, %v14303_v46  ;;  %v14321_v5 = vpop.permute.xlu1 %6050  ;;  %6576 = vrot.lane.b32.xlu0 %v13947_v47, %s8914_s14  ;;  %v6867_v22 = vsel %vm1874_vm4, %v6836_v45, %v14123_v12  ;;  %v17181_v45 = vrot.slane %v14223_v13, 2 }
 0x6db   : > { %17177 = vst [vmem:[#allocation110_spill] sm:$0xff] %v14315_v15  ;;  %17178 = vst [vmem:[#allocation81_spill] sm:$0xff] %v14319_v2  ;;  %v5705_v41 = vrot.slane %v14315_v15, 1  ;;  %v5651_v44 = vmul.f32 %v14315_v15, %v17155_v37  ;;  %v5589_v17 = vmul.f32 %v14315_v15, %v17170_v16  ;;  %v16231_v8 = vrot.slane %v14319_v2, 1 }
 0x6dc   : > { %6762 = vrot.lane.b32.xlu1 %v13963_v36, %s8915_s16  ;;  %v6344_v40 = vpop.permute.xlu0 %6343  ;;  %v5526_v10 = vmul.f32 %v14315_v15, %v17179_v59  ;;  %v14351_v12 = vmul.f32 %v14319_v2, %v17158_v28  ;;  %v14377_v13 = vmul.f32 %v14319_v2, %v17173_v42 }
 0x6dd   : > { %v14340_v21 = vsel %vm3518_vm11, %v5703_v30, %v5705_v41  ;;  %v6713_v37 = vrot.slane %v5651_v44, 2  ;;  %v6307_v36 = vrot.slane %v5589_v17, 2  ;;  %v14347_v55 = vsel %vm3518_vm11, %v5705_v41, %v16231_v8 }
 0x6de   : > { %v6563_v38 = vpop.permute.xlu1 %6562  ;;  %5753 = vrot.lane.b32.xlu0 %v13876_v23, %s8902_s15  ;;  %17180 = vst [vmem:[#allocation48_spill] sm:$0xff] %v14347_v55  ;;  %v5891_v18 = vrot.slane %v5526_v10, 2  ;;  %v6899_v30 = vsel %vm1940_vm6, %v6867_v22, %v14152_v35  ;;  %v17182_v23 = vld [vmem:[#allocation122_spill] sm:$0xff]  ;;  %v16234_v35 = vrot.slane %v14351_v12, 2  ;;  %v16235_v55 = vrot.slane %v14377_v13, 2 }
 0x6df   : > { %v14358_v44 = vsel %vm3712_vm13, %v17181_v45, %v6713_v37  ;;  %v14362_v17 = vmul.f32 %v14319_v2, %v17182_v23  ;;  %v14369_v28 = vsel %vm3712_vm13, %v6305_v1, %v6307_v36  ;;  %v6931_v22 = vsel %vm2006_vm8, %v6899_v30, %v14183_v53  ;;  %v17185_v53 = vld [vmem:[#allocation76_spill] sm:$0xff]  ;;  %v17186_v30 = vld [vmem:[#allocation83_spill] sm:$0xff] }
 0x6e0   : > { %5939 = vrot.lane.b32.xlu1 %v13904_v39, %s8904_s17  ;;  %v14366_v41 = vpop.permute.xlu0 %5925  ;;  %v14372_v10 = vsel %vm3712_vm13, %v5889_v0, %v5891_v18  ;;  %v6963_v39 = vsel %vm4844_vm14, %v6931_v22, %v6342_v58  ;;  %v17184_v0 = vld [vmem:[#allocation33_spill] sm:$0xff]  ;;  %v5479_v45 = vmul.f32 %v17186_v30, %v17185_v53 }
 0x6e1   : > { %17183 = vst [vmem:[#allocation35_spill] sm:$0xff] %v14372_v10  ;;  %v5614_v1 = vmul.f32 %v17184_v0, %v17169_v62  ;;  %v14392_v10 = vsel %vm3712_vm13, %v6713_v37, %v16234_v35  ;;  %v17187_v58 = vrot.slane %v14362_v17, 2  ;;  %v14406_v62 = vsel %vm3712_vm13, %v6307_v36, %v16235_v55 }
 0x6e2   : > { %v14383_v8 = vpop.permute.xlu1 %6151  ;;  %6357 = vrot.lane.b32.xlu0 %v13910_v19, %s8912_s18  ;;  %17189 = vst [vmem:[#allocation109_spill] sm:$0xff] %v14406_v62  ;;  %v6837_v37 = vsel %vm1808_vm2, %v5479_v45, %v14150_v14  ;;  %v6995_v35 = vsel %vm4877_vm0, %v6963_v39, %v6469_v50 }
 0x6e3   : > { %v14400_v22 = vsel %vm3712_vm13, %v5891_v18, %v17187_v58  ;;  %v6868_v53 = vsel %vm1874_vm4, %v6837_v37, %v14176_v29  ;;  %v7027_v30 = vsel %vm4910_vm15, %v6995_v35, %v6563_v38 }
 0x6e4   : > { %17188 = vst [vmem:[#allocation29_spill] sm:$0xff] %v14400_v22  ;;  %6484 = vrot.lane.b32.xlu1 %v5614_v1, %s8913_s23  ;;  %v6471_v19 = vpop.permute.xlu0 %6470  ;;  %v17190_v1 = vld [vmem:[#allocation53_spill] sm:$0xff]  ;;  %v6900_v36 = vsel %vm1940_vm6, %v6868_v53, %v14233_v54 }
 0x6e5   : > { %v5551_v58 = vmul.f32 %v17184_v0, %v17190_v1  ;;  %v6932_v38 = vsel %vm2006_vm8, %v6900_v36, %v14261_v34  ;;  %v17193_v36 = vld [vmem:[#allocation103_spill] sm:$0xff] }
 0x6e6   : > { %v6749_v18 = vpop.permute.xlu1 %6748  ;;  %5755 = vrot.lane.b32.xlu0 %v13947_v47, %s8902_s15  ;;  %v17191_v47 = vld [vmem:[#allocation108_spill] sm:$0xff]  ;;  %v6964_v35 = vsel %vm4844_vm14, %v6932_v38, %v6344_v40 }
 0x6e7   : > { %v7059_v55 = vsel %vm4943_vm3, %v7027_v30, %v6749_v18  ;;  %v6996_v39 = vsel %vm4877_vm0, %v6964_v35, %v6471_v19 }
 0x6e8   : > { %6066 = vrot.lane.b32.xlu1 %v5551_v58, %s8906_s19  ;;  %v14422_v14 = vpop.permute.xlu0 %6052  ;;  %8704 = vmatprep.mubr.msk.f32.mxu0 %vm4992_vm5, %v7059_v55  ;;  %v17192_v55 = vld [vmem:[#allocation42_spill] sm:$0xff] }
 0x6ea   : > { %v14427_v29 = vpop.permute.xlu1 %6153  ;;  %6359 = vrot.lane.b32.xlu0 %v17191_v47, %s8912_s18  ;;  %v8667_v50 = vpop.f32.mrb[40].mxu1 }
 0x6eb   : > { %v5271_v54 = vadd.f32 %v14023_v48, %v8667_v50  ;;  %v5265_v45 = vpop.f32.mrb[41].mxu1  ;;  %v5615_v50 = vmul.f32 %v13929_v6, %v17176_v33 }
 0x6ec   : > { %v5266_v37 = vadd.f32 %v14023_v48, %v5265_v45  ;;  %6578 = vrot.lane.b32.xlu1 %v17192_v55, %s8914_s14  ;;  %v6565_v53 = vpop.permute.xlu0 %6564 }
 0x6ed   : > { %v5337_v34 = vmax.f32 %v5271_v54, 0.0  ;;  %v7028_v30 = vsel %vm4910_vm15, %v6996_v39, %v6565_v53  ;;  %v17196_v53 = vld [vmem:[#allocation169_spill] sm:$0xff] }
 0x6ee   : > { %v5336_v18 = vmax.f32 %v5266_v37, 0.0  ;;  %v6751_v58 = vpop.permute.xlu1 %6750  ;;  %5941 = vrot.lane.b32.xlu0 %v17193_v36, %s8904_s17  ;;  %v17198_v36 = vld [vmem:[#allocation85_spill] sm:$0xff] }
 0x6ef   : > { %v14440_v40 = vrot.slane %v5337_v34, 7  ;;  %v7060_v38 = vsel %vm4943_vm3, %v7028_v30, %v6751_v58  ;;  %v17197_v30 = vld [vmem:[#allocation77_spill] sm:$0xff] }
 0x6f0   : > { %v5421_v47 = vrot.slane %v5336_v18, 7  ;;  %6167 = vrot.lane.b32.xlu1 %v17192_v55, %s8908_s21  ;;  %v14445_v19 = vpop.permute.xlu0 %5741  ;;  %8705 = vmatmul.mubr.msk.f32.gmra.mrb[50].mxu0 %vm4992_vm5, %v7060_v38 }
 0x6f2   : > { %v14452_v35 = vsel %vm2869_vm10, %v14303_v46, %v5421_v47  ;;  %v14456_v54 = vsel %vm2869_vm10, %v5421_v47, %v14440_v40  ;;  %v14458_v45 = vpop.permute.xlu1 %5927  ;;  %6486 = vrot.lane.b32.xlu0 %v5615_v50, %s8913_s23  ;;  %v5552_v46 = vmul.f32 %v13929_v6, %v17197_v30  ;;  %v17199_v47 = vrot.slane %v14319_v2, 1 }
 0x6f3   : > { %17194 = vst [vmem:[#allocation118_spill] sm:$0xff] %v14452_v35  ;;  %17195 = vst [vmem:[#allocation180_spill] sm:$0xff] %v14456_v54  ;;  %v5709_v39 = vrot.slane %v14452_v35, 1  ;;  %v5653_v37 = vmul.f32 %v14452_v35, %v17170_v16  ;;  %v5591_v18 = vmul.f32 %v14452_v35, %v17179_v59  ;;  %v16241_v58 = vrot.slane %v14456_v54, 1 }
 0x6f4   : > { %6764 = vrot.lane.b32.xlu1 %v17196_v53, %s8915_s16  ;;  %v6346_v34 = vpop.permute.xlu0 %6345  ;;  %v5528_v38 = vmul.f32 %v14452_v35, %v17198_v36  ;;  %v14486_v62 = vmul.f32 %v14456_v54, %v17173_v42  ;;  %v17202_v35 = vrot.slane %v14351_v12, 2  ;;  %v17206_v42 = vrot.slane %v14362_v17, 2 }
 0x6f5   : > { %v14476_v50 = vsel %vm3518_vm11, %v17199_v47, %v5709_v39  ;;  %v6717_v16 = vrot.slane %v5653_v37, 2  ;;  %v6311_v53 = vrot.slane %v5591_v18, 2  ;;  %v14482_v6 = vsel %vm3518_vm11, %v5709_v39, %v16241_v58  ;;  %v17204_v37 = vld [vmem:[#allocation86_spill] sm:$0xff] }
 0x6f6   : > { %17200 = vst [vmem:[#allocation197_spill] sm:$0xff] %v14476_v50  ;;  %v6473_v0 = vpop.permute.xlu1 %6472  ;;  %6068 = vrot.lane.b32.xlu0 %v5552_v46, %s8906_s19  ;;  %17201 = vst [vmem:[#allocation140_spill] sm:$0xff] %v14482_v6  ;;  %v5895_v33 = vrot.slane %v5528_v38, 2  ;;  %v14495_v22 = vmul.f32 %v14456_v54, %v17204_v37  ;;  %v17205_v39 = vrot.slane %v14377_v13, 2  ;;  %v14514_v38 = vmul.f32 %v14456_v54, %v17182_v23  ;;  %v17208_v6 = vld [vmem:[#allocation93_spill] sm:$0xff] }
 0x6f7   : > { %v14491_v47 = vsel %vm3712_vm13, %v17202_v35, %v6717_v16  ;;  %v16246_v35 = vrot.slane %v14486_v62, 2 }
 0x6f8   : > { %17203 = vst [vmem:[#allocation99_spill] sm:$0xff] %v14491_v47  ;;  %6169 = vrot.lane.b32.xlu1 %v14080_v32, %s8908_s21  ;;  %v14499_v46 = vpop.permute.xlu0 %5743  ;;  %v14504_v18 = vsel %vm3712_vm13, %v17205_v39, %v6311_v53  ;;  %v14509_v12 = vsel %vm3712_vm13, %v17206_v42, %v5895_v33  ;;  %v16244_v58 = vrot.slane %v14495_v22, 2  ;;  %v17209_v47 = vld [vmem:[#allocation39_spill] sm:$0xff]  ;;  %v16245_v39 = vrot.slane %v14514_v38, 2 }
 0x6f9   : > { %17207 = vst [vmem:[#allocation123_spill] sm:$0xff] %v14509_v12  ;;  %v5480_v50 = vmul.f32 %v17209_v47, %v17208_v6  ;;  %v14526_v17 = vsel %vm3712_vm13, %v6717_v16, %v16246_v35 }
 0x6fa   : > { %v14519_v13 = vpop.permute.xlu1 %6054  ;;  %6580 = vrot.lane.b32.xlu0 %v14080_v32, %s8914_s14  ;;  %v14532_v42 = vsel %vm3712_vm13, %v5895_v33, %v16244_v58  ;;  %v14541_v12 = vsel %vm3712_vm13, %v6311_v53, %v16245_v39 }
 0x6fb   : > { %17210 = vst [vmem:[#allocation40_spill] sm:$0xff] %v14532_v42  ;;  %v6838_v6 = vsel %vm1808_vm2, %v5480_v50, %v14289_v60  ;;  %17211 = vst [vmem:[#allocation22_spill] sm:$0xff] %v14541_v12  ;;  %v17212_v60 = vld [vmem:[#allocation194_spill] sm:$0xff] }
 0x6fc   : > { %6766 = vrot.lane.b32.xlu1 %v14102_v49, %s8915_s16  ;;  %v6348_v47 = vpop.permute.xlu0 %6347  ;;  %v6869_v33 = vsel %vm1874_vm4, %v6838_v6, %v14293_v24  ;;  %v5616_v24 = vmul.f32 %v14057_v27, %v17190_v1  ;;  %v17215_v6 = vld [vmem:[#allocation101_spill] sm:$0xff] }
 0x6fd   : > { %v6901_v58 = vsel %vm1940_vm6, %v6869_v33, %v14321_v5  ;;  %v17214_v5 = vld [vmem:[#allocation94_spill] sm:$0xff] }
 0x6fe   : > { %v6567_v16 = vpop.permute.xlu1 %6566  ;;  %5757 = vrot.lane.b32.xlu0 %v17192_v55, %s8902_s15  ;;  %v6933_v50 = vsel %vm2006_vm8, %v6901_v58, %v14383_v8  ;;  %v17213_v55 = vld [vmem:[#allocation97_spill] sm:$0xff]  ;;  %v5481_v33 = vmul.f32 %v17215_v6, %v17214_v5 }
 0x6ff   : > { %v6965_v53 = vsel %vm4844_vm14, %v6933_v50, %v6346_v34 }
 0x700   : > { %5943 = vrot.lane.b32.xlu1 %v17212_v60, %s8904_s17  ;;  %v14551_v49 = vpop.permute.xlu0 %5929  ;;  %v6839_v34 = vsel %vm1808_vm2, %v5481_v33, %v14309_v26  ;;  %v6997_v58 = vsel %vm4877_vm0, %v6965_v53, %v6473_v0 }
 0x701   : > { %v7029_v1 = vsel %vm4910_vm15, %v6997_v58, %v6567_v16 }
 0x702   : > { %v14556_v39 = vpop.permute.xlu1 %6155  ;;  %6361 = vrot.lane.b32.xlu0 %v17213_v55, %s8912_s18  ;;  %v8670_v35 = vpop.f32.mrb[42].mxu1  ;;  %v6870_v55 = vsel %vm1874_vm4, %v6839_v34, %v14366_v41  ;;  %v7456_v41 = vld [vmem:[%s15855_s11] sm:$0xff] }
 0x703   : > { %v5281_v60 = vadd.f32 %v14023_v48, %v8670_v35  ;;  %v5275_v12 = vpop.f32.mrb[43].mxu1  ;;  %8746 = vmatprep.subr.mxu1 %v7456_v41 }
 0x704   : > { %v5276_v42 = vadd.f32 %v14023_v48, %v5275_v12  ;;  %6488 = vrot.lane.b32.xlu1 %v5616_v24, %s8913_s23  ;;  %v6475_v8 = vpop.permute.xlu0 %6474  ;;  %v17216_v12 = vld [vmem:[#allocation78_spill] sm:$0xff]  ;;  %v6902_v24 = vsel %vm1940_vm6, %v6870_v55, %v14422_v14  ;;  %8747 = vmatpush3.msra.mxu1 %v7456_v41 }
 0x705   : > { %v5339_v50 = vmax.f32 %v5281_v60, 0.0  ;;  %v5553_v35 = vmul.f32 %v14057_v27, %v17216_v12 }
 0x706   : > { %v5338_v5 = vmax.f32 %v5276_v42, 0.0  ;;  %v6753_v6 = vpop.permute.xlu1 %6752  ;;  %5759 = vrot.lane.b32.xlu0 %v14080_v32, %s8902_s15  ;;  %v6934_v32 = vsel %vm2006_vm8, %v6902_v24, %v14427_v29 }
 0x707   : > { %v14579_v26 = vrot.slane %v5339_v50, 7  ;;  %v7061_v0 = vsel %vm4943_vm3, %v7029_v1, %v6753_v6  ;;  %v6966_v33 = vsel %vm4844_vm14, %v6934_v32, %v6348_v47  ;;  %v5617_v32 = vmul.f32 %v14061_v63, %v17197_v30 }
 0x708   : > { %v5425_v16 = vrot.slane %v5338_v5, 7  ;;  %6070 = vrot.lane.b32.xlu1 %v5553_v35, %s8906_s19  ;;  %v14586_v42 = vpop.permute.xlu0 %6056  ;;  %8707 = vmatprep.mubr.msk.f32.mxu0 %vm4992_vm5, %v7061_v0  ;;  %v17218_v5 = vrot.slane %v14456_v54, 1 }
 0x70a   : > { %v14593_v14 = vsel %vm2869_vm10, %v14440_v40, %v5425_v16  ;;  %v14597_v1 = vsel %vm2869_vm10, %v5425_v16, %v14579_v26  ;;  %v14599_v53 = vpop.permute.xlu1 %6157  ;;  %6363 = vrot.lane.b32.xlu0 %v14112_v9, %s8912_s18  ;;  %v6998_v40 = vsel %vm4877_vm0, %v6966_v33, %v6475_v8  ;;  %v17217_v9 = vld [vmem:[#allocation156_spill] sm:$0xff]  ;;  %v17220_v33 = vrot.slane %v14486_v62, 2 }
 0x70b   : > { %v5713_v60 = vrot.slane %v14593_v14, 1  ;;  %v5655_v29 = vmul.f32 %v14593_v14, %v17179_v59  ;;  %v5593_v58 = vmul.f32 %v14593_v14, %v17198_v36  ;;  %v16248_v50 = vrot.slane %v14597_v1, 1 }
 0x70c   : > { %6582 = vrot.lane.b32.xlu1 %v14090_v11, %s8914_s14  ;;  %v6569_v34 = vpop.permute.xlu0 %6568  ;;  %v5530_v55 = vmul.f32 %v14593_v14, %v17217_v9  ;;  %v14630_v41 = vmul.f32 %v14597_v1, %v17182_v23  ;;  %v17222_v23 = vrot.slane %v14514_v38, 2  ;;  %v17224_v62 = vrot.slane %v14495_v22, 2 }
 0x70d   : > { %v7030_v47 = vsel %vm4910_vm15, %v6998_v40, %v6569_v34  ;;  %v14619_v59 = vsel %vm3518_vm11, %v17218_v5, %v5713_v60  ;;  %v6721_v8 = vrot.slane %v5655_v29, 2  ;;  %v6315_v35 = vrot.slane %v5593_v58, 2  ;;  %v17221_v29 = vld [vmem:[#allocation36_spill] sm:$0xff] }
 0x70e   : > { %v6755_v6 = vpop.permute.xlu1 %6754  ;;  %5945 = vrot.lane.b32.xlu0 %v14117_v20, %s8904_s17  ;;  %v14626_v24 = vsel %vm3518_vm11, %v5713_v60, %v16248_v50  ;;  %v5899_v0 = vrot.slane %v5530_v55, 2  ;;  %v14642_v40 = vmul.f32 %v14597_v1, %v17221_v29  ;;  %v16250_v55 = vrot.slane %v14630_v41, 2 }
 0x70f   : > { %17219 = vst [vmem:[#allocation199_spill] sm:$0xff] %v14626_v24  ;;  %v7062_v16 = vsel %vm4943_vm3, %v7030_v47, %v6755_v6  ;;  %v14638_v20 = vsel %vm3712_vm13, %v17220_v33, %v6721_v8  ;;  %v14652_v34 = vsel %vm3712_vm13, %v17222_v23, %v6315_v35  ;;  %v14662_v47 = vmul.f32 %v14597_v1, %v17204_v37  ;;  %v17228_v33 = vld [vmem:[#allocation61_spill] sm:$0xff] }
 0x710   : > { %6171 = vrot.lane.b32.xlu1 %v14090_v11, %s8908_s21  ;;  %v14646_v60 = vpop.permute.xlu0 %5745  ;;  %8708 = vmatmul.mubr.msk.f32.gmra.mrb[52].mxu0 %vm4992_vm5, %v7062_v16  ;;  %17223 = vst [vmem:[#allocation214_spill] sm:$0xff] %v14652_v34  ;;  %v14657_v58 = vsel %vm3712_vm13, %v17224_v62, %v5899_v0  ;;  %v16249_v5 = vrot.slane %v14642_v40, 2  ;;  %v14671_v38 = vsel %vm3712_vm13, %v6721_v8, %v16250_v55  ;;  %v17229_v62 = vld [vmem:[#allocation113_spill] sm:$0xff] }
 0x711   : > { %17225 = vst [vmem:[#allocation158_spill] sm:$0xff] %v14657_v58  ;;  %17226 = vst [vmem:[#allocation87_spill] sm:$0xff] %v14671_v38  ;;  %v16253_v22 = vrot.slane %v14662_v47, 2  ;;  %v5554_v50 = vmul.f32 %v14061_v63, %v17229_v62  ;;  %v17232_v55 = vld [vmem:[#allocation157_spill] sm:$0xff] }
 0x712   : > { %v14665_v6 = vpop.permute.xlu1 %5931  ;;  %6490 = vrot.lane.b32.xlu0 %v5617_v32, %s8913_s23  ;;  %v14677_v16 = vsel %vm3712_vm13, %v5899_v0, %v16249_v5  ;;  %v17231_v5 = vld [vmem:[#allocation135_spill] sm:$0xff] }
 0x713   : > { %17227 = vst [vmem:[#allocation88_spill] sm:$0xff] %v14677_v16  ;;  %v14686_v32 = vsel %vm3712_vm13, %v6315_v35, %v16253_v22 }
 0x714   : > { %6768 = vrot.lane.b32.xlu1 %v17228_v33, %s8915_s16  ;;  %v6350_v23 = vpop.permute.xlu0 %6349  ;;  %17230 = vst [vmem:[#allocation159_spill] sm:$0xff] %v14686_v32  ;;  %v5482_v33 = vmul.f32 %v17232_v55, %v17231_v5 }
 0x716   : > { %v6477_v8 = vpop.permute.xlu1 %6476  ;;  %6072 = vrot.lane.b32.xlu0 %v5554_v50, %s8906_s19  ;;  %v6840_v35 = vsel %vm1808_vm2, %v5482_v33, %v14445_v19 }
 0x717   : > { %v6871_v55 = vsel %vm1874_vm4, %v6840_v35, %v14458_v45  ;;  %v17234_v45 = vld [vmem:[#allocation16_spill] sm:$0xff] }
 0x718   : > { %6173 = vrot.lane.b32.xlu1 %v14219_v25, %s8908_s21  ;;  %v14691_v0 = vpop.permute.xlu0 %5747  ;;  %v6903_v19 = vsel %vm1940_vm6, %v6871_v55, %v14519_v13  ;;  %v5618_v55 = vmul.f32 %v14193_v57, %v17216_v12 }
 0x719   : > { %v6935_v33 = vsel %vm2006_vm8, %v6903_v19, %v14556_v39 }
 0x71a   : > { %v14695_v27 = vpop.permute.xlu1 %6058  ;;  %6584 = vrot.lane.b32.xlu0 %v14219_v25, %s8914_s14  ;;  %v8673_v63 = vpop.f32.mrb[44].mxu1  ;;  %v6967_v24 = vsel %vm4844_vm14, %v6935_v33, %v6350_v23  ;;  %v17238_v23 = vld [vmem:[#allocation114_spill] sm:$0xff] }
 0x71b   : > { %v5291_v22 = vadd.f32 %v14023_v48, %v8673_v63  ;;  %v5285_v50 = vpop.f32.mrb[45].mxu1  ;;  %v5555_v19 = vmul.f32 %v14193_v57, %v17238_v23 }
 0x71c   : > { %v5286_v32 = vadd.f32 %v14023_v48, %v5285_v50  ;;  %6770 = vrot.lane.b32.xlu1 %v14238_v61, %s8915_s16  ;;  %v6352_v16 = vpop.permute.xlu0 %6351  ;;  %v17233_v61 = vld [vmem:[#allocation105_spill] sm:$0xff] }
 0x71d   : > { %v5341_v38 = vmax.f32 %v5291_v22, 0.0 }
 0x71e   : > { %v5340_v5 = vmax.f32 %v5286_v32, 0.0  ;;  %v6571_v58 = vpop.permute.xlu1 %6570  ;;  %5761 = vrot.lane.b32.xlu0 %v14090_v11, %s8902_s15  ;;  %v17235_v32 = vld [vmem:[#allocation84_spill] sm:$0xff] }
 0x71f   : > { %v14711_v63 = vrot.slane %v5341_v38, 7  ;;  %v5483_v35 = vmul.f32 %v17235_v32, %v17234_v45  ;;  %v17237_v38 = vld [vmem:[#allocation195_spill] sm:$0xff] }
 0x720   : > { %v5429_v50 = vrot.slane %v5340_v5, 7  ;;  %5947 = vrot.lane.b32.xlu1 %v17233_v61, %s8904_s17  ;;  %v14717_v22 = vpop.permute.xlu0 %5933 }
 0x721   : > { %v6841_v5 = vsel %vm1808_vm2, %v5483_v35, %v14499_v46 }
 0x722   : > { %v14724_v11 = vsel %vm2869_vm10, %v14579_v26, %v5429_v50  ;;  %v14728_v13 = vsel %vm2869_vm10, %v5429_v50, %v14711_v63  ;;  %v14730_v39 = vpop.permute.xlu1 %6159  ;;  %6365 = vrot.lane.b32.xlu0 %v17237_v38, %s8912_s18  ;;  %v6999_v50 = vsel %vm4877_vm0, %v6967_v24, %v6477_v8  ;;  %v17239_v38 = vld [vmem:[#allocation124_spill] sm:$0xff]  ;;  %v6872_v35 = vsel %vm1874_vm4, %v6841_v5, %v14551_v49 }
 0x723   : > { %17236 = vst [vmem:[#allocation28_spill] sm:$0xff] %v14724_v11  ;;  %v5717_v26 = vrot.slane %v14724_v11, 1  ;;  %v5657_v33 = vmul.f32 %v14724_v11, %v17198_v36  ;;  %v5595_v45 = vmul.f32 %v14724_v11, %v17217_v9  ;;  %v5719_v32 = vrot.slane %v14728_v13, 1 }
 0x724   : > { %6492 = vrot.lane.b32.xlu1 %v5618_v55, %s8913_s23  ;;  %v6479_v61 = vpop.permute.xlu0 %6478  ;;  %v5532_v46 = vmul.f32 %v14724_v11, %v17239_v38  ;;  %v7031_v57 = vsel %vm4910_vm15, %v6999_v50, %v6571_v58  ;;  %v17240_v36 = vrot.slane %v14597_v1, 1  ;;  %v14767_v49 = vmul.f32 %v14728_v13, %v17204_v37  ;;  %v17242_v50 = vld [vmem:[#allocation47_spill] sm:$0xff] }
 0x725   : > { %v6725_v8 = vrot.slane %v5657_v33, 2  ;;  %v6319_v12 = vrot.slane %v5595_v45, 2  ;;  %v14763_v11 = vsel %vm3518_vm11, %v5717_v26, %v5719_v32  ;;  %v6904_v58 = vsel %vm1940_vm6, %v6872_v35, %v14586_v42 }
 0x726   : > { %v14756_v24 = vsel %vm3518_vm11, %v17240_v36, %v5717_v26  ;;  %v6757_v55 = vpop.permute.xlu1 %6756  ;;  %5763 = vrot.lane.b32.xlu0 %v14219_v25, %s8902_s15  ;;  %v5903_v34 = vrot.slane %v5532_v46, 2  ;;  %v17241_v33 = vrot.slane %v14630_v41, 2  ;;  %v14779_v45 = vmul.f32 %v14728_v13, %v17242_v50 }
 0x727   : > { %v7063_v5 = vsel %vm4943_vm3, %v7031_v57, %v6757_v55  ;;  %v17243_v37 = vrot.slane %v14662_v47, 2  ;;  %v17244_v57 = vrot.slane %v14642_v40, 2  ;;  %v16260_v46 = vrot.slane %v14767_v49, 2 }
 0x728   : > { %v14775_v25 = vsel %vm3712_vm13, %v17241_v33, %v6725_v8  ;;  %6074 = vrot.lane.b32.xlu1 %v5555_v19, %s8906_s19  ;;  %v14782_v26 = vpop.permute.xlu0 %6060  ;;  %8710 = vmatprep.mubr.msk.f32.mxu0 %vm4992_vm5, %v7063_v5  ;;  %v14798_v35 = vmul.f32 %v14728_v13, %v17221_v29  ;;  %v16259_v19 = vrot.slane %v14779_v45, 2  ;;  %v6936_v36 = vsel %vm2006_vm8, %v6904_v58, %v14599_v53 }
 0x729   : > { %v14788_v42 = vsel %vm3712_vm13, %v17243_v37, %v6319_v12  ;;  %v14793_v41 = vsel %vm3712_vm13, %v17244_v57, %v5903_v34  ;;  %v14810_v40 = vsel %vm3712_vm13, %v6725_v8, %v16260_v46  ;;  %v6968_v5 = vsel %vm4844_vm14, %v6936_v36, %v6352_v16 }
 0x72a   : > { %v14803_v47 = vpop.permute.xlu1 %6161  ;;  %6367 = vrot.lane.b32.xlu0 %v14248_v56, %s8912_s18  ;;  %v6321_v55 = vrot.slane %v14798_v35, 2  ;;  %v14817_v33 = vsel %vm3712_vm13, %v5903_v34, %v16259_v19  ;;  %v7000_v53 = vsel %vm4877_vm0, %v6968_v5, %v6479_v61  ;;  %v5619_v61 = vmul.f32 %v14197_v7, %v17229_v62 }
 0x72c   : > { %6586 = vrot.lane.b32.xlu1 %v14229_v3, %s8914_s14  ;;  %v6573_v56 = vpop.permute.xlu0 %6572  ;;  %v14823_v58 = vsel %vm3712_vm13, %v6319_v12, %v6321_v55 }
 0x72d   : > { %17245 = vst [vmem:[#allocation141_spill] sm:$0xff] %v14823_v58  ;;  %v7032_v8 = vsel %vm4910_vm15, %v7000_v53, %v6573_v56  ;;  %v17246_v53 = vld [vmem:[#allocation95_spill] sm:$0xff] }
 0x72e   : > { %v6759_v37 = vpop.permute.xlu1 %6758  ;;  %5949 = vrot.lane.b32.xlu0 %v14253_v51, %s8904_s17  ;;  %v5556_v56 = vmul.f32 %v14197_v7, %v17246_v53 }
 0x72f   : > { %v7064_v16 = vsel %vm4943_vm3, %v7032_v8, %v6759_v37 }
 0x730   : > { %6175 = vrot.lane.b32.xlu1 %v14229_v3, %s8908_s21  ;;  %v14831_v34 = vpop.permute.xlu0 %5749  ;;  %8711 = vmatmul.mubr.msk.f32.gmra.mrb[54].mxu0 %vm4992_vm5, %v7064_v16 }
 0x732   : > { %v14836_v12 = vpop.permute.xlu1 %5935  ;;  %6494 = vrot.lane.b32.xlu0 %v5619_v61, %s8913_s23  ;;  %v8676_v57 = vpop.f32.mrb[46].mxu1  ;;  %v17247_v61 = vld [vmem:[#allocation166_spill] sm:$0xff] }
 0x733   : > { %v5301_v35 = vadd.f32 %v14023_v48, %v8676_v57  ;;  %v5295_v51 = vpop.f32.mrb[47].mxu1  ;;  %v5484_v57 = vmul.f32 %v17247_v61, %v17152_v52 }
 0x734   : > { %v5296_v36 = vadd.f32 %v14023_v48, %v5295_v51  ;;  %6772 = vrot.lane.b32.xlu1 %v14268_v4, %s8915_s16  ;;  %v6354_v5 = vpop.permute.xlu0 %6353 }
 0x735   : > { %v5343_v8 = vmax.f32 %v5301_v35, 0.0  ;;  %v6842_v4 = vsel %vm1808_vm2, %v5484_v57, %v14646_v60 }
 0x736   : > { %v5342_v37 = vmax.f32 %v5296_v36, 0.0  ;;  %v6481_v16 = vpop.permute.xlu1 %6480  ;;  %6076 = vrot.lane.b32.xlu0 %v5556_v56, %s8906_s19  ;;  %v6873_v61 = vsel %vm1874_vm4, %v6842_v4, %v14665_v6  ;;  %v17251_v4 = vrot.slane %v14767_v49, 2 }
 0x737   : > { %v14846_v19 = vrot.slane %v5343_v8, 7  ;;  %v17249_v8 = vld [vmem:[#allocation126_spill] sm:$0xff] }
 0x738   : > { %v5433_v46 = vrot.slane %v5342_v37, 7  ;;  %6177 = vrot.lane.b32.xlu1 %v14340_v21, %s8908_s21  ;;  %v14852_v48 = vpop.permute.xlu0 %5751 }
 0x73a   : > { %v14858_v35 = vsel %vm2869_vm10, %v14711_v63, %v5433_v46  ;;  %v14862_v51 = vsel %vm2869_vm10, %v5433_v46, %v14846_v19  ;;  %v14864_v36 = vpop.permute.xlu1 %6062  ;;  %6588 = vrot.lane.b32.xlu0 %v14340_v21, %s8914_s14 }
 0x73b   : > { %17248 = vst [vmem:[#allocation49_spill] sm:$0xff] %v14858_v35  ;;  %v5721_v52 = vrot.slane %v14858_v35, 1  ;;  %v5659_v56 = vmul.f32 %v14858_v35, %v17217_v9  ;;  %v5597_v63 = vmul.f32 %v14858_v35, %v17239_v38  ;;  %v16264_v46 = vrot.slane %v14862_v51, 1 }
 0x73c   : > { %6774 = vrot.lane.b32.xlu1 %v14358_v44, %s8915_s16  ;;  %v6356_v60 = vpop.permute.xlu0 %6355  ;;  %v5534_v37 = vmul.f32 %v14858_v35, %v17249_v8  ;;  %v14894_v6 = vmul.f32 %v14862_v51, %v17221_v29 }
 0x73d   : > { %v14883_v57 = vsel %vm3518_vm11, %v5719_v32, %v5721_v52  ;;  %v6729_v9 = vrot.slane %v5659_v56, 2  ;;  %v6323_v44 = vrot.slane %v5597_v63, 2  ;;  %v14890_v58 = vsel %vm3518_vm11, %v5721_v52, %v16264_v46 }
 0x73e   : > { %v6575_v7 = vpop.permute.xlu1 %6574  ;;  %5765 = vrot.lane.b32.xlu0 %v14229_v3, %s8902_s15  ;;  %17250 = vst [vmem:[#allocation201_spill] sm:$0xff] %v14890_v58  ;;  %v5907_v35 = vrot.slane %v5534_v37, 2  ;;  %v6905_v32 = vsel %vm1940_vm6, %v6873_v61, %v14695_v27  ;;  %v17252_v3 = vld [vmem:[#allocation128_spill] sm:$0xff]  ;;  %v17253_v37 = vrot.slane %v14779_v45, 2  ;;  %v16266_v49 = vrot.slane %v14894_v6, 2 }
 0x73f   : > { %v14901_v56 = vsel %vm3712_vm13, %v17251_v4, %v6729_v9  ;;  %v14905_v63 = vmul.f32 %v14862_v51, %v17252_v3  ;;  %v14912_v29 = vsel %vm3712_vm13, %v6321_v55, %v6323_v44  ;;  %v14922_v61 = vmul.f32 %v14862_v51, %v17242_v50 }
 0x740   : > { %5951 = vrot.lane.b32.xlu1 %v14277_v31, %s8904_s17  ;;  %v14909_v52 = vpop.permute.xlu0 %5937  ;;  %v14917_v27 = vsel %vm3712_vm13, %v17253_v37, %v5907_v35  ;;  %v6937_v4 = vsel %vm2006_vm8, %v6905_v32, %v14730_v39  ;;  %v5620_v45 = vmul.f32 %v14315_v15, %v17238_v23  ;;  %v14937_v37 = vsel %vm3712_vm13, %v6729_v9, %v16266_v49  ;;  %v17257_v32 = vld [vmem:[#allocation193_spill] sm:$0xff] }
 0x741   : > { %17254 = vst [vmem:[#allocation116_spill] sm:$0xff] %v14917_v27  ;;  %v16267_v31 = vrot.slane %v14905_v63, 2  ;;  %v6969_v46 = vsel %vm4844_vm14, %v6937_v4, %v6354_v5  ;;  %17255 = vst [vmem:[#allocation64_spill] sm:$0xff] %v14937_v37  ;;  %v16268_v27 = vrot.slane %v14922_v61, 2  ;;  %v17256_v5 = vld [vmem:[#allocation26_spill] sm:$0xff] }
 0x742   : > { %v14928_v55 = vpop.permute.xlu1 %6163  ;;  %6369 = vrot.lane.b32.xlu0 %v14281_v43, %s8912_s18  ;;  %v5485_v4 = vmul.f32 %v17257_v32, %v17256_v5  ;;  %v7001_v9 = vsel %vm4877_vm0, %v6969_v46, %v6481_v16  ;;  %v8891_v5 = vld [vmem:[%s15852_s8] ss:$0 sm:$0xff] }
 0x743   : > { %v14943_v39 = vsel %vm3712_vm13, %v5907_v35, %v16267_v31  ;;  %v14951_v58 = vsel %vm3712_vm13, %v6323_v44, %v16268_v27  ;;  %v7033_v35 = vsel %vm4910_vm15, %v7001_v9, %v6575_v7  ;;  %v17259_v44 = vld [vmem:[#allocation96_spill] sm:$0xff] }
 0x744   : > { %6496 = vrot.lane.b32.xlu1 %v5620_v45, %s8913_s23  ;;  %v6483_v43 = vpop.permute.xlu0 %6482  ;;  %17258 = vst [vmem:[#allocation198_spill] sm:$0xff] %v14951_v58  ;;  %v6843_v37 = vsel %vm1808_vm2, %v5485_v4, %v14691_v0  ;;  %v5557_v27 = vmul.f32 %v14315_v15, %v17259_v44 }
 0x745   : > { %v8679_v49 = vpop.f32.mrb[48].mxu1  ;;  %v6874_v16 = vsel %vm1874_vm4, %v6843_v37, %v14717_v22 }
 0x746   : > { %v5311_v32 = vadd.f32 %v8891_v5, %v8679_v49  ;;  %v6761_v45 = vpop.permute.xlu1 %6760  ;;  %5767 = vrot.lane.b32.xlu0 %v14340_v21, %s8902_s15  ;;  %v5305_v31 = vpop.f32.mrb[49].mxu1  ;;  %v6906_v7 = vsel %vm1940_vm6, %v6874_v16, %v14782_v26  ;;  %v17262_v16 = vld [vmem:[#allocation35_spill] sm:$0xff] }
 0x747   : > { %v7065_v0 = vsel %vm4943_vm3, %v7033_v35, %v6761_v45  ;;  %v5306_v46 = vadd.f32 %v8891_v5, %v5305_v31  ;;  %v6938_v22 = vsel %vm2006_vm8, %v6906_v7, %v14803_v47 }
 0x748   : > { %v5345_v4 = vmax.f32 %v5311_v32, 0.0  ;;  %6078 = vrot.lane.b32.xlu1 %v5557_v27, %s8906_s19  ;;  %v14970_v49 = vpop.permute.xlu0 %6064  ;;  %8713 = vmatprep.mubr.msk.f32.mxu0 %vm4992_vm5, %v7065_v0  ;;  %v6970_v26 = vsel %vm4844_vm14, %v6938_v22, %v6356_v60  ;;  %v17260_v27 = vld [vmem:[#allocation48_spill] sm:$0xff]  ;;  %v17264_v22 = vrot.slane %v14862_v51, 1 }
 0x749   : > { %v5344_v21 = vmax.f32 %v5306_v46, 0.0  ;;  %v7002_v5 = vsel %vm4877_vm0, %v6970_v26, %v6483_v43  ;;  %v17263_v46 = vld [vmem:[#allocation106_spill] sm:$0xff] }
 0x74a   : > { %v5439_v9 = vrot.slane %v5345_v4, 7  ;;  %v14973_v58 = vpop.permute.xlu1 %6165  ;;  %6371 = vrot.lane.b32.xlu0 %v14369_v28, %s8912_s18  ;;  %v5621_v28 = vmul.f32 %v14319_v2, %v17246_v53 }
 0x74b   : > { %v5437_v31 = vrot.slane %v5344_v21, 7 }
 0x74c   : > { %v14981_v37 = vsel %vm2869_vm10, %v5439_v9, 0.0  ;;  %6590 = vrot.lane.b32.xlu1 %v17260_v27, %s8914_s14  ;;  %v6577_v35 = vpop.permute.xlu0 %6576 }
 0x74d   : > { %v14988_v32 = vsel %vm2869_vm10, %v14846_v19, %v5437_v31  ;;  %v14993_v47 = vsel %vm2869_vm10, %v5437_v31, %v5439_v9  ;;  %v7034_v60 = vsel %vm4910_vm15, %v7002_v5, %v6577_v35  ;;  %v5601_v19 = vmul.f32 %v14981_v37, %v17263_v46 }
 0x74e   : > { %17261 = vst [vmem:[#allocation213_spill] sm:$0xff] %v14993_v47  ;;  %v6763_v45 = vpop.permute.xlu1 %6762  ;;  %5953 = vrot.lane.b32.xlu0 %v17262_v16, %s8904_s17  ;;  %v5725_v0 = vrot.slane %v14988_v32, 1  ;;  %v5661_v43 = vmul.f32 %v14988_v32, %v17239_v38  ;;  %v5599_v21 = vmul.f32 %v14988_v32, %v17249_v8  ;;  %v6135_v26 = vrot.slane %v14993_v47, 1 }
 0x74f   : > { %v7066_v4 = vsel %vm4943_vm3, %v7034_v60, %v6763_v45  ;;  %v5536_v35 = vmul.f32 %v14988_v32, %v17263_v46  ;;  %v15022_v5 = vmul.f32 %v14981_v37, %v17249_v8  ;;  %v5662_v45 = vmul.f32 %v14993_v47, %v17242_v50 }
 0x750   : > { %6179 = vrot.lane.b32.xlu1 %v17260_v27, %s8908_s21  ;;  %v15009_v9 = vpop.permute.xlu0 %5753  ;;  %8714 = vmatmul.mubr.msk.f32.gmra.mrb[56].mxu0 %vm4992_vm5, %v7066_v4  ;;  %v15015_v38 = vsel %vm3518_vm11, %v17264_v22, %v5725_v0  ;;  %v6733_v31 = vrot.slane %v5661_v43, 2  ;;  %v6327_v60 = vrot.slane %v5599_v21, 2  ;;  %v17266_v4 = vrot.slane %v14894_v6, 2 }
 0x751   : > { %17265 = vst [vmem:[#allocation41_spill] sm:$0xff] %v15022_v5  ;;  %v15035_v22 = vsel %vm3518_vm11, %v5725_v0, %v6135_v26  ;;  %v5911_v46 = vrot.slane %v5536_v35, 2  ;;  %v17267_v8 = vrot.slane %v14922_v61, 2  ;;  %v6735_v7 = vrot.slane %v5662_v45, 2 }
 0x752   : > { %v15026_v16 = vpop.permute.xlu1 %5939  ;;  %6498 = vrot.lane.b32.xlu0 %v5621_v28, %s8913_s23  ;;  %v15032_v43 = vsel %vm3712_vm13, %v17266_v4, %v6733_v31  ;;  %v5600_v50 = vmul.f32 %v14993_v47, %v17252_v3  ;;  %v17268_v28 = vld [vmem:[#allocation136_spill] sm:$0xff]  ;;  %v17269_v0 = vrot.slane %v14905_v63, 2  ;;  %v17270_v61 = vrot.slane %v14981_v37, 1 }
 0x753   : > { %v15040_v21 = vsel %vm3712_vm13, %v17267_v8, %v6327_v60  ;;  %v5558_v4 = vmul.f32 %v14319_v2, %v17268_v28  ;;  %v6331_v45 = vrot.slane %v5601_v19, 2  ;;  %v15059_v3 = vsel %vm3712_vm13, %v6733_v31, %v6735_v7  ;;  %v17272_v19 = vld [vmem:[#allocation197_spill] sm:$0xff] }
 0x754   : > { %6776 = vrot.lane.b32.xlu1 %v14392_v10, %s8915_s16  ;;  %v6358_v6 = vpop.permute.xlu0 %6357  ;;  %v15051_v35 = vsel %vm3712_vm13, %v17269_v0, %v5911_v46  ;;  %v15056_v8 = vsel %vm3518_vm11, %v6135_v26, %v17270_v61  ;;  %v6329_v15 = vrot.slane %v5600_v50, 2  ;;  %v16272_v10 = vrot.slane %v15022_v5, 2  ;;  %v17273_v50 = vld [vmem:[#allocation27_spill] sm:$0xff]  ;;  %v17277_v2 = vld [vmem:[#allocation109_spill] sm:$0xff] }
 0x755   : > { %v17274_v0 = vld [vmem:[#allocation107_spill] sm:$0xff] }
 0x756   : > { %v6485_v47 = vpop.permute.xlu1 %6484  ;;  %6080 = vrot.lane.b32.xlu0 %v5558_v4, %s8906_s19  ;;  %v15064_v63 = vsel %vm3712_vm13, %v6327_v60, %v6329_v15  ;;  %v15067_v46 = vsel %vm3712_vm13, %v6329_v15, %v6331_v45  ;;  %v15072_v26 = vsel %vm3712_vm13, %v6735_v7, %v16272_v10  ;;  %v5486_v61 = vmul.f32 %v17274_v0, %v17273_v50  ;;  %v17275_v60 = vld [vmem:[#allocation99_spill] sm:$0xff]  ;;  %v17276_v0 = vld [vmem:[#allocation29_spill] sm:$0xff] }
 0x757   : > { %17271 = vst [vmem:[#allocation130_spill] sm:$0xff] %v15072_v26  ;;  %v17280_v26 = vld [vmem:[#allocation161_spill] sm:$0xff] }
 0x758   : > { %6181 = vrot.lane.b32.xlu1 %v17272_v19, %s8908_s21  ;;  %v15076_v31 = vpop.permute.xlu0 %5755  ;;  %v6844_v15 = vsel %vm1808_vm2, %v5486_v61, %v14831_v34 }
 0x759   : > { %v6875_v10 = vsel %vm1874_vm4, %v6844_v15, %v14836_v12  ;;  %v17279_v15 = vld [vmem:[#allocation52_spill] sm:$0xff] }
 0x75a   : > { %v15080_v4 = vpop.permute.xlu1 %6066  ;;  %6592 = vrot.lane.b32.xlu0 %v17272_v19, %s8914_s14  ;;  %v6907_v50 = vsel %vm1940_vm6, %v6875_v10, %v14864_v36  ;;  %v5487_v36 = vmul.f32 %v17280_v26, %v17279_v15 }
 0x75b   : > { %v6939_v34 = vsel %vm2006_vm8, %v6907_v50, %v14928_v55 }
 0x75c   : > { %6778 = vrot.lane.b32.xlu1 %v17275_v60, %s8915_s16  ;;  %v6360_v7 = vpop.permute.xlu0 %6359  ;;  %v6971_v61 = vsel %vm4844_vm14, %v6939_v34, %v6358_v6  ;;  %v17281_v34 = vld [vmem:[#allocation137_spill] sm:$0xff] }
 0x75d   : > { %v7003_v55 = vsel %vm4877_vm0, %v6971_v61, %v6485_v47 }
 0x75e   : > { %v6579_v45 = vpop.permute.xlu1 %6578  ;;  %5769 = vrot.lane.b32.xlu0 %v17260_v27, %s8902_s15  ;;  %v17278_v27 = vld [vmem:[#allocation118_spill] sm:$0xff] }
 0x75f   : > { %v5622_v12 = vmul.f32 %v17278_v27, %v17259_v44  ;;  %v7035_v50 = vsel %vm4910_vm15, %v7003_v55, %v6579_v45  ;;  %v5559_v26 = vmul.f32 %v17278_v27, %v17281_v34  ;;  %v17283_v55 = vld [vmem:[#allocation123_spill] sm:$0xff] }
 0x760   : > { %5955 = vrot.lane.b32.xlu1 %v17276_v0, %s8904_s17  ;;  %v15096_v5 = vpop.permute.xlu0 %5941  ;;  %v6845_v0 = vsel %vm1808_vm2, %v5487_v36, %v14852_v48 }
 0x761   : > { %v6876_v6 = vsel %vm1874_vm4, %v6845_v0, %v14909_v52 }
 0x762   : > { %v6168_v60 = vpop.permute.xlu1 %6167  ;;  %6373 = vrot.lane.b32.xlu0 %v17277_v2, %s8912_s18 }
 0x764   : > { %6500 = vrot.lane.b32.xlu1 %v5622_v12, %s8913_s23  ;;  %v6487_v10 = vpop.permute.xlu0 %6486  ;;  %v6908_v12 = vsel %vm1940_vm6, %v6876_v6, %v14970_v49  ;;  %v17282_v49 = vld [vmem:[#allocation140_spill] sm:$0xff] }
 0x765   : > { %v6940_v52 = vsel %vm2006_vm8, %v6908_v12, %v14973_v58 }
 0x766   : > { %v6765_v2 = vpop.permute.xlu1 %6764  ;;  %5771 = vrot.lane.b32.xlu0 %v17272_v19, %s8902_s15  ;;  %v6972_v19 = vsel %vm4844_vm14, %v6940_v52, %v6360_v7  ;;  %v5623_v7 = vmul.f32 %v14456_v54, %v17268_v28  ;;  %v17286_v52 = vld [vmem:[#allocation24_spill] sm:$0xff] }
 0x767   : > { %v7067_v15 = vsel %vm4943_vm3, %v7035_v50, %v6765_v2  ;;  %v7004_v45 = vsel %vm4877_vm0, %v6972_v19, %v6487_v10  ;;  %v17284_v50 = vld [vmem:[#allocation20_spill] sm:$0xff] }
 0x768   : > { %6082 = vrot.lane.b32.xlu1 %v5559_v26, %s8906_s19  ;;  %v6069_v48 = vpop.permute.xlu0 %6068  ;;  %8716 = vmatprep.mubr.msk.f32.mxu0 %vm4992_vm5, %v7067_v15  ;;  %v5560_v2 = vmul.f32 %v14456_v54, %v17284_v50  ;;  %v17285_v15 = vld [vmem:[#allocation53_spill] sm:$0xff] }
 0x769   : > { %v5488_v19 = vmul.f32 %v17286_v52, %v17285_v15  ;;  %v17289_v15 = vld [vmem:[#allocation175_spill] sm:$0xff] }
 0x76a   : > { %v15125_v47 = vpop.permute.xlu1 %6169  ;;  %6375 = vrot.lane.b32.xlu0 %v14504_v18, %s8912_s18  ;;  %v5489_v52 = vmul.f32 %v17289_v15, %v17197_v30  ;;  %v17290_v15 = vld [vmem:[#allocation21_spill] sm:$0xff] }
 0x76c   : > { %6594 = vrot.lane.b32.xlu1 %v17282_v49, %s8914_s14  ;;  %v6581_v61 = vpop.permute.xlu0 %6580 }
 0x76d   : > { %v7036_v36 = vsel %vm4910_vm15, %v7004_v45, %v6581_v61 }
 0x76e   : > { %v6767_v0 = vpop.permute.xlu1 %6766  ;;  %5957 = vrot.lane.b32.xlu0 %v17283_v55, %s8904_s17 }
 0x76f   : > { %v7068_v58 = vsel %vm4943_vm3, %v7036_v36, %v6767_v0 }
 0x770   : > { %6183 = vrot.lane.b32.xlu1 %v17282_v49, %s8908_s21  ;;  %v15139_v18 = vpop.permute.xlu0 %5757  ;;  %8717 = vmatmul.mubr.msk.f32.gmra.mrb[58].mxu0 %vm4992_vm5, %v7068_v58  ;;  %v17287_v58 = vld [vmem:[#allocation40_spill] sm:$0xff] }
 0x772   : > { %v15144_v10 = vpop.permute.xlu1 %5943  ;;  %6502 = vrot.lane.b32.xlu0 %v5623_v7, %s8913_s23 }
 0x774   : > { %6780 = vrot.lane.b32.xlu1 %v14526_v17, %s8915_s16  ;;  %v6362_v6 = vpop.permute.xlu0 %6361  ;;  %v6846_v17 = vsel %vm1808_vm2, %v5488_v19, %v15009_v9 }
 0x775   : > { %v6877_v0 = vsel %vm1874_vm4, %v6846_v17, %v15026_v16  ;;  %v17288_v16 = vld [vmem:[#allocation22_spill] sm:$0xff] }
 0x776   : > { %v6489_v26 = vpop.permute.xlu1 %6488  ;;  %6084 = vrot.lane.b32.xlu0 %v5560_v2, %s8906_s19  ;;  %v6909_v55 = vsel %vm1940_vm6, %v6877_v0, %v15080_v4  ;;  %v5624_v4 = vmul.f32 %v14593_v14, %v17281_v34 }
 0x777   : > { %v6941_v9 = vsel %vm2006_vm8, %v6909_v55, %v6168_v60 }
 0x778   : > { %6185 = vrot.lane.b32.xlu1 %v14619_v59, %s8908_s21  ;;  %v15154_v12 = vpop.permute.xlu0 %5759 }
 0x77a   : > { %v15158_v45 = vpop.permute.xlu1 %6070  ;;  %6596 = vrot.lane.b32.xlu0 %v14619_v59, %s8914_s14 }
 0x77c   : > { %6782 = vrot.lane.b32.xlu1 %v14638_v20, %s8915_s16  ;;  %v6364_v61 = vpop.permute.xlu0 %6363  ;;  %v15180_v20 = vld [vmem:[%s15854_s10] ss:$0 sm:$0xff] }
 0x77e   : > { %v6583_v36 = vpop.permute.xlu1 %6582  ;;  %5773 = vrot.lane.b32.xlu0 %v17282_v49, %s8902_s15  ;;  %v6973_v49 = vsel %vm4844_vm14, %v6941_v9, %v6362_v6  ;;  %v6847_v6 = vsel %vm1808_vm2, %v5489_v52, %v15076_v31 }
 0x77f   : > { %v7005_v55 = vsel %vm4877_vm0, %v6973_v49, %v6489_v26  ;;  %v6878_v9 = vsel %vm1874_vm4, %v6847_v6, %v15096_v5 }
 0x780   : > { %5959 = vrot.lane.b32.xlu1 %v17287_v58, %s8904_s17  ;;  %v15174_v7 = vpop.permute.xlu0 %5945 }
 0x782   : > { %v15183_v2 = vpop.permute.xlu1 %6171  ;;  %6377 = vrot.lane.b32.xlu0 %v17288_v16, %s8912_s18  ;;  %v7037_v16 = vsel %vm4910_vm15, %v7005_v55, %v6583_v36 }
 0x783   : > { %v8700_v19 = vpop.f32.mrb[46].mxu0 }
 0x784   : > { %v7271_v60 = vadd.f32 %v8700_v19, %v15180_v20  ;;  %6504 = vrot.lane.b32.xlu1 %v5624_v4, %s8913_s23  ;;  %v7265_v17 = vpop.f32.mrb[47].mxu0  ;;  %v6491_v0 = vpop.permute.xlu0 %6490  ;;  %v5561_v4 = vmul.f32 %v14593_v14, %v17290_v15  ;;  %v6910_v19 = vsel %vm1940_vm6, %v6878_v9, %v6069_v48  ;;  %v17291_v48 = vld [vmem:[#allocation214_spill] sm:$0xff]  ;;  %v17294_v9 = vld [vmem:[#allocation87_spill] sm:$0xff] }
 0x785   : > { %v7266_v58 = vadd.f32 %v15180_v20, %v7265_v17  ;;  %v6942_v5 = vsel %vm2006_vm8, %v6910_v19, %v15125_v47  ;;  %v17293_v47 = vld [vmem:[#allocation158_spill] sm:$0xff] }
 0x786   : > { %v6769_v30 = vpop.permute.xlu1 %6768  ;;  %5775 = vrot.lane.b32.xlu0 %v14619_v59, %s8902_s15  ;;  %v7425_v26 = vmax.f32 %v7271_v60, 0.0  ;;  %v6974_v36 = vsel %vm4844_vm14, %v6942_v5, %v6364_v61  ;;  %v17292_v60 = vld [vmem:[#allocation199_spill] sm:$0xff]  ;;  %v5625_v61 = vmul.f32 %v14597_v1, %v17284_v50  ;;  %v17297_v5 = vld [vmem:[#allocation33_spill] sm:$0xff] }
 0x787   : > { %v7424_v54 = vmax.f32 %v7266_v58, 0.0  ;;  %v7069_v31 = vsel %vm4943_vm3, %v7037_v16, %v6769_v30  ;;  %v7006_v52 = vsel %vm4877_vm0, %v6974_v36, %v6491_v0  ;;  %v17295_v30 = vld [vmem:[#allocation30_spill] sm:$0xff] }
 0x788   : > { %6086 = vrot.lane.b32.xlu1 %v5561_v4, %s8906_s19  ;;  %v6073_v49 = vpop.permute.xlu0 %6072  ;;  %8719 = vmatprep.mubr.msk.f32.mxu0 %vm4992_vm5, %v7069_v31  ;;  %v5562_v4 = vmul.f32 %v14597_v1, %v17295_v30 }
 0x789   : > { %8748 = vmatprep.mubr.msk.f32.mxu1 %vm1808_vm2, %v7424_v54 }
 0x78a   : > { %v15211_v59 = vpop.permute.xlu1 %6173  ;;  %8749 = vmatmul.mubr.msk.f32.vlgmr.msra.gmra.mrb[50].mxu1 %vm1808_vm2, %v7425_v26  ;;  %6379 = vrot.lane.b32.xlu0 %v17291_v48, %s8912_s18  ;;  %v17296_v26 = vld [vmem:[#allocation78_spill] sm:$0xff] }
 0x78b   : > { %v5490_v48 = vmul.f32 %v17297_v5, %v17296_v26 }
 0x78c   : > { %6598 = vrot.lane.b32.xlu1 %v17292_v60, %s8914_s14  ;;  %v6585_v17 = vpop.permute.xlu0 %6584 }
 0x78d   : > { %v7038_v54 = vsel %vm4910_vm15, %v7006_v52, %v6585_v17  ;;  %v6848_v52 = vsel %vm1808_vm2, %v5490_v48, %v15139_v18 }
 0x78e   : > { %v6771_v6 = vpop.permute.xlu1 %6770  ;;  %5961 = vrot.lane.b32.xlu0 %v17293_v47, %s8904_s17 }
 0x78f   : > { %v7070_v55 = vsel %vm4943_vm3, %v7038_v54, %v6771_v6  ;;  %v6879_v6 = vsel %vm1874_vm4, %v6848_v52, %v15144_v10  ;;  %v17300_v10 = vld [vmem:[#allocation28_spill] sm:$0xff] }
 0x790   : > { %6187 = vrot.lane.b32.xlu1 %v17292_v60, %s8908_s21  ;;  %v15226_v58 = vpop.permute.xlu0 %5761  ;;  %8720 = vmatmul.mubr.msk.f32.gmra.mrb[60].mxu0 %vm4992_vm5, %v7070_v55  ;;  %v6911_v47 = vsel %vm1940_vm6, %v6879_v6, %v15158_v45  ;;  %v17298_v55 = vld [vmem:[#allocation88_spill] sm:$0xff]  ;;  %v17301_v45 = vld [vmem:[#allocation34_spill] sm:$0xff] }
 0x791   : > { %v6943_v18 = vsel %vm2006_vm8, %v6911_v47, %v15183_v2  ;;  %v5491_v26 = vmul.f32 %v17301_v45, %v17229_v62 }
 0x792   : > { %v15231_v0 = vpop.permute.xlu1 %5947  ;;  %6506 = vrot.lane.b32.xlu0 %v5625_v61, %s8913_s23 }
 0x794   : > { %6784 = vrot.lane.b32.xlu1 %v17294_v9, %s8915_s16  ;;  %v6366_v16 = vpop.permute.xlu0 %6365 }
 0x796   : > { %v6493_v19 = vpop.permute.xlu1 %6492  ;;  %6088 = vrot.lane.b32.xlu0 %v5562_v4, %s8906_s19  ;;  %v5626_v4 = vmul.f32 %v17300_v10, %v17290_v15 }
 0x798   : > { %6189 = vrot.lane.b32.xlu1 %v14756_v24, %s8908_s21  ;;  %v15241_v31 = vpop.permute.xlu0 %5763 }
 0x79a   : > { %v15245_v36 = vpop.permute.xlu1 %6074  ;;  %6600 = vrot.lane.b32.xlu0 %v14756_v24, %s8914_s14 }
 0x79c   : > { %6786 = vrot.lane.b32.xlu1 %v14775_v25, %s8915_s16  ;;  %v6368_v17 = vpop.permute.xlu0 %6367  ;;  %v6975_v25 = vsel %vm4844_vm14, %v6943_v18, %v6366_v16  ;;  %v6849_v16 = vsel %vm1808_vm2, %v5491_v26, %v15154_v12 }
 0x79d   : > { %v7007_v6 = vsel %vm4877_vm0, %v6975_v25, %v6493_v19 }
 0x79e   : > { %v6587_v54 = vpop.permute.xlu1 %6586  ;;  %5777 = vrot.lane.b32.xlu0 %v17292_v60, %s8902_s15  ;;  %v17299_v60 = vld [vmem:[#allocation159_spill] sm:$0xff] }
 0x79f   : > { %v7039_v18 = vsel %vm4910_vm15, %v7007_v6, %v6587_v54 }
 0x7a0   : > { %5963 = vrot.lane.b32.xlu1 %v17298_v55, %s8904_s17  ;;  %v15261_v61 = vpop.permute.xlu0 %5949  ;;  %v6880_v55 = vsel %vm1874_vm4, %v6849_v16, %v15174_v7  ;;  %v17303_v16 = vld [vmem:[#allocation56_spill] sm:$0xff] }
 0x7a1   : > { %v6912_v45 = vsel %vm1940_vm6, %v6880_v55, %v6073_v49  ;;  %v5564_v6 = vmul.f32 %v14728_v13, %v17303_v16 }
 0x7a2   : > { %v15266_v9 = vpop.permute.xlu1 %6175  ;;  %6381 = vrot.lane.b32.xlu0 %v17299_v60, %s8912_s18  ;;  %v17302_v60 = vld [vmem:[#allocation31_spill] sm:$0xff]  ;;  %v6944_v7 = vsel %vm2006_vm8, %v6912_v45, %v15211_v59 }
 0x7a3   : > { %v8703_v5 = vpop.f32.mrb[48].mxu0  ;;  %v6976_v49 = vsel %vm4844_vm14, %v6944_v7, %v6368_v17  ;;  %v5627_v17 = vmul.f32 %v14728_v13, %v17295_v30 }
 0x7a4   : > { %v7281_v48 = vadd.f32 %v8703_v5, %v15180_v20  ;;  %6508 = vrot.lane.b32.xlu1 %v5626_v4, %s8913_s23  ;;  %v7275_v52 = vpop.f32.mrb[49].mxu0  ;;  %v6495_v2 = vpop.permute.xlu0 %6494  ;;  %v5563_v4 = vmul.f32 %v17300_v10, %v17302_v60 }
 0x7a5   : > { %v7276_v47 = vadd.f32 %v15180_v20, %v7275_v52  ;;  %v7008_v54 = vsel %vm4877_vm0, %v6976_v49, %v6495_v2 }
 0x7a6   : > { %v6773_v62 = vpop.permute.xlu1 %6772  ;;  %5779 = vrot.lane.b32.xlu0 %v14756_v24, %s8902_s15  ;;  %v7427_v19 = vmax.f32 %v7281_v48, 0.0 }
 0x7a7   : > { %v7426_v5 = vmax.f32 %v7276_v47, 0.0  ;;  %v7071_v12 = vsel %vm4943_vm3, %v7039_v18, %v6773_v62  ;;  %v17304_v18 = vld [vmem:[#allocation196_spill] sm:$0xff] }
 0x7a8   : > { %6090 = vrot.lane.b32.xlu1 %v5563_v4, %s8906_s19  ;;  %v6077_v25 = vpop.permute.xlu0 %6076  ;;  %8722 = vmatprep.mubr.msk.f32.mxu0 %vm4992_vm5, %v7071_v12  ;;  %v5492_v62 = vmul.f32 %v17304_v18, %v17238_v23  ;;  %v17308_v18 = vld [vmem:[#allocation57_spill] sm:$0xff] }
 0x7a9   : > { %8751 = vmatprep.mubr.msk.f32.mxu1 %vm1808_vm2, %v7426_v5 }
 0x7aa   : > { %v15294_v24 = vpop.permute.xlu1 %6177  ;;  %8752 = vmatmul.mubr.msk.f32.gmra.mrb[52].mxu1 %vm1808_vm2, %v7427_v19  ;;  %6383 = vrot.lane.b32.xlu0 %v14788_v42, %s8912_s18 }
 0x7ac   : > { %6602 = vrot.lane.b32.xlu1 %v14763_v11, %s8914_s14  ;;  %v6589_v26 = vpop.permute.xlu0 %6588 }
 0x7ad   : > { %v7040_v48 = vsel %vm4910_vm15, %v7008_v54, %v6589_v26 }
 0x7ae   : > { %v6775_v52 = vpop.permute.xlu1 %6774  ;;  %5965 = vrot.lane.b32.xlu0 %v14793_v41, %s8904_s17 }
 0x7af   : > { %v7072_v59 = vsel %vm4943_vm3, %v7040_v48, %v6775_v52 }
 0x7b0   : > { %6191 = vrot.lane.b32.xlu1 %v14763_v11, %s8908_s21  ;;  %v15309_v42 = vpop.permute.xlu0 %5765  ;;  %8723 = vmatmul.mubr.msk.f32.gmra.mrb[62].mxu0 %vm4992_vm5, %v7072_v59 }
 0x7b2   : > { %v15314_v2 = vpop.permute.xlu1 %5951  ;;  %6510 = vrot.lane.b32.xlu0 %v5627_v17, %s8913_s23 }
 0x7b4   : > { %6788 = vrot.lane.b32.xlu1 %v14810_v40, %s8915_s16  ;;  %v6370_v41 = vpop.permute.xlu0 %6369  ;;  %v6850_v40 = vsel %vm1808_vm2, %v5492_v62, %v15226_v58 }
 0x7b5   : > { %v6881_v12 = vsel %vm1874_vm4, %v6850_v40, %v15231_v0  ;;  %v17306_v0 = vld [vmem:[#allocation49_spill] sm:$0xff] }
 0x7b6   : > { %v6497_v47 = vpop.permute.xlu1 %6496  ;;  %6092 = vrot.lane.b32.xlu0 %v5564_v6, %s8906_s19  ;;  %v6913_v23 = vsel %vm1940_vm6, %v6881_v12, %v15245_v36  ;;  %v5628_v49 = vmul.f32 %v17306_v0, %v17302_v60  ;;  %v17307_v36 = vld [vmem:[#allocation43_spill] sm:$0xff]  ;;  %v5565_v62 = vmul.f32 %v17306_v0, %v17308_v18 }
 0x7b7   : > { %v6945_v58 = vsel %vm2006_vm8, %v6913_v23, %v15266_v9  ;;  %v5493_v54 = vmul.f32 %v17307_v36, %v17246_v53 }
 0x7b8   : > { %6193 = vrot.lane.b32.xlu1 %v14883_v57, %s8908_s21  ;;  %v15324_v55 = vpop.permute.xlu0 %5767 }
 0x7b9   : > { %v6851_v52 = vsel %vm1808_vm2, %v5493_v54, %v15241_v31 }
 0x7ba   : > { %v15328_v4 = vpop.permute.xlu1 %6078  ;;  %6604 = vrot.lane.b32.xlu0 %v14883_v57, %s8914_s14 }
 0x7bc   : > { %6790 = vrot.lane.b32.xlu1 %v14901_v56, %s8915_s16  ;;  %v6372_v45 = vpop.permute.xlu0 %6371  ;;  %v6977_v56 = vsel %vm4844_vm14, %v6945_v58, %v6370_v41  ;;  %v6882_v41 = vsel %vm1874_vm4, %v6851_v52, %v15261_v61  ;;  %v17309_v58 = vld [vmem:[#allocation201_spill] sm:$0xff] }
 0x7bd   : > { %v7009_v59 = vsel %vm4877_vm0, %v6977_v56, %v6497_v47  ;;  %v6914_v40 = vsel %vm1940_vm6, %v6882_v41, %v6077_v25 }
 0x7be   : > { %v6591_v5 = vpop.permute.xlu1 %6590  ;;  %5781 = vrot.lane.b32.xlu0 %v14763_v11, %s8902_s15  ;;  %v17305_v11 = vld [vmem:[#allocation141_spill] sm:$0xff]  ;;  %v6946_v61 = vsel %vm2006_vm8, %v6914_v40, %v15294_v24  ;;  %v17310_v24 = vld [vmem:[#allocation116_spill] sm:$0xff] }
 0x7bf   : > { %v7041_v6 = vsel %vm4910_vm15, %v7009_v59, %v6591_v5  ;;  %v6978_v25 = vsel %vm4844_vm14, %v6946_v61, %v6372_v45  ;;  %v5629_v45 = vmul.f32 %v14862_v51, %v17303_v16  ;;  %v17314_v61 = vld [vmem:[#allocation198_spill] sm:$0xff] }
 0x7c0   : > { %5967 = vrot.lane.b32.xlu1 %v14817_v33, %s8904_s17  ;;  %v15344_v19 = vpop.permute.xlu0 %5953 }
 0x7c2   : > { %v15349_v7 = vpop.permute.xlu1 %6179  ;;  %6385 = vrot.lane.b32.xlu0 %v17305_v11, %s8912_s18 }
 0x7c3   : > { %v8706_v26 = vpop.f32.mrb[50].mxu0 }
 0x7c4   : > { %v7291_v33 = vadd.f32 %v8706_v26, %v15180_v20  ;;  %6512 = vrot.lane.b32.xlu1 %v5628_v49, %s8913_s23  ;;  %v6499_v48 = vpop.permute.xlu0 %6498  ;;  %v7285_v9 = vpop.f32.mrb[51].mxu0  ;;  %v17311_v26 = vld [vmem:[#allocation64_spill] sm:$0xff] }
 0x7c5   : > { %v7286_v17 = vadd.f32 %v15180_v20, %v7285_v9  ;;  %v7010_v5 = vsel %vm4877_vm0, %v6978_v25, %v6499_v48  ;;  %v17312_v48 = vld [vmem:[#allocation79_spill] sm:$0xff] }
 0x7c6   : > { %v6777_v53 = vpop.permute.xlu1 %6776  ;;  %5783 = vrot.lane.b32.xlu0 %v14883_v57, %s8902_s15  ;;  %v7429_v47 = vmax.f32 %v7291_v33, 0.0  ;;  %v5566_v9 = vmul.f32 %v14862_v51, %v17312_v48 }
 0x7c7   : > { %v7428_v12 = vmax.f32 %v7286_v17, 0.0  ;;  %v7073_v31 = vsel %vm4943_vm3, %v7041_v6, %v6777_v53  ;;  %v17313_v17 = vld [vmem:[#allocation37_spill] sm:$0xff] }
 0x7c8   : > { %6094 = vrot.lane.b32.xlu1 %v5565_v62, %s8906_s19  ;;  %v6081_v23 = vpop.permute.xlu0 %6080  ;;  %8725 = vmatprep.mubr.msk.f32.mxu0 %vm4992_vm5, %v7073_v31  ;;  %v5494_v41 = vmul.f32 %v17313_v17, %v17259_v44 }
 0x7c9   : > { %8754 = vmatprep.mubr.msk.f32.mxu1 %vm1808_vm2, %v7428_v12 }
 0x7ca   : > { %v15377_v57 = vpop.permute.xlu1 %6181  ;;  %6387 = vrot.lane.b32.xlu0 %v14912_v29, %s8912_s18  ;;  %8755 = vmatmul.mubr.msk.f32.gmra.mrb[54].mxu1 %vm1808_vm2, %v7429_v47  ;;  %v6852_v53 = vsel %vm1808_vm2, %v5494_v41, %v15309_v42 }
 0x7cb   : > { %v6883_v12 = vsel %vm1874_vm4, %v6852_v53, %v15314_v2  ;;  %v5630_v2 = vmul.f32 %v14988_v32, %v17308_v18 }
 0x7cc   : > { %6606 = vrot.lane.b32.xlu1 %v17309_v58, %s8914_s14  ;;  %v6593_v56 = vpop.permute.xlu0 %6592  ;;  %v6915_v44 = vsel %vm1940_vm6, %v6883_v12, %v15328_v4  ;;  %v17315_v4 = vld [vmem:[#allocation104_spill] sm:$0xff] }
 0x7cd   : > { %v7042_v11 = vsel %vm4910_vm15, %v7010_v5, %v6593_v56  ;;  %v6947_v42 = vsel %vm2006_vm8, %v6915_v44, %v15349_v7  ;;  %v5495_v25 = vmul.f32 %v17315_v4, %v17268_v28 }
 0x7ce   : > { %v6779_v49 = vpop.permute.xlu1 %6778  ;;  %5969 = vrot.lane.b32.xlu0 %v17310_v24, %s8904_s17 }
 0x7cf   : > { %v7074_v36 = vsel %vm4943_vm3, %v7042_v11, %v6779_v49  ;;  %v6853_v56 = vsel %vm1808_vm2, %v5495_v25, %v15324_v55 }
 0x7d0   : > { %6195 = vrot.lane.b32.xlu1 %v17309_v58, %s8908_s21  ;;  %v15392_v29 = vpop.permute.xlu0 %5769  ;;  %8726 = vmatmul.mubr.msk.f32.gmra.mrb[64].mxu0 %vm4992_vm5, %v7074_v36  ;;  %v6884_v24 = vsel %vm1874_vm4, %v6853_v56, %v15344_v19 }
 0x7d2   : > { %v15397_v54 = vpop.permute.xlu1 %5955  ;;  %6514 = vrot.lane.b32.xlu0 %v5629_v45, %s8913_s23  ;;  %v17316_v45 = vld [vmem:[#allocation80_spill] sm:$0xff] }
 0x7d4   : > { %6792 = vrot.lane.b32.xlu1 %v17311_v26, %s8915_s16  ;;  %v6374_v33 = vpop.permute.xlu0 %6373  ;;  %v5567_v26 = vmul.f32 %v14988_v32, %v17316_v45 }
 0x7d6   : > { %v6501_v52 = vpop.permute.xlu1 %6500  ;;  %6096 = vrot.lane.b32.xlu0 %v5566_v9, %s8906_s19 }
 0x7d8   : > { %6197 = vrot.lane.b32.xlu1 %v15015_v38, %s8908_s21  ;;  %v15407_v59 = vpop.permute.xlu0 %5771 }
 0x7da   : > { %v15411_v6 = vpop.permute.xlu1 %6082  ;;  %6608 = vrot.lane.b32.xlu0 %v15015_v38, %s8914_s14 }
 0x7dc   : > { %6794 = vrot.lane.b32.xlu1 %v15032_v43, %s8915_s16  ;;  %v6376_v62 = vpop.permute.xlu0 %6375  ;;  %v6979_v43 = vsel %vm4844_vm14, %v6947_v42, %v6374_v33  ;;  %v6916_v33 = vsel %vm1940_vm6, %v6884_v24, %v6081_v23  ;;  %v17318_v42 = vld [vmem:[#allocation115_spill] sm:$0xff] }
 0x7dd   : > { %v7011_v11 = vsel %vm4877_vm0, %v6979_v43, %v6501_v52  ;;  %v6948_v19 = vsel %vm2006_vm8, %v6916_v33, %v15377_v57  ;;  %v5632_v33 = vmul.f32 %v14981_v37, %v17316_v45 }
 0x7de   : > { %v6595_v40 = vpop.permute.xlu1 %6594  ;;  %5785 = vrot.lane.b32.xlu0 %v17309_v58, %s8902_s15  ;;  %v6980_v32 = vsel %vm4844_vm14, %v6948_v19, %v6376_v62  ;;  %v17317_v62 = vld [vmem:[#allocation213_spill] sm:$0xff] }
 0x7df   : > { %v7043_v36 = vsel %vm4910_vm15, %v7011_v11, %v6595_v40  ;;  %v5631_v12 = vmul.f32 %v17317_v62, %v17312_v48  ;;  %v5568_v43 = vmul.f32 %v17317_v62, %v17318_v42 }
 0x7e0   : > { %5971 = vrot.lane.b32.xlu1 %v14943_v39, %s8904_s17  ;;  %v15427_v31 = vpop.permute.xlu0 %5957 }
 0x7e2   : > { %v15432_v47 = vpop.permute.xlu1 %6183  ;;  %6389 = vrot.lane.b32.xlu0 %v17314_v61, %s8912_s18 }
 0x7e3   : > { %v8709_v5 = vpop.f32.mrb[52].mxu0 }
 0x7e4   : > { %v7301_v39 = vadd.f32 %v8709_v5, %v15180_v20  ;;  %6516 = vrot.lane.b32.xlu1 %v5630_v2, %s8913_s23  ;;  %v6503_v58 = vpop.permute.xlu0 %6502  ;;  %v7295_v7 = vpop.f32.mrb[53].mxu0  ;;  %v17319_v2 = vld [vmem:[#allocation110_spill] sm:$0xff] }
 0x7e5   : > { %v7296_v49 = vadd.f32 %v15180_v20, %v7295_v7  ;;  %v7012_v23 = vsel %vm4877_vm0, %v6980_v32, %v6503_v58  ;;  %v5496_v4 = vmul.f32 %v17319_v2, %v17281_v34  ;;  %v17320_v58 = vld [vmem:[#allocation3_spill] sm:$0xff]  ;;  %v17321_v34 = vrot.slane %v14981_v37, 1 }
 0x7e6   : > { %v6781_v28 = vpop.permute.xlu1 %6780  ;;  %5787 = vrot.lane.b32.xlu0 %v15015_v38, %s8902_s15  ;;  %v7431_v52 = vmax.f32 %v7301_v39, 0.0 }
 0x7e7   : > { %v7430_v9 = vmax.f32 %v7296_v49, 0.0  ;;  %v7075_v55 = vsel %vm4943_vm3, %v7043_v36, %v6781_v28  ;;  %v6553_v7 = vsel %vm3518_vm11, %v17321_v34, %v17320_v58  ;;  %v17322_v49 = vld [vmem:[#allocation130_spill] sm:$0xff]  ;;  %v5498_v34 = vmul.f32 %v17278_v27, %v17290_v15 }
 0x7e8   : > { %6098 = vrot.lane.b32.xlu1 %v5567_v26, %s8906_s19  ;;  %v6085_v17 = vpop.permute.xlu0 %6084  ;;  %8728 = vmatprep.mubr.msk.f32.mxu0 %vm4992_vm5, %v7075_v55 }
 0x7e9   : > { %8757 = vmatprep.mubr.msk.f32.mxu1 %vm1808_vm2, %v7430_v9 }
 0x7ea   : > { %v15460_v38 = vpop.permute.xlu1 %6185  ;;  %6391 = vrot.lane.b32.xlu0 %v15040_v21, %s8912_s18  ;;  %8758 = vmatmul.mubr.msk.f32.gmra.mrb[56].mxu1 %vm1808_vm2, %v7431_v52 }
 0x7ec   : > { %6610 = vrot.lane.b32.xlu1 %v15035_v22, %s8914_s14  ;;  %v6597_v41 = vpop.permute.xlu0 %6596 }
 0x7ed   : > { %v7044_v53 = vsel %vm4910_vm15, %v7012_v23, %v6597_v41 }
 0x7ee   : > { %v6783_v40 = vpop.permute.xlu1 %6782  ;;  %5973 = vrot.lane.b32.xlu0 %v15051_v35, %s8904_s17 }
 0x7ef   : > { %v7076_v57 = vsel %vm4943_vm3, %v7044_v53, %v6783_v40  ;;  %v17325_v40 = vld [vmem:[#allocation41_spill] sm:$0xff] }
 0x7f0   : > { %6199 = vrot.lane.b32.xlu1 %v15035_v22, %s8908_s21  ;;  %v15475_v21 = vpop.permute.xlu0 %5773  ;;  %8729 = vmatmul.mubr.msk.f32.gmra.mrb[66].mxu0 %vm4992_vm5, %v7076_v57  ;;  %v17326_v57 = vrot.slane %v17325_v40, 2 }
 0x7f2   : > { %v15480_v44 = vpop.permute.xlu1 %5959  ;;  %6518 = vrot.lane.b32.xlu0 %v5631_v12, %s8913_s23 }
 0x7f4   : > { %6796 = vrot.lane.b32.xlu1 %v15059_v3, %s8915_s16  ;;  %v6378_v35 = vpop.permute.xlu0 %6377  ;;  %v6854_v3 = vsel %vm1808_vm2, %v5496_v4, %v15392_v29 }
 0x7f6   : > { %v6505_v61 = vpop.permute.xlu1 %6504  ;;  %6100 = vrot.lane.b32.xlu0 %v5568_v43, %s8906_s19 }
 0x7f8   : > { %6393 = vrot.lane.b32.xlu1 %v15064_v63, %s8912_s18  ;;  %v15490_v22 = vpop.permute.xlu0 %5775  ;;  %v6885_v63 = vsel %vm1874_vm4, %v6854_v3, %v15397_v54  ;;  %v17323_v54 = vld [vmem:[#allocation81_spill] sm:$0xff] }
 0x7f9   : > { %v6917_v56 = vsel %vm1940_vm6, %v6885_v63, %v15411_v6  ;;  %v5497_v24 = vmul.f32 %v17323_v54, %v17284_v50 }
 0x7fa   : > { %v6087_v25 = vpop.permute.xlu1 %6086  ;;  %6612 = vrot.lane.b32.xlu0 %v15056_v8, %s8914_s14 }
 0x7fc   : > { %6395 = vrot.lane.b32.xlu1 %v15067_v46, %s8912_s18  ;;  %v6380_v5 = vpop.permute.xlu0 %6379  ;;  %v6949_v46 = vsel %vm2006_vm8, %v6917_v56, %v15432_v47  ;;  %v6855_v47 = vsel %vm1808_vm2, %v5497_v24, %v15407_v59  ;;  %v17324_v59 = vld [vmem:[#allocation38_spill] sm:$0xff]  ;;  %s15627_s18 = scalar_lea.vmem %s15857_s13, %s8319_s22 }
 0x7fd   : > { %v6981_v11 = vsel %vm4844_vm14, %v6949_v46, %v6378_v35  ;;  %v6886_v52 = vsel %vm1874_vm4, %v6855_v47, %v15427_v31  ;;  %v6739_v31 = vsel %vm3712_vm13, %v17326_v57, %v17324_v59 }
 0x7fe   : > { %v6599_v39 = vpop.permute.xlu1 %6598  ;;  %6201 = vrot.lane.b32.xlu0 %v15056_v8, %s8908_s21  ;;  %v7013_v9 = vsel %vm4877_vm0, %v6981_v11, %v6505_v61  ;;  %v6918_v32 = vsel %vm1940_vm6, %v6886_v52, %v6085_v17 }
 0x7ff   : > { %v7045_v50 = vsel %vm4910_vm15, %v7013_v9, %v6599_v39  ;;  %v6950_v62 = vsel %vm2006_vm8, %v6918_v32, %v15460_v38 }
 0x800   : > { %6614 = vrot.lane.b32.xlu1 %v6553_v7, %s8914_s14  ;;  %v5962_v29 = vpop.permute.xlu0 %5961  ;;  %v6982_v17 = vsel %vm4844_vm14, %v6950_v62, %v6380_v5  ;;  %v6856_v5 = vsel %vm1808_vm2, %v5498_v34, %v15475_v21 }
 0x801   : > { %v6887_v11 = vsel %vm1874_vm4, %v6856_v5, %v15480_v44 }
 0x802   : > { %v6188_v8 = vpop.permute.xlu1 %6187  ;;  %6798 = vrot.lane.b32.xlu0 %v17322_v49, %s8915_s16  ;;  %v6919_v49 = vsel %vm1940_vm6, %v6887_v11, %v6087_v25  ;;  %v5501_v11 = vmul.f32 %v14597_v1, %v17303_v16 }
 0x803   : > { %v8712_v36 = vpop.f32.mrb[54].mxu0  ;;  %v6951_v24 = vsel %vm2006_vm8, %v6919_v49, %v6188_v8 }
 0x804   : > { %v7311_v28 = vadd.f32 %v8712_v36, %v15180_v20  ;;  %v6507_v26 = vpop.permute.xlu0 %6506  ;;  %v7305_v6 = vpop.f32.mrb[55].mxu0 }
 0x805   : > { %v7306_v55 = vadd.f32 %v15180_v20, %v7305_v6  ;;  %v7014_v35 = vsel %vm4877_vm0, %v6982_v17, %v6507_v26  ;;  %v17327_v26 = vld [vmem:[#allocation180_spill] sm:$0xff] }
 0x806   : > { %v6785_v19 = vpop.permute.xlu1 %6784  ;;  %6520 = vrot.lane.b32.xlu0 %v5632_v33, %s8913_s23  ;;  %v7433_v41 = vmax.f32 %v7311_v28, 0.0  ;;  %v5499_v27 = vmul.f32 %v17327_v26, %v17295_v30 }
 0x807   : > { %v7432_v23 = vmax.f32 %v7306_v55, 0.0  ;;  %v7077_v37 = vsel %vm4943_vm3, %v7045_v50, %v6785_v19 }
 0x808   : > { %v6089_v53 = vpop.permute.xlu0 %6088  ;;  %8731 = vmatprep.mubr.msk.f32.mxu0 %vm4992_vm5, %v7077_v37  ;;  %v6857_v47 = vsel %vm1808_vm2, %v5499_v27, %v15490_v22 }
 0x809   : > { %8760 = vmatprep.mubr.msk.f32.mxu1 %vm1808_vm2, %v7432_v23  ;;  %v6888_v8 = vsel %vm1874_vm4, %v6857_v47, %v5962_v29 }
 0x80a   : > { %v6190_v12 = vpop.permute.xlu1 %6189  ;;  %6800 = vrot.lane.b32.xlu0 %v6739_v31, %s8915_s16  ;;  %8761 = vmatmul.mubr.msk.f32.gmra.mrb[58].mxu1 %vm1808_vm2, %v7433_v41  ;;  %v6920_v52 = vsel %vm1940_vm6, %v6888_v8, %v6089_v53 }
 0x80b   : > { %v6952_v22 = vsel %vm2006_vm8, %v6920_v52, %v6190_v12 }
 0x80c   : > { %v6601_v43 = vpop.permute.xlu0 %6600 }
 0x80d   : > { %v7046_v61 = vsel %vm4910_vm15, %v7014_v35, %v6601_v43  ;;  %v5500_v35 = vmul.f32 %v14593_v14, %v17302_v60 }
 0x80e   : > { %v6787_v2 = vpop.permute.xlu1 %6786 }
 0x80f   : > { %v7078_v4 = vsel %vm4943_vm3, %v7046_v61, %v6787_v2 }
 0x810   : > { %v5778_v3 = vpop.permute.xlu0 %5777  ;;  %8732 = vmatmul.mubr.msk.f32.gmra.mrb[68].mxu0 %vm4992_vm5, %v7078_v4 }
 0x811   : > { %v6858_v61 = vsel %vm1808_vm2, %v5500_v35, %v5778_v3 }
 0x812   : > { %v5964_v39 = vpop.permute.xlu1 %5963 }
 0x814   : > { %v6382_v38 = vpop.permute.xlu0 %6381 }
 0x815   : > { %v6983_v36 = vsel %vm4844_vm14, %v6951_v24, %v6382_v38  ;;  %v6889_v38 = vsel %vm1874_vm4, %v6858_v61, %v5964_v39 }
 0x816   : > { %v6509_v63 = vpop.permute.xlu1 %6508 }
 0x817   : > { %v7015_v44 = vsel %vm4877_vm0, %v6983_v36, %v6509_v63 }
 0x818   : > { %v5780_v58 = vpop.permute.xlu0 %5779 }
 0x819   : > { %v6859_v24 = vsel %vm1808_vm2, %v5501_v11, %v5780_v58 }
 0x81a   : > { %v6091_v7 = vpop.permute.xlu1 %6090 }
 0x81b   : > { %v6921_v63 = vsel %vm1940_vm6, %v6889_v38, %v6091_v7  ;;  %v17329_v38 = vld [vmem:[#allocation7_spill] sm:$0xff] }
 0x81c   : > { %v6384_v56 = vpop.permute.xlu0 %6383 }
 0x81d   : > { %v6984_v29 = vsel %vm4844_vm14, %v6952_v22, %v6384_v56  ;;  %v15614_v22 = vld [vmem:[%s15856_s12] ss:$0 sm:$0xff] }
 0x81e   : > { %v6603_v46 = vpop.permute.xlu1 %6602 }
 0x81f   : > { %v7047_v9 = vsel %vm4910_vm15, %v7015_v44, %v6603_v46 }
 0x820   : > { %v5966_v54 = vpop.permute.xlu0 %5965 }
 0x821   : > { %v6890_v36 = vsel %vm1874_vm4, %v6859_v24, %v5966_v54 }
 0x822   : > { %v6192_v28 = vpop.permute.xlu1 %6191 }
 0x823   : > { %v8715_v15 = vpop.f32.mrb[56].mxu0  ;;  %v6953_v5 = vsel %vm2006_vm8, %v6921_v63, %v6192_v28 }
 0x824   : > { %v7321_v6 = vadd.f32 %v8715_v15, %v15180_v20  ;;  %v6511_v21 = vpop.permute.xlu0 %6510  ;;  %v7315_v33 = vpop.f32.mrb[57].mxu0 }
 0x825   : > { %v7316_v25 = vadd.f32 %v15180_v20, %v7315_v33  ;;  %v7016_v37 = vsel %vm4877_vm0, %v6984_v29, %v6511_v21 }
 0x826   : > { %v6789_v55 = vpop.permute.xlu1 %6788  ;;  %v7435_v19 = vmax.f32 %v7321_v6, 0.0 }
 0x827   : > { %v7434_v30 = vmax.f32 %v7316_v25, 0.0  ;;  %v7079_v50 = vsel %vm4943_vm3, %v7047_v9, %v6789_v55 }
 0x828   : > { %v6093_v32 = vpop.permute.xlu0 %6092  ;;  %8734 = vmatprep.mubr.msk.f32.mxu0 %vm4992_vm5, %v7079_v50 }
 0x829   : > { %8763 = vmatprep.mubr.msk.f32.mxu1 %vm1808_vm2, %v7434_v30  ;;  %v6922_v27 = vsel %vm1940_vm6, %v6890_v36, %v6093_v32  ;;  %v5503_v36 = vmul.f32 %v14728_v13, %v17312_v48  ;;  %v5504_v13 = vmul.f32 %v17306_v0, %v17316_v45 }
 0x82a   : > { %v6194_v23 = vpop.permute.xlu1 %6193  ;;  %8764 = vmatmul.mubr.msk.f32.gmra.mrb[60].mxu1 %vm1808_vm2, %v7435_v19  ;;  %v5502_v19 = vmul.f32 %v17300_v10, %v17308_v18 }
 0x82b   : > { %v6954_v58 = vsel %vm2006_vm8, %v6922_v27, %v6194_v23 }
 0x82c   : > { %v6605_v41 = vpop.permute.xlu0 %6604 }
 0x82d   : > { %v7048_v53 = vsel %vm4910_vm15, %v7016_v37, %v6605_v41 }
 0x82e   : > { %v6791_v59 = vpop.permute.xlu1 %6790 }
 0x82f   : > { %v7080_v40 = vsel %vm4943_vm3, %v7048_v53, %v6791_v59 }
 0x830   : > { %v5782_v57 = vpop.permute.xlu0 %5781  ;;  %8735 = vmatmul.mubr.msk.f32.gmra.mrb[70].mxu0 %vm4992_vm5, %v7080_v40 }
 0x831   : > { %v6860_v23 = vsel %vm1808_vm2, %v5502_v19, %v5782_v57 }
 0x832   : > { %v5968_v31 = vpop.permute.xlu1 %5967 }
 0x833   : > { %v6891_v40 = vsel %vm1874_vm4, %v6860_v23, %v5968_v31  ;;  %v17328_v31 = vld [vmem:[#allocation62_spill] sm:$0xff] }
 0x834   : > { %v6386_v62 = vpop.permute.xlu0 %6385 }
 0x835   : > { %v6985_v56 = vsel %vm4844_vm14, %v6953_v5, %v6386_v62 }
 0x836   : > { %v6513_v17 = vpop.permute.xlu1 %6512 }
 0x837   : > { %v7017_v39 = vsel %vm4877_vm0, %v6985_v56, %v6513_v17 }
 0x838   : > { %v15575_v12 = vpop.permute.xlu0 %5783 }
 0x83a   : > { %v6095_v43 = vpop.permute.xlu1 %6094 }
 0x83b   : > { %v6923_v10 = vsel %vm1940_vm6, %v6891_v40, %v6095_v43 }
 0x83c   : > { %v6388_v2 = vpop.permute.xlu0 %6387 }
 0x83d   : > { %v6986_v54 = vsel %vm4844_vm14, %v6954_v58, %v6388_v2 }
 0x83e   : > { %v6607_v4 = vpop.permute.xlu1 %6606 }
 0x83f   : > { %v7049_v28 = vsel %vm4910_vm15, %v7017_v39, %v6607_v4 }
 0x840   : > { %v15582_v34 = vpop.permute.xlu0 %5969 }
 0x842   : > { %v6196_v46 = vpop.permute.xlu1 %6195 }
 0x843   : > { %v8718_v14 = vpop.f32.mrb[58].mxu0  ;;  %v6955_v35 = vsel %vm2006_vm8, %v6923_v10, %v6196_v46  ;;  %v17332_v10 = vld [vmem:[#allocation25_spill] sm:$0xff] }
 0x844   : > { %v7331_v60 = vadd.f32 %v8718_v14, %v15180_v20  ;;  %v6515_v3 = vpop.permute.xlu0 %6514  ;;  %v7325_v49 = vpop.f32.mrb[59].mxu0 }
 0x845   : > { %v7326_v7 = vadd.f32 %v15180_v20, %v7325_v49  ;;  %v7018_v33 = vsel %vm4877_vm0, %v6986_v54, %v6515_v3 }
 0x846   : > { %v6793_v26 = vpop.permute.xlu1 %6792  ;;  %v7437_v16 = vmax.f32 %v7331_v60, 0.0 }
 0x847   : > { %v7436_v15 = vmax.f32 %v7326_v7, 0.0  ;;  %v7081_v1 = vsel %vm4943_vm3, %v7049_v28, %v6793_v26  ;;  %v6861_v28 = vsel %vm1808_vm2, %v5503_v36, %v15575_v12  ;;  %v17336_v36 = vld [vmem:[#allocation6_spill] sm:$0xff] }
 0x848   : > { %v6097_v6 = vpop.permute.xlu0 %6096  ;;  %8737 = vmatprep.mubr.msk.f32.mxu0 %vm4992_vm5, %v7081_v1  ;;  %v6892_v27 = vsel %vm1874_vm4, %v6861_v28, %v15582_v34 }
 0x849   : > { %8766 = vmatprep.mubr.msk.f32.mxu1 %vm1808_vm2, %v7436_v15  ;;  %v5505_v15 = vmul.f32 %v14862_v51, %v17318_v42  ;;  %v6924_v1 = vsel %vm1940_vm6, %v6892_v27, %v6097_v6 }
 0x84a   : > { %v15599_v21 = vpop.permute.xlu1 %6197  ;;  %8767 = vmatmul.mubr.msk.f32.gmra.mrb[62].mxu1 %vm1808_vm2, %v7437_v16 }
 0x84b   : > { %v6956_v12 = vsel %vm2006_vm8, %v6924_v1, %v15599_v21 }
 0x84c   : > { %v6609_v47 = vpop.permute.xlu0 %6608 }
 0x84d   : > { %v7050_v44 = vsel %vm4910_vm15, %v7018_v33, %v6609_v47 }
 0x84e   : > { %v6795_v25 = vpop.permute.xlu1 %6794 }
 0x84f   : > { %v7082_v8 = vsel %vm4943_vm3, %v7050_v44, %v6795_v25 }
 0x850   : > { %v5786_v9 = vpop.permute.xlu0 %5785  ;;  %8738 = vmatmul.mubr.msk.f32.gmra.mrb[72].mxu0 %vm4992_vm5, %v7082_v8 }
 0x851   : > { %v6862_v34 = vsel %vm1808_vm2, %v5504_v13, %v5786_v9 }
 0x852   : > { %v15607_v55 = vpop.permute.xlu1 %5971 }
 0x853   : > { %v6893_v45 = vsel %vm1874_vm4, %v6862_v34, %v15607_v55  ;;  %v17331_v55 = vld [vmem:[#allocation102_spill] sm:$0xff] }
 0x854   : > { %v6390_v52 = vpop.permute.xlu0 %6389 }
 0x855   : > { %v6987_v61 = vsel %vm4844_vm14, %v6955_v35, %v6390_v52 }
 0x856   : > { %v6517_v30 = vpop.permute.xlu1 %6516 }
 0x857   : > { %v7019_v11 = vsel %vm4877_vm0, %v6987_v61, %v6517_v30  ;;  %v17330_v30 = vld [vmem:[#allocation32_spill] sm:$0xff]  ;;  %v17333_v61 = vld [vmem:[#allocation2_spill] sm:$0xff] }
 0x858   : > { %v5788_v50 = vpop.permute.xlu0 %5787 }
 0x859   : > { %v6863_v58 = vsel %vm1808_vm2, %v5505_v15, %v5788_v50 }
 0x85a   : > { %v6099_v32 = vpop.permute.xlu1 %6098 }
 0x85b   : > { %v6925_v8 = vsel %vm1940_vm6, %v6893_v45, %v6099_v32 }
 0x85c   : > { %v6392_v29 = vpop.permute.xlu0 %6391 }
 0x85d   : > { %v8750_v37 = vpop.f32.mrb[50].mxu1  ;;  %v6988_v51 = vsel %vm4844_vm14, %v6956_v12, %v6392_v29 }
 0x85e   : > { %v7632_v41 = vadd.f32 %v8750_v37, %v15614_v22  ;;  %v6611_v53 = vpop.permute.xlu1 %6610  ;;  %v7626_v59 = vpop.f32.mrb[51].mxu1 }
 0x85f   : > { %v7627_v62 = vadd.f32 %v15614_v22, %v7626_v59  ;;  %v7051_v60 = vsel %vm4910_vm15, %v7019_v11, %v6611_v53 }
 0x860   : > { %v7786_v18 = vmax.f32 %v7632_v41, 0.0  ;;  %v5974_v17 = vpop.permute.xlu0 %5973 }
 0x861   : > { %v7785_v57 = vmax.f32 %v7627_v62, 0.0  ;;  %v6894_v48 = vsel %vm1874_vm4, %v6863_v58, %v5974_v17 }
 0x862   : > { %v7818_v2 = vadd.f32 %v7786_v18, %v17328_v31  ;;  %v6200_v4 = vpop.permute.xlu1 %6199 }
 0x863   : > { %v7817_v43 = vadd.f32 %v7785_v57, %v17329_v38  ;;  %v8721_v63 = vpop.f32.mrb[60].mxu0  ;;  %v6957_v9 = vsel %vm2006_vm8, %v6925_v8, %v6200_v4 }
 0x864   : > { %7850 = vst.msk [vmem:[%s15627_s18 + $0x8] sm:$0xff] %vm1775_vm1, %v7818_v2  ;;  %v7341_v5 = vadd.f32 %v8721_v63, %v15180_v20  ;;  %v6519_v56 = vpop.permute.xlu0 %6518  ;;  %v7335_v46 = vpop.f32.mrb[61].mxu0  ;;  %v17334_v2 = vld [vmem:[#allocation63_spill] sm:$0xff] }
 0x865   : > { %7849 = vst.msk [vmem:[%s15627_s18] sm:$0xff] %vm1775_vm1, %v7817_v43  ;;  %v7336_v14 = vadd.f32 %v15180_v20, %v7335_v46  ;;  %v7020_v6 = vsel %vm4877_vm0, %v6988_v51, %v6519_v56  ;;  %v17337_v51 = vld [vmem:[#allocation10_spill] sm:$0xff] }
 0x866   : > { %v6797_v3 = vpop.permute.xlu1 %6796  ;;  %v7439_v39 = vmax.f32 %v7341_v5, 0.0 }
 0x867   : > { %v7438_v49 = vmax.f32 %v7336_v14, 0.0  ;;  %v7083_v24 = vsel %vm4943_vm3, %v7051_v60, %v6797_v3 }
 0x868   : > { %v6101_v7 = vpop.permute.xlu0 %6100  ;;  %8740 = vmatprep.mubr.msk.f32.mxu0 %vm4992_vm5, %v7083_v24 }
 0x869   : > { %8769 = vmatprep.mubr.msk.f32.mxu1 %vm1808_vm2, %v7438_v49  ;;  %v6926_v33 = vsel %vm1940_vm6, %v6894_v48, %v6101_v7 }
 0x86a   : > { %8770 = vmatmul.mubr.msk.f32.gmra.mrb[64].mxu1 %vm1808_vm2, %v7439_v39  ;;  %v6394_v16 = vpop.permute.xlu1 %6393  ;;  %v17335_v39 = vld [vmem:[#allocation66_spill] sm:$0xff] }
 0x86b   : > { %v6989_v52 = vsel %vm4844_vm14, %v6957_v9, %v6394_v16 }
 0x86c   : > { %v6613_v26 = vpop.permute.xlu0 %6612 }
 0x86d   : > { %v7052_v47 = vsel %vm4910_vm15, %v7020_v6, %v6613_v26  ;;  %v17338_v6 = vld [vmem:[#allocation67_spill] sm:$0xff] }
 0x86e   : > { %v6396_v44 = vpop.permute.xlu1 %6395 }
 0x870   : > { %v6202_v54 = vpop.permute.xlu0 %6201 }
 0x871   : > { %v6958_v42 = vsel %vm2006_vm8, %v6926_v33, %v6202_v54 }
 0x872   : > { %v6990_v25 = vsel %vm4844_vm14, %v6958_v42, %v6396_v44  ;;  %v6615_v29 = vpop.permute.xlu1 %6614 }
 0x873   : > { %v7022_v50 = vsel %vm4877_vm0, %v6990_v25, %v17330_v30 }
 0x874   : > { %v6799_v0 = vpop.permute.xlu0 %6798  ;;  %v7054_v37 = vsel %vm4910_vm15, %v7022_v50, %v17331_v55 }
 0x875   : > { %v7084_v21 = vsel %vm4943_vm3, %v7052_v47, %v6799_v0  ;;  %v7086_v18 = vsel %vm4943_vm3, %v7054_v37, %v17332_v10  ;;  %v17340_v37 = vld [vmem:[#allocation11_spill] sm:$0xff] }
 0x876   : > { %8741 = vmatmul.mubr.msk.f32.gmra.mrb[74].mxu0 %vm4992_vm5, %v7084_v21 }
 0x878   : > { %v6521_v19 = vpop.permute.xlu0 %6520 }
 0x879   : > { %v7021_v23 = vsel %vm4877_vm0, %v6989_v52, %v6521_v19 }
 0x87a   : > { %v7053_v41 = vsel %vm4910_vm15, %v7021_v23, %v6615_v29  ;;  %v17339_v29 = vld [vmem:[#allocation68_spill] sm:$0xff] }
 0x87c   : > { %v6801_v32 = vpop.permute.xlu0 %6800 }
 0x87d   : > { %v7085_v53 = vsel %vm4943_vm3, %v7053_v41, %v6801_v32  ;;  %v8753_v59 = vpop.f32.mrb[52].mxu1  ;;  %v15729_v32 = vld [vmem:[%s15854_s10] ss:$0 sm:$0xff] }
 0x87e   : > { %v7642_v40 = vadd.f32 %v8753_v59, %v15614_v22  ;;  %8743 = vmatprep.mubr.msk.f32.mxu0 %vm4992_vm5, %v7085_v53  ;;  %v7636_v62 = vpop.f32.mrb[53].mxu1 }
 0x87f   : > { %v7637_v17 = vadd.f32 %v15614_v22, %v7636_v62  ;;  %8744 = vmatmul.mubr.msk.f32.gmra.mrb[76].mxu0 %vm4992_vm5, %v7086_v18 }
 0x880   : > { %v7788_v35 = vmax.f32 %v7642_v40, 0.0 }
 0x881   : > { %v7787_v57 = vmax.f32 %v7637_v17, 0.0 }
 0x882   : > { %v7820_v31 = vadd.f32 %v7788_v35, %v17333_v61 }
 0x883   : > { %v7819_v4 = vadd.f32 %v7787_v57, %v17334_v2  ;;  %v8724_v38 = vpop.f32.mrb[62].mxu0  ;;  %v17341_v2 = vld [vmem:[#allocation12_spill] sm:$0xff] }
 0x884   : > { %7852 = vst.msk [vmem:[%s15627_s18 + $0x18] sm:$0xff] %vm1775_vm1, %v7820_v31  ;;  %v7351_v43 = vadd.f32 %v8724_v38, %v15180_v20  ;;  %v7345_v63 = vpop.f32.mrb[63].mxu0  ;;  %v17342_v38 = vld [vmem:[#allocation69_spill] sm:$0xff] }
 0x885   : > { %7851 = vst.msk [vmem:[%s15627_s18 + $0x10] sm:$0xff] %vm1775_vm1, %v7819_v4  ;;  %v7346_v5 = vadd.f32 %v15180_v20, %v7345_v63 }
 0x886   : > { %v7441_v46 = vmax.f32 %v7351_v43, 0.0 }
 0x887   : > { %v7440_v56 = vmax.f32 %v7346_v5, 0.0 }
 0x889   : > { %8772 = vmatprep.mubr.msk.f32.mxu1 %vm1808_vm2, %v7440_v56 }
 0x88a   : > { %8773 = vmatmul.mubr.msk.f32.gmra.mrb[66].mxu1 %vm1808_vm2, %v7441_v46 }
 0x89d   : > { %v8756_v11 = vpop.f32.mrb[54].mxu1 }
 0x89e   : > { %v7652_v14 = vadd.f32 %v8756_v11, %v15614_v22  ;;  %v7646_v60 = vpop.f32.mrb[55].mxu1 }
 0x89f   : > { %v7647_v3 = vadd.f32 %v15614_v22, %v7646_v60 }
 0x8a0   : > { %v7790_v49 = vmax.f32 %v7652_v14, 0.0 }
 0x8a1   : > { %v7789_v24 = vmax.f32 %v7647_v3, 0.0 }
 0x8a2   : > { %v7822_v7 = vadd.f32 %v7790_v49, %v17335_v39 }
 0x8a3   : > { %v7821_v28 = vadd.f32 %v7789_v24, %v17336_v36  ;;  %v8727_v26 = vpop.f32.mrb[64].mxu0  ;;  %v17343_v36 = vld [vmem:[#allocation70_spill] sm:$0xff] }
 0x8a4   : > { %7854 = vst.msk [vmem:[%s15627_s18 + $0x28] sm:$0xff] %vm1775_vm1, %v7822_v7  ;;  %v7361_v27 = vadd.f32 %v8727_v26, %v15180_v20  ;;  %v7355_v15 = vpop.f32.mrb[65].mxu0  ;;  %v17344_v26 = vld [vmem:[#allocation13_spill] sm:$0xff] }
 0x8a5   : > { %7853 = vst.msk [vmem:[%s15627_s18 + $0x20] sm:$0xff] %vm1775_vm1, %v7821_v28  ;;  %v7356_v1 = vadd.f32 %v15180_v20, %v7355_v15 }
 0x8a6   : > { %v7443_v58 = vmax.f32 %v7361_v27, 0.0 }
 0x8a7   : > { %v7442_v16 = vmax.f32 %v7356_v1, 0.0 }
 0x8a9   : > { %8775 = vmatprep.mubr.msk.f32.mxu1 %vm1808_vm2, %v7442_v16 }
 0x8aa   : > { %8776 = vmatmul.mubr.msk.f32.gmra.mrb[68].mxu1 %vm1808_vm2, %v7443_v58 }
 0x8bd   : > { %v8759_v13 = vpop.f32.mrb[56].mxu1 }
 0x8be   : > { %v7662_v48 = vadd.f32 %v8759_v13, %v15614_v22  ;;  %v7656_v54 = vpop.f32.mrb[57].mxu1 }
 0x8bf   : > { %v7657_v12 = vadd.f32 %v15614_v22, %v7656_v54 }
 0x8c0   : > { %v7792_v33 = vmax.f32 %v7662_v48, 0.0 }
 0x8c1   : > { %v7791_v34 = vmax.f32 %v7657_v12, 0.0 }
 0x8c2   : > { %v7824_v42 = vadd.f32 %v7792_v33, %v17337_v51 }
 0x8c3   : > { %v7823_v47 = vadd.f32 %v7791_v34, %v17338_v6  ;;  %v8730_v44 = vpop.f32.mrb[66].mxu0  ;;  %v17345_v6 = vld [vmem:[#allocation14_spill] sm:$0xff] }
 0x8c4   : > { %7856 = vst.msk [vmem:[%s15627_s18 + $0x38] sm:$0xff] %vm1775_vm1, %v7824_v42  ;;  %v7371_v0 = vadd.f32 %v8730_v44, %v15180_v20  ;;  %v7365_v45 = vpop.f32.mrb[67].mxu0  ;;  %v17346_v44 = vld [vmem:[#allocation71_spill] sm:$0xff] }
 0x8c5   : > { %7855 = vst.msk [vmem:[%s15627_s18 + $0x30] sm:$0xff] %vm1775_vm1, %v7823_v47  ;;  %v7366_v25 = vadd.f32 %v15180_v20, %v7365_v45 }
 0x8c6   : > { %v7445_v8 = vmax.f32 %v7371_v0, 0.0 }
 0x8c7   : > { %v7444_v21 = vmax.f32 %v7366_v25, 0.0 }
 0x8c9   : > { %8778 = vmatprep.mubr.msk.f32.mxu1 %vm1808_vm2, %v7444_v21 }
 0x8ca   : > { %8779 = vmatmul.mubr.msk.f32.gmra.mrb[70].mxu1 %vm1808_vm2, %v7445_v8 }
 0x8dd   : > { %v8762_v9 = vpop.f32.mrb[58].mxu1 }
 0x8de   : > { %v7672_v52 = vadd.f32 %v8762_v9, %v15614_v22  ;;  %v7666_v30 = vpop.f32.mrb[59].mxu1 }
 0x8df   : > { %v7667_v50 = vadd.f32 %v15614_v22, %v7666_v30 }
 0x8e0   : > { %v7794_v19 = vmax.f32 %v7672_v52, 0.0 }
 0x8e1   : > { %v7793_v23 = vmax.f32 %v7667_v50, 0.0 }
 0x8e2   : > { %v7826_v55 = vadd.f32 %v7794_v19, %v17339_v29 }
 0x8e3   : > { %v7825_v41 = vadd.f32 %v7793_v23, %v17340_v37  ;;  %v8733_v20 = vpop.f32.mrb[68].mxu0 }
 0x8e4   : > { %7858 = vst.msk [vmem:[%s15627_s18 + $0x48] sm:$0xff] %vm1775_vm1, %v7826_v55  ;;  %v7381_v53 = vadd.f32 %v15729_v32, %v8733_v20  ;;  %v7375_v59 = vpop.f32.mrb[69].mxu0 }
 0x8e5   : > { %7857 = vst.msk [vmem:[%s15627_s18 + $0x40] sm:$0xff] %vm1775_vm1, %v7825_v41  ;;  %v7376_v40 = vadd.f32 %v15729_v32, %v7375_v59 }
 0x8e6   : > { %v7447_v10 = vmax.f32 %v7381_v53, 0.0 }
 0x8e7   : > { %v7446_v62 = vmax.f32 %v7376_v40, 0.0 }
 0x8e9   : > { %8781 = vmatprep.mubr.msk.f32.mxu1 %vm1808_vm2, %v7446_v62  ;;  %v17347_v62 = vld [vmem:[#allocation72_spill] sm:$0xff] }
 0x8ea   : > { %8782 = vmatmul.mubr.msk.f32.gmra.mrb[72].mxu1 %vm1808_vm2, %v7447_v10 }
 0x8fd   : > { %v8765_v18 = vpop.f32.mrb[60].mxu1 }
 0x8fe   : > { %v7682_v17 = vadd.f32 %v8765_v18, %v15614_v22  ;;  %v7676_v35 = vpop.f32.mrb[61].mxu1  ;;  %v17348_v18 = vld [vmem:[#allocation15_spill] sm:$0xff] }
 0x8ff   : > { %v7677_v57 = vadd.f32 %v15614_v22, %v7676_v35 }
 0x900   : > { %v7796_v61 = vmax.f32 %v7682_v17, 0.0 }
 0x901   : > { %v7795_v31 = vmax.f32 %v7677_v57, 0.0 }
 0x902   : > { %v7828_v4 = vadd.f32 %v7796_v61, %v17341_v2 }
 0x903   : > { %v7827_v43 = vadd.f32 %v7795_v31, %v17342_v38  ;;  %v8736_v63 = vpop.f32.mrb[70].mxu0 }
 0x904   : > { %7860 = vst.msk [vmem:[%s15627_s18 + $0x58] sm:$0xff] %vm1775_vm1, %v7828_v4  ;;  %v7391_v5 = vadd.f32 %v15729_v32, %v8736_v63  ;;  %v7385_v56 = vpop.f32.mrb[71].mxu0  ;;  %v17349_v4 = vld [vmem:[#allocation90_spill] sm:$0xff] }
 0x905   : > { %7859 = vst.msk [vmem:[%s15627_s18 + $0x50] sm:$0xff] %vm1775_vm1, %v7827_v43  ;;  %v7386_v46 = vadd.f32 %v15729_v32, %v7385_v56  ;;  %v17350_v43 = vld [vmem:[#allocation89_spill] sm:$0xff] }
 0x906   : > { %v7449_v14 = vmax.f32 %v7391_v5, 0.0 }
 0x907   : > { %v7448_v11 = vmax.f32 %v7386_v46, 0.0 }
 0x909   : > { %8784 = vmatprep.mubr.msk.f32.mxu1 %vm1808_vm2, %v7448_v11 }
 0x90a   : > { %8785 = vmatmul.mubr.msk.f32.gmra.mrb[74].mxu1 %vm1808_vm2, %v7449_v14 }
 0x91d   : > { %v8768_v60 = vpop.f32.mrb[62].mxu1 }
 0x91e   : > { %v7692_v3 = vadd.f32 %v8768_v60, %v15614_v22  ;;  %v7686_v49 = vpop.f32.mrb[63].mxu1 }
 0x91f   : > { %v7687_v24 = vadd.f32 %v15614_v22, %v7686_v49 }
 0x920   : > { %v7798_v39 = vmax.f32 %v7692_v3, 0.0  ;;  %v17351_v3 = vld [vmem:[#allocation5_spill] sm:$0xff] }
 0x921   : > { %v7797_v7 = vmax.f32 %v7687_v24, 0.0  ;;  %v17352_v24 = vld [vmem:[#allocation4_spill] sm:$0xff] }
 0x922   : > { %v7830_v28 = vadd.f32 %v7798_v39, %v17343_v36 }
 0x923   : > { %v7829_v27 = vadd.f32 %v7797_v7, %v17344_v26  ;;  %v8739_v15 = vpop.f32.mrb[72].mxu0 }
 0x924   : > { %7862 = vst.msk [vmem:[%s15627_s18 + $0x68] sm:$0xff] %vm1775_vm1, %v7830_v28  ;;  %v7401_v1 = vadd.f32 %v15729_v32, %v8739_v15  ;;  %v7395_v16 = vpop.f32.mrb[73].mxu0 }
 0x925   : > { %7861 = vst.msk [vmem:[%s15627_s18 + $0x60] sm:$0xff] %vm1775_vm1, %v7829_v27  ;;  %v7396_v58 = vadd.f32 %v15729_v32, %v7395_v16 }
 0x926   : > { %v7451_v48 = vmax.f32 %v7401_v1, 0.0  ;;  %v17353_v1 = vld [vmem:[#allocation19_spill] sm:$0xff] }
 0x927   : > { %v7450_v13 = vmax.f32 %v7396_v58, 0.0  ;;  %v17354_v58 = vld [vmem:[#allocation18_spill] sm:$0xff] }
 0x929   : > { %8787 = vmatprep.mubr.msk.f32.mxu1 %vm1808_vm2, %v7450_v13 }
 0x92a   : > { %8788 = vmatmul.mubr.msk.f32.gmra.mrb[76].mxu1 %vm1808_vm2, %v7451_v48 }
 0x93d   : > { %v8771_v54 = vpop.f32.mrb[64].mxu1 }
 0x93e   : > { %v7702_v12 = vadd.f32 %v8771_v54, %v15614_v22  ;;  %v7696_v33 = vpop.f32.mrb[65].mxu1 }
 0x93f   : > { %v7697_v34 = vadd.f32 %v15614_v22, %v7696_v33 }
 0x940   : > { %v7800_v51 = vmax.f32 %v7702_v12, 0.0 }
 0x941   : > { %v7799_v42 = vmax.f32 %v7697_v34, 0.0 }
 0x942   : > { %v7832_v47 = vadd.f32 %v7800_v51, %v17345_v6 }
 0x943   : > { %v7831_v0 = vadd.f32 %v7799_v42, %v17346_v44  ;;  %v17355_v42 = vld [vmem:[#allocation45_spill] sm:$0xff] }
 0x944   : > { %7864 = vst.msk [vmem:[%s15627_s18 + $0x78] sm:$0xff] %vm1775_vm1, %v7832_v47  ;;  %v17356_v47 = vld [vmem:[#allocation44_spill] sm:$0xff] }
 0x945   : > { %7863 = vst.msk [vmem:[%s15627_s18 + $0x70] sm:$0xff] %vm1775_vm1, %v7831_v0 }
 0x949   : > { %v8742_v45 = vpop.f32.mrb[74].mxu0 }
 0x94a   : > { %v7411_v25 = vadd.f32 %v15729_v32, %v8742_v45  ;;  %v7405_v21 = vpop.f32.mrb[75].mxu0 }
 0x94b   : > { %v7406_v8 = vadd.f32 %v15729_v32, %v7405_v21 }
 0x94c   : > { %v7453_v52 = vmax.f32 %v7411_v25, 0.0 }
 0x94d   : > { %v7452_v9 = vmax.f32 %v7406_v8, 0.0 }
 0x94f   : > { %8790 = vmatprep.mubr.msk.f32.mxu1 %vm1808_vm2, %v7452_v9 }
 0x950   : > { %8791 = vmatmul.mubr.msk.f32.gmra.mrb[78].mxu1 %vm1808_vm2, %v7453_v52  ;;  %v17357_v52 = vld [vmem:[#allocation74_spill] sm:$0xff] }
 0x952   : > { %v8745_v30 = vpop.f32.mrb[76].mxu0 }
 0x953   : > { %v7421_v50 = vadd.f32 %v15729_v32, %v8745_v30  ;;  %v7415_v19 = vpop.f32.mrb[77].mxu0 }
 0x954   : > { %v7416_v23 = vadd.f32 %v15729_v32, %v7415_v19 }
 0x955   : > { %v7455_v55 = vmax.f32 %v7421_v50, 0.0  ;;  %v17358_v50 = vld [vmem:[#allocation73_spill] sm:$0xff] }
 0x956   : > { %v7454_v29 = vmax.f32 %v7416_v23, 0.0 }
 0x958   : > { %8793 = vmatprep.mubr.msk.f32.mxu1 %vm1808_vm2, %v7454_v29 }
 0x959   : > { %8794 = vmatmul.mubr.msk.f32.gmra.mrb[80].mxu1 %vm1808_vm2, %v7455_v55 }
 0x95d   : > { %v8774_v37 = vpop.f32.mrb[66].mxu1 }
 0x95e   : > { %v7712_v41 = vadd.f32 %v8774_v37, %v15614_v22  ;;  %v7706_v20 = vpop.f32.mrb[67].mxu1 }
 0x95f   : > { %v7707_v53 = vadd.f32 %v15614_v22, %v7706_v20 }
 0x960   : > { %v7802_v59 = vmax.f32 %v7712_v41, 0.0 }
 0x961   : > { %v7801_v40 = vmax.f32 %v7707_v53, 0.0  ;;  %v17359_v53 = vld [vmem:[#allocation92_spill] sm:$0xff] }
 0x962   : > { %v7834_v10 = vadd.f32 %v7802_v59, %v17347_v62 }
 0x963   : > { %v7833_v32 = vadd.f32 %v7801_v40, %v17348_v18  ;;  %v17360_v40 = vld [vmem:[#allocation91_spill] sm:$0xff] }
 0x964   : > { %7866 = vst.msk [vmem:[%s15627_s18 + $0x88] sm:$0xff] %vm1775_vm1, %v7834_v10 }
 0x965   : > { %7865 = vst.msk [vmem:[%s15627_s18 + $0x80] sm:$0xff] %vm1775_vm1, %v7833_v32 }
 0x97d   : > { %v8777_v17 = vpop.f32.mrb[68].mxu1 }
 0x97e   : > { %v7722_v35 = vadd.f32 %v8777_v17, %v15614_v22  ;;  %v7716_v57 = vpop.f32.mrb[69].mxu1 }
 0x97f   : > { %v7717_v61 = vadd.f32 %v15614_v22, %v7716_v57 }
 0x980   : > { %v7804_v31 = vmax.f32 %v7722_v35, 0.0 }
 0x981   : > { %v7803_v2 = vmax.f32 %v7717_v61, 0.0  ;;  %v17361_v61 = vld [vmem:[#allocation9_spill] sm:$0xff] }
 0x982   : > { %v7836_v38 = vadd.f32 %v7804_v31, %v17349_v4 }
 0x983   : > { %v7835_v63 = vadd.f32 %v7803_v2, %v17350_v43  ;;  %v17362_v2 = vld [vmem:[#allocation8_spill] sm:$0xff] }
 0x984   : > { %7868 = vst.msk [vmem:[%s15627_s18 + $0x98] sm:$0xff] %vm1775_vm1, %v7836_v38 }
 0x985   : > { %7867 = vst.msk [vmem:[%s15627_s18 + $0x90] sm:$0xff] %vm1775_vm1, %v7835_v63 }
 0x99d   : > { %v8780_v5 = vpop.f32.mrb[70].mxu1 }
 0x99e   : > { %v7732_v56 = vadd.f32 %v8780_v5, %v15614_v22  ;;  %v7726_v46 = vpop.f32.mrb[71].mxu1 }
 0x99f   : > { %v7727_v11 = vadd.f32 %v15614_v22, %v7726_v46 }
 0x9a0   : > { %v7806_v14 = vmax.f32 %v7732_v56, 0.0 }
 0x9a1   : > { %v7805_v60 = vmax.f32 %v7727_v11, 0.0 }
 0x9a2   : > { %v7838_v49 = vadd.f32 %v7806_v14, %v17351_v3 }
 0x9a3   : > { %v7837_v39 = vadd.f32 %v7805_v60, %v17352_v24 }
 0x9a4   : > { %7870 = vst.msk [vmem:[%s15627_s18 + $0xa8] sm:$0xff] %vm1775_vm1, %v7838_v49 }
 0x9a5   : > { %7869 = vst.msk [vmem:[%s15627_s18 + $0xa0] sm:$0xff] %vm1775_vm1, %v7837_v39 }
 0x9bd   : > { %v8783_v7 = vpop.f32.mrb[72].mxu1 }
 0x9be   : > { %v7742_v36 = vadd.f32 %v8783_v7, %v15614_v22  ;;  %v7736_v28 = vpop.f32.mrb[73].mxu1 }
 0x9bf   : > { %v7737_v26 = vadd.f32 %v15614_v22, %v7736_v28 }
 0x9c0   : > { %v7808_v27 = vmax.f32 %v7742_v36, 0.0 }
 0x9c1   : > { %v7807_v15 = vmax.f32 %v7737_v26, 0.0 }
 0x9c2   : > { %v7840_v16 = vadd.f32 %v7808_v27, %v17353_v1 }
 0x9c3   : > { %v7839_v13 = vadd.f32 %v7807_v15, %v17354_v58 }
 0x9c4   : > { %7872 = vst.msk [vmem:[%s15627_s18 + $0xb8] sm:$0xff] %vm1775_vm1, %v7840_v16 }
 0x9c5   : > { %7871 = vst.msk [vmem:[%s15627_s18 + $0xb0] sm:$0xff] %vm1775_vm1, %v7839_v13 }
 0x9dd   : > { %v8786_v48 = vpop.f32.mrb[74].mxu1 }
 0x9de   : > { %v7752_v54 = vadd.f32 %v8786_v48, %v15614_v22  ;;  %v7746_v12 = vpop.f32.mrb[75].mxu1 }
 0x9df   : > { %v7747_v33 = vadd.f32 %v15614_v22, %v7746_v12 }
 0x9e0   : > { %v7810_v34 = vmax.f32 %v7752_v54, 0.0 }
 0x9e1   : > { %v7809_v51 = vmax.f32 %v7747_v33, 0.0 }
 0x9e2   : > { %v7842_v6 = vadd.f32 %v7810_v34, %v17355_v42 }
 0x9e3   : > { %v7841_v44 = vadd.f32 %v7809_v51, %v17356_v47 }
 0x9e4   : > { %7874 = vst.msk [vmem:[%s15627_s18 + $0xc8] sm:$0xff] %vm1775_vm1, %v7842_v6 }
 0x9e5   : > { %7873 = vst.msk [vmem:[%s15627_s18 + $0xc0] sm:$0xff] %vm1775_vm1, %v7841_v44 }
 0x9fd   : > { %v8789_v0 = vpop.f32.mrb[76].mxu1 }
 0x9fe   : > { %v7762_v45 = vadd.f32 %v8789_v0, %v15614_v22  ;;  %v7756_v25 = vpop.f32.mrb[77].mxu1 }
 0x9ff   : > { %v7757_v21 = vadd.f32 %v15614_v22, %v7756_v25 }
 0xa00   : > { %v7812_v8 = vmax.f32 %v7762_v45, 0.0 }
 0xa01   : > { %v7811_v9 = vmax.f32 %v7757_v21, 0.0 }
 0xa02   : > { %v7844_v30 = vadd.f32 %v7812_v8, %v17357_v52 }
 0xa03   : > { %v7843_v19 = vadd.f32 %v7811_v9, %v17358_v50 }
 0xa04   : > { %7876 = vst.msk [vmem:[%s15627_s18 + $0xd8] sm:$0xff] %vm1775_vm1, %v7844_v30 }
 0xa05   : > { %7875 = vst.msk [vmem:[%s15627_s18 + $0xd0] sm:$0xff] %vm1775_vm1, %v7843_v19 }
 0xa23   : > { %v8792_v23 = vpop.f32.mrb[78].mxu1 }
 0xa24   : > { %v7772_v29 = vadd.f32 %v8792_v23, %v15614_v22  ;;  %v7766_v55 = vpop.f32.mrb[79].mxu1 }
 0xa25   : > { %v7767_v37 = vadd.f32 %v15614_v22, %v7766_v55 }
 0xa26   : > { %v7814_v41 = vmax.f32 %v7772_v29, 0.0 }
 0xa27   : > { %v7813_v20 = vmax.f32 %v7767_v37, 0.0 }
 0xa28   : > { %v7846_v59 = vadd.f32 %v7814_v41, %v17359_v53 }
 0xa29   : > { %v7845_v62 = vadd.f32 %v7813_v20, %v17360_v40 }
 0xa2a   : > { %7878 = vst.msk [vmem:[%s15627_s18 + $0xe8] sm:$0xff] %vm1775_vm1, %v7846_v59 }
 0xa2b   : > { %7877 = vst.msk [vmem:[%s15627_s18 + $0xe0] sm:$0xff] %vm1775_vm1, %v7845_v62 }
 0xa2c   : > { %v8795_v10 = vpop.f32.mrb[80].mxu1 }
 0xa2d   : > { %v7782_v18 = vadd.f32 %v8795_v10, %v15614_v22  ;;  %v7776_v32 = vpop.f32.mrb[81].mxu1 }
 0xa2e   : > { %v7777_v17 = vadd.f32 %v15614_v22, %v7776_v32 }
 0xa2f   : > { %v7816_v35 = vmax.f32 %v7782_v18, 0.0 }
 0xa30   : > { %v7815_v57 = vmax.f32 %v7777_v17, 0.0 }
 0xa31   : > { %v7848_v31 = vadd.f32 %v7816_v35, %v17361_v61 }
 0xa32   : > { %v7847_v4 = vadd.f32 %v7815_v57, %v17362_v2 }
 0xa33   : > { %7880 = vst.msk [vmem:[%s15627_s18 + $0xf8] sm:$0xff] %vm1775_vm1, %v7848_v31 }
 0xa34   : > { %7879 = vst.msk [vmem:[%s15627_s18 + $0xf0] sm:$0xff] %vm1775_vm1, %v7847_v4 }
 0xa35 PF: > { %s23_s25 = sadd.s32 1, %s8899_s25  }
 0xa36   : > { %p20_p4 = scmp.ge.s32.totalorder %s23_s25, 4  }
 0xa38   :  { %22 = sbr.rel (!%p20_p4) target bundleno = 1 (0x1), region = 107 }

</bundles_post_ra>
